<compile_context>
chip_gen: v7x
topology: tpu7x:2x2x1
jax: 0.10.0
libtpu: 0.0.40
codegen_flags: <defaults>
</compile_context>

<pallas_src>
import jax
import jax.numpy as jnp
from jax.experimental import pallas as pl
from jax.experimental.pallas import tpu as pltpu


K_IN = 128 * 120   # 15360 flattened input features
H1 = 512
H2 = 512
N_OUT = 4
TK = 5120          # 15360 / 5120 = 3 K-steps (multiples of 128)


def _fused_flatnet_kernel(x_ref, w1_ref, s1_ref, b1_ref, w2_ref, b2_ref,
                          w3_ref, b3_ref, o_ref, acc_ref):
    """Grid axis 0 walks the K reduction of layer 1; layers 2/3 run at k==last."""
    k = pl.program_id(0)

    @pl.when(k == 0)
    def _():
        acc_ref[...] = jnp.zeros_like(acc_ref)

    # Layer-1 partial matmul: x(bf16) @ dequant-to-bf16(int8 W1) -> f32 accumulate.
    # int8 values are exactly representable in bf16; per-channel scale is applied once
    # in the epilogue, so the accumulator holds the un-scaled integer-weight product.
    acc_ref[...] += jnp.dot(
        x_ref[...].astype(jnp.bfloat16),
        w1_ref[...].astype(jnp.bfloat16),
        preferred_element_type=jnp.float32,
    )

    @pl.when(k == pl.num_programs(0) - 1)
    def _():
        # Layer 1 epilogue: per-output-channel dequant + bias + ReLU.
        h1 = jnp.maximum(acc_ref[...] * s1_ref[...] + b1_ref[...], 0.0)
        # Layer 2: VMEM-resident bf16 weights, f32 accumulation, bias + ReLU.
        h2 = jnp.dot(h1.astype(jnp.bfloat16), w2_ref[...],
                     preferred_element_type=jnp.float32)
        h2 = jnp.maximum(h2 + b2_ref[...], 0.0)
        # Layer 3: tiny f32 head (4 output lanes; masked store is negligible here).
        y = jnp.dot(h2, w3_ref[...], preferred_element_type=jnp.float32)
        o_ref[...] = (y + b3_ref[...]).astype(o_ref.dtype)


def flat_net_forward(x, params):
    """Forward pass of flatNet. x: (B, 128, 120) f32 -> (B, 4) f32."""
    B = x.shape[0]
    h = jnp.reshape(x, (B, -1))               # nn.Flatten (row-major), glue only
    (w1_q, s1, b1), (w2, b2), (w3, b3) = params
    M, K = h.shape
    assert K == K_IN and K % TK == 0

    return pl.pallas_call(
        _fused_flatnet_kernel,
        out_shape=jax.ShapeDtypeStruct((M, N_OUT), jnp.float32),
        grid_spec=pltpu.PrefetchScalarGridSpec(
            num_scalar_prefetch=0,
            grid=(K // TK,),
            in_specs=[
                pl.BlockSpec((M, TK), lambda k: (0, k)),      # x tile (streamed)
                pl.BlockSpec((TK, H1), lambda k: (k, 0)),     # W1 tile (streamed, int8)
                pl.BlockSpec((1, H1), lambda k: (0, 0)),      # W1 dequant scale (resident)
                pl.BlockSpec((1, H1), lambda k: (0, 0)),      # b1 (resident)
                pl.BlockSpec((H1, H2), lambda k: (0, 0)),     # W2 (resident, bf16)
                pl.BlockSpec((1, H2), lambda k: (0, 0)),      # b2 (resident)
                pl.BlockSpec((H2, N_OUT), lambda k: (0, 0)),  # W3 (resident, f32)
                pl.BlockSpec((1, N_OUT), lambda k: (0, 0)),   # b3 (resident)
            ],
            out_specs=pl.BlockSpec((M, N_OUT), lambda k: (0, 0)),
            scratch_shapes=[pltpu.VMEM((M, H1), jnp.float32)],
        ),
        compiler_params=pltpu.CompilerParams(
            dimension_semantics=("arbitrary",),   # K reduction is sequential
            vmem_limit_bytes=32 * 1024 * 1024,    # explicit budget; safe on v5e..v7x
        ),
    )(h, w1_q, s1, b1, w2, b2, w3, b3)


def _quantize_int8_per_channel(w):
    """Symmetric per-output-channel int8 quantization of an (in, out) weight."""
    amax = jnp.max(jnp.abs(w), axis=0, keepdims=True)           # (1, out)
    scale = jnp.maximum(amax, 1e-8) / 127.0                     # (1, out) f32
    q = jnp.clip(jnp.round(w / scale), -127.0, 127.0).astype(jnp.int8)
    return q, scale.astype(jnp.float32)


def init_params(key):
    """Deterministic synthetic parameters, PyTorch nn.Linear init ranges.

    PyTorch weights are (out, in); we store the transpose (in, out).
    W1 is stored int8 + per-channel f32 scale (streamed), W2 bf16 (resident),
    W3 and all biases stay f32."""
    dims = [(K_IN, H1), (H1, H2), (H2, N_OUT)]
    raw = []
    for fan_in, fan_out in dims:
        kw, kb, key = jax.random.split(key, 3)
        bound = 1.0 / jnp.sqrt(jnp.float32(fan_in))
        w_t = jax.random.uniform(
            kw, (fan_in, fan_out), jnp.float32, minval=-bound, maxval=bound)
        b = jax.random.uniform(
            kb, (1, fan_out), jnp.float32, minval=-bound, maxval=bound)
        raw.append((w_t, b))

    (w1, b1), (w2, b2), (w3, b3) = raw
    w1_q, s1 = _quantize_int8_per_channel(w1)
    return ((w1_q, s1, b1), (w2.astype(jnp.bfloat16), b2), (w3, b3))


if __name__ == "__main__":
    key = jax.random.PRNGKey(0)
    kx, kp = jax.random.split(key)

    # Input consistent with Linear(128*120, ...): (batch, 128, 120)
    B = 2
    x = jax.random.normal(kx, (B, 128, 120), dtype=jnp.float32)
    params = init_params(kp)

    y = flat_net_forward(x, params)
    y = jax.block_until_ready(y)

    # Reference in plain JAX, following the same int8/bf16 path as the kernel.
    h = jnp.reshape(x, (B, -1))
    (w1_q, s1, b1), (w2, b2), (w3, b3) = params
    r = jnp.dot(h.astype(jnp.bfloat16), w1_q.astype(jnp.bfloat16),
                preferred_element_type=jnp.float32) * s1 + b1
    r = jnp.maximum(r, 0.0)
    r = jnp.maximum(
        jnp.dot(r.astype(jnp.bfloat16), w2, preferred_element_type=jnp.float32) + b2,
        0.0,
    )
    r = jnp.dot(r, w3, preferred_element_type=jnp.float32) + b3

    assert y.shape == (B, 4)
    assert jnp.allclose(y, r, atol=5e-3, rtol=5e-3)

    print("KERNEL_OK")
</pallas_src>

<mosaic_0001>
module attributes {stable_mosaic.version = 11 : i64} {
  func.func @_fused_flatnet_kernel(%arg0: i32, %arg1: memref<2x5120xf32, #tpu.memory_space<vmem>>, %arg2: memref<5120x512xi8, #tpu.memory_space<vmem>>, %arg3: memref<1x512xf32, #tpu.memory_space<vmem>>, %arg4: memref<1x512xf32, #tpu.memory_space<vmem>>, %arg5: memref<512x512xbf16, #tpu.memory_space<vmem>>, %arg6: memref<1x512xf32, #tpu.memory_space<vmem>>, %arg7: memref<512x4xf32, #tpu.memory_space<vmem>>, %arg8: memref<1x4xf32, #tpu.memory_space<vmem>>, %arg9: memref<2x4xf32, #tpu.memory_space<vmem>>, %arg10: memref<2x512xf32, #tpu.memory_space<vmem>>) attributes {dimension_semantics = [#tpu.dimension_semantics<arbitrary>], iteration_bounds = array<i64: 3>, scalar_prefetch = 0 : i64, scratch_operands = 1 : i64, tpu.core_type = #tpu.core_type<tc>, window_params = [{transform_indices = @transform_0, window_bounds = array<i64: 2, 5120>}, {transform_indices = @transform_1, window_bounds = array<i64: 5120, 512>}, {pipeline_mode = #tpu.pipeline_mode<synchronous>, transform_indices = @transform_2, window_bounds = array<i64: 1, 512>}, {pipeline_mode = #tpu.pipeline_mode<synchronous>, transform_indices = @transform_3, window_bounds = array<i64: 1, 512>}, {pipeline_mode = #tpu.pipeline_mode<synchronous>, transform_indices = @transform_4, window_bounds = array<i64: 512, 512>}, {pipeline_mode = #tpu.pipeline_mode<synchronous>, transform_indices = @transform_5, window_bounds = array<i64: 1, 512>}, {pipeline_mode = #tpu.pipeline_mode<synchronous>, transform_indices = @transform_6, window_bounds = array<i64: 512, 4>}, {pipeline_mode = #tpu.pipeline_mode<synchronous>, transform_indices = @transform_7, window_bounds = array<i64: 1, 4>}, {pipeline_mode = #tpu.pipeline_mode<synchronous>, transform_indices = @transform_8, window_bounds = array<i64: 2, 4>}]} {
    %c0_i32 = arith.constant 0 : i32
    %0 = arith.cmpi eq, %arg0, %c0_i32 : i32
    %1 = arith.extui %0 : i1 to i32
    %c0_i32_0 = arith.constant 0 : i32
    %2 = arith.cmpi ne, %1, %c0_i32_0 : i32
    scf.if %2 {
      %cst_9 = arith.constant 0.000000e+00 : f32
      %14 = vector.broadcast %cst_9 : f32 to vector<2x512xf32>
      %c0_10 = arith.constant 0 : index
      %c0_11 = arith.constant 0 : index
      %15 = vector.load %arg10[%c0_10, %c0_11] : memref<2x512xf32, #tpu.memory_space<vmem>>, vector<2x512xf32>
      tpu.vector_store %arg10[%c0_10, %c0_11], %14 {strides = array<i32>} : memref<2x512xf32, #tpu.memory_space<vmem>>, vector<2x512xf32>,
    } else {
    }
    %c0 = arith.constant 0 : index
    %c0_1 = arith.constant 0 : index
    %3 = vector.load %arg10[%c0, %c0_1] : memref<2x512xf32, #tpu.memory_space<vmem>>, vector<2x512xf32>
    %c0_2 = arith.constant 0 : index
    %c0_3 = arith.constant 0 : index
    %4 = vector.load %arg1[%c0_2, %c0_3] : memref<2x5120xf32, #tpu.memory_space<vmem>>, vector<2x5120xf32>
    %5 = arith.truncf %4 : vector<2x5120xf32> to vector<2x5120xbf16>
    %c0_4 = arith.constant 0 : index
    %c0_5 = arith.constant 0 : index
    %6 = vector.load %arg2[%c0_4, %c0_5] : memref<5120x512xi8, #tpu.memory_space<vmem>>, vector<5120x512xi8>
    %7 = arith.sitofp %6 : vector<5120x512xi8> to vector<5120x512xbf16>
    %cst = arith.constant dense<0.000000e+00> : vector<2x512xf32>
    %8 = tpu.matmul %5, %7, %cst {dimension_numbers = #tpu.dot_dimension_numbers<[1], [0], [0], [1], [0, 0, 1, 1], [], []>} : vector<2x5120xbf16>, vector<5120x512xbf16>, vector<2x512xf32> -> vector<2x512xf32>
    %9 = arith.addf %3, %8 : vector<2x512xf32>
    %c0_6 = arith.constant 0 : index
    %c0_7 = arith.constant 0 : index
    %10 = vector.load %arg10[%c0_6, %c0_7] : memref<2x512xf32, #tpu.memory_space<vmem>>, vector<2x512xf32>
    tpu.vector_store %arg10[%c0_6, %c0_7], %9 {strides = array<i32>} : memref<2x512xf32, #tpu.memory_space<vmem>>, vector<2x512xf32>,
    %c2_i32 = arith.constant 2 : i32
    %11 = arith.cmpi eq, %arg0, %c2_i32 : i32
    %12 = arith.extui %11 : i1 to i32
    %c0_i32_8 = arith.constant 0 : i32
    %13 = arith.cmpi ne, %12, %c0_i32_8 : i32
    scf.if %13 {
      %c0_9 = arith.constant 0 : index
      %c0_10 = arith.constant 0 : index
      %14 = vector.load %arg10[%c0_9, %c0_10] : memref<2x512xf32, #tpu.memory_space<vmem>>, vector<2x512xf32>
      %c0_11 = arith.constant 0 : index
      %c0_12 = arith.constant 0 : index
      %15 = vector.load %arg3[%c0_11, %c0_12] : memref<1x512xf32, #tpu.memory_space<vmem>>, vector<1x512xf32>
      %16 = vector.broadcast %15 : vector<1x512xf32> to vector<2x512xf32>
      %17 = arith.mulf %14, %16 : vector<2x512xf32>
      %c0_13 = arith.constant 0 : index
      %c0_14 = arith.constant 0 : index
      %18 = vector.load %arg4[%c0_13, %c0_14] : memref<1x512xf32, #tpu.memory_space<vmem>>, vector<1x512xf32>
      %19 = vector.broadcast %18 : vector<1x512xf32> to vector<2x512xf32>
      %20 = arith.addf %17, %19 : vector<2x512xf32>
      %cst_15 = arith.constant 0.000000e+00 : f32
      %21 = vector.broadcast %cst_15 : f32 to vector<2x512xf32>
      %22 = arith.maximumf %20, %21 : vector<2x512xf32>
      %23 = arith.truncf %22 : vector<2x512xf32> to vector<2x512xbf16>
      %c0_16 = arith.constant 0 : index
      %c0_17 = arith.constant 0 : index
      %24 = vector.load %arg5[%c0_16, %c0_17] : memref<512x512xbf16, #tpu.memory_space<vmem>>, vector<512x512xbf16>
      %cst_18 = arith.constant dense<0.000000e+00> : vector<2x512xf32>
      %25 = tpu.matmul %23, %24, %cst_18 {dimension_numbers = #tpu.dot_dimension_numbers<[1], [0], [0], [1], [0, 0, 1, 1], [], []>} : vector<2x512xbf16>, vector<512x512xbf16>, vector<2x512xf32> -> vector<2x512xf32>
      %c0_19 = arith.constant 0 : index
      %c0_20 = arith.constant 0 : index
      %26 = vector.load %arg6[%c0_19, %c0_20] : memref<1x512xf32, #tpu.memory_space<vmem>>, vector<1x512xf32>
      %27 = vector.broadcast %26 : vector<1x512xf32> to vector<2x512xf32>
      %28 = arith.addf %25, %27 : vector<2x512xf32>
      %cst_21 = arith.constant 0.000000e+00 : f32
      %29 = vector.broadcast %cst_21 : f32 to vector<2x512xf32>
      %30 = arith.maximumf %28, %29 : vector<2x512xf32>
      %c0_22 = arith.constant 0 : index
      %c0_23 = arith.constant 0 : index
      %31 = vector.load %arg7[%c0_22, %c0_23] : memref<512x4xf32, #tpu.memory_space<vmem>>, vector<512x4xf32>
      %cst_24 = arith.constant dense<0.000000e+00> : vector<2x4xf32>
      %32 = tpu.matmul %30, %31, %cst_24 {dimension_numbers = #tpu.dot_dimension_numbers<[1], [0], [0], [1], [0, 0, 1, 1], [], []>} : vector<2x512xf32>, vector<512x4xf32>, vector<2x4xf32> -> vector<2x4xf32>
      %c0_25 = arith.constant 0 : index
      %c0_26 = arith.constant 0 : index
      %33 = vector.load %arg8[%c0_25, %c0_26] : memref<1x4xf32, #tpu.memory_space<vmem>>, vector<1x4xf32>
      %34 = vector.broadcast %33 : vector<1x4xf32> to vector<2x4xf32>
      %35 = arith.addf %32, %34 : vector<2x4xf32>
      %c0_27 = arith.constant 0 : index
      %c0_28 = arith.constant 0 : index
      %36 = vector.load %arg9[%c0_27, %c0_28] : memref<2x4xf32, #tpu.memory_space<vmem>>, vector<2x4xf32>
      tpu.vector_store %arg9[%c0_27, %c0_28], %35 {strides = array<i32>} : memref<2x4xf32, #tpu.memory_space<vmem>>, vector<2x4xf32>,
    } else {
    }
    return
  }
  func.func @transform_0(%arg0: i32) -> (i32, i32) {
    %c0_i32 = arith.constant 0 : i32
    %c0_i32_0 = arith.constant 0 : i32
    return %c0_i32, %arg0 : i32, i32
  }
  func.func @transform_1(%arg0: i32) -> (i32, i32) {
    %c0_i32 = arith.constant 0 : i32
    %c0_i32_0 = arith.constant 0 : i32
    return %arg0, %c0_i32 : i32, i32
  }
  func.func @transform_2(%arg0: i32) -> (i32, i32) {
    %c0_i32 = arith.constant 0 : i32
    %c0_i32_0 = arith.constant 0 : i32
    %c0_i32_1 = arith.constant 0 : i32
    return %c0_i32, %c0_i32_0 : i32, i32
  }
  func.func @transform_3(%arg0: i32) -> (i32, i32) {
    %c0_i32 = arith.constant 0 : i32
    %c0_i32_0 = arith.constant 0 : i32
    %c0_i32_1 = arith.constant 0 : i32
    return %c0_i32, %c0_i32_0 : i32, i32
  }
  func.func @transform_4(%arg0: i32) -> (i32, i32) {
    %c0_i32 = arith.constant 0 : i32
    %c0_i32_0 = arith.constant 0 : i32
    %c0_i32_1 = arith.constant 0 : i32
    return %c0_i32, %c0_i32_0 : i32, i32
  }
  func.func @transform_5(%arg0: i32) -> (i32, i32) {
    %c0_i32 = arith.constant 0 : i32
    %c0_i32_0 = arith.constant 0 : i32
    %c0_i32_1 = arith.constant 0 : i32
    return %c0_i32, %c0_i32_0 : i32, i32
  }
  func.func @transform_6(%arg0: i32) -> (i32, i32) {
    %c0_i32 = arith.constant 0 : i32
    %c0_i32_0 = arith.constant 0 : i32
    %c0_i32_1 = arith.constant 0 : i32
    return %c0_i32, %c0_i32_0 : i32, i32
  }
  func.func @transform_7(%arg0: i32) -> (i32, i32) {
    %c0_i32 = arith.constant 0 : i32
    %c0_i32_0 = arith.constant 0 : i32
    %c0_i32_1 = arith.constant 0 : i32
    return %c0_i32, %c0_i32_0 : i32, i32
  }
  func.func @transform_8(%arg0: i32) -> (i32, i32) {
    %c0_i32 = arith.constant 0 : i32
    %c0_i32_0 = arith.constant 0 : i32
    %c0_i32_1 = arith.constant 0 : i32
    return %c0_i32, %c0_i32_0 : i32, i32
  }
}

</mosaic_0001>

<bundles_post_ra>
// kernel: tpu_custom_call.1
= control target key start
LH: loop header
LB: loop body
LE: loop exit
PB: predicated region body
PF: predicated region fallthrough
CT: control target
= control target key end

     0   :  { %s8192_s0 = inlined_call_operand.hbm [shape: f32[2,15360], index: 0, kind: input, shape index: {}]   ;;  %s8193_s1 = inlined_call_operand.hbm [shape: s8[15360,512], index: 1, kind: input, shape index: {}]   ;;  %s8194_s2 = inlined_call_operand.hbm [shape: f32[1,512], index: 2, kind: input, shape index: {}]   ;;  %s8195_s3 = inlined_call_operand.hbm [shape: f32[1,512], index: 3, kind: input, shape index: {}]   ;;  %s8196_s4 = inlined_call_operand.hbm [shape: bf16[512,512], index: 4, kind: input, shape index: {}]   ;;  %s8197_s5 = inlined_call_operand.hbm [shape: f32[1,512], index: 5, kind: input, shape index: {}]   ;;  %s8198_s6 = inlined_call_operand.vmem [shape: f32[512,4], index: 6, kind: input, shape index: {}]   ;;  %s8199_s7 = inlined_call_operand.hbm [shape: f32[1,4], index: 7, kind: input, shape index: {}]   ;;  %s8200_s8 = inlined_call_operand.hbm [shape: f32[2,4], index: 8, kind: output, shape index: {}]  }
   0x1   :  { %8203 = sst [smem:[#allocation22_spill]] %s8192_s0 }
   0x2   :  { %13 = vsyncpa [#allocation4], 0 }
   0x3   :  { %15 = vsyncpa [#allocation4 + $0x1], 0 }
   0x4   :  { %16 = vsyncpa [#allocation7], 0 }
   0x5   :  { %18 = vsyncpa [#allocation7 + $0x1], 0 }
   0x6   :  { %19 = vsyncpa [#allocation10], 0 }
   0x7   :  { %20 = vsyncpa [#allocation13], 0 }
   0x8   :  { %21 = vsyncpa [#allocation5], 0  ;;  %s6790_s27 = smov 0   ;;  %s6792_s28 = smov 0  }
   0x9   :  { %s6794_s29 = smov 0   ;;  %s6796_s30 = smov 0  }
   0xa LB: > { %s6731_s9 = smov [#allocation8]   ;;  %s6811_s11 = sadd.s32 4294967295, %s6729_s30   ;;  %s6729_s30 = sphi %s6796_s30, %s8222_s30   ;;  %s6725_s29 = sphi %s6794_s29, %s8221_s29   ;;  %s6721_s28 = sphi %s6792_s28, %s8220_s28   ;;  %s6717_s27 = sphi %s6790_s27, %s8219_s27  }
   0xb   : > { %s244_s10 = sshll.u32 %s6731_s9, 4  ;;  %p5682_p0 = scmp.ge.s32.totalorder %s6729_s30, 1  ;;  %s6817_s10 = int_to_ptr.vmem [resolvable:$true] %s244_s10 }
   0xc   : > { %p8201_p1 = scmp.eq.s32.totalorder %s6811_s11, 0  ;;  %p231_p2 = scmp.lt.s32.totalorder %s6729_s30, 4 }
   0xd   : > { %s6732_s13 = smov [#allocation9]   ;;  %s6733_s15 = smov [#allocation12]  }
   0xe   : > { %p6819_p4 = pnand %p5682_p0, %p231_p2  ;;  %s255_s14 = sshll.u32 %s6732_s13, 4  ;;  %s6825_s14 = int_to_ptr.vmem [resolvable:$true] %s255_s14 }
   0xf   : > { %s279_s16 = sshll.u32 %s6733_s15, 4  ;;  %s6734_s18 = smov [#allocation11]   ;;  %s6833_s16 = int_to_ptr.vmem [resolvable:$true] %s279_s16 }
  0x10   : > { %s8204_s12 = scalar_select %p6819_p4, 1, 0 }
  0x11   : > { %p6167_p5 = pneg %p6819_p4  ;;  %s6835_s19 = sshll.u32 %s6734_s18, 4  ;;  %s266_s19 = int_to_ptr.vmem [resolvable:$true] %s6835_s19 }
  0x12   : > { %s6449_s22 = scalar_lea.hbm %s8194_s2, 64 }
  0x13   : > { %p6829_p6 = pnand %p6167_p5, %p8201_p1  ;;  %p6450_p7 = scmp.ne.s32.totalorder %s8194_s2, %s6449_s22 }
  0x14   : > { %p6456_p11 = scmp.lt.u32.totalorder %s6449_s22, %s8194_s2 }
  0x15   : > { %p6845_p8 = pneg %p6829_p6 }
  0x17   : > { %p6452_p9 = pnand %p6845_p8, %p6450_p7 }
  0x19   : > { %p6453_p10 = pneg %p6452_p9 }
  0x1b   : > { %p6458_p12 = pnand %p6456_p11, %p6453_p10 }
  0x1d   : > { %6461 = shalt.err (!%p6458_p12)
}
  0x1e   : > { %s6462_s13 = scalar_lea.vmem %s6817_s10, 64  ;;  %p6470_p5 = scmp.lt.s32.totalorder %s6817_s10, %s6817_s10 }
  0x1f   : > { %p6463_p13 = scmp.ne.s32.totalorder %s6817_s10, %s6462_s13  ;;  %p6471_p3 = scmp.lt.s32.totalorder %s6462_s13, %s6462_s13 }
  0x21   : > { %p6465_p0 = pnand %p6463_p13, %p6845_p8  ;;  %p6472_p7 = por %p6471_p3, %p6470_p5 }
  0x23   : > { %p6466_p2 = pneg %p6465_p0 }
  0x25   : > { %p6473_p9 = pnand %p6472_p7, %p6466_p2 }
  0x27   : > { %6476 = shalt.err (!%p6473_p9)
}
  0x28   : > { %6170 = dma.hbm_to_vmem [thread:$0]  (!%p6829_p6), %s8194_s2, 64, %s6817_s10, [#allocation7]  }
  0x29   : > { %s6477_s22 = scalar_lea.hbm %s8195_s3, 64 }
  0x2a   : > { %p6478_p10 = scmp.ne.s32.totalorder %s8195_s3, %s6477_s22  ;;  %p6484_p12 = scmp.lt.u32.totalorder %s6477_s22, %s8195_s3 }
  0x2c   : > { %p6480_p3 = pnand %p6478_p10, %p6845_p8 }
  0x2e   : > { %p6481_p11 = pneg %p6480_p3 }
  0x30   : > { %p6486_p13 = pnand %p6484_p12, %p6481_p11 }
  0x32   : > { %6489 = shalt.err (!%p6486_p13)
}
  0x33   : > { %s6490_s10 = scalar_lea.vmem %s6825_s14, 64  ;;  %p6498_p7 = scmp.lt.s32.totalorder %s6825_s14, %s6825_s14 }
  0x34   : > { %p6491_p0 = scmp.ne.s32.totalorder %s6825_s14, %s6490_s10  ;;  %p6499_p9 = scmp.lt.s32.totalorder %s6490_s10, %s6490_s10 }
  0x36   : > { %p6493_p2 = pnand %p6491_p0, %p6845_p8  ;;  %p6500_p10 = por %p6499_p9, %p6498_p7 }
  0x38   : > { %p6494_p5 = pneg %p6493_p2 }
  0x3a   : > { %p6501_p3 = pnand %p6500_p10, %p6494_p5 }
  0x3c   : > { %6504 = shalt.err (!%p6501_p3)
}
  0x3d   : > { %6173 = dma.hbm_to_vmem [thread:$0]  (!%p6829_p6), %s8195_s3, 64, %s6825_s14, [#allocation10]  }
  0x3e   : > { %s6505_s21 = scalar_lea.hbm %s8197_s5, 64 }
  0x3f   : > { %p6506_p11 = scmp.ne.s32.totalorder %s8197_s5, %s6505_s21  ;;  %p6512_p0 = scmp.lt.u32.totalorder %s6505_s21, %s8197_s5 }
  0x41   : > { %p6508_p12 = pnand %p6506_p11, %p6845_p8 }
  0x43   : > { %p6509_p13 = pneg %p6508_p12 }
  0x45   : > { %p6514_p2 = pnand %p6512_p0, %p6509_p13 }
  0x47   : > { %6517 = shalt.err (!%p6514_p2)
}
  0x48   : > { %s6518_s14 = scalar_lea.vmem %s6833_s16, 64  ;;  %p6526_p10 = scmp.lt.s32.totalorder %s6833_s16, %s6833_s16 }
  0x49   : > { %p6519_p5 = scmp.ne.s32.totalorder %s6833_s16, %s6518_s14  ;;  %p6527_p3 = scmp.lt.s32.totalorder %s6518_s14, %s6518_s14 }
  0x4b   : > { %p6521_p7 = pnand %p6519_p5, %p6845_p8  ;;  %p6528_p11 = por %p6527_p3, %p6526_p10 }
  0x4d   : > { %p6522_p9 = pneg %p6521_p7 }
  0x4f   : > { %p6529_p12 = pnand %p6528_p11, %p6522_p9 }
  0x51   : > { %6532 = shalt.err (!%p6529_p12)
}
  0x52   : > { %6179 = dma.hbm_to_vmem [thread:$0]  (!%p6829_p6), %s8197_s5, 64, %s6833_s16, [#allocation13]  }
  0x53   : > { %s6533_s18 = scalar_lea.hbm %s8196_s4, 16384 }
  0x54   : > { %p6534_p13 = scmp.ne.s32.totalorder %s8196_s4, %s6533_s18  ;;  %p6540_p5 = scmp.lt.u32.totalorder %s6533_s18, %s8196_s4 }
  0x56   : > { %p6536_p0 = pnand %p6534_p13, %p6845_p8 }
  0x58   : > { %p6537_p2 = pneg %p6536_p0 }
  0x5a   : > { %p6542_p7 = pnand %p6540_p5, %p6537_p2 }
  0x5c   : > { %6545 = shalt.err (!%p6542_p7)
}
  0x5d   : > { %s6546_s24 = scalar_lea.vmem %s266_s19, 16384  ;;  %p6554_p11 = scmp.lt.s32.totalorder %s266_s19, %s266_s19 }
  0x5e   : > { %p6547_p9 = scmp.ne.s32.totalorder %s266_s19, %s6546_s24  ;;  %p6555_p12 = scmp.lt.s32.totalorder %s6546_s24, %s6546_s24 }
  0x60   : > { %p6549_p10 = pnand %p6547_p9, %p6845_p8  ;;  %p6556_p1 = por %p6555_p12, %p6554_p11 }
  0x62   : > { %p6550_p3 = pneg %p6549_p10 }
  0x64   : > { %p6557_p4 = pnand %p6556_p1, %p6550_p3 }
  0x66   : > { %6560 = shalt.err (!%p6557_p4)
}
  0x67   : > { %s6735_s16 = smov 256   ;;  %s6736_s26 = smov 16  }
  0x68   : > { %6176 = dma.hbm_to_vmem [thread:$0]  (!%p6829_p6), %s8196_s4, 16384, %s266_s19, [#allocation10], %s6735_s16, %s6735_s16, %s6736_s26  }
  0x69   : > { %s6737_s10 = smov [#allocation14]   ;;  %s6561_s20 = scalar_lea.hbm %s8199_s7, 16 }
  0x6a   : > { %s293_s13 = sshll.u32 %s6737_s10, 4  ;;  %p6562_p1 = scmp.ne.s32.totalorder %s8199_s7, %s6561_s20  ;;  %s294_s13 = int_to_ptr.vmem [resolvable:$true] %s293_s13 }
  0x6b   : > { %p6568_p0 = scmp.lt.u32.totalorder %s6561_s20, %s8199_s7 }
  0x6c   : > { %p6564_p4 = pnand %p6562_p1, %p6845_p8 }
  0x6e   : > { %p6565_p13 = pneg %p6564_p4 }
  0x70   : > { %p6570_p2 = pnand %p6568_p0, %p6565_p13 }
  0x72   : > { %6573 = shalt.err (!%p6570_p2)
}
  0x73   : > { %s6574_s19 = scalar_lea.vmem %s294_s13, 16  ;;  %s6581_s16 = scalar_lea.vmem %s294_s13, 32 }
  0x74   : > { %p6575_p5 = scmp.ne.s32.totalorder %s294_s13, %s6574_s19  ;;  %p6582_p10 = scmp.lt.s32.totalorder %s294_s13, %s294_s13 }
  0x75   : > { %p6583_p3 = scmp.lt.s32.totalorder %s6581_s16, %s6574_s19 }
  0x76   : > { %p6577_p7 = pnand %p6575_p5, %p6845_p8 }
  0x77   : > { %p6584_p11 = por %p6583_p3, %p6582_p10 }
  0x78   : > { %p6578_p9 = pneg %p6577_p7 }
  0x7a   : > { %p6585_p12 = pnand %p6584_p11, %p6578_p9 }
  0x7c   : > { %6588 = shalt.err (!%p6585_p12)
}
  0x7d   : > { %6182 = dma.hbm_to_vmem [thread:$0]  (!%p6829_p6), %s8199_s7, 16, %s294_s13, [#allocation13]  }
  0x7e   : > { %s6950_s25 = sadd.s32 1, %s6729_s30   ;;  %s34_s9 = sadd.s32 1, %s6725_s29 }
  0x7f   : > { %s31_s17 = ssub.s32 %s6729_s30, %s6950_s25  ;;  %p41_p1 = scmp.ne.s32.totalorder %s6725_s29, %s6721_s28 }
  0x80   : > { %p32_p8 = scmp.eq.s32.totalorder %s31_s17, 0  ;;  %p42_p4 = scmp.eq.s32.totalorder %s6729_s30, 0 }
  0x81   : > { %p47_p13 = scmp.ne.s32.totalorder %s6721_s28, %s6717_s27  ;;  %p8207_p2 = scmp.eq.s32.totalorder %s6811_s11, 0 }
  0x82   : > { %s6961_s10 = scalar_select %p32_p8, %s6725_s29, %s34_s9  }
  0x83   : > { %p43_p0 = por %p42_p4, %p41_p1  ;;  %p6965_p5 = por %p8207_p2, %p47_p13 }
  0x84   : > { %p6195_p7 = scmp.lt.s32.totalorder %s6729_s30, 3  ;;  %s6971_s18 = sand.u32 1, %s6725_s29  }
  0x85   : > { %s6135_s13 = smul.u32 80, %s6971_s18  ;;  %s8210_s0 = sld [smem:[#allocation22_spill]] }
  0x86   : > { %s5833_s20 = smul.u32 1280, %s6729_s30  ;;  %p6975_p6 = pnand %p6195_p7, %p43_p0 }
  0x87   : > { %s6136_s27 = smul.u32 5120, %s6971_s18  ;;  %s308_s19 = scalar_lea.vmem [#allocation3], %s6135_s13 }
  0x88   : > { %s316_s16 = sshll.u32 %s308_s19, 4  ;;  %s305_s26 = scalar_lea.sflag [#allocation4], %s6971_s18  ;;  %s6985_s16 = int_to_ptr.vmem [resolvable:$true] %s316_s16 }
  0x89   : > { %p6591_p10 = pneg %p6975_p6 }
  0x8b   : > { %s6983_s24 = scalar_lea.hbm %s8210_s0, %s5833_s20  ;;  %s6594_s20 = scalar_lea.hbm %s8210_s0, 3840 }
  0x8c   : > { %s6589_s14 = scalar_lea.hbm %s6983_s24, 1280  ;;  %p6595_p12 = scmp.lt.u32.totalorder %s6983_s24, %s8210_s0 }
  0x8d   : > { %p6590_p9 = scmp.ne.s32.totalorder %s6983_s24, %s6589_s14  ;;  %p6596_p8 = scmp.lt.u32.totalorder %s6594_s20, %s6589_s14 }
  0x8e   : > { %p6598_p4 = scmp.lt.u32.totalorder %s6589_s14, %s6983_s24 }
  0x8f   : > { %p6592_p3 = pnand %p6591_p10, %p6590_p9  ;;  %p6597_p1 = por %p6596_p8, %p6595_p12 }
  0x91   : > { %p6593_p11 = pneg %p6592_p3  ;;  %p6599_p13 = por %p6598_p4, %p6597_p1 }
  0x93   : > { %p6600_p0 = pnand %p6599_p13, %p6593_p11 }
  0x95   : > { %6603 = shalt.err (!%p6600_p0)
}
  0x96   : > { %s6604_s13 = scalar_lea.vmem %s6985_s16, 1280  ;;  %s6738_s19 = smov [#allocation3]  }
  0x97   : > { %p6605_p2 = scmp.ne.s32.totalorder %s6985_s16, %s6604_s13  ;;  %s6609_s17 = sshll.u32 %s6738_s19, 4  ;;  %s6610_s17 = int_to_ptr.vmem [resolvable:$false] %s6609_s17 }
  0x98   : > { %s6611_s9 = scalar_lea.vmem %s6610_s17, 2560  ;;  %p6612_p3 = scmp.lt.s32.totalorder %s6985_s16, %s6610_s17 }
  0x99   : > { %p6607_p7 = pnand %p6605_p2, %p6591_p10  ;;  %p6613_p12 = scmp.lt.s32.totalorder %s6611_s9, %s6604_s13 }
  0x9b   : > { %p6608_p9 = pneg %p6607_p7  ;;  %p6614_p8 = por %p6613_p12, %p6612_p3 }
  0x9d   : > { %p6615_p1 = pnand %p6614_p8, %p6608_p9 }
  0x9f   : > { %6618 = shalt.err (!%p6615_p1)
}
  0xa0   : > { %6186 = dma.hbm_to_vmem [thread:$0]  (!%p6975_p6), %s6983_s24, 1280, %s6985_s16, %s305_s26  }
  0xa1   : > { %s323_s14 = sand.u32 1, %s6729_s30   ;;  %s327_s20 = scalar_lea.vmem [#allocation6], %s6136_s27 }
  0xa2   : > { %s335_s22 = sshll.u32 %s327_s20, 4  ;;  %s5836_s23 = smul.u32 81920, %s6729_s30  ;;  %s7016_s22 = int_to_ptr.vmem [resolvable:$true] %s335_s22 }
  0xa3   : > { %s7024_s9 = scalar_lea.sflag [#allocation7], %s323_s14  ;;  %s6624_s30 = scalar_lea.hbm %s8193_s1, 245760 }
  0xa4   : > { %s7022_s17 = scalar_lea.hbm %s8193_s1, %s5836_s23 }
  0xa5   : > { %s6619_s0 = scalar_lea.hbm %s7022_s17, 81920  ;;  %p6625_p0 = scmp.lt.u32.totalorder %s7022_s17, %s8193_s1 }
  0xa6   : > { %p6620_p11 = scmp.ne.s32.totalorder %s7022_s17, %s6619_s0  ;;  %p6626_p2 = scmp.lt.u32.totalorder %s6624_s30, %s6619_s0 }
  0xa7   : > { %p6628_p9 = scmp.lt.u32.totalorder %s6619_s0, %s7022_s17 }
  0xa8   : > { %p6622_p4 = pnand %p6620_p11, %p6591_p10  ;;  %p6627_p7 = por %p6626_p2, %p6625_p0 }
  0xaa   : > { %p6623_p13 = pneg %p6622_p4  ;;  %p6629_p3 = por %p6628_p9, %p6627_p7 }
  0xac   : > { %p6630_p12 = pnand %p6629_p3, %p6623_p13 }
  0xae   : > { %6633 = shalt.err (!%p6630_p12)
}
  0xaf   : > { %s6634_s26 = scalar_lea.vmem %s7016_s22, 81920  ;;  %s6739_s14 = smov [#allocation6]  }
  0xb0   : > { %p6635_p8 = scmp.ne.s32.totalorder %s7016_s22, %s6634_s26  ;;  %s6639_s20 = sshll.u32 %s6739_s14, 4  ;;  %s6640_s20 = int_to_ptr.vmem [resolvable:$false] %s6639_s20 }
  0xb1   : > { %s6641_s23 = scalar_lea.vmem %s6640_s20, 163840  ;;  %p6642_p4 = scmp.lt.s32.totalorder %s7016_s22, %s6640_s20 }
  0xb2   : > { %p6637_p1 = pnand %p6635_p8, %p6591_p10  ;;  %p6643_p0 = scmp.lt.s32.totalorder %s6641_s23, %s6634_s26 }
  0xb4   : > { %p6638_p11 = pneg %p6637_p1  ;;  %p6644_p2 = por %p6643_p0, %p6642_p4 }
  0xb6   : > { %p6645_p7 = pnand %p6644_p2, %p6638_p11 }
  0xb8   : > { %6648 = shalt.err (!%p6645_p7)
}
  0xb9   : > { %s6740_s0 = smov 512   ;;  %s6741_s13 = smov 32  }
  0xba   : > { %6189 = dma.hbm_to_vmem [thread:$0]  (!%p6975_p6), %s7022_s17, 81920, %s7016_s22, %s7024_s9, %s6740_s0, %s6740_s0, %s6741_s13  }
  0xbb   : > { %p8211_p10 = scmp.ne.s32.totalorder %s8204_s12, 0 }
  0xbc   : > { %s349_s19 = sand.u32 (!%p8211_p10), 1, %s6721_s28  }
  0xbd   : > { %347 = sbr.rel (%p8211_p10) target bundleno = 2272 (0x8e0), region = 52  ;;  %s350_s27 = scalar_lea.sflag (!%p8211_p10), [#allocation4], %s349_s19 }
  0xbe   : > { %s6137_s18 = smul.u32 (!%p8211_p10), 80, %s349_s19 }
  0xc0   : > { %s7053_s30 = scalar_lea.vmem (!%p8211_p10), [#allocation3], %s6137_s18 }
  0xc4   : > { %6692 = dma.done.wait (%p6965_p5), %s350_s27, 1280  }
  0xc5   : > { %6694 = vsyncadd (%p6965_p5), %s350_s27, 4294966016  ;;  %s358_s24 = sand.u32 1, %s6811_s11   ;;  %s6138_s21 = smul.u32 5120, %s349_s19 }
  0xc6   : > { %s359_s22 = scalar_lea.sflag [#allocation7], %s358_s24 }
  0xc7   : > { %s7060_s17 = scalar_lea.vmem [#allocation6], %s6138_s21 }
  0xc8   : > { %6696 = dma.done.wait (%p6965_p5), %s359_s22, 81920  }
  0xc9   : > { %6698 = vsyncadd (%p6965_p5), %s359_s22, 4294885376  ;;  %p8212_p6 = scmp.eq.s32.totalorder %s6811_s11, 0 }
  0xcb   : > { %6700 = dma.done.wait (%p8212_p6), [#allocation7], 64   ;;  %p8213_p13 = pmov %p8212_p6 }
  0xcc   : > { %p8214_p9 = pmov %p8212_p6 }
  0xcd   : > { %6702 = vsyncadd (%p8213_p13), [#allocation7], 4294967232 }
  0xce   : > { %6704 = dma.done.wait (%p8214_p9), [#allocation10], 16448   ;;  %p8215_p3 = pmov %p8212_p6 }
  0xd0   : > { %6706 = vsyncadd (%p8215_p3), [#allocation10], 4294950848  ;;  %p8216_p12 = pmov %p8215_p3 }
  0xd1   : > { %p8217_p8 = pmov %p8215_p3 }
  0xd2   : > { %6708 = dma.done.wait (%p8216_p12), [#allocation13], 80  }
  0xd3   : > { %6710 = vsyncadd (%p8217_p8), [#allocation13], 4294967216  ;;  %p8218_p5 = scmp.ne.s32.totalorder %s6811_s11, 0 }
  0xd4   : > { %v6742_v0 = vmov (!%p8218_p5), 0.0  }
  0xd5   : > { %420 = sbr.rel (%p8218_p5) target bundleno = 220 (0xdc), region = 84  ;;  %421 = vst [vmem:[#allocation2] sm:$0xff] (!%p8218_p5), %v6742_v0 }
  0xdc PF: > { %v694_v1 = vld [vmem:[%s7060_s17 + $0x8] sm:$0xff]  ;;  %v696_v2 = vld [vmem:[%s7060_s17 + $0x18] sm:$0xff]  ;;  %v693_v3 = vld [vmem:[%s7060_s17] sm:$0xff]  ;;  %v447_v31 = vlaneseq  ;;  %v6743_v36 = vmov 1983009808   ;;  %p5699_p1 = scmp.ne.s32.totalorder %s6811_s11, 2 }
  0xdd   : > { %v1334_v4 = vunpack.c.l.s8.bf16 %v694_v1  ;;  %v1338_v5 = vunpack.c.h.s8.bf16 %v694_v1  ;;  %v1336_v6 = vunpack.c.l.s8.bf16 %v696_v2  ;;  %v1340_v7 = vunpack.c.h.s8.bf16 %v696_v2  ;;  %v695_v8 = vld [vmem:[%s7060_s17 + $0x10] sm:$0xff]  ;;  %v698_v11 = vld [vmem:[%s7060_s17 + $0x28] sm:$0xff]  ;;  %v700_v12 = vld [vmem:[%s7060_s17 + $0x38] sm:$0xff] }
  0xde   : > { %v1333_v9 = vunpack.c.l.s8.bf16 %v693_v3  ;;  %v1335_v10 = vunpack.c.l.s8.bf16 %v695_v8  ;;  %v1337_v13 = vunpack.c.h.s8.bf16 %v693_v3  ;;  %v1339_v14 = vunpack.c.h.s8.bf16 %v695_v8  ;;  %v697_v17 = vld [vmem:[%s7060_s17 + $0x20] sm:$0xff]  ;;  %v699_v18 = vld [vmem:[%s7060_s17 + $0x30] sm:$0xff]  ;;  %v702_v23 = vld [vmem:[%s7060_s17 + $0x48] sm:$0xff] }
  0xdf   : > { %2613 = vmatprep.subr.bf16.mxu0 %v1334_v4  ;;  %3433 = vmatprep.subr.bf16.mxu1 %v1336_v6  ;;  %v1342_v15 = vunpack.c.l.s8.bf16 %v698_v11  ;;  %v1344_v16 = vunpack.c.l.s8.bf16 %v700_v12  ;;  %v1341_v19 = vunpack.c.l.s8.bf16 %v697_v17  ;;  %v1343_v20 = vunpack.c.l.s8.bf16 %v699_v18  ;;  %v704_v24 = vld [vmem:[%s7060_s17 + $0x58] sm:$0xff]  ;;  %v701_v29 = vld [vmem:[%s7060_s17 + $0x40] sm:$0xff]  ;;  %v703_v30 = vld [vmem:[%s7060_s17 + $0x50] sm:$0xff] }
  0xe0   : > { %2614 = vmatpush1.bf16.msra.mxu0 %v1333_v9  ;;  %3434 = vmatpush1.bf16.msra.mxu1 %v1335_v10  ;;  %v1346_v21 = vunpack.c.h.s8.bf16 %v698_v11  ;;  %v1348_v22 = vunpack.c.h.s8.bf16 %v700_v12  ;;  %v1345_v25 = vunpack.c.h.s8.bf16 %v697_v17  ;;  %v1347_v26 = vunpack.c.h.s8.bf16 %v699_v18  ;;  %v706_v39 = vld [vmem:[%s7060_s17 + $0x68] sm:$0xff]  ;;  %v708_v40 = vld [vmem:[%s7060_s17 + $0x78] sm:$0xff]  ;;  %v7097_v44 = vld [vmem:[%s7053_s30] sm:$0xff] }
  0xe1   : > { %2615 = vmatprep.subr.bf16.mxu0 %v1338_v5  ;;  %3435 = vmatprep.subr.bf16.mxu1 %v1340_v7  ;;  %v1350_v27 = vunpack.c.l.s8.bf16 %v702_v23  ;;  %v1352_v28 = vunpack.c.l.s8.bf16 %v704_v24  ;;  %v1349_v32 = vunpack.c.l.s8.bf16 %v701_v29  ;;  %v1351_v33 = vunpack.c.l.s8.bf16 %v703_v30  ;;  %v705_v47 = vld [vmem:[%s7060_s17 + $0x60] sm:$0xff]  ;;  %v707_v48 = vld [vmem:[%s7060_s17 + $0x70] sm:$0xff]  ;;  %v710_v56 = vld [vmem:[%s7060_s17 + $0x88] sm:$0xff] }
  0xe2   : > { %v1354_v34 = vunpack.c.h.s8.bf16 %v702_v23  ;;  %v1356_v35 = vunpack.c.h.s8.bf16 %v704_v24  ;;  %v445_v37 = vunpack.c.l.s4 %v6743_v36  ;;  %v7092_v38 = vshrl.u32 %v447_v31, 7  ;;  %v712_v57 = vld [vmem:[%s7060_s17 + $0x98] sm:$0xff]  ;;  %v709_v63 = vld [vmem:[%s7060_s17 + $0x80] sm:$0xff]  ;;  %v711_v0 = vld [vmem:[%s7060_s17 + $0x90] sm:$0xff] }
  0xe3   : > { %v1353_v42 = vunpack.c.h.s8.bf16 %v701_v29  ;;  %v1355_v43 = vunpack.c.h.s8.bf16 %v703_v30  ;;  %v1358_v45 = vunpack.c.l.s8.bf16 %v706_v39  ;;  %v1360_v46 = vunpack.c.l.s8.bf16 %v708_v40  ;;  %v714_v5 = vld [vmem:[%s7060_s17 + $0xa8] sm:$0xff]  ;;  %v716_v6 = vld [vmem:[%s7060_s17 + $0xb8] sm:$0xff]  ;;  %v713_v11 = vld [vmem:[%s7060_s17 + $0xa0] sm:$0xff] }
  0xe4   : > { %2616 = vmatpush1.bf16.msra.mxu0 %v1337_v13  ;;  %3436 = vmatpush1.bf16.msra.mxu1 %v1339_v14  ;;  %v446_v41 = vunpack.c.0.s8 %v445_v37  ;;  %v1357_v51 = vunpack.c.l.s8.bf16 %v705_v47  ;;  %v1359_v52 = vunpack.c.l.s8.bf16 %v707_v48  ;;  %v1362_v53 = vunpack.c.h.s8.bf16 %v706_v39  ;;  %v715_v12 = vld [vmem:[%s7060_s17 + $0xb0] sm:$0xff]  ;;  %v718_v17 = vld [vmem:[%s7060_s17 + $0xc8] sm:$0xff]  ;;  %v720_v18 = vld [vmem:[%s7060_s17 + $0xd8] sm:$0xff] }
  0xe5   : > { %2617 = vmatprep.subr.bf16.mxu0 %v1342_v15  ;;  %3437 = vmatprep.subr.bf16.mxu1 %v1344_v16  ;;  %v1364_v54 = vunpack.c.h.s8.bf16 %v708_v40  ;;  %v1361_v59 = vunpack.c.h.s8.bf16 %v705_v47  ;;  %v1363_v60 = vunpack.c.h.s8.bf16 %v707_v48  ;;  %v1366_v61 = vunpack.c.l.s8.bf16 %v710_v56  ;;  %v717_v23 = vld [vmem:[%s7060_s17 + $0xc0] sm:$0xff]  ;;  %v719_v24 = vld [vmem:[%s7060_s17 + $0xd0] sm:$0xff]  ;;  %v722_v29 = vld [vmem:[%s7060_s17 + $0xe8] sm:$0xff] }
  0xe6   : > { %v7102_v49 = vsub.s32 %v446_v41, %v7092_v38  ;;  %v1368_v62 = vunpack.c.l.s8.bf16 %v712_v57  ;;  %v1365_v1 = vunpack.c.l.s8.bf16 %v709_v63  ;;  %v1367_v2 = vunpack.c.l.s8.bf16 %v711_v0  ;;  %v724_v30 = vld [vmem:[%s7060_s17 + $0xf8] sm:$0xff]  ;;  %v723_v36 = vld [vmem:[%s7060_s17 + $0xf0] sm:$0xff] }
  0xe7   : > { %v1370_v3 = vunpack.c.h.s8.bf16 %v710_v56  ;;  %v1372_v4 = vunpack.c.h.s8.bf16 %v712_v57  ;;  %v1369_v7 = vunpack.c.h.s8.bf16 %v709_v63  ;;  %v1371_v8 = vunpack.c.h.s8.bf16 %v711_v0 }
  0xe8   : > { %2618 = vmatpush1.bf16.msra.mxu0 %v1341_v19  ;;  %3438 = vmatpush1.bf16.msra.mxu1 %v1343_v20  ;;  %v7106_v50 = vrot.slane %v7097_v44, %v7102_v49  ;;  %v1374_v9 = vunpack.c.l.s8.bf16 %v714_v5  ;;  %v1376_v10 = vunpack.c.l.s8.bf16 %v716_v6  ;;  %v1373_v13 = vunpack.c.l.s8.bf16 %v713_v11 }
  0xe9   : > { %2619 = vmatprep.subr.bf16.mxu0 %v1346_v21  ;;  %3439 = vmatprep.subr.bf16.mxu1 %v1348_v22  ;;  %v1375_v14 = vunpack.c.l.s8.bf16 %v715_v12  ;;  %v1378_v15 = vunpack.c.h.s8.bf16 %v714_v5  ;;  %v1380_v16 = vunpack.c.h.s8.bf16 %v716_v6  ;;  %v1377_v19 = vunpack.c.h.s8.bf16 %v713_v11 }
  0xea   : > { %v458_v55 = vcombine.high %v7106_v50, %v7106_v50  ;;  %v1379_v20 = vunpack.c.h.s8.bf16 %v715_v12  ;;  %v1382_v21 = vunpack.c.l.s8.bf16 %v718_v17  ;;  %v1384_v22 = vunpack.c.l.s8.bf16 %v720_v18 }
  0xeb   : > { %v1385_v31 = vunpack.c.h.s8.bf16 %v717_v23  ;;  %v443_v37 = vcombine.high %v7097_v44, %v7097_v44  ;;  %v1391_v40 = vunpack.c.l.s8.bf16 %v723_v36  ;;  %v1394_v41 = vunpack.c.h.s8.bf16 %v722_v29 }
  0xec   : > { %2620 = vmatpush1.bf16.msra.mxu0 %v1345_v25  ;;  %3440 = vmatpush1.bf16.msra.mxu1 %v1347_v26  ;;  %v654_v58 = vpack.c.bf16 %v458_v55, %v458_v55  ;;  %v1381_v25 = vunpack.c.l.s8.bf16 %v717_v23  ;;  %v1383_v26 = vunpack.c.l.s8.bf16 %v719_v24  ;;  %v1395_v48 = vunpack.c.h.s8.bf16 %v723_v36 }
  0xed   : > { %2621 = vmatprep.subr.bf16.mxu0 %v1350_v27  ;;  %3441 = vmatprep.subr.bf16.mxu1 %v1352_v28  ;;  %v1386_v27 = vunpack.c.h.s8.bf16 %v718_v17  ;;  %v1388_v28 = vunpack.c.h.s8.bf16 %v720_v18  ;;  %v653_v55 = vpack.c.bf16 %v7106_v50, %v7106_v50  ;;  %vm5552_vm0 = vcmask (!%p5699_p1), 25600  }
  0xee   : > { %2645 = vmatprep.mubr.bf16.mxu0 %v654_v58  ;;  %3465 = vmatprep.mubr.bf16.mxu1 %v654_v58 }
  0xf0   : > { %2622 = vmatpush1.bf16.msra.mxu0 %v1349_v32  ;;  %3442 = vmatpush1.bf16.msra.mxu1 %v1351_v33  ;;  %v1387_v32 = vunpack.c.h.s8.bf16 %v719_v24  ;;  %v1390_v33 = vunpack.c.l.s8.bf16 %v722_v29 }
  0xf1   : > { %2623 = vmatprep.subr.bf16.mxu0 %v1354_v34  ;;  %3443 = vmatprep.subr.bf16.mxu1 %v1356_v35  ;;  %v1392_v34 = vunpack.c.l.s8.bf16 %v724_v30  ;;  %v721_v35 = vld [vmem:[%s7060_s17 + $0xe0] sm:$0xff] }
  0xf2   : > { %v1389_v39 = vunpack.c.l.s8.bf16 %v721_v35  ;;  %v1393_v47 = vunpack.c.h.s8.bf16 %v721_v35 }
  0xf4   : > { %2624 = vmatpush1.bf16.msra.mxu0 %v1353_v42  ;;  %3444 = vmatpush1.bf16.msra.mxu1 %v1355_v43  ;;  %v1396_v42 = vunpack.c.h.s8.bf16 %v724_v30  ;;  %v726_v43 = vld [vmem:[%s7060_s17 + $0x108] sm:$0xff] }
  0xf5   : > { %2625 = vmatprep.subr.bf16.mxu0 %v1358_v45  ;;  %3445 = vmatprep.subr.bf16.mxu1 %v1360_v46  ;;  %v728_v45 = vld [vmem:[%s7060_s17 + $0x118] sm:$0xff]  ;;  %v7131_v46 = vrot.slane %v443_v37, %v7102_v49  ;;  %v1398_v44 = vunpack.c.l.s8.bf16 %v726_v43  ;;  %v1402_v58 = vunpack.c.h.s8.bf16 %v726_v43 }
  0xf8   : > { %2626 = vmatpush1.bf16.msra.mxu0 %v1357_v51  ;;  %3446 = vmatpush1.bf16.msra.mxu1 %v1359_v52  ;;  %v1400_v51 = vunpack.c.l.s8.bf16 %v728_v45  ;;  %v725_v52 = vld [vmem:[%s7060_s17 + $0x100] sm:$0xff] }
  0xf9   : > { %2627 = vmatprep.subr.bf16.mxu0 %v1362_v53  ;;  %3447 = vmatprep.subr.bf16.mxu1 %v1364_v54  ;;  %v727_v53 = vld [vmem:[%s7060_s17 + $0x110] sm:$0xff]  ;;  %v459_v54 = vcombine.high %v7131_v46, %v7131_v46  ;;  %v1397_v56 = vunpack.c.l.s8.bf16 %v725_v52  ;;  %v1401_v63 = vunpack.c.h.s8.bf16 %v725_v52 }
  0xfa   : > { %v1399_v57 = vunpack.c.l.s8.bf16 %v727_v53  ;;  %v1403_v0 = vunpack.c.h.s8.bf16 %v727_v53 }
  0xfc   : > { %2628 = vmatpush1.bf16.msra.mxu0 %v1361_v59  ;;  %3448 = vmatpush1.bf16.msra.mxu1 %v1363_v60  ;;  %v1404_v59 = vunpack.c.h.s8.bf16 %v728_v45  ;;  %v730_v60 = vld [vmem:[%s7060_s17 + $0x128] sm:$0xff] }
  0xfd   : > { %2629 = vmatprep.subr.bf16.mxu0 %v1366_v61  ;;  %3449 = vmatprep.subr.bf16.mxu1 %v1368_v62  ;;  %v732_v61 = vld [vmem:[%s7060_s17 + $0x138] sm:$0xff]  ;;  %v656_v62 = vpack.c.bf16 %v459_v54, %v459_v54  ;;  %v1406_v50 = vunpack.c.l.s8.bf16 %v730_v60  ;;  %v1410_v6 = vunpack.c.h.s8.bf16 %v730_v60  ;;  %v745_v54 = vld [vmem:[%s7060_s17 + $0x1a0] sm:$0xff]  ;;  %v750_v60 = vld [vmem:[%s7060_s17 + $0x1c8] sm:$0xff] }
 0x100   : > { %2630 = vmatpush1.bf16.msra.mxu0 %v1365_v1  ;;  %3450 = vmatpush1.bf16.msra.mxu1 %v1367_v2  ;;  %v1408_v1 = vunpack.c.l.s8.bf16 %v732_v61  ;;  %v729_v2 = vld [vmem:[%s7060_s17 + $0x120] sm:$0xff] }
 0x101   : > { %2631 = vmatprep.subr.bf16.mxu0 %v1370_v3  ;;  %3451 = vmatprep.subr.bf16.mxu1 %v1372_v4  ;;  %v731_v3 = vld [vmem:[%s7060_s17 + $0x130] sm:$0xff]  ;;  %v1405_v4 = vunpack.c.l.s8.bf16 %v729_v2 }
 0x102   : > { %v1407_v5 = vunpack.c.l.s8.bf16 %v731_v3  ;;  %v1411_v11 = vunpack.c.h.s8.bf16 %v731_v3 }
 0x104   : > { %2632 = vmatpush1.bf16.msra.mxu0 %v1369_v7  ;;  %3452 = vmatpush1.bf16.msra.mxu1 %v1371_v8  ;;  %v1412_v7 = vunpack.c.h.s8.bf16 %v732_v61  ;;  %v734_v8 = vld [vmem:[%s7060_s17 + $0x148] sm:$0xff]  ;;  %v752_v61 = vld [vmem:[%s7060_s17 + $0x1d8] sm:$0xff] }
 0x105   : > { %2633 = vmatprep.subr.bf16.mxu0 %v1374_v9  ;;  %3453 = vmatprep.subr.bf16.mxu1 %v1376_v10  ;;  %v736_v9 = vld [vmem:[%s7060_s17 + $0x158] sm:$0xff]  ;;  %v1409_v10 = vunpack.c.h.s8.bf16 %v729_v2  ;;  %v1414_v12 = vunpack.c.l.s8.bf16 %v734_v8  ;;  %v1418_v18 = vunpack.c.h.s8.bf16 %v734_v8  ;;  %v751_v2 = vld [vmem:[%s7060_s17 + $0x1d0] sm:$0xff] }
 0x106   : > { %v756_v8 = vld [vmem:[%s7060_s17 + $0x1f8] sm:$0xff] }
 0x108   : > { %2634 = vmatpush1.bf16.msra.mxu0 %v1373_v13  ;;  %3454 = vmatpush1.bf16.msra.mxu1 %v1375_v14  ;;  %v1416_v13 = vunpack.c.l.s8.bf16 %v736_v9  ;;  %v733_v14 = vld [vmem:[%s7060_s17 + $0x140] sm:$0xff] }
 0x109   : > { %2635 = vmatprep.subr.bf16.mxu0 %v1378_v15  ;;  %3455 = vmatprep.subr.bf16.mxu1 %v1380_v16  ;;  %v735_v15 = vld [vmem:[%s7060_s17 + $0x150] sm:$0xff]  ;;  %v1413_v16 = vunpack.c.l.s8.bf16 %v733_v14 }
 0x10a   : > { %v1415_v17 = vunpack.c.l.s8.bf16 %v735_v15  ;;  %v1419_v23 = vunpack.c.h.s8.bf16 %v735_v15  ;;  %v7168_v15 = vld [vmem:[%s7053_s30 + $0x8] sm:$0xff] }
 0x10c   : > { %2636 = vmatpush1.bf16.msra.mxu0 %v1377_v19  ;;  %3456 = vmatpush1.bf16.msra.mxu1 %v1379_v20  ;;  %v1420_v19 = vunpack.c.h.s8.bf16 %v736_v9  ;;  %v738_v20 = vld [vmem:[%s7060_s17 + $0x168] sm:$0xff] }
 0x10d   : > { %2637 = vmatprep.subr.bf16.mxu0 %v1382_v21  ;;  %3457 = vmatprep.subr.bf16.mxu1 %v1384_v22  ;;  %v740_v21 = vld [vmem:[%s7060_s17 + $0x178] sm:$0xff]  ;;  %v1417_v22 = vunpack.c.h.s8.bf16 %v733_v14  ;;  %v1422_v24 = vunpack.c.l.s8.bf16 %v738_v20  ;;  %v1426_v30 = vunpack.c.h.s8.bf16 %v738_v20  ;;  %v755_v14 = vld [vmem:[%s7060_s17 + $0x1f0] sm:$0xff]  ;;  %v758_v20 = vld [vmem:[%s7060_s17 + $0x208] sm:$0xff] }
 0x110   : > { %2638 = vmatpush1.bf16.msra.mxu0 %v1381_v25  ;;  %3458 = vmatpush1.bf16.msra.mxu1 %v1383_v26  ;;  %v1424_v25 = vunpack.c.l.s8.bf16 %v740_v21  ;;  %v737_v26 = vld [vmem:[%s7060_s17 + $0x160] sm:$0xff] }
 0x111   : > { %2639 = vmatprep.subr.bf16.mxu0 %v1386_v27  ;;  %3459 = vmatprep.subr.bf16.mxu1 %v1388_v28  ;;  %v739_v27 = vld [vmem:[%s7060_s17 + $0x170] sm:$0xff]  ;;  %v1421_v28 = vunpack.c.l.s8.bf16 %v737_v26 }
 0x112   : > { %v1423_v29 = vunpack.c.l.s8.bf16 %v739_v27  ;;  %v1427_v35 = vunpack.c.h.s8.bf16 %v739_v27  ;;  %v757_v27 = vld [vmem:[%s7060_s17 + $0x200] sm:$0xff] }
 0x114   : > { %2640 = vmatpush1.bf16.msra.mxu0 %v1385_v31  ;;  %3460 = vmatpush1.bf16.msra.mxu1 %v1387_v32  ;;  %v1428_v31 = vunpack.c.h.s8.bf16 %v740_v21  ;;  %v742_v32 = vld [vmem:[%s7060_s17 + $0x188] sm:$0xff]  ;;  %v760_v21 = vld [vmem:[%s7060_s17 + $0x218] sm:$0xff] }
 0x115   : > { %2641 = vmatprep.subr.bf16.mxu0 %v1390_v33  ;;  %3461 = vmatprep.subr.bf16.mxu1 %v1392_v34  ;;  %v744_v33 = vld [vmem:[%s7060_s17 + $0x198] sm:$0xff]  ;;  %v1425_v34 = vunpack.c.h.s8.bf16 %v737_v26  ;;  %v1430_v36 = vunpack.c.l.s8.bf16 %v742_v32  ;;  %v1434_v43 = vunpack.c.h.s8.bf16 %v742_v32  ;;  %v1464_v26 = vunpack.c.l.s8.bf16 %v760_v21 }
 0x116   : > { %v1432_v37 = vunpack.c.l.s8.bf16 %v744_v33  ;;  %v1436_v45 = vunpack.c.h.s8.bf16 %v744_v33  ;;  %v1466_v33 = vunpack.c.h.s8.bf16 %v758_v20 }
 0x118   : > { %2642 = vmatpush1.bf16.msra.mxu0 %v1389_v39  ;;  %3462 = vmatpush1.bf16.msra.mxu1 %v1391_v40  ;;  %v741_v39 = vld [vmem:[%s7060_s17 + $0x180] sm:$0xff]  ;;  %v743_v40 = vld [vmem:[%s7060_s17 + $0x190] sm:$0xff] }
 0x119   : > { %2643 = vmatprep.subr.bf16.mxu0 %v1394_v41  ;;  %3463 = vmatprep.subr.bf16.mxu1 %v1396_v42  ;;  %v1429_v41 = vunpack.c.l.s8.bf16 %v741_v39  ;;  %v1431_v42 = vunpack.c.l.s8.bf16 %v743_v40 }
 0x11c   : > { %2644 = vmatpush1.bf16.msra.mxu0 %v1393_v47  ;;  %3464 = vmatpush1.bf16.msra.mxu1 %v1395_v48  ;;  %v746_v47 = vld [vmem:[%s7060_s17 + $0x1a8] sm:$0xff]  ;;  %v748_v48 = vld [vmem:[%s7060_s17 + $0x1b8] sm:$0xff] }
 0x11d   : > { %2654 = vmatprep.subr.bf16.mxu0 %v1398_v44  ;;  %3474 = vmatprep.subr.bf16.mxu1 %v1400_v51  ;;  %v1433_v44 = vunpack.c.h.s8.bf16 %v741_v39  ;;  %v1435_v51 = vunpack.c.h.s8.bf16 %v743_v40  ;;  %v1438_v52 = vunpack.c.l.s8.bf16 %v746_v47  ;;  %v1440_v53 = vunpack.c.l.s8.bf16 %v748_v48 }
 0x11e   : > { %v1465_v39 = vunpack.c.h.s8.bf16 %v757_v27 }
 0x11f   : > { %2646 = vmatmul.mubr.bf16.vlgmr.msra.gmra.mrb[0].mxu0 %v653_v55  ;;  %3466 = vmatmul.mubr.bf16.vlgmr.msra.gmra.mrb[0].mxu1 %v653_v55  ;;  %v747_v55 = vld [vmem:[%s7060_s17 + $0x1b0] sm:$0xff] }
 0x120   : > { %2655 = vmatpush1.bf16.msra.mxu0 %v1397_v56  ;;  %3475 = vmatpush1.bf16.msra.mxu1 %v1399_v57  ;;  %v1437_v56 = vunpack.c.l.s8.bf16 %v745_v54  ;;  %v1439_v57 = vunpack.c.l.s8.bf16 %v747_v55 }
 0x121   : > { %2656 = vmatprep.subr.bf16.mxu0 %v1402_v58  ;;  %3476 = vmatprep.subr.bf16.mxu1 %v1404_v59  ;;  %v1442_v58 = vunpack.c.h.s8.bf16 %v746_v47  ;;  %v1444_v59 = vunpack.c.h.s8.bf16 %v748_v48 }
 0x122   : > { %2686 = vmatprep.mubr.bf16.mxu0 %v656_v62  ;;  %3506 = vmatprep.mubr.bf16.mxu1 %v656_v62  ;;  %v1441_v62 = vunpack.c.h.s8.bf16 %v745_v54 }
 0x124   : > { %2657 = vmatpush1.bf16.msra.mxu0 %v1401_v63  ;;  %3477 = vmatpush1.bf16.msra.mxu1 %v1403_v0  ;;  %v1443_v63 = vunpack.c.h.s8.bf16 %v747_v55  ;;  %v1446_v0 = vunpack.c.l.s8.bf16 %v750_v60 }
 0x125   : > { %2658 = vmatprep.subr.bf16.mxu0 %v1406_v50  ;;  %3478 = vmatprep.subr.bf16.mxu1 %v1408_v1  ;;  %v1448_v50 = vunpack.c.l.s8.bf16 %v752_v61  ;;  %v749_v1 = vld [vmem:[%s7060_s17 + $0x1c0] sm:$0xff] }
 0x126   : > { %v1445_v3 = vunpack.c.l.s8.bf16 %v749_v1  ;;  %v1449_v9 = vunpack.c.h.s8.bf16 %v749_v1 }
 0x128   : > { %2659 = vmatpush1.bf16.msra.mxu0 %v1405_v4  ;;  %3479 = vmatpush1.bf16.msra.mxu1 %v1407_v5  ;;  %v1447_v4 = vunpack.c.l.s8.bf16 %v751_v2  ;;  %v1450_v5 = vunpack.c.h.s8.bf16 %v750_v60 }
 0x129   : > { %2660 = vmatprep.subr.bf16.mxu0 %v1410_v6  ;;  %3480 = vmatprep.subr.bf16.mxu1 %v1412_v7  ;;  %v1452_v6 = vunpack.c.h.s8.bf16 %v752_v61  ;;  %v754_v7 = vld [vmem:[%s7060_s17 + $0x1e8] sm:$0xff] }
 0x12c   : > { %2661 = vmatpush1.bf16.msra.mxu0 %v1409_v10  ;;  %3481 = vmatpush1.bf16.msra.mxu1 %v1411_v11  ;;  %v1451_v10 = vunpack.c.h.s8.bf16 %v751_v2  ;;  %v1454_v11 = vunpack.c.l.s8.bf16 %v754_v7 }
 0x12d   : > { %2662 = vmatprep.subr.bf16.mxu0 %v1414_v12  ;;  %3482 = vmatprep.subr.bf16.mxu1 %v1416_v13  ;;  %v1456_v12 = vunpack.c.l.s8.bf16 %v756_v8  ;;  %v753_v13 = vld [vmem:[%s7060_s17 + $0x1e0] sm:$0xff] }
 0x130   : > { %2663 = vmatpush1.bf16.msra.mxu0 %v1413_v16  ;;  %3483 = vmatpush1.bf16.msra.mxu1 %v1415_v17  ;;  %v1453_v16 = vunpack.c.l.s8.bf16 %v753_v13  ;;  %v1455_v17 = vunpack.c.l.s8.bf16 %v755_v14 }
 0x131   : > { %2664 = vmatprep.subr.bf16.mxu0 %v1418_v18  ;;  %3484 = vmatprep.subr.bf16.mxu1 %v1420_v19  ;;  %v1458_v18 = vunpack.c.h.s8.bf16 %v754_v7  ;;  %v1460_v19 = vunpack.c.h.s8.bf16 %v756_v8 }
 0x134   : > { %2665 = vmatpush1.bf16.msra.mxu0 %v1417_v22  ;;  %3485 = vmatpush1.bf16.msra.mxu1 %v1419_v23  ;;  %v7174_v22 = vrot.slane %v7168_v15, %v7102_v49  ;;  %v1457_v23 = vunpack.c.h.s8.bf16 %v753_v13 }
 0x135   : > { %2666 = vmatprep.subr.bf16.mxu0 %v1422_v24  ;;  %3486 = vmatprep.subr.bf16.mxu1 %v1424_v25  ;;  %v1459_v24 = vunpack.c.h.s8.bf16 %v755_v14  ;;  %v1462_v25 = vunpack.c.l.s8.bf16 %v758_v20 }
 0x138   : > { %2667 = vmatpush1.bf16.msra.mxu0 %v1421_v28  ;;  %3487 = vmatpush1.bf16.msra.mxu1 %v1423_v29  ;;  %v759_v28 = vld [vmem:[%s7060_s17 + $0x210] sm:$0xff]  ;;  %v475_v29 = vcombine.high %v7174_v22, %v7174_v22 }
 0x139   : > { %2668 = vmatprep.subr.bf16.mxu0 %v1426_v30  ;;  %3488 = vmatprep.subr.bf16.mxu1 %v1428_v31  ;;  %v655_v30 = vpack.c.bf16 %v7131_v46, %v7131_v46  ;;  %v1461_v31 = vunpack.c.l.s8.bf16 %v757_v27  ;;  %v1463_v32 = vunpack.c.l.s8.bf16 %v759_v28  ;;  %v1467_v40 = vunpack.c.h.s8.bf16 %v759_v28 }
 0x13c   : > { %2669 = vmatpush1.bf16.msra.mxu0 %v1425_v34  ;;  %3489 = vmatpush1.bf16.msra.mxu1 %v1427_v35  ;;  %v1468_v34 = vunpack.c.h.s8.bf16 %v760_v21  ;;  %v762_v35 = vld [vmem:[%s7060_s17 + $0x228] sm:$0xff] }
 0x13d   : > { %2670 = vmatprep.subr.bf16.mxu0 %v1430_v36  ;;  %3490 = vmatprep.subr.bf16.mxu1 %v1432_v37  ;;  %v764_v36 = vld [vmem:[%s7060_s17 + $0x238] sm:$0xff]  ;;  %v658_v37 = vpack.c.bf16 %v475_v29, %v475_v29  ;;  %v1470_v46 = vunpack.c.l.s8.bf16 %v762_v35  ;;  %v1474_v48 = vunpack.c.h.s8.bf16 %v762_v35 }
 0x140   : > { %2671 = vmatpush1.bf16.msra.mxu0 %v1429_v41  ;;  %3491 = vmatpush1.bf16.msra.mxu1 %v1431_v42  ;;  %v1472_v41 = vunpack.c.l.s8.bf16 %v764_v36  ;;  %v761_v42 = vld [vmem:[%s7060_s17 + $0x220] sm:$0xff] }
 0x141   : > { %2672 = vmatprep.subr.bf16.mxu0 %v1434_v43  ;;  %3492 = vmatprep.subr.bf16.mxu1 %v1436_v45  ;;  %v763_v43 = vld [vmem:[%s7060_s17 + $0x230] sm:$0xff]  ;;  %v1469_v45 = vunpack.c.l.s8.bf16 %v761_v42 }
 0x142   : > { %v1471_v47 = vunpack.c.l.s8.bf16 %v763_v43  ;;  %v1475_v54 = vunpack.c.h.s8.bf16 %v763_v43  ;;  %v783_v43 = vld [vmem:[%s7060_s17 + $0x2d0] sm:$0xff] }
 0x144   : > { %2673 = vmatpush1.bf16.msra.mxu0 %v1433_v44  ;;  %3493 = vmatpush1.bf16.msra.mxu1 %v1435_v51  ;;  %v1476_v44 = vunpack.c.h.s8.bf16 %v764_v36  ;;  %v766_v51 = vld [vmem:[%s7060_s17 + $0x248] sm:$0xff] }
 0x145   : > { %2674 = vmatprep.subr.bf16.mxu0 %v1438_v52  ;;  %3494 = vmatprep.subr.bf16.mxu1 %v1440_v53  ;;  %v768_v52 = vld [vmem:[%s7060_s17 + $0x258] sm:$0xff]  ;;  %v1473_v53 = vunpack.c.h.s8.bf16 %v761_v42  ;;  %v1478_v55 = vunpack.c.l.s8.bf16 %v766_v51  ;;  %v1482_v61 = vunpack.c.h.s8.bf16 %v766_v51  ;;  %v782_v36 = vld [vmem:[%s7060_s17 + $0x2c8] sm:$0xff]  ;;  %v781_v42 = vld [vmem:[%s7060_s17 + $0x2c0] sm:$0xff] }
 0x146   : > { %v786_v51 = vld [vmem:[%s7060_s17 + $0x2e8] sm:$0xff] }
 0x148   : > { %2675 = vmatpush1.bf16.msra.mxu0 %v1437_v56  ;;  %3495 = vmatpush1.bf16.msra.mxu1 %v1439_v57  ;;  %v1480_v56 = vunpack.c.l.s8.bf16 %v768_v52  ;;  %v765_v57 = vld [vmem:[%s7060_s17 + $0x240] sm:$0xff] }
 0x149   : > { %2676 = vmatprep.subr.bf16.mxu0 %v1442_v58  ;;  %3496 = vmatprep.subr.bf16.mxu1 %v1444_v59  ;;  %v767_v58 = vld [vmem:[%s7060_s17 + $0x250] sm:$0xff]  ;;  %v1477_v59 = vunpack.c.l.s8.bf16 %v765_v57 }
 0x14a   : > { %v1479_v60 = vunpack.c.l.s8.bf16 %v767_v58  ;;  %v1483_v1 = vunpack.c.h.s8.bf16 %v767_v58  ;;  %v787_v58 = vld [vmem:[%s7060_s17 + $0x2f0] sm:$0xff] }
 0x14c   : > { %2677 = vmatpush1.bf16.msra.mxu0 %v1441_v62  ;;  %3497 = vmatpush1.bf16.msra.mxu1 %v1443_v63  ;;  %v1484_v62 = vunpack.c.h.s8.bf16 %v768_v52  ;;  %v770_v63 = vld [vmem:[%s7060_s17 + $0x268] sm:$0xff]  ;;  %v788_v52 = vld [vmem:[%s7060_s17 + $0x2f8] sm:$0xff] }
 0x14d   : > { %2678 = vmatprep.subr.bf16.mxu0 %v1446_v0  ;;  %3498 = vmatprep.subr.bf16.mxu1 %v1448_v50  ;;  %v772_v0 = vld [vmem:[%s7060_s17 + $0x278] sm:$0xff]  ;;  %v1481_v50 = vunpack.c.h.s8.bf16 %v765_v57  ;;  %v1486_v2 = vunpack.c.l.s8.bf16 %v770_v63  ;;  %v1490_v8 = vunpack.c.h.s8.bf16 %v770_v63  ;;  %v785_v57 = vld [vmem:[%s7060_s17 + $0x2e0] sm:$0xff]  ;;  %v1524_v63 = vunpack.c.h.s8.bf16 %v788_v52 }
 0x150   : > { %2679 = vmatpush1.bf16.msra.mxu0 %v1445_v3  ;;  %3499 = vmatpush1.bf16.msra.mxu1 %v1447_v4  ;;  %v1488_v3 = vunpack.c.l.s8.bf16 %v772_v0  ;;  %v769_v4 = vld [vmem:[%s7060_s17 + $0x260] sm:$0xff] }
 0x151   : > { %2680 = vmatprep.subr.bf16.mxu0 %v1450_v5  ;;  %3500 = vmatprep.subr.bf16.mxu1 %v1452_v6  ;;  %v771_v5 = vld [vmem:[%s7060_s17 + $0x270] sm:$0xff]  ;;  %v1485_v6 = vunpack.c.l.s8.bf16 %v769_v4 }
 0x152   : > { %v1487_v7 = vunpack.c.l.s8.bf16 %v771_v5  ;;  %v1491_v13 = vunpack.c.h.s8.bf16 %v771_v5  ;;  %v789_v5 = vld [vmem:[%s7060_s17 + $0x300] sm:$0xff] }
 0x154   : > { %2681 = vmatpush1.bf16.msra.mxu0 %v1449_v9  ;;  %3501 = vmatpush1.bf16.msra.mxu1 %v1451_v10  ;;  %v1492_v9 = vunpack.c.h.s8.bf16 %v772_v0  ;;  %v774_v10 = vld [vmem:[%s7060_s17 + $0x288] sm:$0xff] }
 0x155   : > { %2682 = vmatprep.subr.bf16.mxu0 %v1454_v11  ;;  %3502 = vmatprep.subr.bf16.mxu1 %v1456_v12  ;;  %v776_v11 = vld [vmem:[%s7060_s17 + $0x298] sm:$0xff]  ;;  %v1489_v12 = vunpack.c.h.s8.bf16 %v769_v4  ;;  %v1494_v14 = vunpack.c.l.s8.bf16 %v774_v10  ;;  %v1498_v21 = vunpack.c.h.s8.bf16 %v774_v10  ;;  %v790_v0 = vld [vmem:[%s7060_s17 + $0x308] sm:$0xff] }
 0x158   : > { %2683 = vmatpush1.bf16.msra.mxu0 %v1453_v16  ;;  %3503 = vmatpush1.bf16.msra.mxu1 %v1455_v17  ;;  %v1496_v16 = vunpack.c.l.s8.bf16 %v776_v11  ;;  %v773_v17 = vld [vmem:[%s7060_s17 + $0x280] sm:$0xff] }
 0x159   : > { %2684 = vmatprep.subr.bf16.mxu0 %v1458_v18  ;;  %3504 = vmatprep.subr.bf16.mxu1 %v1460_v19  ;;  %v775_v18 = vld [vmem:[%s7060_s17 + $0x290] sm:$0xff]  ;;  %v1493_v19 = vunpack.c.l.s8.bf16 %v773_v17 }
 0x15a   : > { %v1495_v20 = vunpack.c.l.s8.bf16 %v775_v18  ;;  %v1499_v27 = vunpack.c.h.s8.bf16 %v775_v18 }
 0x15c   : > { %2685 = vmatpush1.bf16.msra.mxu0 %v1457_v23  ;;  %3505 = vmatpush1.bf16.msra.mxu1 %v1459_v24  ;;  %v1500_v23 = vunpack.c.h.s8.bf16 %v776_v11  ;;  %v778_v24 = vld [vmem:[%s7060_s17 + $0x2a8] sm:$0xff]  ;;  %v1530_v11 = vunpack.c.h.s8.bf16 %v790_v0 }
 0x15d   : > { %2695 = vmatprep.subr.bf16.mxu0 %v1462_v25  ;;  %3515 = vmatprep.subr.bf16.mxu1 %v1464_v26  ;;  %v780_v25 = vld [vmem:[%s7060_s17 + $0x2b8] sm:$0xff]  ;;  %v1497_v26 = vunpack.c.h.s8.bf16 %v773_v17  ;;  %v1502_v28 = vunpack.c.l.s8.bf16 %v778_v24  ;;  %v1529_v17 = vunpack.c.h.s8.bf16 %v789_v5 }
 0x15e   : > { %v1504_v29 = vunpack.c.l.s8.bf16 %v780_v25  ;;  %v1508_v35 = vunpack.c.h.s8.bf16 %v780_v25 }
 0x15f   : > { %2687 = vmatmul.mubr.bf16.vlgmr.msra.gmra.mrb[0].mxu0 %v655_v30  ;;  %3507 = vmatmul.mubr.bf16.vlgmr.msra.gmra.mrb[0].mxu1 %v655_v30  ;;  %v777_v30 = vld [vmem:[%s7060_s17 + $0x2a0] sm:$0xff] }
 0x160   : > { %2696 = vmatpush1.bf16.msra.mxu0 %v1461_v31  ;;  %3516 = vmatpush1.bf16.msra.mxu1 %v1463_v32  ;;  %v779_v31 = vld [vmem:[%s7060_s17 + $0x2b0] sm:$0xff]  ;;  %v1501_v32 = vunpack.c.l.s8.bf16 %v777_v30 }
 0x161   : > { %2697 = vmatprep.subr.bf16.mxu0 %v1466_v33  ;;  %3517 = vmatprep.subr.bf16.mxu1 %v1468_v34  ;;  %v1503_v33 = vunpack.c.l.s8.bf16 %v779_v31  ;;  %v1506_v34 = vunpack.c.h.s8.bf16 %v778_v24 }
 0x162   : > { %2727 = vmatprep.mubr.bf16.mxu0 %v658_v37  ;;  %3547 = vmatprep.mubr.bf16.mxu1 %v658_v37  ;;  %v784_v37 = vld [vmem:[%s7060_s17 + $0x2d8] sm:$0xff] }
 0x164   : > { %2698 = vmatpush1.bf16.msra.mxu0 %v1465_v39  ;;  %3518 = vmatpush1.bf16.msra.mxu1 %v1467_v40  ;;  %v1505_v39 = vunpack.c.h.s8.bf16 %v777_v30  ;;  %v1507_v40 = vunpack.c.h.s8.bf16 %v779_v31 }
 0x165   : > { %2699 = vmatprep.subr.bf16.mxu0 %v1470_v46  ;;  %3519 = vmatprep.subr.bf16.mxu1 %v1472_v41  ;;  %v1510_v46 = vunpack.c.l.s8.bf16 %v782_v36  ;;  %v1512_v41 = vunpack.c.l.s8.bf16 %v784_v37 }
 0x168   : > { %2700 = vmatpush1.bf16.msra.mxu0 %v1469_v45  ;;  %3520 = vmatpush1.bf16.msra.mxu1 %v1471_v47  ;;  %v1509_v45 = vunpack.c.l.s8.bf16 %v781_v42  ;;  %v1511_v47 = vunpack.c.l.s8.bf16 %v783_v43 }
 0x169   : > { %2701 = vmatprep.subr.bf16.mxu0 %v1474_v48  ;;  %3521 = vmatprep.subr.bf16.mxu1 %v1476_v44  ;;  %v1514_v48 = vunpack.c.h.s8.bf16 %v782_v36  ;;  %v1516_v44 = vunpack.c.h.s8.bf16 %v784_v37 }
 0x16c   : > { %2702 = vmatpush1.bf16.msra.mxu0 %v1473_v53  ;;  %3522 = vmatpush1.bf16.msra.mxu1 %v1475_v54  ;;  %v1513_v53 = vunpack.c.h.s8.bf16 %v781_v42  ;;  %v1515_v54 = vunpack.c.h.s8.bf16 %v783_v43 }
 0x16d   : > { %2703 = vmatprep.subr.bf16.mxu0 %v1478_v55  ;;  %3523 = vmatprep.subr.bf16.mxu1 %v1480_v56  ;;  %v1518_v55 = vunpack.c.l.s8.bf16 %v786_v51  ;;  %v1520_v56 = vunpack.c.l.s8.bf16 %v788_v52 }
 0x170   : > { %2704 = vmatpush1.bf16.msra.mxu0 %v1477_v59  ;;  %3524 = vmatpush1.bf16.msra.mxu1 %v1479_v60  ;;  %v460_v59 = vcombine.high %v7168_v15, %v7168_v15  ;;  %v1517_v60 = vunpack.c.l.s8.bf16 %v785_v57  ;;  %v1526_v15 = vunpack.c.l.s8.bf16 %v790_v0 }
 0x171   : > { %2705 = vmatprep.subr.bf16.mxu0 %v1482_v61  ;;  %3525 = vmatprep.subr.bf16.mxu1 %v1484_v62  ;;  %v1519_v61 = vunpack.c.l.s8.bf16 %v787_v58  ;;  %v1522_v62 = vunpack.c.h.s8.bf16 %v786_v51 }
 0x174   : > { %2706 = vmatpush1.bf16.msra.mxu0 %v1481_v50  ;;  %3526 = vmatpush1.bf16.msra.mxu1 %v1483_v1  ;;  %v792_v50 = vld [vmem:[%s7060_s17 + $0x318] sm:$0xff]  ;;  %v7215_v1 = vrot.slane %v460_v59, %v7102_v49 }
 0x175   : > { %2707 = vmatprep.subr.bf16.mxu0 %v1486_v2  ;;  %3527 = vmatprep.subr.bf16.mxu1 %v1488_v3  ;;  %v1521_v2 = vunpack.c.h.s8.bf16 %v785_v57  ;;  %v1523_v3 = vunpack.c.h.s8.bf16 %v787_v58  ;;  %v1528_v4 = vunpack.c.l.s8.bf16 %v792_v50 }
 0x178   : > { %2708 = vmatpush1.bf16.msra.mxu0 %v1485_v6  ;;  %3528 = vmatpush1.bf16.msra.mxu1 %v1487_v7  ;;  %v791_v6 = vld [vmem:[%s7060_s17 + $0x310] sm:$0xff]  ;;  %v476_v7 = vcombine.high %v7215_v1, %v7215_v1 }
 0x179   : > { %2709 = vmatprep.subr.bf16.mxu0 %v1490_v8  ;;  %3529 = vmatprep.subr.bf16.mxu1 %v1492_v9  ;;  %v657_v8 = vpack.c.bf16 %v7174_v22, %v7174_v22  ;;  %v1525_v9 = vunpack.c.l.s8.bf16 %v789_v5  ;;  %v1527_v10 = vunpack.c.l.s8.bf16 %v791_v6  ;;  %v1531_v18 = vunpack.c.h.s8.bf16 %v791_v6 }
 0x17c   : > { %2710 = vmatpush1.bf16.msra.mxu0 %v1489_v12  ;;  %3530 = vmatpush1.bf16.msra.mxu1 %v1491_v13  ;;  %v1532_v12 = vunpack.c.h.s8.bf16 %v792_v50  ;;  %v794_v13 = vld [vmem:[%s7060_s17 + $0x328] sm:$0xff] }
 0x17d   : > { %2711 = vmatprep.subr.bf16.mxu0 %v1494_v14  ;;  %3531 = vmatprep.subr.bf16.mxu1 %v1496_v16  ;;  %v796_v14 = vld [vmem:[%s7060_s17 + $0x338] sm:$0xff]  ;;  %v660_v16 = vpack.c.bf16 %v476_v7, %v476_v7  ;;  %v1534_v22 = vunpack.c.l.s8.bf16 %v794_v13  ;;  %v1538_v25 = vunpack.c.h.s8.bf16 %v794_v13  ;;  %v809_v7 = vld [vmem:[%s7060_s17 + $0x3a0] sm:$0xff]  ;;  %v814_v13 = vld [vmem:[%s7060_s17 + $0x3c8] sm:$0xff] }
 0x180   : > { %2712 = vmatpush1.bf16.msra.mxu0 %v1493_v19  ;;  %3532 = vmatpush1.bf16.msra.mxu1 %v1495_v20  ;;  %v1536_v19 = vunpack.c.l.s8.bf16 %v796_v14  ;;  %v793_v20 = vld [vmem:[%s7060_s17 + $0x320] sm:$0xff] }
 0x181   : > { %2713 = vmatprep.subr.bf16.mxu0 %v1498_v21  ;;  %3533 = vmatprep.subr.bf16.mxu1 %v1500_v23  ;;  %v795_v21 = vld [vmem:[%s7060_s17 + $0x330] sm:$0xff]  ;;  %v1533_v23 = vunpack.c.l.s8.bf16 %v793_v20 }
 0x182   : > { %v1535_v24 = vunpack.c.l.s8.bf16 %v795_v21  ;;  %v1539_v30 = vunpack.c.h.s8.bf16 %v795_v21 }
 0x184   : > { %2714 = vmatpush1.bf16.msra.mxu0 %v1497_v26  ;;  %3534 = vmatpush1.bf16.msra.mxu1 %v1499_v27  ;;  %v1540_v26 = vunpack.c.h.s8.bf16 %v796_v14  ;;  %v798_v27 = vld [vmem:[%s7060_s17 + $0x348] sm:$0xff]  ;;  %v816_v14 = vld [vmem:[%s7060_s17 + $0x3d8] sm:$0xff] }
 0x185   : > { %2715 = vmatprep.subr.bf16.mxu0 %v1502_v28  ;;  %3535 = vmatprep.subr.bf16.mxu1 %v1504_v29  ;;  %v800_v28 = vld [vmem:[%s7060_s17 + $0x358] sm:$0xff]  ;;  %v1537_v29 = vunpack.c.h.s8.bf16 %v793_v20  ;;  %v1542_v31 = vunpack.c.l.s8.bf16 %v798_v27  ;;  %v1546_v37 = vunpack.c.h.s8.bf16 %v798_v27  ;;  %v815_v20 = vld [vmem:[%s7060_s17 + $0x3d0] sm:$0xff] }
 0x186   : > { %v820_v27 = vld [vmem:[%s7060_s17 + $0x3f8] sm:$0xff] }
 0x188   : > { %2716 = vmatpush1.bf16.msra.mxu0 %v1501_v32  ;;  %3536 = vmatpush1.bf16.msra.mxu1 %v1503_v33  ;;  %v1544_v32 = vunpack.c.l.s8.bf16 %v800_v28  ;;  %v797_v33 = vld [vmem:[%s7060_s17 + $0x340] sm:$0xff] }
 0x189   : > { %2717 = vmatprep.subr.bf16.mxu0 %v1506_v34  ;;  %3537 = vmatprep.subr.bf16.mxu1 %v1508_v35  ;;  %v799_v34 = vld [vmem:[%s7060_s17 + $0x350] sm:$0xff]  ;;  %v1541_v35 = vunpack.c.l.s8.bf16 %v797_v33 }
 0x18a   : > { %v1543_v36 = vunpack.c.l.s8.bf16 %v799_v34  ;;  %v1547_v42 = vunpack.c.h.s8.bf16 %v799_v34  ;;  %v7252_v34 = vld [vmem:[%s7053_s30 + $0x10] sm:$0xff] }
 0x18c   : > { %2718 = vmatpush1.bf16.msra.mxu0 %v1505_v39  ;;  %3538 = vmatpush1.bf16.msra.mxu1 %v1507_v40  ;;  %v1548_v39 = vunpack.c.h.s8.bf16 %v800_v28  ;;  %v802_v40 = vld [vmem:[%s7060_s17 + $0x368] sm:$0xff] }
 0x18d   : > { %2719 = vmatprep.subr.bf16.mxu0 %v1510_v46  ;;  %3539 = vmatprep.subr.bf16.mxu1 %v1512_v41  ;;  %v804_v46 = vld [vmem:[%s7060_s17 + $0x378] sm:$0xff]  ;;  %v1545_v41 = vunpack.c.h.s8.bf16 %v797_v33  ;;  %v1550_v43 = vunpack.c.l.s8.bf16 %v802_v40  ;;  %v1554_v52 = vunpack.c.h.s8.bf16 %v802_v40  ;;  %v819_v33 = vld [vmem:[%s7060_s17 + $0x3f0] sm:$0xff]  ;;  %v822_v40 = vld [vmem:[%s7060_s17 + $0x408] sm:$0xff] }
 0x190   : > { %2720 = vmatpush1.bf16.msra.mxu0 %v1509_v45  ;;  %3540 = vmatpush1.bf16.msra.mxu1 %v1511_v47  ;;  %v1552_v45 = vunpack.c.l.s8.bf16 %v804_v46  ;;  %v801_v47 = vld [vmem:[%s7060_s17 + $0x360] sm:$0xff] }
 0x191   : > { %2721 = vmatprep.subr.bf16.mxu0 %v1514_v48  ;;  %3541 = vmatprep.subr.bf16.mxu1 %v1516_v44  ;;  %v803_v48 = vld [vmem:[%s7060_s17 + $0x370] sm:$0xff]  ;;  %v1549_v44 = vunpack.c.l.s8.bf16 %v801_v47 }
 0x192   : > { %v1551_v51 = vunpack.c.l.s8.bf16 %v803_v48  ;;  %v1555_v57 = vunpack.c.h.s8.bf16 %v803_v48  ;;  %v821_v48 = vld [vmem:[%s7060_s17 + $0x400] sm:$0xff] }
 0x194   : > { %2722 = vmatpush1.bf16.msra.mxu0 %v1513_v53  ;;  %3542 = vmatpush1.bf16.msra.mxu1 %v1515_v54  ;;  %v1556_v53 = vunpack.c.h.s8.bf16 %v804_v46  ;;  %v806_v54 = vld [vmem:[%s7060_s17 + $0x388] sm:$0xff]  ;;  %v824_v46 = vld [vmem:[%s7060_s17 + $0x418] sm:$0xff] }
 0x195   : > { %2723 = vmatprep.subr.bf16.mxu0 %v1518_v55  ;;  %3543 = vmatprep.subr.bf16.mxu1 %v1520_v56  ;;  %v808_v55 = vld [vmem:[%s7060_s17 + $0x398] sm:$0xff]  ;;  %v1553_v56 = vunpack.c.h.s8.bf16 %v801_v47  ;;  %v1558_v58 = vunpack.c.l.s8.bf16 %v806_v54  ;;  %v1562_v0 = vunpack.c.h.s8.bf16 %v806_v54  ;;  %v1592_v47 = vunpack.c.l.s8.bf16 %v824_v46 }
 0x196   : > { %v1560_v59 = vunpack.c.l.s8.bf16 %v808_v55  ;;  %v1564_v50 = vunpack.c.h.s8.bf16 %v808_v55  ;;  %v1594_v55 = vunpack.c.h.s8.bf16 %v822_v40 }
 0x198   : > { %2724 = vmatpush1.bf16.msra.mxu0 %v1517_v60  ;;  %3544 = vmatpush1.bf16.msra.mxu1 %v1519_v61  ;;  %v805_v60 = vld [vmem:[%s7060_s17 + $0x380] sm:$0xff]  ;;  %v807_v61 = vld [vmem:[%s7060_s17 + $0x390] sm:$0xff] }
 0x199   : > { %2725 = vmatprep.subr.bf16.mxu0 %v1522_v62  ;;  %3545 = vmatprep.subr.bf16.mxu1 %v1524_v63  ;;  %v1557_v62 = vunpack.c.l.s8.bf16 %v805_v60  ;;  %v1559_v63 = vunpack.c.l.s8.bf16 %v807_v61 }
 0x19c   : > { %2726 = vmatpush1.bf16.msra.mxu0 %v1521_v2  ;;  %3546 = vmatpush1.bf16.msra.mxu1 %v1523_v3  ;;  %v810_v2 = vld [vmem:[%s7060_s17 + $0x3a8] sm:$0xff]  ;;  %v812_v3 = vld [vmem:[%s7060_s17 + $0x3b8] sm:$0xff] }
 0x19d   : > { %2736 = vmatprep.subr.bf16.mxu0 %v1526_v15  ;;  %3556 = vmatprep.subr.bf16.mxu1 %v1528_v4  ;;  %v1561_v15 = vunpack.c.h.s8.bf16 %v805_v60  ;;  %v1563_v4 = vunpack.c.h.s8.bf16 %v807_v61  ;;  %v1566_v5 = vunpack.c.l.s8.bf16 %v810_v2  ;;  %v1568_v6 = vunpack.c.l.s8.bf16 %v812_v3 }
 0x19e   : > { %v1593_v60 = vunpack.c.h.s8.bf16 %v821_v48 }
 0x19f   : > { %2728 = vmatmul.mubr.bf16.vlgmr.msra.gmra.mrb[0].mxu0 %v657_v8  ;;  %3548 = vmatmul.mubr.bf16.vlgmr.msra.gmra.mrb[0].mxu1 %v657_v8  ;;  %v811_v8 = vld [vmem:[%s7060_s17 + $0x3b0] sm:$0xff] }
 0x1a0   : > { %2737 = vmatpush1.bf16.msra.mxu0 %v1525_v9  ;;  %3557 = vmatpush1.bf16.msra.mxu1 %v1527_v10  ;;  %v1565_v9 = vunpack.c.l.s8.bf16 %v809_v7  ;;  %v1567_v10 = vunpack.c.l.s8.bf16 %v811_v8 }
 0x1a1   : > { %2738 = vmatprep.subr.bf16.mxu0 %v1530_v11  ;;  %3558 = vmatprep.subr.bf16.mxu1 %v1532_v12  ;;  %v1570_v11 = vunpack.c.h.s8.bf16 %v810_v2  ;;  %v1572_v12 = vunpack.c.h.s8.bf16 %v812_v3 }
 0x1a2   : > { %2768 = vmatprep.mubr.bf16.mxu0 %v660_v16  ;;  %3588 = vmatprep.mubr.bf16.mxu1 %v660_v16  ;;  %v1569_v16 = vunpack.c.h.s8.bf16 %v809_v7 }
 0x1a4   : > { %2739 = vmatpush1.bf16.msra.mxu0 %v1529_v17  ;;  %3559 = vmatpush1.bf16.msra.mxu1 %v1531_v18  ;;  %v1571_v17 = vunpack.c.h.s8.bf16 %v811_v8  ;;  %v1574_v18 = vunpack.c.l.s8.bf16 %v814_v13 }
 0x1a5   : > { %2740 = vmatprep.subr.bf16.mxu0 %v1534_v22  ;;  %3560 = vmatprep.subr.bf16.mxu1 %v1536_v19  ;;  %v1576_v22 = vunpack.c.l.s8.bf16 %v816_v14  ;;  %v813_v19 = vld [vmem:[%s7060_s17 + $0x3c0] sm:$0xff] }
 0x1a6   : > { %v1573_v21 = vunpack.c.l.s8.bf16 %v813_v19  ;;  %v1577_v28 = vunpack.c.h.s8.bf16 %v813_v19 }
 0x1a8   : > { %2741 = vmatpush1.bf16.msra.mxu0 %v1533_v23  ;;  %3561 = vmatpush1.bf16.msra.mxu1 %v1535_v24  ;;  %v1575_v23 = vunpack.c.l.s8.bf16 %v815_v20  ;;  %v1578_v24 = vunpack.c.h.s8.bf16 %v814_v13 }
 0x1a9   : > { %2742 = vmatprep.subr.bf16.mxu0 %v1538_v25  ;;  %3562 = vmatprep.subr.bf16.mxu1 %v1540_v26  ;;  %v1580_v25 = vunpack.c.h.s8.bf16 %v816_v14  ;;  %v818_v26 = vld [vmem:[%s7060_s17 + $0x3e8] sm:$0xff] }
 0x1ac   : > { %2743 = vmatpush1.bf16.msra.mxu0 %v1537_v29  ;;  %3563 = vmatpush1.bf16.msra.mxu1 %v1539_v30  ;;  %v1579_v29 = vunpack.c.h.s8.bf16 %v815_v20  ;;  %v1582_v30 = vunpack.c.l.s8.bf16 %v818_v26 }
 0x1ad   : > { %2744 = vmatprep.subr.bf16.mxu0 %v1542_v31  ;;  %3564 = vmatprep.subr.bf16.mxu1 %v1544_v32  ;;  %v1584_v31 = vunpack.c.l.s8.bf16 %v820_v27  ;;  %v817_v32 = vld [vmem:[%s7060_s17 + $0x3e0] sm:$0xff] }
 0x1b0   : > { %2745 = vmatpush1.bf16.msra.mxu0 %v1541_v35  ;;  %3565 = vmatpush1.bf16.msra.mxu1 %v1543_v36  ;;  %v1581_v35 = vunpack.c.l.s8.bf16 %v817_v32  ;;  %v1583_v36 = vunpack.c.l.s8.bf16 %v819_v33 }
 0x1b1   : > { %2746 = vmatprep.subr.bf16.mxu0 %v1546_v37  ;;  %3566 = vmatprep.subr.bf16.mxu1 %v1548_v39  ;;  %v1586_v37 = vunpack.c.h.s8.bf16 %v818_v26  ;;  %v1588_v39 = vunpack.c.h.s8.bf16 %v820_v27 }
 0x1b4   : > { %2747 = vmatpush1.bf16.msra.mxu0 %v1545_v41  ;;  %3567 = vmatpush1.bf16.msra.mxu1 %v1547_v42  ;;  %v7258_v41 = vrot.slane %v7252_v34, %v7102_v49  ;;  %v1585_v42 = vunpack.c.h.s8.bf16 %v817_v32 }
 0x1b5   : > { %2748 = vmatprep.subr.bf16.mxu0 %v1550_v43  ;;  %3568 = vmatprep.subr.bf16.mxu1 %v1552_v45  ;;  %v1587_v43 = vunpack.c.h.s8.bf16 %v819_v33  ;;  %v1590_v45 = vunpack.c.l.s8.bf16 %v822_v40 }
 0x1b8   : > { %2749 = vmatpush1.bf16.msra.mxu0 %v1549_v44  ;;  %3569 = vmatpush1.bf16.msra.mxu1 %v1551_v51  ;;  %v823_v44 = vld [vmem:[%s7060_s17 + $0x410] sm:$0xff]  ;;  %v492_v51 = vcombine.high %v7258_v41, %v7258_v41 }
 0x1b9   : > { %2750 = vmatprep.subr.bf16.mxu0 %v1554_v52  ;;  %3570 = vmatprep.subr.bf16.mxu1 %v1556_v53  ;;  %v659_v52 = vpack.c.bf16 %v7215_v1, %v7215_v1  ;;  %v1589_v53 = vunpack.c.l.s8.bf16 %v821_v48  ;;  %v1591_v54 = vunpack.c.l.s8.bf16 %v823_v44  ;;  %v1595_v61 = vunpack.c.h.s8.bf16 %v823_v44 }
 0x1bc   : > { %2751 = vmatpush1.bf16.msra.mxu0 %v1553_v56  ;;  %3571 = vmatpush1.bf16.msra.mxu1 %v1555_v57  ;;  %v1596_v56 = vunpack.c.h.s8.bf16 %v824_v46  ;;  %v826_v57 = vld [vmem:[%s7060_s17 + $0x428] sm:$0xff] }
 0x1bd   : > { %2752 = vmatprep.subr.bf16.mxu0 %v1558_v58  ;;  %3572 = vmatprep.subr.bf16.mxu1 %v1560_v59  ;;  %v828_v58 = vld [vmem:[%s7060_s17 + $0x438] sm:$0xff]  ;;  %v662_v59 = vpack.c.bf16 %v492_v51, %v492_v51  ;;  %v1598_v1 = vunpack.c.l.s8.bf16 %v826_v57  ;;  %v1602_v3 = vunpack.c.h.s8.bf16 %v826_v57 }
 0x1c0   : > { %2753 = vmatpush1.bf16.msra.mxu0 %v1557_v62  ;;  %3573 = vmatpush1.bf16.msra.mxu1 %v1559_v63  ;;  %v1600_v62 = vunpack.c.l.s8.bf16 %v828_v58  ;;  %v825_v63 = vld [vmem:[%s7060_s17 + $0x420] sm:$0xff] }
 0x1c1   : > { %2754 = vmatprep.subr.bf16.mxu0 %v1562_v0  ;;  %3574 = vmatprep.subr.bf16.mxu1 %v1564_v50  ;;  %v827_v0 = vld [vmem:[%s7060_s17 + $0x430] sm:$0xff]  ;;  %v1597_v50 = vunpack.c.l.s8.bf16 %v825_v63 }
 0x1c2   : > { %v1599_v2 = vunpack.c.l.s8.bf16 %v827_v0  ;;  %v1603_v7 = vunpack.c.h.s8.bf16 %v827_v0  ;;  %v847_v0 = vld [vmem:[%s7060_s17 + $0x4d0] sm:$0xff] }
 0x1c4   : > { %2755 = vmatpush1.bf16.msra.mxu0 %v1561_v15  ;;  %3575 = vmatpush1.bf16.msra.mxu1 %v1563_v4  ;;  %v1604_v15 = vunpack.c.h.s8.bf16 %v828_v58  ;;  %v830_v4 = vld [vmem:[%s7060_s17 + $0x448] sm:$0xff] }
 0x1c5   : > { %2756 = vmatprep.subr.bf16.mxu0 %v1566_v5  ;;  %3576 = vmatprep.subr.bf16.mxu1 %v1568_v6  ;;  %v832_v5 = vld [vmem:[%s7060_s17 + $0x458] sm:$0xff]  ;;  %v1601_v6 = vunpack.c.h.s8.bf16 %v825_v63  ;;  %v1606_v8 = vunpack.c.l.s8.bf16 %v830_v4  ;;  %v1610_v14 = vunpack.c.h.s8.bf16 %v830_v4  ;;  %v846_v58 = vld [vmem:[%s7060_s17 + $0x4c8] sm:$0xff]  ;;  %v845_v63 = vld [vmem:[%s7060_s17 + $0x4c0] sm:$0xff] }
 0x1c6   : > { %v850_v4 = vld [vmem:[%s7060_s17 + $0x4e8] sm:$0xff] }
 0x1c8   : > { %2757 = vmatpush1.bf16.msra.mxu0 %v1565_v9  ;;  %3577 = vmatpush1.bf16.msra.mxu1 %v1567_v10  ;;  %v1608_v9 = vunpack.c.l.s8.bf16 %v832_v5  ;;  %v829_v10 = vld [vmem:[%s7060_s17 + $0x440] sm:$0xff] }
 0x1c9   : > { %2758 = vmatprep.subr.bf16.mxu0 %v1570_v11  ;;  %3578 = vmatprep.subr.bf16.mxu1 %v1572_v12  ;;  %v831_v11 = vld [vmem:[%s7060_s17 + $0x450] sm:$0xff]  ;;  %v1605_v12 = vunpack.c.l.s8.bf16 %v829_v10 }
 0x1ca   : > { %v1607_v13 = vunpack.c.l.s8.bf16 %v831_v11  ;;  %v1611_v19 = vunpack.c.h.s8.bf16 %v831_v11  ;;  %v851_v11 = vld [vmem:[%s7060_s17 + $0x4f0] sm:$0xff] }
 0x1cc   : > { %2759 = vmatpush1.bf16.msra.mxu0 %v1569_v16  ;;  %3579 = vmatpush1.bf16.msra.mxu1 %v1571_v17  ;;  %v1612_v16 = vunpack.c.h.s8.bf16 %v832_v5  ;;  %v834_v17 = vld [vmem:[%s7060_s17 + $0x468] sm:$0xff]  ;;  %v852_v5 = vld [vmem:[%s7060_s17 + $0x4f8] sm:$0xff] }
 0x1cd   : > { %2760 = vmatprep.subr.bf16.mxu0 %v1574_v18  ;;  %3580 = vmatprep.subr.bf16.mxu1 %v1576_v22  ;;  %v836_v18 = vld [vmem:[%s7060_s17 + $0x478] sm:$0xff]  ;;  %v1609_v22 = vunpack.c.h.s8.bf16 %v829_v10  ;;  %v1614_v20 = vunpack.c.l.s8.bf16 %v834_v17  ;;  %v1618_v27 = vunpack.c.h.s8.bf16 %v834_v17  ;;  %v849_v10 = vld [vmem:[%s7060_s17 + $0x4e0] sm:$0xff]  ;;  %v1652_v17 = vunpack.c.h.s8.bf16 %v852_v5 }
 0x1d0   : > { %2761 = vmatpush1.bf16.msra.mxu0 %v1573_v21  ;;  %3581 = vmatpush1.bf16.msra.mxu1 %v1575_v23  ;;  %v1616_v21 = vunpack.c.l.s8.bf16 %v836_v18  ;;  %v833_v23 = vld [vmem:[%s7060_s17 + $0x460] sm:$0xff] }
 0x1d1   : > { %2762 = vmatprep.subr.bf16.mxu0 %v1578_v24  ;;  %3582 = vmatprep.subr.bf16.mxu1 %v1580_v25  ;;  %v835_v24 = vld [vmem:[%s7060_s17 + $0x470] sm:$0xff]  ;;  %v1613_v25 = vunpack.c.l.s8.bf16 %v833_v23 }
 0x1d2   : > { %v1615_v26 = vunpack.c.l.s8.bf16 %v835_v24  ;;  %v1619_v32 = vunpack.c.h.s8.bf16 %v835_v24  ;;  %v853_v24 = vld [vmem:[%s7060_s17 + $0x500] sm:$0xff] }
 0x1d4   : > { %2763 = vmatpush1.bf16.msra.mxu0 %v1577_v28  ;;  %3583 = vmatpush1.bf16.msra.mxu1 %v1579_v29  ;;  %v1620_v28 = vunpack.c.h.s8.bf16 %v836_v18  ;;  %v838_v29 = vld [vmem:[%s7060_s17 + $0x488] sm:$0xff] }
 0x1d5   : > { %2764 = vmatprep.subr.bf16.mxu0 %v1582_v30  ;;  %3584 = vmatprep.subr.bf16.mxu1 %v1584_v31  ;;  %v840_v30 = vld [vmem:[%s7060_s17 + $0x498] sm:$0xff]  ;;  %v1617_v31 = vunpack.c.h.s8.bf16 %v833_v23  ;;  %v1622_v33 = vunpack.c.l.s8.bf16 %v838_v29  ;;  %v1626_v46 = vunpack.c.h.s8.bf16 %v838_v29  ;;  %v854_v18 = vld [vmem:[%s7060_s17 + $0x508] sm:$0xff] }
 0x1d8   : > { %2765 = vmatpush1.bf16.msra.mxu0 %v1581_v35  ;;  %3585 = vmatpush1.bf16.msra.mxu1 %v1583_v36  ;;  %v1624_v35 = vunpack.c.l.s8.bf16 %v840_v30  ;;  %v837_v36 = vld [vmem:[%s7060_s17 + $0x480] sm:$0xff] }
 0x1d9   : > { %2766 = vmatprep.subr.bf16.mxu0 %v1586_v37  ;;  %3586 = vmatprep.subr.bf16.mxu1 %v1588_v39  ;;  %v839_v37 = vld [vmem:[%s7060_s17 + $0x490] sm:$0xff]  ;;  %v1621_v39 = vunpack.c.l.s8.bf16 %v837_v36 }
 0x1da   : > { %v1623_v40 = vunpack.c.l.s8.bf16 %v839_v37  ;;  %v1627_v48 = vunpack.c.h.s8.bf16 %v839_v37 }
 0x1dc   : > { %2767 = vmatpush1.bf16.msra.mxu0 %v1585_v42  ;;  %3587 = vmatpush1.bf16.msra.mxu1 %v1587_v43  ;;  %v1628_v42 = vunpack.c.h.s8.bf16 %v840_v30  ;;  %v842_v43 = vld [vmem:[%s7060_s17 + $0x4a8] sm:$0xff]  ;;  %v1658_v30 = vunpack.c.h.s8.bf16 %v854_v18 }
 0x1dd   : > { %2777 = vmatprep.subr.bf16.mxu0 %v1590_v45  ;;  %3597 = vmatprep.subr.bf16.mxu1 %v1592_v47  ;;  %v844_v45 = vld [vmem:[%s7060_s17 + $0x4b8] sm:$0xff]  ;;  %v1625_v47 = vunpack.c.h.s8.bf16 %v837_v36  ;;  %v1630_v44 = vunpack.c.l.s8.bf16 %v842_v43  ;;  %v1657_v36 = vunpack.c.h.s8.bf16 %v853_v24 }
 0x1de   : > { %v1632_v51 = vunpack.c.l.s8.bf16 %v844_v45  ;;  %v1636_v57 = vunpack.c.h.s8.bf16 %v844_v45 }
 0x1df   : > { %2769 = vmatmul.mubr.bf16.vlgmr.msra.gmra.mrb[0].mxu0 %v659_v52  ;;  %3589 = vmatmul.mubr.bf16.vlgmr.msra.gmra.mrb[0].mxu1 %v659_v52  ;;  %v841_v52 = vld [vmem:[%s7060_s17 + $0x4a0] sm:$0xff] }
 0x1e0   : > { %2778 = vmatpush1.bf16.msra.mxu0 %v1589_v53  ;;  %3598 = vmatpush1.bf16.msra.mxu1 %v1591_v54  ;;  %v843_v53 = vld [vmem:[%s7060_s17 + $0x4b0] sm:$0xff]  ;;  %v1629_v54 = vunpack.c.l.s8.bf16 %v841_v52 }
 0x1e1   : > { %2779 = vmatprep.subr.bf16.mxu0 %v1594_v55  ;;  %3599 = vmatprep.subr.bf16.mxu1 %v1596_v56  ;;  %v1631_v55 = vunpack.c.l.s8.bf16 %v843_v53  ;;  %v1634_v56 = vunpack.c.h.s8.bf16 %v842_v43 }
 0x1e2   : > { %2809 = vmatprep.mubr.bf16.mxu0 %v662_v59  ;;  %3629 = vmatprep.mubr.bf16.mxu1 %v662_v59  ;;  %v848_v59 = vld [vmem:[%s7060_s17 + $0x4d8] sm:$0xff] }
 0x1e4   : > { %2780 = vmatpush1.bf16.msra.mxu0 %v1593_v60  ;;  %3600 = vmatpush1.bf16.msra.mxu1 %v1595_v61  ;;  %v1633_v60 = vunpack.c.h.s8.bf16 %v841_v52  ;;  %v1635_v61 = vunpack.c.h.s8.bf16 %v843_v53 }
 0x1e5   : > { %2781 = vmatprep.subr.bf16.mxu0 %v1598_v1  ;;  %3601 = vmatprep.subr.bf16.mxu1 %v1600_v62  ;;  %v1638_v1 = vunpack.c.l.s8.bf16 %v846_v58  ;;  %v1640_v62 = vunpack.c.l.s8.bf16 %v848_v59 }
 0x1e8   : > { %2782 = vmatpush1.bf16.msra.mxu0 %v1597_v50  ;;  %3602 = vmatpush1.bf16.msra.mxu1 %v1599_v2  ;;  %v1637_v50 = vunpack.c.l.s8.bf16 %v845_v63  ;;  %v1639_v2 = vunpack.c.l.s8.bf16 %v847_v0 }
 0x1e9   : > { %2783 = vmatprep.subr.bf16.mxu0 %v1602_v3  ;;  %3603 = vmatprep.subr.bf16.mxu1 %v1604_v15  ;;  %v1642_v3 = vunpack.c.h.s8.bf16 %v846_v58  ;;  %v1644_v15 = vunpack.c.h.s8.bf16 %v848_v59 }
 0x1ec   : > { %2784 = vmatpush1.bf16.msra.mxu0 %v1601_v6  ;;  %3604 = vmatpush1.bf16.msra.mxu1 %v1603_v7  ;;  %v1641_v6 = vunpack.c.h.s8.bf16 %v845_v63  ;;  %v1643_v7 = vunpack.c.h.s8.bf16 %v847_v0 }
 0x1ed   : > { %2785 = vmatprep.subr.bf16.mxu0 %v1606_v8  ;;  %3605 = vmatprep.subr.bf16.mxu1 %v1608_v9  ;;  %v1646_v8 = vunpack.c.l.s8.bf16 %v850_v4  ;;  %v1648_v9 = vunpack.c.l.s8.bf16 %v852_v5 }
 0x1f0   : > { %2786 = vmatpush1.bf16.msra.mxu0 %v1605_v12  ;;  %3606 = vmatpush1.bf16.msra.mxu1 %v1607_v13  ;;  %v477_v12 = vcombine.high %v7252_v34, %v7252_v34  ;;  %v1645_v13 = vunpack.c.l.s8.bf16 %v849_v10  ;;  %v1654_v34 = vunpack.c.l.s8.bf16 %v854_v18 }
 0x1f1   : > { %2787 = vmatprep.subr.bf16.mxu0 %v1610_v14  ;;  %3607 = vmatprep.subr.bf16.mxu1 %v1612_v16  ;;  %v1647_v14 = vunpack.c.l.s8.bf16 %v851_v11  ;;  %v1650_v16 = vunpack.c.h.s8.bf16 %v850_v4 }
 0x1f4   : > { %2788 = vmatpush1.bf16.msra.mxu0 %v1609_v22  ;;  %3608 = vmatpush1.bf16.msra.mxu1 %v1611_v19  ;;  %v856_v22 = vld [vmem:[%s7060_s17 + $0x518] sm:$0xff]  ;;  %v7299_v19 = vrot.slane %v477_v12, %v7102_v49 }
 0x1f5   : > { %2789 = vmatprep.subr.bf16.mxu0 %v1614_v20  ;;  %3609 = vmatprep.subr.bf16.mxu1 %v1616_v21  ;;  %v1649_v20 = vunpack.c.h.s8.bf16 %v849_v10  ;;  %v1651_v21 = vunpack.c.h.s8.bf16 %v851_v11  ;;  %v1656_v23 = vunpack.c.l.s8.bf16 %v856_v22 }
 0x1f8   : > { %2790 = vmatpush1.bf16.msra.mxu0 %v1613_v25  ;;  %3610 = vmatpush1.bf16.msra.mxu1 %v1615_v26  ;;  %v855_v25 = vld [vmem:[%s7060_s17 + $0x510] sm:$0xff]  ;;  %v493_v26 = vcombine.high %v7299_v19, %v7299_v19 }
 0x1f9   : > { %2791 = vmatprep.subr.bf16.mxu0 %v1618_v27  ;;  %3611 = vmatprep.subr.bf16.mxu1 %v1620_v28  ;;  %v661_v27 = vpack.c.bf16 %v7258_v41, %v7258_v41  ;;  %v1653_v28 = vunpack.c.l.s8.bf16 %v853_v24  ;;  %v1655_v29 = vunpack.c.l.s8.bf16 %v855_v25  ;;  %v1659_v37 = vunpack.c.h.s8.bf16 %v855_v25 }
 0x1fc   : > { %2792 = vmatpush1.bf16.msra.mxu0 %v1617_v31  ;;  %3612 = vmatpush1.bf16.msra.mxu1 %v1619_v32  ;;  %v1660_v31 = vunpack.c.h.s8.bf16 %v856_v22  ;;  %v858_v32 = vld [vmem:[%s7060_s17 + $0x528] sm:$0xff] }
 0x1fd   : > { %2793 = vmatprep.subr.bf16.mxu0 %v1622_v33  ;;  %3613 = vmatprep.subr.bf16.mxu1 %v1624_v35  ;;  %v860_v33 = vld [vmem:[%s7060_s17 + $0x538] sm:$0xff]  ;;  %v664_v35 = vpack.c.bf16 %v493_v26, %v493_v26  ;;  %v1662_v41 = vunpack.c.l.s8.bf16 %v858_v32  ;;  %v1666_v45 = vunpack.c.h.s8.bf16 %v858_v32  ;;  %v873_v26 = vld [vmem:[%s7060_s17 + $0x5a0] sm:$0xff]  ;;  %v878_v32 = vld [vmem:[%s7060_s17 + $0x5c8] sm:$0xff] }
 0x200   : > { %2794 = vmatpush1.bf16.msra.mxu0 %v1621_v39  ;;  %3614 = vmatpush1.bf16.msra.mxu1 %v1623_v40  ;;  %v1664_v39 = vunpack.c.l.s8.bf16 %v860_v33  ;;  %v857_v40 = vld [vmem:[%s7060_s17 + $0x520] sm:$0xff] }
 0x201   : > { %2795 = vmatprep.subr.bf16.mxu0 %v1626_v46  ;;  %3615 = vmatprep.subr.bf16.mxu1 %v1628_v42  ;;  %v859_v46 = vld [vmem:[%s7060_s17 + $0x530] sm:$0xff]  ;;  %v1661_v42 = vunpack.c.l.s8.bf16 %v857_v40 }
 0x202   : > { %v1663_v43 = vunpack.c.l.s8.bf16 %v859_v46  ;;  %v1667_v52 = vunpack.c.h.s8.bf16 %v859_v46 }
 0x204   : > { %2796 = vmatpush1.bf16.msra.mxu0 %v1625_v47  ;;  %3616 = vmatpush1.bf16.msra.mxu1 %v1627_v48  ;;  %v1668_v47 = vunpack.c.h.s8.bf16 %v860_v33  ;;  %v862_v48 = vld [vmem:[%s7060_s17 + $0x548] sm:$0xff]  ;;  %v880_v33 = vld [vmem:[%s7060_s17 + $0x5d8] sm:$0xff] }
 0x205   : > { %2797 = vmatprep.subr.bf16.mxu0 %v1630_v44  ;;  %3617 = vmatprep.subr.bf16.mxu1 %v1632_v51  ;;  %v864_v44 = vld [vmem:[%s7060_s17 + $0x558] sm:$0xff]  ;;  %v1665_v51 = vunpack.c.h.s8.bf16 %v857_v40  ;;  %v1670_v53 = vunpack.c.l.s8.bf16 %v862_v48  ;;  %v1674_v59 = vunpack.c.h.s8.bf16 %v862_v48  ;;  %v879_v40 = vld [vmem:[%s7060_s17 + $0x5d0] sm:$0xff] }
 0x206   : > { %v884_v48 = vld [vmem:[%s7060_s17 + $0x5f8] sm:$0xff] }
 0x208   : > { %2798 = vmatpush1.bf16.msra.mxu0 %v1629_v54  ;;  %3618 = vmatpush1.bf16.msra.mxu1 %v1631_v55  ;;  %v1672_v54 = vunpack.c.l.s8.bf16 %v864_v44  ;;  %v861_v55 = vld [vmem:[%s7060_s17 + $0x540] sm:$0xff] }
 0x209   : > { %2799 = vmatprep.subr.bf16.mxu0 %v1634_v56  ;;  %3619 = vmatprep.subr.bf16.mxu1 %v1636_v57  ;;  %v863_v56 = vld [vmem:[%s7060_s17 + $0x550] sm:$0xff]  ;;  %v1669_v57 = vunpack.c.l.s8.bf16 %v861_v55 }
 0x20a   : > { %v1671_v58 = vunpack.c.l.s8.bf16 %v863_v56  ;;  %v1675_v63 = vunpack.c.h.s8.bf16 %v863_v56  ;;  %v7336_v56 = vld [vmem:[%s7053_s30 + $0x18] sm:$0xff] }
 0x20c   : > { %2800 = vmatpush1.bf16.msra.mxu0 %v1633_v60  ;;  %3620 = vmatpush1.bf16.msra.mxu1 %v1635_v61  ;;  %v1676_v60 = vunpack.c.h.s8.bf16 %v864_v44  ;;  %v866_v61 = vld [vmem:[%s7060_s17 + $0x568] sm:$0xff] }
 0x20d   : > { %2801 = vmatprep.subr.bf16.mxu0 %v1638_v1  ;;  %3621 = vmatprep.subr.bf16.mxu1 %v1640_v62  ;;  %v868_v1 = vld [vmem:[%s7060_s17 + $0x578] sm:$0xff]  ;;  %v1673_v62 = vunpack.c.h.s8.bf16 %v861_v55  ;;  %v1678_v0 = vunpack.c.l.s8.bf16 %v866_v61  ;;  %v1682_v5 = vunpack.c.h.s8.bf16 %v866_v61  ;;  %v883_v55 = vld [vmem:[%s7060_s17 + $0x5f0] sm:$0xff]  ;;  %v886_v61 = vld [vmem:[%s7060_s17 + $0x608] sm:$0xff] }
 0x210   : > { %2802 = vmatpush1.bf16.msra.mxu0 %v1637_v50  ;;  %3622 = vmatpush1.bf16.msra.mxu1 %v1639_v2  ;;  %v1680_v50 = vunpack.c.l.s8.bf16 %v868_v1  ;;  %v865_v2 = vld [vmem:[%s7060_s17 + $0x560] sm:$0xff] }
 0x211   : > { %2803 = vmatprep.subr.bf16.mxu0 %v1642_v3  ;;  %3623 = vmatprep.subr.bf16.mxu1 %v1644_v15  ;;  %v867_v3 = vld [vmem:[%s7060_s17 + $0x570] sm:$0xff]  ;;  %v1677_v15 = vunpack.c.l.s8.bf16 %v865_v2 }
 0x212   : > { %v1679_v4 = vunpack.c.l.s8.bf16 %v867_v3  ;;  %v1683_v10 = vunpack.c.h.s8.bf16 %v867_v3  ;;  %v885_v3 = vld [vmem:[%s7060_s17 + $0x600] sm:$0xff] }
 0x214   : > { %2804 = vmatpush1.bf16.msra.mxu0 %v1641_v6  ;;  %3624 = vmatpush1.bf16.msra.mxu1 %v1643_v7  ;;  %v1684_v6 = vunpack.c.h.s8.bf16 %v868_v1  ;;  %v870_v7 = vld [vmem:[%s7060_s17 + $0x588] sm:$0xff]  ;;  %v888_v1 = vld [vmem:[%s7060_s17 + $0x618] sm:$0xff] }
 0x215   : > { %2805 = vmatprep.subr.bf16.mxu0 %v1646_v8  ;;  %3625 = vmatprep.subr.bf16.mxu1 %v1648_v9  ;;  %v872_v8 = vld [vmem:[%s7060_s17 + $0x598] sm:$0xff]  ;;  %v1681_v9 = vunpack.c.h.s8.bf16 %v865_v2  ;;  %v1686_v11 = vunpack.c.l.s8.bf16 %v870_v7  ;;  %v1690_v18 = vunpack.c.h.s8.bf16 %v870_v7  ;;  %v1720_v2 = vunpack.c.l.s8.bf16 %v888_v1 }
 0x216   : > { %v1688_v12 = vunpack.c.l.s8.bf16 %v872_v8  ;;  %v1692_v22 = vunpack.c.h.s8.bf16 %v872_v8  ;;  %v1722_v8 = vunpack.c.h.s8.bf16 %v886_v61 }
 0x218   : > { %2806 = vmatpush1.bf16.msra.mxu0 %v1645_v13  ;;  %3626 = vmatpush1.bf16.msra.mxu1 %v1647_v14  ;;  %v869_v13 = vld [vmem:[%s7060_s17 + $0x580] sm:$0xff]  ;;  %v871_v14 = vld [vmem:[%s7060_s17 + $0x590] sm:$0xff] }
 0x219   : > { %2807 = vmatprep.subr.bf16.mxu0 %v1650_v16  ;;  %3627 = vmatprep.subr.bf16.mxu1 %v1652_v17  ;;  %v1685_v16 = vunpack.c.l.s8.bf16 %v869_v13  ;;  %v1687_v17 = vunpack.c.l.s8.bf16 %v871_v14 }
 0x21c   : > { %2808 = vmatpush1.bf16.msra.mxu0 %v1649_v20  ;;  %3628 = vmatpush1.bf16.msra.mxu1 %v1651_v21  ;;  %v874_v20 = vld [vmem:[%s7060_s17 + $0x5a8] sm:$0xff]  ;;  %v876_v21 = vld [vmem:[%s7060_s17 + $0x5b8] sm:$0xff] }
 0x21d   : > { %2818 = vmatprep.subr.bf16.mxu0 %v1654_v34  ;;  %3638 = vmatprep.subr.bf16.mxu1 %v1656_v23  ;;  %v1689_v34 = vunpack.c.h.s8.bf16 %v869_v13  ;;  %v1691_v23 = vunpack.c.h.s8.bf16 %v871_v14  ;;  %v1694_v24 = vunpack.c.l.s8.bf16 %v874_v20  ;;  %v1696_v25 = vunpack.c.l.s8.bf16 %v876_v21 }
 0x21e   : > { %v1721_v13 = vunpack.c.h.s8.bf16 %v885_v3 }
 0x21f   : > { %2810 = vmatmul.mubr.bf16.vlgmr.msra.gmra.mrb[0].mxu0 %v661_v27  ;;  %3630 = vmatmul.mubr.bf16.vlgmr.msra.gmra.mrb[0].mxu1 %v661_v27  ;;  %v875_v27 = vld [vmem:[%s7060_s17 + $0x5b0] sm:$0xff] }
 0x220   : > { %2819 = vmatpush1.bf16.msra.mxu0 %v1653_v28  ;;  %3639 = vmatpush1.bf16.msra.mxu1 %v1655_v29  ;;  %v1693_v28 = vunpack.c.l.s8.bf16 %v873_v26  ;;  %v1695_v29 = vunpack.c.l.s8.bf16 %v875_v27 }
 0x221   : > { %2820 = vmatprep.subr.bf16.mxu0 %v1658_v30  ;;  %3640 = vmatprep.subr.bf16.mxu1 %v1660_v31  ;;  %v1698_v30 = vunpack.c.h.s8.bf16 %v874_v20  ;;  %v1700_v31 = vunpack.c.h.s8.bf16 %v876_v21 }
 0x222   : > { %2850 = vmatprep.mubr.bf16.mxu0 %v664_v35  ;;  %3670 = vmatprep.mubr.bf16.mxu1 %v664_v35  ;;  %v1697_v35 = vunpack.c.h.s8.bf16 %v873_v26 }
 0x224   : > { %2821 = vmatpush1.bf16.msra.mxu0 %v1657_v36  ;;  %3641 = vmatpush1.bf16.msra.mxu1 %v1659_v37  ;;  %v1699_v36 = vunpack.c.h.s8.bf16 %v875_v27  ;;  %v1702_v37 = vunpack.c.l.s8.bf16 %v878_v32 }
 0x225   : > { %2822 = vmatprep.subr.bf16.mxu0 %v1662_v41  ;;  %3642 = vmatprep.subr.bf16.mxu1 %v1664_v39  ;;  %v1704_v41 = vunpack.c.l.s8.bf16 %v880_v33  ;;  %v877_v39 = vld [vmem:[%s7060_s17 + $0x5c0] sm:$0xff] }
 0x226   : > { %v1701_v46 = vunpack.c.l.s8.bf16 %v877_v39  ;;  %v1705_v44 = vunpack.c.h.s8.bf16 %v877_v39 }
 0x228   : > { %2823 = vmatpush1.bf16.msra.mxu0 %v1661_v42  ;;  %3643 = vmatpush1.bf16.msra.mxu1 %v1663_v43  ;;  %v1703_v42 = vunpack.c.l.s8.bf16 %v879_v40  ;;  %v1706_v43 = vunpack.c.h.s8.bf16 %v878_v32 }
 0x229   : > { %2824 = vmatprep.subr.bf16.mxu0 %v1666_v45  ;;  %3644 = vmatprep.subr.bf16.mxu1 %v1668_v47  ;;  %v1708_v45 = vunpack.c.h.s8.bf16 %v880_v33  ;;  %v882_v47 = vld [vmem:[%s7060_s17 + $0x5e8] sm:$0xff] }
 0x22c   : > { %2825 = vmatpush1.bf16.msra.mxu0 %v1665_v51  ;;  %3645 = vmatpush1.bf16.msra.mxu1 %v1667_v52  ;;  %v1707_v51 = vunpack.c.h.s8.bf16 %v879_v40  ;;  %v1710_v52 = vunpack.c.l.s8.bf16 %v882_v47 }
 0x22d   : > { %2826 = vmatprep.subr.bf16.mxu0 %v1670_v53  ;;  %3646 = vmatprep.subr.bf16.mxu1 %v1672_v54  ;;  %v1712_v53 = vunpack.c.l.s8.bf16 %v884_v48  ;;  %v881_v54 = vld [vmem:[%s7060_s17 + $0x5e0] sm:$0xff] }
 0x230   : > { %2827 = vmatpush1.bf16.msra.mxu0 %v1669_v57  ;;  %3647 = vmatpush1.bf16.msra.mxu1 %v1671_v58  ;;  %v1709_v57 = vunpack.c.l.s8.bf16 %v881_v54  ;;  %v1711_v58 = vunpack.c.l.s8.bf16 %v883_v55 }
 0x231   : > { %2828 = vmatprep.subr.bf16.mxu0 %v1674_v59  ;;  %3648 = vmatprep.subr.bf16.mxu1 %v1676_v60  ;;  %v1714_v59 = vunpack.c.h.s8.bf16 %v882_v47  ;;  %v1716_v60 = vunpack.c.h.s8.bf16 %v884_v48 }
 0x234   : > { %2829 = vmatpush1.bf16.msra.mxu0 %v1673_v62  ;;  %3649 = vmatpush1.bf16.msra.mxu1 %v1675_v63  ;;  %v7342_v62 = vrot.slane %v7336_v56, %v7102_v49  ;;  %v1713_v63 = vunpack.c.h.s8.bf16 %v881_v54 }
 0x235   : > { %2830 = vmatprep.subr.bf16.mxu0 %v1678_v0  ;;  %3650 = vmatprep.subr.bf16.mxu1 %v1680_v50  ;;  %v1715_v0 = vunpack.c.h.s8.bf16 %v883_v55  ;;  %v1718_v50 = vunpack.c.l.s8.bf16 %v886_v61 }
 0x238   : > { %2831 = vmatpush1.bf16.msra.mxu0 %v1677_v15  ;;  %3651 = vmatpush1.bf16.msra.mxu1 %v1679_v4  ;;  %v887_v15 = vld [vmem:[%s7060_s17 + $0x610] sm:$0xff]  ;;  %v509_v4 = vcombine.high %v7342_v62, %v7342_v62 }
 0x239   : > { %2832 = vmatprep.subr.bf16.mxu0 %v1682_v5  ;;  %3652 = vmatprep.subr.bf16.mxu1 %v1684_v6  ;;  %v663_v5 = vpack.c.bf16 %v7299_v19, %v7299_v19  ;;  %v1717_v6 = vunpack.c.l.s8.bf16 %v885_v3  ;;  %v1719_v7 = vunpack.c.l.s8.bf16 %v887_v15  ;;  %v1723_v14 = vunpack.c.h.s8.bf16 %v887_v15 }
 0x23c   : > { %2833 = vmatpush1.bf16.msra.mxu0 %v1681_v9  ;;  %3653 = vmatpush1.bf16.msra.mxu1 %v1683_v10  ;;  %v1724_v9 = vunpack.c.h.s8.bf16 %v888_v1  ;;  %v890_v10 = vld [vmem:[%s7060_s17 + $0x628] sm:$0xff] }
 0x23d   : > { %2834 = vmatprep.subr.bf16.mxu0 %v1686_v11  ;;  %3654 = vmatprep.subr.bf16.mxu1 %v1688_v12  ;;  %v892_v11 = vld [vmem:[%s7060_s17 + $0x638] sm:$0xff]  ;;  %v666_v12 = vpack.c.bf16 %v509_v4, %v509_v4  ;;  %v1726_v19 = vunpack.c.l.s8.bf16 %v890_v10  ;;  %v1730_v21 = vunpack.c.h.s8.bf16 %v890_v10 }
 0x240   : > { %2835 = vmatpush1.bf16.msra.mxu0 %v1685_v16  ;;  %3655 = vmatpush1.bf16.msra.mxu1 %v1687_v17  ;;  %v1728_v16 = vunpack.c.l.s8.bf16 %v892_v11  ;;  %v889_v17 = vld [vmem:[%s7060_s17 + $0x620] sm:$0xff] }
 0x241   : > { %2836 = vmatprep.subr.bf16.mxu0 %v1690_v18  ;;  %3656 = vmatprep.subr.bf16.mxu1 %v1692_v22  ;;  %v891_v18 = vld [vmem:[%s7060_s17 + $0x630] sm:$0xff]  ;;  %v1725_v22 = vunpack.c.l.s8.bf16 %v889_v17 }
 0x242   : > { %v1727_v20 = vunpack.c.l.s8.bf16 %v891_v18  ;;  %v1731_v26 = vunpack.c.h.s8.bf16 %v891_v18  ;;  %v911_v18 = vld [vmem:[%s7060_s17 + $0x6d0] sm:$0xff] }
 0x244   : > { %2837 = vmatpush1.bf16.msra.mxu0 %v1689_v34  ;;  %3657 = vmatpush1.bf16.msra.mxu1 %v1691_v23  ;;  %v1732_v34 = vunpack.c.h.s8.bf16 %v892_v11  ;;  %v894_v23 = vld [vmem:[%s7060_s17 + $0x648] sm:$0xff] }
 0x245   : > { %2838 = vmatprep.subr.bf16.mxu0 %v1694_v24  ;;  %3658 = vmatprep.subr.bf16.mxu1 %v1696_v25  ;;  %v896_v24 = vld [vmem:[%s7060_s17 + $0x658] sm:$0xff]  ;;  %v1729_v25 = vunpack.c.h.s8.bf16 %v889_v17  ;;  %v1734_v27 = vunpack.c.l.s8.bf16 %v894_v23  ;;  %v1738_v33 = vunpack.c.h.s8.bf16 %v894_v23  ;;  %v910_v11 = vld [vmem:[%s7060_s17 + $0x6c8] sm:$0xff]  ;;  %v909_v17 = vld [vmem:[%s7060_s17 + $0x6c0] sm:$0xff] }
 0x246   : > { %v914_v23 = vld [vmem:[%s7060_s17 + $0x6e8] sm:$0xff] }
 0x248   : > { %2839 = vmatpush1.bf16.msra.mxu0 %v1693_v28  ;;  %3659 = vmatpush1.bf16.msra.mxu1 %v1695_v29  ;;  %v1736_v28 = vunpack.c.l.s8.bf16 %v896_v24  ;;  %v893_v29 = vld [vmem:[%s7060_s17 + $0x640] sm:$0xff] }
 0x249   : > { %2840 = vmatprep.subr.bf16.mxu0 %v1698_v30  ;;  %3660 = vmatprep.subr.bf16.mxu1 %v1700_v31  ;;  %v895_v30 = vld [vmem:[%s7060_s17 + $0x650] sm:$0xff]  ;;  %v1733_v31 = vunpack.c.l.s8.bf16 %v893_v29 }
 0x24a   : > { %v1735_v32 = vunpack.c.l.s8.bf16 %v895_v30  ;;  %v1739_v39 = vunpack.c.h.s8.bf16 %v895_v30  ;;  %v915_v30 = vld [vmem:[%s7060_s17 + $0x6f0] sm:$0xff] }
 0x24c   : > { %2841 = vmatpush1.bf16.msra.mxu0 %v1697_v35  ;;  %3661 = vmatpush1.bf16.msra.mxu1 %v1699_v36  ;;  %v1740_v35 = vunpack.c.h.s8.bf16 %v896_v24  ;;  %v898_v36 = vld [vmem:[%s7060_s17 + $0x668] sm:$0xff]  ;;  %v916_v24 = vld [vmem:[%s7060_s17 + $0x6f8] sm:$0xff] }
 0x24d   : > { %2842 = vmatprep.subr.bf16.mxu0 %v1702_v37  ;;  %3662 = vmatprep.subr.bf16.mxu1 %v1704_v41  ;;  %v900_v37 = vld [vmem:[%s7060_s17 + $0x678] sm:$0xff]  ;;  %v1737_v41 = vunpack.c.h.s8.bf16 %v893_v29  ;;  %v1742_v40 = vunpack.c.l.s8.bf16 %v898_v36  ;;  %v1746_v48 = vunpack.c.h.s8.bf16 %v898_v36  ;;  %v913_v29 = vld [vmem:[%s7060_s17 + $0x6e0] sm:$0xff]  ;;  %v1780_v36 = vunpack.c.h.s8.bf16 %v916_v24 }
 0x250   : > { %2843 = vmatpush1.bf16.msra.mxu0 %v1701_v46  ;;  %3663 = vmatpush1.bf16.msra.mxu1 %v1703_v42  ;;  %v1744_v46 = vunpack.c.l.s8.bf16 %v900_v37  ;;  %v897_v42 = vld [vmem:[%s7060_s17 + $0x660] sm:$0xff] }
 0x251   : > { %2844 = vmatprep.subr.bf16.mxu0 %v1706_v43  ;;  %3664 = vmatprep.subr.bf16.mxu1 %v1708_v45  ;;  %v899_v43 = vld [vmem:[%s7060_s17 + $0x670] sm:$0xff]  ;;  %v1741_v45 = vunpack.c.l.s8.bf16 %v897_v42 }
 0x252   : > { %v1743_v47 = vunpack.c.l.s8.bf16 %v899_v43  ;;  %v1747_v54 = vunpack.c.h.s8.bf16 %v899_v43  ;;  %v917_v43 = vld [vmem:[%s7060_s17 + $0x700] sm:$0xff] }
 0x254   : > { %2845 = vmatpush1.bf16.msra.mxu0 %v1705_v44  ;;  %3665 = vmatpush1.bf16.msra.mxu1 %v1707_v51  ;;  %v1748_v44 = vunpack.c.h.s8.bf16 %v900_v37  ;;  %v902_v51 = vld [vmem:[%s7060_s17 + $0x688] sm:$0xff] }
 0x255   : > { %2846 = vmatprep.subr.bf16.mxu0 %v1710_v52  ;;  %3666 = vmatprep.subr.bf16.mxu1 %v1712_v53  ;;  %v904_v52 = vld [vmem:[%s7060_s17 + $0x698] sm:$0xff]  ;;  %v1745_v53 = vunpack.c.h.s8.bf16 %v897_v42  ;;  %v1750_v55 = vunpack.c.l.s8.bf16 %v902_v51  ;;  %v1754_v1 = vunpack.c.h.s8.bf16 %v902_v51  ;;  %v918_v37 = vld [vmem:[%s7060_s17 + $0x708] sm:$0xff] }
 0x258   : > { %2847 = vmatpush1.bf16.msra.mxu0 %v1709_v57  ;;  %3667 = vmatpush1.bf16.msra.mxu1 %v1711_v58  ;;  %v1752_v57 = vunpack.c.l.s8.bf16 %v904_v52  ;;  %v901_v58 = vld [vmem:[%s7060_s17 + $0x680] sm:$0xff] }
 0x259   : > { %2848 = vmatprep.subr.bf16.mxu0 %v1714_v59  ;;  %3668 = vmatprep.subr.bf16.mxu1 %v1716_v60  ;;  %v903_v59 = vld [vmem:[%s7060_s17 + $0x690] sm:$0xff]  ;;  %v1749_v60 = vunpack.c.l.s8.bf16 %v901_v58 }
 0x25a   : > { %v1751_v61 = vunpack.c.l.s8.bf16 %v903_v59  ;;  %v1755_v3 = vunpack.c.h.s8.bf16 %v903_v59 }
 0x25c   : > { %2849 = vmatpush1.bf16.msra.mxu0 %v1713_v63  ;;  %3669 = vmatpush1.bf16.msra.mxu1 %v1715_v0  ;;  %v1756_v63 = vunpack.c.h.s8.bf16 %v904_v52  ;;  %v906_v0 = vld [vmem:[%s7060_s17 + $0x6a8] sm:$0xff]  ;;  %v1786_v52 = vunpack.c.h.s8.bf16 %v918_v37 }
 0x25d   : > { %2859 = vmatprep.subr.bf16.mxu0 %v1718_v50  ;;  %3679 = vmatprep.subr.bf16.mxu1 %v1720_v2  ;;  %v908_v50 = vld [vmem:[%s7060_s17 + $0x6b8] sm:$0xff]  ;;  %v1753_v2 = vunpack.c.h.s8.bf16 %v901_v58  ;;  %v1758_v15 = vunpack.c.l.s8.bf16 %v906_v0  ;;  %v1785_v58 = vunpack.c.h.s8.bf16 %v917_v43 }
 0x25e   : > { %v1760_v4 = vunpack.c.l.s8.bf16 %v908_v50  ;;  %v1764_v10 = vunpack.c.h.s8.bf16 %v908_v50 }
 0x25f   : > { %2851 = vmatmul.mubr.bf16.vlgmr.msra.gmra.mrb[0].mxu0 %v663_v5  ;;  %3671 = vmatmul.mubr.bf16.vlgmr.msra.gmra.mrb[0].mxu1 %v663_v5  ;;  %v905_v5 = vld [vmem:[%s7060_s17 + $0x6a0] sm:$0xff] }
 0x260   : > { %2860 = vmatpush1.bf16.msra.mxu0 %v1717_v6  ;;  %3680 = vmatpush1.bf16.msra.mxu1 %v1719_v7  ;;  %v907_v6 = vld [vmem:[%s7060_s17 + $0x6b0] sm:$0xff]  ;;  %v1757_v7 = vunpack.c.l.s8.bf16 %v905_v5 }
 0x261   : > { %2861 = vmatprep.subr.bf16.mxu0 %v1722_v8  ;;  %3681 = vmatprep.subr.bf16.mxu1 %v1724_v9  ;;  %v1759_v8 = vunpack.c.l.s8.bf16 %v907_v6  ;;  %v1762_v9 = vunpack.c.h.s8.bf16 %v906_v0 }
 0x262   : > { %2891 = vmatprep.mubr.bf16.mxu0 %v666_v12  ;;  %3711 = vmatprep.mubr.bf16.mxu1 %v666_v12  ;;  %v912_v12 = vld [vmem:[%s7060_s17 + $0x6d8] sm:$0xff] }
 0x264   : > { %2862 = vmatpush1.bf16.msra.mxu0 %v1721_v13  ;;  %3682 = vmatpush1.bf16.msra.mxu1 %v1723_v14  ;;  %v1761_v13 = vunpack.c.h.s8.bf16 %v905_v5  ;;  %v1763_v14 = vunpack.c.h.s8.bf16 %v907_v6 }
 0x265   : > { %2863 = vmatprep.subr.bf16.mxu0 %v1726_v19  ;;  %3683 = vmatprep.subr.bf16.mxu1 %v1728_v16  ;;  %v1766_v19 = vunpack.c.l.s8.bf16 %v910_v11  ;;  %v1768_v16 = vunpack.c.l.s8.bf16 %v912_v12 }
 0x268   : > { %2864 = vmatpush1.bf16.msra.mxu0 %v1725_v22  ;;  %3684 = vmatpush1.bf16.msra.mxu1 %v1727_v20  ;;  %v1765_v22 = vunpack.c.l.s8.bf16 %v909_v17  ;;  %v1767_v20 = vunpack.c.l.s8.bf16 %v911_v18 }
 0x269   : > { %2865 = vmatprep.subr.bf16.mxu0 %v1730_v21  ;;  %3685 = vmatprep.subr.bf16.mxu1 %v1732_v34  ;;  %v1770_v21 = vunpack.c.h.s8.bf16 %v910_v11  ;;  %v1772_v34 = vunpack.c.h.s8.bf16 %v912_v12 }
 0x26c   : > { %2866 = vmatpush1.bf16.msra.mxu0 %v1729_v25  ;;  %3686 = vmatpush1.bf16.msra.mxu1 %v1731_v26  ;;  %v1769_v25 = vunpack.c.h.s8.bf16 %v909_v17  ;;  %v1771_v26 = vunpack.c.h.s8.bf16 %v911_v18 }
 0x26d   : > { %2867 = vmatprep.subr.bf16.mxu0 %v1734_v27  ;;  %3687 = vmatprep.subr.bf16.mxu1 %v1736_v28  ;;  %v1774_v27 = vunpack.c.l.s8.bf16 %v914_v23  ;;  %v1776_v28 = vunpack.c.l.s8.bf16 %v916_v24 }
 0x270   : > { %2868 = vmatpush1.bf16.msra.mxu0 %v1733_v31  ;;  %3688 = vmatpush1.bf16.msra.mxu1 %v1735_v32  ;;  %v494_v31 = vcombine.high %v7336_v56, %v7336_v56  ;;  %v1773_v32 = vunpack.c.l.s8.bf16 %v913_v29  ;;  %v1782_v56 = vunpack.c.l.s8.bf16 %v918_v37 }
 0x271   : > { %2869 = vmatprep.subr.bf16.mxu0 %v1738_v33  ;;  %3689 = vmatprep.subr.bf16.mxu1 %v1740_v35  ;;  %v1775_v33 = vunpack.c.l.s8.bf16 %v915_v30  ;;  %v1778_v35 = vunpack.c.h.s8.bf16 %v914_v23 }
 0x274   : > { %2870 = vmatpush1.bf16.msra.mxu0 %v1737_v41  ;;  %3690 = vmatpush1.bf16.msra.mxu1 %v1739_v39  ;;  %v920_v41 = vld [vmem:[%s7060_s17 + $0x718] sm:$0xff]  ;;  %v7383_v39 = vrot.slane %v494_v31, %v7102_v49 }
 0x275   : > { %2871 = vmatprep.subr.bf16.mxu0 %v1742_v40  ;;  %3691 = vmatprep.subr.bf16.mxu1 %v1744_v46  ;;  %v1777_v40 = vunpack.c.h.s8.bf16 %v913_v29  ;;  %v1779_v46 = vunpack.c.h.s8.bf16 %v915_v30  ;;  %v1784_v42 = vunpack.c.l.s8.bf16 %v920_v41 }
 0x278   : > { %2872 = vmatpush1.bf16.msra.mxu0 %v1741_v45  ;;  %3692 = vmatpush1.bf16.msra.mxu1 %v1743_v47  ;;  %v919_v45 = vld [vmem:[%s7060_s17 + $0x710] sm:$0xff]  ;;  %v510_v47 = vcombine.high %v7383_v39, %v7383_v39 }
 0x279   : > { %2873 = vmatprep.subr.bf16.mxu0 %v1746_v48  ;;  %3693 = vmatprep.subr.bf16.mxu1 %v1748_v44  ;;  %v665_v48 = vpack.c.bf16 %v7342_v62, %v7342_v62  ;;  %v1781_v44 = vunpack.c.l.s8.bf16 %v917_v43  ;;  %v1783_v51 = vunpack.c.l.s8.bf16 %v919_v45  ;;  %v1787_v59 = vunpack.c.h.s8.bf16 %v919_v45 }
 0x27c   : > { %2874 = vmatpush1.bf16.msra.mxu0 %v1745_v53  ;;  %3694 = vmatpush1.bf16.msra.mxu1 %v1747_v54  ;;  %v1788_v53 = vunpack.c.h.s8.bf16 %v920_v41  ;;  %v922_v54 = vld [vmem:[%s7060_s17 + $0x728] sm:$0xff] }
 0x27d   : > { %2875 = vmatprep.subr.bf16.mxu0 %v1750_v55  ;;  %3695 = vmatprep.subr.bf16.mxu1 %v1752_v57  ;;  %v924_v55 = vld [vmem:[%s7060_s17 + $0x738] sm:$0xff]  ;;  %v668_v57 = vpack.c.bf16 %v510_v47, %v510_v47  ;;  %v1790_v62 = vunpack.c.l.s8.bf16 %v922_v54  ;;  %v1794_v50 = vunpack.c.h.s8.bf16 %v922_v54  ;;  %v937_v47 = vld [vmem:[%s7060_s17 + $0x7a0] sm:$0xff]  ;;  %v942_v54 = vld [vmem:[%s7060_s17 + $0x7c8] sm:$0xff] }
 0x280   : > { %2876 = vmatpush1.bf16.msra.mxu0 %v1749_v60  ;;  %3696 = vmatpush1.bf16.msra.mxu1 %v1751_v61  ;;  %v1792_v60 = vunpack.c.l.s8.bf16 %v924_v55  ;;  %v921_v61 = vld [vmem:[%s7060_s17 + $0x720] sm:$0xff] }
 0x281   : > { %2877 = vmatprep.subr.bf16.mxu0 %v1754_v1  ;;  %3697 = vmatprep.subr.bf16.mxu1 %v1756_v63  ;;  %v923_v1 = vld [vmem:[%s7060_s17 + $0x730] sm:$0xff]  ;;  %v1789_v63 = vunpack.c.l.s8.bf16 %v921_v61 }
 0x282   : > { %v1791_v0 = vunpack.c.l.s8.bf16 %v923_v1  ;;  %v1795_v5 = vunpack.c.h.s8.bf16 %v923_v1 }
 0x284   : > { %2878 = vmatpush1.bf16.msra.mxu0 %v1753_v2  ;;  %3698 = vmatpush1.bf16.msra.mxu1 %v1755_v3  ;;  %v1796_v2 = vunpack.c.h.s8.bf16 %v924_v55  ;;  %v926_v3 = vld [vmem:[%s7060_s17 + $0x748] sm:$0xff]  ;;  %v944_v55 = vld [vmem:[%s7060_s17 + $0x7d8] sm:$0xff] }
 0x285   : > { %2879 = vmatprep.subr.bf16.mxu0 %v1758_v15  ;;  %3699 = vmatprep.subr.bf16.mxu1 %v1760_v4  ;;  %v928_v15 = vld [vmem:[%s7060_s17 + $0x758] sm:$0xff]  ;;  %v1793_v4 = vunpack.c.h.s8.bf16 %v921_v61  ;;  %v1798_v6 = vunpack.c.l.s8.bf16 %v926_v3  ;;  %v1802_v12 = vunpack.c.h.s8.bf16 %v926_v3  ;;  %v943_v61 = vld [vmem:[%s7060_s17 + $0x7d0] sm:$0xff] }
 0x286   : > { %v948_v3 = vld [vmem:[%s7060_s17 + $0x7f8] sm:$0xff] }
 0x288   : > { %2880 = vmatpush1.bf16.msra.mxu0 %v1757_v7  ;;  %3700 = vmatpush1.bf16.msra.mxu1 %v1759_v8  ;;  %v1800_v7 = vunpack.c.l.s8.bf16 %v928_v15  ;;  %v925_v8 = vld [vmem:[%s7060_s17 + $0x740] sm:$0xff] }
 0x289   : > { %2881 = vmatprep.subr.bf16.mxu0 %v1762_v9  ;;  %3701 = vmatprep.subr.bf16.mxu1 %v1764_v10  ;;  %v927_v9 = vld [vmem:[%s7060_s17 + $0x750] sm:$0xff]  ;;  %v1797_v10 = vunpack.c.l.s8.bf16 %v925_v8 }
 0x28a   : > { %v1799_v11 = vunpack.c.l.s8.bf16 %v927_v9  ;;  %v1803_v17 = vunpack.c.h.s8.bf16 %v927_v9  ;;  %v7420_v9 = vld [vmem:[%s7053_s30 + $0x20] sm:$0xff] }
 0x28c   : > { %2882 = vmatpush1.bf16.msra.mxu0 %v1761_v13  ;;  %3702 = vmatpush1.bf16.msra.mxu1 %v1763_v14  ;;  %v1804_v13 = vunpack.c.h.s8.bf16 %v928_v15  ;;  %v930_v14 = vld [vmem:[%s7060_s17 + $0x768] sm:$0xff] }
 0x28d   : > { %2883 = vmatprep.subr.bf16.mxu0 %v1766_v19  ;;  %3703 = vmatprep.subr.bf16.mxu1 %v1768_v16  ;;  %v932_v19 = vld [vmem:[%s7060_s17 + $0x778] sm:$0xff]  ;;  %v1801_v16 = vunpack.c.h.s8.bf16 %v925_v8  ;;  %v1806_v18 = vunpack.c.l.s8.bf16 %v930_v14  ;;  %v1810_v24 = vunpack.c.h.s8.bf16 %v930_v14  ;;  %v947_v8 = vld [vmem:[%s7060_s17 + $0x7f0] sm:$0xff]  ;;  %v950_v14 = vld [vmem:[%s7060_s17 + $0x808] sm:$0xff] }
 0x290   : > { %2884 = vmatpush1.bf16.msra.mxu0 %v1765_v22  ;;  %3704 = vmatpush1.bf16.msra.mxu1 %v1767_v20  ;;  %v1808_v22 = vunpack.c.l.s8.bf16 %v932_v19  ;;  %v929_v20 = vld [vmem:[%s7060_s17 + $0x760] sm:$0xff] }
 0x291   : > { %2885 = vmatprep.subr.bf16.mxu0 %v1770_v21  ;;  %3705 = vmatprep.subr.bf16.mxu1 %v1772_v34  ;;  %v931_v21 = vld [vmem:[%s7060_s17 + $0x770] sm:$0xff]  ;;  %v1805_v34 = vunpack.c.l.s8.bf16 %v929_v20 }
 0x292   : > { %v1807_v23 = vunpack.c.l.s8.bf16 %v931_v21  ;;  %v1811_v29 = vunpack.c.h.s8.bf16 %v931_v21  ;;  %v949_v21 = vld [vmem:[%s7060_s17 + $0x800] sm:$0xff] }
 0x294   : > { %2886 = vmatpush1.bf16.msra.mxu0 %v1769_v25  ;;  %3706 = vmatpush1.bf16.msra.mxu1 %v1771_v26  ;;  %v1812_v25 = vunpack.c.h.s8.bf16 %v932_v19  ;;  %v934_v26 = vld [vmem:[%s7060_s17 + $0x788] sm:$0xff]  ;;  %v952_v19 = vld [vmem:[%s7060_s17 + $0x818] sm:$0xff] }
 0x295   : > { %2887 = vmatprep.subr.bf16.mxu0 %v1774_v27  ;;  %3707 = vmatprep.subr.bf16.mxu1 %v1776_v28  ;;  %v936_v27 = vld [vmem:[%s7060_s17 + $0x798] sm:$0xff]  ;;  %v1809_v28 = vunpack.c.h.s8.bf16 %v929_v20  ;;  %v1814_v30 = vunpack.c.l.s8.bf16 %v934_v26  ;;  %v1818_v37 = vunpack.c.h.s8.bf16 %v934_v26  ;;  %v1848_v20 = vunpack.c.l.s8.bf16 %v952_v19 }
 0x296   : > { %v1816_v31 = vunpack.c.l.s8.bf16 %v936_v27  ;;  %v1820_v41 = vunpack.c.h.s8.bf16 %v936_v27  ;;  %v1850_v27 = vunpack.c.h.s8.bf16 %v950_v14 }
 0x298   : > { %2888 = vmatpush1.bf16.msra.mxu0 %v1773_v32  ;;  %3708 = vmatpush1.bf16.msra.mxu1 %v1775_v33  ;;  %v933_v32 = vld [vmem:[%s7060_s17 + $0x780] sm:$0xff]  ;;  %v935_v33 = vld [vmem:[%s7060_s17 + $0x790] sm:$0xff] }
 0x299   : > { %2889 = vmatprep.subr.bf16.mxu0 %v1778_v35  ;;  %3709 = vmatprep.subr.bf16.mxu1 %v1780_v36  ;;  %v1813_v35 = vunpack.c.l.s8.bf16 %v933_v32  ;;  %v1815_v36 = vunpack.c.l.s8.bf16 %v935_v33 }
 0x29c   : > { %2890 = vmatpush1.bf16.msra.mxu0 %v1777_v40  ;;  %3710 = vmatpush1.bf16.msra.mxu1 %v1779_v46  ;;  %v938_v40 = vld [vmem:[%s7060_s17 + $0x7a8] sm:$0xff]  ;;  %v940_v46 = vld [vmem:[%s7060_s17 + $0x7b8] sm:$0xff] }
 0x29d   : > { %2900 = vmatprep.subr.bf16.mxu0 %v1782_v56  ;;  %3720 = vmatprep.subr.bf16.mxu1 %v1784_v42  ;;  %v1817_v56 = vunpack.c.h.s8.bf16 %v933_v32  ;;  %v1819_v42 = vunpack.c.h.s8.bf16 %v935_v33  ;;  %v1822_v43 = vunpack.c.l.s8.bf16 %v938_v40  ;;  %v1824_v45 = vunpack.c.l.s8.bf16 %v940_v46 }
 0x29e   : > { %v1849_v32 = vunpack.c.h.s8.bf16 %v949_v21 }
 0x29f   : > { %2892 = vmatmul.mubr.bf16.vlgmr.msra.gmra.mrb[0].mxu0 %v665_v48  ;;  %3712 = vmatmul.mubr.bf16.vlgmr.msra.gmra.mrb[0].mxu1 %v665_v48  ;;  %v939_v48 = vld [vmem:[%s7060_s17 + $0x7b0] sm:$0xff] }
 0x2a0   : > { %2901 = vmatpush1.bf16.msra.mxu0 %v1781_v44  ;;  %3721 = vmatpush1.bf16.msra.mxu1 %v1783_v51  ;;  %v1821_v44 = vunpack.c.l.s8.bf16 %v937_v47  ;;  %v1823_v51 = vunpack.c.l.s8.bf16 %v939_v48 }
 0x2a1   : > { %2902 = vmatprep.subr.bf16.mxu0 %v1786_v52  ;;  %3722 = vmatprep.subr.bf16.mxu1 %v1788_v53  ;;  %v1826_v52 = vunpack.c.h.s8.bf16 %v938_v40  ;;  %v1828_v53 = vunpack.c.h.s8.bf16 %v940_v46 }
 0x2a2   : > { %2932 = vmatprep.mubr.bf16.mxu0 %v668_v57  ;;  %3752 = vmatprep.mubr.bf16.mxu1 %v668_v57  ;;  %v1825_v57 = vunpack.c.h.s8.bf16 %v937_v47 }
 0x2a4   : > { %2903 = vmatpush1.bf16.msra.mxu0 %v1785_v58  ;;  %3723 = vmatpush1.bf16.msra.mxu1 %v1787_v59  ;;  %v1827_v58 = vunpack.c.h.s8.bf16 %v939_v48  ;;  %v1830_v59 = vunpack.c.l.s8.bf16 %v942_v54 }
 0x2a5   : > { %2904 = vmatprep.subr.bf16.mxu0 %v1790_v62  ;;  %3724 = vmatprep.subr.bf16.mxu1 %v1792_v60  ;;  %v1832_v62 = vunpack.c.l.s8.bf16 %v944_v55  ;;  %v941_v60 = vld [vmem:[%s7060_s17 + $0x7c0] sm:$0xff] }
 0x2a6   : > { %v1829_v1 = vunpack.c.l.s8.bf16 %v941_v60  ;;  %v1833_v15 = vunpack.c.h.s8.bf16 %v941_v60 }
 0x2a8   : > { %2905 = vmatpush1.bf16.msra.mxu0 %v1789_v63  ;;  %3725 = vmatpush1.bf16.msra.mxu1 %v1791_v0  ;;  %v1831_v63 = vunpack.c.l.s8.bf16 %v943_v61  ;;  %v1834_v0 = vunpack.c.h.s8.bf16 %v942_v54 }
 0x2a9   : > { %2906 = vmatprep.subr.bf16.mxu0 %v1794_v50  ;;  %3726 = vmatprep.subr.bf16.mxu1 %v1796_v2  ;;  %v1836_v50 = vunpack.c.h.s8.bf16 %v944_v55  ;;  %v946_v2 = vld [vmem:[%s7060_s17 + $0x7e8] sm:$0xff] }
 0x2ac   : > { %2907 = vmatpush1.bf16.msra.mxu0 %v1793_v4  ;;  %3727 = vmatpush1.bf16.msra.mxu1 %v1795_v5  ;;  %v1835_v4 = vunpack.c.h.s8.bf16 %v943_v61  ;;  %v1838_v5 = vunpack.c.l.s8.bf16 %v946_v2 }
 0x2ad   : > { %2908 = vmatprep.subr.bf16.mxu0 %v1798_v6  ;;  %3728 = vmatprep.subr.bf16.mxu1 %v1800_v7  ;;  %v1840_v6 = vunpack.c.l.s8.bf16 %v948_v3  ;;  %v945_v7 = vld [vmem:[%s7060_s17 + $0x7e0] sm:$0xff] }
 0x2b0   : > { %2909 = vmatpush1.bf16.msra.mxu0 %v1797_v10  ;;  %3729 = vmatpush1.bf16.msra.mxu1 %v1799_v11  ;;  %v1837_v10 = vunpack.c.l.s8.bf16 %v945_v7  ;;  %v1839_v11 = vunpack.c.l.s8.bf16 %v947_v8 }
 0x2b1   : > { %2910 = vmatprep.subr.bf16.mxu0 %v1802_v12  ;;  %3730 = vmatprep.subr.bf16.mxu1 %v1804_v13  ;;  %v1842_v12 = vunpack.c.h.s8.bf16 %v946_v2  ;;  %v1844_v13 = vunpack.c.h.s8.bf16 %v948_v3 }
 0x2b4   : > { %2911 = vmatpush1.bf16.msra.mxu0 %v1801_v16  ;;  %3731 = vmatpush1.bf16.msra.mxu1 %v1803_v17  ;;  %v7426_v16 = vrot.slane %v7420_v9, %v7102_v49  ;;  %v1841_v17 = vunpack.c.h.s8.bf16 %v945_v7 }
 0x2b5   : > { %2912 = vmatprep.subr.bf16.mxu0 %v1806_v18  ;;  %3732 = vmatprep.subr.bf16.mxu1 %v1808_v22  ;;  %v1843_v18 = vunpack.c.h.s8.bf16 %v947_v8  ;;  %v1846_v22 = vunpack.c.l.s8.bf16 %v950_v14 }
 0x2b8   : > { %2913 = vmatpush1.bf16.msra.mxu0 %v1805_v34  ;;  %3733 = vmatpush1.bf16.msra.mxu1 %v1807_v23  ;;  %v951_v34 = vld [vmem:[%s7060_s17 + $0x810] sm:$0xff]  ;;  %v526_v23 = vcombine.high %v7426_v16, %v7426_v16 }
 0x2b9   : > { %2914 = vmatprep.subr.bf16.mxu0 %v1810_v24  ;;  %3734 = vmatprep.subr.bf16.mxu1 %v1812_v25  ;;  %v667_v24 = vpack.c.bf16 %v7383_v39, %v7383_v39  ;;  %v1845_v25 = vunpack.c.l.s8.bf16 %v949_v21  ;;  %v1847_v26 = vunpack.c.l.s8.bf16 %v951_v34  ;;  %v1851_v33 = vunpack.c.h.s8.bf16 %v951_v34 }
 0x2bc   : > { %2915 = vmatpush1.bf16.msra.mxu0 %v1809_v28  ;;  %3735 = vmatpush1.bf16.msra.mxu1 %v1811_v29  ;;  %v1852_v28 = vunpack.c.h.s8.bf16 %v952_v19  ;;  %v954_v29 = vld [vmem:[%s7060_s17 + $0x828] sm:$0xff] }
 0x2bd   : > { %2916 = vmatprep.subr.bf16.mxu0 %v1814_v30  ;;  %3736 = vmatprep.subr.bf16.mxu1 %v1816_v31  ;;  %v956_v30 = vld [vmem:[%s7060_s17 + $0x838] sm:$0xff]  ;;  %v670_v31 = vpack.c.bf16 %v526_v23, %v526_v23  ;;  %v1854_v39 = vunpack.c.l.s8.bf16 %v954_v29  ;;  %v1858_v46 = vunpack.c.h.s8.bf16 %v954_v29 }
 0x2c0   : > { %2917 = vmatpush1.bf16.msra.mxu0 %v1813_v35  ;;  %3737 = vmatpush1.bf16.msra.mxu1 %v1815_v36  ;;  %v1856_v35 = vunpack.c.l.s8.bf16 %v956_v30  ;;  %v953_v36 = vld [vmem:[%s7060_s17 + $0x820] sm:$0xff] }
 0x2c1   : > { %2918 = vmatprep.subr.bf16.mxu0 %v1818_v37  ;;  %3738 = vmatprep.subr.bf16.mxu1 %v1820_v41  ;;  %v955_v37 = vld [vmem:[%s7060_s17 + $0x830] sm:$0xff]  ;;  %v1853_v41 = vunpack.c.l.s8.bf16 %v953_v36 }
 0x2c2   : > { %v1855_v40 = vunpack.c.l.s8.bf16 %v955_v37  ;;  %v1859_v47 = vunpack.c.h.s8.bf16 %v955_v37  ;;  %v975_v37 = vld [vmem:[%s7060_s17 + $0x8d0] sm:$0xff] }
 0x2c4   : > { %2919 = vmatpush1.bf16.msra.mxu0 %v1817_v56  ;;  %3739 = vmatpush1.bf16.msra.mxu1 %v1819_v42  ;;  %v1860_v56 = vunpack.c.h.s8.bf16 %v956_v30  ;;  %v958_v42 = vld [vmem:[%s7060_s17 + $0x848] sm:$0xff] }
 0x2c5   : > { %2920 = vmatprep.subr.bf16.mxu0 %v1822_v43  ;;  %3740 = vmatprep.subr.bf16.mxu1 %v1824_v45  ;;  %v960_v43 = vld [vmem:[%s7060_s17 + $0x858] sm:$0xff]  ;;  %v1857_v45 = vunpack.c.h.s8.bf16 %v953_v36  ;;  %v1862_v48 = vunpack.c.l.s8.bf16 %v958_v42  ;;  %v1866_v55 = vunpack.c.h.s8.bf16 %v958_v42  ;;  %v974_v30 = vld [vmem:[%s7060_s17 + $0x8c8] sm:$0xff]  ;;  %v973_v36 = vld [vmem:[%s7060_s17 + $0x8c0] sm:$0xff] }
 0x2c6   : > { %v978_v42 = vld [vmem:[%s7060_s17 + $0x8e8] sm:$0xff] }
 0x2c8   : > { %2921 = vmatpush1.bf16.msra.mxu0 %v1821_v44  ;;  %3741 = vmatpush1.bf16.msra.mxu1 %v1823_v51  ;;  %v1864_v44 = vunpack.c.l.s8.bf16 %v960_v43  ;;  %v957_v51 = vld [vmem:[%s7060_s17 + $0x840] sm:$0xff] }
 0x2c9   : > { %2922 = vmatprep.subr.bf16.mxu0 %v1826_v52  ;;  %3742 = vmatprep.subr.bf16.mxu1 %v1828_v53  ;;  %v959_v52 = vld [vmem:[%s7060_s17 + $0x850] sm:$0xff]  ;;  %v1861_v53 = vunpack.c.l.s8.bf16 %v957_v51 }
 0x2ca   : > { %v1863_v54 = vunpack.c.l.s8.bf16 %v959_v52  ;;  %v1867_v60 = vunpack.c.h.s8.bf16 %v959_v52  ;;  %v979_v52 = vld [vmem:[%s7060_s17 + $0x8f0] sm:$0xff] }
 0x2cc   : > { %2923 = vmatpush1.bf16.msra.mxu0 %v1825_v57  ;;  %3743 = vmatpush1.bf16.msra.mxu1 %v1827_v58  ;;  %v1868_v57 = vunpack.c.h.s8.bf16 %v960_v43  ;;  %v962_v58 = vld [vmem:[%s7060_s17 + $0x868] sm:$0xff]  ;;  %v980_v43 = vld [vmem:[%s7060_s17 + $0x8f8] sm:$0xff] }
 0x2cd   : > { %2924 = vmatprep.subr.bf16.mxu0 %v1830_v59  ;;  %3744 = vmatprep.subr.bf16.mxu1 %v1832_v62  ;;  %v964_v59 = vld [vmem:[%s7060_s17 + $0x878] sm:$0xff]  ;;  %v1865_v62 = vunpack.c.h.s8.bf16 %v957_v51  ;;  %v1870_v61 = vunpack.c.l.s8.bf16 %v962_v58  ;;  %v1874_v3 = vunpack.c.h.s8.bf16 %v962_v58  ;;  %v977_v51 = vld [vmem:[%s7060_s17 + $0x8e0] sm:$0xff]  ;;  %v1908_v58 = vunpack.c.h.s8.bf16 %v980_v43 }
 0x2d0   : > { %2925 = vmatpush1.bf16.msra.mxu0 %v1829_v1  ;;  %3745 = vmatpush1.bf16.msra.mxu1 %v1831_v63  ;;  %v1872_v1 = vunpack.c.l.s8.bf16 %v964_v59  ;;  %v961_v63 = vld [vmem:[%s7060_s17 + $0x860] sm:$0xff] }
 0x2d1   : > { %2926 = vmatprep.subr.bf16.mxu0 %v1834_v0  ;;  %3746 = vmatprep.subr.bf16.mxu1 %v1836_v50  ;;  %v963_v0 = vld [vmem:[%s7060_s17 + $0x870] sm:$0xff]  ;;  %v1869_v50 = vunpack.c.l.s8.bf16 %v961_v63 }
 0x2d2   : > { %v1871_v2 = vunpack.c.l.s8.bf16 %v963_v0  ;;  %v1875_v7 = vunpack.c.h.s8.bf16 %v963_v0  ;;  %v981_v0 = vld [vmem:[%s7060_s17 + $0x900] sm:$0xff] }
 0x2d4   : > { %2927 = vmatpush1.bf16.msra.mxu0 %v1833_v15  ;;  %3747 = vmatpush1.bf16.msra.mxu1 %v1835_v4  ;;  %v1876_v15 = vunpack.c.h.s8.bf16 %v964_v59  ;;  %v966_v4 = vld [vmem:[%s7060_s17 + $0x888] sm:$0xff] }
 0x2d5   : > { %2928 = vmatprep.subr.bf16.mxu0 %v1838_v5  ;;  %3748 = vmatprep.subr.bf16.mxu1 %v1840_v6  ;;  %v968_v5 = vld [vmem:[%s7060_s17 + $0x898] sm:$0xff]  ;;  %v1873_v6 = vunpack.c.h.s8.bf16 %v961_v63  ;;  %v1878_v8 = vunpack.c.l.s8.bf16 %v966_v4  ;;  %v1882_v19 = vunpack.c.h.s8.bf16 %v966_v4  ;;  %v982_v59 = vld [vmem:[%s7060_s17 + $0x908] sm:$0xff] }
 0x2d8   : > { %2929 = vmatpush1.bf16.msra.mxu0 %v1837_v10  ;;  %3749 = vmatpush1.bf16.msra.mxu1 %v1839_v11  ;;  %v1880_v10 = vunpack.c.l.s8.bf16 %v968_v5  ;;  %v965_v11 = vld [vmem:[%s7060_s17 + $0x880] sm:$0xff] }
 0x2d9   : > { %2930 = vmatprep.subr.bf16.mxu0 %v1842_v12  ;;  %3750 = vmatprep.subr.bf16.mxu1 %v1844_v13  ;;  %v967_v12 = vld [vmem:[%s7060_s17 + $0x890] sm:$0xff]  ;;  %v1877_v13 = vunpack.c.l.s8.bf16 %v965_v11 }
 0x2da   : > { %v1879_v14 = vunpack.c.l.s8.bf16 %v967_v12  ;;  %v1883_v21 = vunpack.c.h.s8.bf16 %v967_v12 }
 0x2dc   : > { %2931 = vmatpush1.bf16.msra.mxu0 %v1841_v17  ;;  %3751 = vmatpush1.bf16.msra.mxu1 %v1843_v18  ;;  %v1884_v17 = vunpack.c.h.s8.bf16 %v968_v5  ;;  %v970_v18 = vld [vmem:[%s7060_s17 + $0x8a8] sm:$0xff]  ;;  %v1914_v5 = vunpack.c.h.s8.bf16 %v982_v59 }
 0x2dd   : > { %2941 = vmatprep.subr.bf16.mxu0 %v1846_v22  ;;  %3761 = vmatprep.subr.bf16.mxu1 %v1848_v20  ;;  %v972_v22 = vld [vmem:[%s7060_s17 + $0x8b8] sm:$0xff]  ;;  %v1881_v20 = vunpack.c.h.s8.bf16 %v965_v11  ;;  %v1886_v34 = vunpack.c.l.s8.bf16 %v970_v18  ;;  %v1913_v11 = vunpack.c.h.s8.bf16 %v981_v0 }
 0x2de   : > { %v1888_v23 = vunpack.c.l.s8.bf16 %v972_v22  ;;  %v1892_v29 = vunpack.c.h.s8.bf16 %v972_v22 }
 0x2df   : > { %2933 = vmatmul.mubr.bf16.vlgmr.msra.gmra.mrb[0].mxu0 %v667_v24  ;;  %3753 = vmatmul.mubr.bf16.vlgmr.msra.gmra.mrb[0].mxu1 %v667_v24  ;;  %v969_v24 = vld [vmem:[%s7060_s17 + $0x8a0] sm:$0xff] }
 0x2e0   : > { %2942 = vmatpush1.bf16.msra.mxu0 %v1845_v25  ;;  %3762 = vmatpush1.bf16.msra.mxu1 %v1847_v26  ;;  %v971_v25 = vld [vmem:[%s7060_s17 + $0x8b0] sm:$0xff]  ;;  %v1885_v26 = vunpack.c.l.s8.bf16 %v969_v24 }
 0x2e1   : > { %2943 = vmatprep.subr.bf16.mxu0 %v1850_v27  ;;  %3763 = vmatprep.subr.bf16.mxu1 %v1852_v28  ;;  %v1887_v27 = vunpack.c.l.s8.bf16 %v971_v25  ;;  %v1890_v28 = vunpack.c.h.s8.bf16 %v970_v18 }
 0x2e2   : > { %2973 = vmatprep.mubr.bf16.mxu0 %v670_v31  ;;  %3793 = vmatprep.mubr.bf16.mxu1 %v670_v31  ;;  %v976_v31 = vld [vmem:[%s7060_s17 + $0x8d8] sm:$0xff] }
 0x2e4   : > { %2944 = vmatpush1.bf16.msra.mxu0 %v1849_v32  ;;  %3764 = vmatpush1.bf16.msra.mxu1 %v1851_v33  ;;  %v1889_v32 = vunpack.c.h.s8.bf16 %v969_v24  ;;  %v1891_v33 = vunpack.c.h.s8.bf16 %v971_v25 }
 0x2e5   : > { %2945 = vmatprep.subr.bf16.mxu0 %v1854_v39  ;;  %3765 = vmatprep.subr.bf16.mxu1 %v1856_v35  ;;  %v1894_v39 = vunpack.c.l.s8.bf16 %v974_v30  ;;  %v1896_v35 = vunpack.c.l.s8.bf16 %v976_v31 }
 0x2e8   : > { %2946 = vmatpush1.bf16.msra.mxu0 %v1853_v41  ;;  %3766 = vmatpush1.bf16.msra.mxu1 %v1855_v40  ;;  %v1893_v41 = vunpack.c.l.s8.bf16 %v973_v36  ;;  %v1895_v40 = vunpack.c.l.s8.bf16 %v975_v37 }
 0x2e9   : > { %2947 = vmatprep.subr.bf16.mxu0 %v1858_v46  ;;  %3767 = vmatprep.subr.bf16.mxu1 %v1860_v56  ;;  %v1898_v46 = vunpack.c.h.s8.bf16 %v974_v30  ;;  %v1900_v56 = vunpack.c.h.s8.bf16 %v976_v31 }
 0x2ec   : > { %2948 = vmatpush1.bf16.msra.mxu0 %v1857_v45  ;;  %3768 = vmatpush1.bf16.msra.mxu1 %v1859_v47  ;;  %v1897_v45 = vunpack.c.h.s8.bf16 %v973_v36  ;;  %v1899_v47 = vunpack.c.h.s8.bf16 %v975_v37 }
 0x2ed   : > { %2949 = vmatprep.subr.bf16.mxu0 %v1862_v48  ;;  %3769 = vmatprep.subr.bf16.mxu1 %v1864_v44  ;;  %v1902_v48 = vunpack.c.l.s8.bf16 %v978_v42  ;;  %v1904_v44 = vunpack.c.l.s8.bf16 %v980_v43 }
 0x2f0   : > { %2950 = vmatpush1.bf16.msra.mxu0 %v1861_v53  ;;  %3770 = vmatpush1.bf16.msra.mxu1 %v1863_v54  ;;  %v511_v53 = vcombine.high %v7420_v9, %v7420_v9  ;;  %v1901_v54 = vunpack.c.l.s8.bf16 %v977_v51  ;;  %v1910_v9 = vunpack.c.l.s8.bf16 %v982_v59 }
 0x2f1   : > { %2951 = vmatprep.subr.bf16.mxu0 %v1866_v55  ;;  %3771 = vmatprep.subr.bf16.mxu1 %v1868_v57  ;;  %v1903_v55 = vunpack.c.l.s8.bf16 %v979_v52  ;;  %v1906_v57 = vunpack.c.h.s8.bf16 %v978_v42 }
 0x2f4   : > { %2952 = vmatpush1.bf16.msra.mxu0 %v1865_v62  ;;  %3772 = vmatpush1.bf16.msra.mxu1 %v1867_v60  ;;  %v984_v62 = vld [vmem:[%s7060_s17 + $0x918] sm:$0xff]  ;;  %v7467_v60 = vrot.slane %v511_v53, %v7102_v49 }
 0x2f5   : > { %2953 = vmatprep.subr.bf16.mxu0 %v1870_v61  ;;  %3773 = vmatprep.subr.bf16.mxu1 %v1872_v1  ;;  %v1905_v61 = vunpack.c.h.s8.bf16 %v977_v51  ;;  %v1907_v1 = vunpack.c.h.s8.bf16 %v979_v52  ;;  %v1912_v63 = vunpack.c.l.s8.bf16 %v984_v62 }
 0x2f8   : > { %2954 = vmatpush1.bf16.msra.mxu0 %v1869_v50  ;;  %3774 = vmatpush1.bf16.msra.mxu1 %v1871_v2  ;;  %v983_v50 = vld [vmem:[%s7060_s17 + $0x910] sm:$0xff]  ;;  %v527_v2 = vcombine.high %v7467_v60, %v7467_v60 }
 0x2f9   : > { %2955 = vmatprep.subr.bf16.mxu0 %v1874_v3  ;;  %3775 = vmatprep.subr.bf16.mxu1 %v1876_v15  ;;  %v669_v3 = vpack.c.bf16 %v7426_v16, %v7426_v16  ;;  %v1909_v15 = vunpack.c.l.s8.bf16 %v981_v0  ;;  %v1911_v4 = vunpack.c.l.s8.bf16 %v983_v50  ;;  %v1915_v12 = vunpack.c.h.s8.bf16 %v983_v50 }
 0x2fc   : > { %2956 = vmatpush1.bf16.msra.mxu0 %v1873_v6  ;;  %3776 = vmatpush1.bf16.msra.mxu1 %v1875_v7  ;;  %v1916_v6 = vunpack.c.h.s8.bf16 %v984_v62  ;;  %v986_v7 = vld [vmem:[%s7060_s17 + $0x928] sm:$0xff] }
 0x2fd   : > { %2957 = vmatprep.subr.bf16.mxu0 %v1878_v8  ;;  %3777 = vmatprep.subr.bf16.mxu1 %v1880_v10  ;;  %v988_v8 = vld [vmem:[%s7060_s17 + $0x938] sm:$0xff]  ;;  %v672_v10 = vpack.c.bf16 %v527_v2, %v527_v2  ;;  %v1918_v16 = vunpack.c.l.s8.bf16 %v986_v7  ;;  %v1922_v22 = vunpack.c.h.s8.bf16 %v986_v7  ;;  %v1001_v2 = vld [vmem:[%s7060_s17 + $0x9a0] sm:$0xff]  ;;  %v1006_v7 = vld [vmem:[%s7060_s17 + $0x9c8] sm:$0xff] }
 0x300   : > { %2958 = vmatpush1.bf16.msra.mxu0 %v1877_v13  ;;  %3778 = vmatpush1.bf16.msra.mxu1 %v1879_v14  ;;  %v1920_v13 = vunpack.c.l.s8.bf16 %v988_v8  ;;  %v985_v14 = vld [vmem:[%s7060_s17 + $0x920] sm:$0xff] }
 0x301   : > { %2959 = vmatprep.subr.bf16.mxu0 %v1882_v19  ;;  %3779 = vmatprep.subr.bf16.mxu1 %v1884_v17  ;;  %v987_v19 = vld [vmem:[%s7060_s17 + $0x930] sm:$0xff]  ;;  %v1917_v17 = vunpack.c.l.s8.bf16 %v985_v14 }
 0x302   : > { %v1919_v18 = vunpack.c.l.s8.bf16 %v987_v19  ;;  %v1923_v24 = vunpack.c.h.s8.bf16 %v987_v19 }
 0x304   : > { %2960 = vmatpush1.bf16.msra.mxu0 %v1881_v20  ;;  %3780 = vmatpush1.bf16.msra.mxu1 %v1883_v21  ;;  %v1924_v20 = vunpack.c.h.s8.bf16 %v988_v8  ;;  %v990_v21 = vld [vmem:[%s7060_s17 + $0x948] sm:$0xff]  ;;  %v1008_v8 = vld [vmem:[%s7060_s17 + $0x9d8] sm:$0xff] }
 0x305   : > { %2961 = vmatprep.subr.bf16.mxu0 %v1886_v34  ;;  %3781 = vmatprep.subr.bf16.mxu1 %v1888_v23  ;;  %v992_v34 = vld [vmem:[%s7060_s17 + $0x958] sm:$0xff]  ;;  %v1921_v23 = vunpack.c.h.s8.bf16 %v985_v14  ;;  %v1926_v25 = vunpack.c.l.s8.bf16 %v990_v21  ;;  %v1930_v31 = vunpack.c.h.s8.bf16 %v990_v21  ;;  %v1007_v14 = vld [vmem:[%s7060_s17 + $0x9d0] sm:$0xff] }
 0x306   : > { %v1012_v21 = vld [vmem:[%s7060_s17 + $0x9f8] sm:$0xff] }
 0x308   : > { %2962 = vmatpush1.bf16.msra.mxu0 %v1885_v26  ;;  %3782 = vmatpush1.bf16.msra.mxu1 %v1887_v27  ;;  %v1928_v26 = vunpack.c.l.s8.bf16 %v992_v34  ;;  %v989_v27 = vld [vmem:[%s7060_s17 + $0x940] sm:$0xff] }
 0x309   : > { %2963 = vmatprep.subr.bf16.mxu0 %v1890_v28  ;;  %3783 = vmatprep.subr.bf16.mxu1 %v1892_v29  ;;  %v991_v28 = vld [vmem:[%s7060_s17 + $0x950] sm:$0xff]  ;;  %v1925_v29 = vunpack.c.l.s8.bf16 %v989_v27 }
 0x30a   : > { %v1927_v30 = vunpack.c.l.s8.bf16 %v991_v28  ;;  %v1931_v36 = vunpack.c.h.s8.bf16 %v991_v28  ;;  %v7504_v28 = vld [vmem:[%s7053_s30 + $0x28] sm:$0xff] }
 0x30c   : > { %2964 = vmatpush1.bf16.msra.mxu0 %v1889_v32  ;;  %3784 = vmatpush1.bf16.msra.mxu1 %v1891_v33  ;;  %v1932_v32 = vunpack.c.h.s8.bf16 %v992_v34  ;;  %v994_v33 = vld [vmem:[%s7060_s17 + $0x968] sm:$0xff] }
 0x30d   : > { %2965 = vmatprep.subr.bf16.mxu0 %v1894_v39  ;;  %3785 = vmatprep.subr.bf16.mxu1 %v1896_v35  ;;  %v996_v39 = vld [vmem:[%s7060_s17 + $0x978] sm:$0xff]  ;;  %v1929_v35 = vunpack.c.h.s8.bf16 %v989_v27  ;;  %v1934_v37 = vunpack.c.l.s8.bf16 %v994_v33  ;;  %v1938_v43 = vunpack.c.h.s8.bf16 %v994_v33  ;;  %v1011_v27 = vld [vmem:[%s7060_s17 + $0x9f0] sm:$0xff]  ;;  %v1014_v33 = vld [vmem:[%s7060_s17 + $0xa08] sm:$0xff] }
 0x310   : > { %2966 = vmatpush1.bf16.msra.mxu0 %v1893_v41  ;;  %3786 = vmatpush1.bf16.msra.mxu1 %v1895_v40  ;;  %v1936_v41 = vunpack.c.l.s8.bf16 %v996_v39  ;;  %v993_v40 = vld [vmem:[%s7060_s17 + $0x960] sm:$0xff] }
 0x311   : > { %2967 = vmatprep.subr.bf16.mxu0 %v1898_v46  ;;  %3787 = vmatprep.subr.bf16.mxu1 %v1900_v56  ;;  %v995_v46 = vld [vmem:[%s7060_s17 + $0x970] sm:$0xff]  ;;  %v1933_v56 = vunpack.c.l.s8.bf16 %v993_v40 }
 0x312   : > { %v1935_v42 = vunpack.c.l.s8.bf16 %v995_v46  ;;  %v1939_v51 = vunpack.c.h.s8.bf16 %v995_v46  ;;  %v1013_v46 = vld [vmem:[%s7060_s17 + $0xa00] sm:$0xff] }
 0x314   : > { %2968 = vmatpush1.bf16.msra.mxu0 %v1897_v45  ;;  %3788 = vmatpush1.bf16.msra.mxu1 %v1899_v47  ;;  %v1940_v45 = vunpack.c.h.s8.bf16 %v996_v39  ;;  %v998_v47 = vld [vmem:[%s7060_s17 + $0x988] sm:$0xff]  ;;  %v1016_v39 = vld [vmem:[%s7060_s17 + $0xa18] sm:$0xff] }
 0x315   : > { %2969 = vmatprep.subr.bf16.mxu0 %v1902_v48  ;;  %3789 = vmatprep.subr.bf16.mxu1 %v1904_v44  ;;  %v1000_v48 = vld [vmem:[%s7060_s17 + $0x998] sm:$0xff]  ;;  %v1937_v44 = vunpack.c.h.s8.bf16 %v993_v40  ;;  %v1942_v52 = vunpack.c.l.s8.bf16 %v998_v47  ;;  %v1946_v59 = vunpack.c.h.s8.bf16 %v998_v47  ;;  %v1976_v40 = vunpack.c.l.s8.bf16 %v1016_v39 }
 0x316   : > { %v1944_v53 = vunpack.c.l.s8.bf16 %v1000_v48  ;;  %v1948_v62 = vunpack.c.h.s8.bf16 %v1000_v48  ;;  %v1978_v48 = vunpack.c.h.s8.bf16 %v1014_v33 }
 0x318   : > { %2970 = vmatpush1.bf16.msra.mxu0 %v1901_v54  ;;  %3790 = vmatpush1.bf16.msra.mxu1 %v1903_v55  ;;  %v997_v54 = vld [vmem:[%s7060_s17 + $0x980] sm:$0xff]  ;;  %v999_v55 = vld [vmem:[%s7060_s17 + $0x990] sm:$0xff] }
 0x319   : > { %2971 = vmatprep.subr.bf16.mxu0 %v1906_v57  ;;  %3791 = vmatprep.subr.bf16.mxu1 %v1908_v58  ;;  %v1941_v57 = vunpack.c.l.s8.bf16 %v997_v54  ;;  %v1943_v58 = vunpack.c.l.s8.bf16 %v999_v55 }
 0x31c   : > { %2972 = vmatpush1.bf16.msra.mxu0 %v1905_v61  ;;  %3792 = vmatpush1.bf16.msra.mxu1 %v1907_v1  ;;  %v1002_v61 = vld [vmem:[%s7060_s17 + $0x9a8] sm:$0xff]  ;;  %v1004_v1 = vld [vmem:[%s7060_s17 + $0x9b8] sm:$0xff] }
 0x31d   : > { %2982 = vmatprep.subr.bf16.mxu0 %v1910_v9  ;;  %3802 = vmatprep.subr.bf16.mxu1 %v1912_v63  ;;  %v1945_v9 = vunpack.c.h.s8.bf16 %v997_v54  ;;  %v1947_v63 = vunpack.c.h.s8.bf16 %v999_v55  ;;  %v1950_v0 = vunpack.c.l.s8.bf16 %v1002_v61  ;;  %v1952_v50 = vunpack.c.l.s8.bf16 %v1004_v1 }
 0x31e   : > { %v1977_v54 = vunpack.c.h.s8.bf16 %v1013_v46 }
 0x31f   : > { %2974 = vmatmul.mubr.bf16.vlgmr.msra.gmra.mrb[0].mxu0 %v669_v3  ;;  %3794 = vmatmul.mubr.bf16.vlgmr.msra.gmra.mrb[0].mxu1 %v669_v3  ;;  %v1003_v3 = vld [vmem:[%s7060_s17 + $0x9b0] sm:$0xff] }
 0x320   : > { %2983 = vmatpush1.bf16.msra.mxu0 %v1909_v15  ;;  %3803 = vmatpush1.bf16.msra.mxu1 %v1911_v4  ;;  %v1949_v15 = vunpack.c.l.s8.bf16 %v1001_v2  ;;  %v1951_v4 = vunpack.c.l.s8.bf16 %v1003_v3 }
 0x321   : > { %2984 = vmatprep.subr.bf16.mxu0 %v1914_v5  ;;  %3804 = vmatprep.subr.bf16.mxu1 %v1916_v6  ;;  %v1954_v5 = vunpack.c.h.s8.bf16 %v1002_v61  ;;  %v1956_v6 = vunpack.c.h.s8.bf16 %v1004_v1 }
 0x322   : > { %3014 = vmatprep.mubr.bf16.mxu0 %v672_v10  ;;  %3834 = vmatprep.mubr.bf16.mxu1 %v672_v10  ;;  %v1953_v10 = vunpack.c.h.s8.bf16 %v1001_v2 }
 0x324   : > { %2985 = vmatpush1.bf16.msra.mxu0 %v1913_v11  ;;  %3805 = vmatpush1.bf16.msra.mxu1 %v1915_v12  ;;  %v1955_v11 = vunpack.c.h.s8.bf16 %v1003_v3  ;;  %v1958_v12 = vunpack.c.l.s8.bf16 %v1006_v7 }
 0x325   : > { %2986 = vmatprep.subr.bf16.mxu0 %v1918_v16  ;;  %3806 = vmatprep.subr.bf16.mxu1 %v1920_v13  ;;  %v1960_v16 = vunpack.c.l.s8.bf16 %v1008_v8  ;;  %v1005_v13 = vld [vmem:[%s7060_s17 + $0x9c0] sm:$0xff] }
 0x326   : > { %v1957_v19 = vunpack.c.l.s8.bf16 %v1005_v13  ;;  %v1961_v34 = vunpack.c.h.s8.bf16 %v1005_v13 }
 0x328   : > { %2987 = vmatpush1.bf16.msra.mxu0 %v1917_v17  ;;  %3807 = vmatpush1.bf16.msra.mxu1 %v1919_v18  ;;  %v1959_v17 = vunpack.c.l.s8.bf16 %v1007_v14  ;;  %v1962_v18 = vunpack.c.h.s8.bf16 %v1006_v7 }
 0x329   : > { %2988 = vmatprep.subr.bf16.mxu0 %v1922_v22  ;;  %3808 = vmatprep.subr.bf16.mxu1 %v1924_v20  ;;  %v1964_v22 = vunpack.c.h.s8.bf16 %v1008_v8  ;;  %v1010_v20 = vld [vmem:[%s7060_s17 + $0x9e8] sm:$0xff] }
 0x32c   : > { %2989 = vmatpush1.bf16.msra.mxu0 %v1921_v23  ;;  %3809 = vmatpush1.bf16.msra.mxu1 %v1923_v24  ;;  %v1963_v23 = vunpack.c.h.s8.bf16 %v1007_v14  ;;  %v1966_v24 = vunpack.c.l.s8.bf16 %v1010_v20 }
 0x32d   : > { %2990 = vmatprep.subr.bf16.mxu0 %v1926_v25  ;;  %3810 = vmatprep.subr.bf16.mxu1 %v1928_v26  ;;  %v1968_v25 = vunpack.c.l.s8.bf16 %v1012_v21  ;;  %v1009_v26 = vld [vmem:[%s7060_s17 + $0x9e0] sm:$0xff] }
 0x330   : > { %2991 = vmatpush1.bf16.msra.mxu0 %v1925_v29  ;;  %3811 = vmatpush1.bf16.msra.mxu1 %v1927_v30  ;;  %v1965_v29 = vunpack.c.l.s8.bf16 %v1009_v26  ;;  %v1967_v30 = vunpack.c.l.s8.bf16 %v1011_v27 }
 0x331   : > { %2992 = vmatprep.subr.bf16.mxu0 %v1930_v31  ;;  %3812 = vmatprep.subr.bf16.mxu1 %v1932_v32  ;;  %v1970_v31 = vunpack.c.h.s8.bf16 %v1010_v20  ;;  %v1972_v32 = vunpack.c.h.s8.bf16 %v1012_v21 }
 0x334   : > { %2993 = vmatpush1.bf16.msra.mxu0 %v1929_v35  ;;  %3813 = vmatpush1.bf16.msra.mxu1 %v1931_v36  ;;  %v7510_v35 = vrot.slane %v7504_v28, %v7102_v49  ;;  %v1969_v36 = vunpack.c.h.s8.bf16 %v1009_v26 }
 0x335   : > { %2994 = vmatprep.subr.bf16.mxu0 %v1934_v37  ;;  %3814 = vmatprep.subr.bf16.mxu1 %v1936_v41  ;;  %v1971_v37 = vunpack.c.h.s8.bf16 %v1011_v27  ;;  %v1974_v41 = vunpack.c.l.s8.bf16 %v1014_v33 }
 0x338   : > { %2995 = vmatpush1.bf16.msra.mxu0 %v1933_v56  ;;  %3815 = vmatpush1.bf16.msra.mxu1 %v1935_v42  ;;  %v1015_v56 = vld [vmem:[%s7060_s17 + $0xa10] sm:$0xff]  ;;  %v543_v42 = vcombine.high %v7510_v35, %v7510_v35 }
 0x339   : > { %2996 = vmatprep.subr.bf16.mxu0 %v1938_v43  ;;  %3816 = vmatprep.subr.bf16.mxu1 %v1940_v45  ;;  %v671_v43 = vpack.c.bf16 %v7467_v60, %v7467_v60  ;;  %v1973_v45 = vunpack.c.l.s8.bf16 %v1013_v46  ;;  %v1975_v47 = vunpack.c.l.s8.bf16 %v1015_v56  ;;  %v1979_v55 = vunpack.c.h.s8.bf16 %v1015_v56 }
 0x33c   : > { %2997 = vmatpush1.bf16.msra.mxu0 %v1937_v44  ;;  %3817 = vmatpush1.bf16.msra.mxu1 %v1939_v51  ;;  %v1980_v44 = vunpack.c.h.s8.bf16 %v1016_v39  ;;  %v1018_v51 = vld [vmem:[%s7060_s17 + $0xa28] sm:$0xff] }
 0x33d   : > { %2998 = vmatprep.subr.bf16.mxu0 %v1942_v52  ;;  %3818 = vmatprep.subr.bf16.mxu1 %v1944_v53  ;;  %v1020_v52 = vld [vmem:[%s7060_s17 + $0xa38] sm:$0xff]  ;;  %v674_v53 = vpack.c.bf16 %v543_v42, %v543_v42  ;;  %v1982_v60 = vunpack.c.l.s8.bf16 %v1018_v51  ;;  %v1986_v1 = vunpack.c.h.s8.bf16 %v1018_v51 }
 0x340   : > { %2999 = vmatpush1.bf16.msra.mxu0 %v1941_v57  ;;  %3819 = vmatpush1.bf16.msra.mxu1 %v1943_v58  ;;  %v1984_v57 = vunpack.c.l.s8.bf16 %v1020_v52  ;;  %v1017_v58 = vld [vmem:[%s7060_s17 + $0xa20] sm:$0xff] }
 0x341   : > { %3000 = vmatprep.subr.bf16.mxu0 %v1946_v59  ;;  %3820 = vmatprep.subr.bf16.mxu1 %v1948_v62  ;;  %v1019_v59 = vld [vmem:[%s7060_s17 + $0xa30] sm:$0xff]  ;;  %v1981_v62 = vunpack.c.l.s8.bf16 %v1017_v58 }
 0x342   : > { %v1983_v61 = vunpack.c.l.s8.bf16 %v1019_v59  ;;  %v1987_v2 = vunpack.c.h.s8.bf16 %v1019_v59  ;;  %v1039_v59 = vld [vmem:[%s7060_s17 + $0xad0] sm:$0xff] }
 0x344   : > { %3001 = vmatpush1.bf16.msra.mxu0 %v1945_v9  ;;  %3821 = vmatpush1.bf16.msra.mxu1 %v1947_v63  ;;  %v1988_v9 = vunpack.c.h.s8.bf16 %v1020_v52  ;;  %v1022_v63 = vld [vmem:[%s7060_s17 + $0xa48] sm:$0xff] }
 0x345   : > { %3002 = vmatprep.subr.bf16.mxu0 %v1950_v0  ;;  %3822 = vmatprep.subr.bf16.mxu1 %v1952_v50  ;;  %v1024_v0 = vld [vmem:[%s7060_s17 + $0xa58] sm:$0xff]  ;;  %v1985_v50 = vunpack.c.h.s8.bf16 %v1017_v58  ;;  %v1990_v3 = vunpack.c.l.s8.bf16 %v1022_v63  ;;  %v1994_v8 = vunpack.c.h.s8.bf16 %v1022_v63  ;;  %v1038_v52 = vld [vmem:[%s7060_s17 + $0xac8] sm:$0xff]  ;;  %v1037_v58 = vld [vmem:[%s7060_s17 + $0xac0] sm:$0xff] }
 0x346   : > { %v1042_v63 = vld [vmem:[%s7060_s17 + $0xae8] sm:$0xff] }
 0x348   : > { %3003 = vmatpush1.bf16.msra.mxu0 %v1949_v15  ;;  %3823 = vmatpush1.bf16.msra.mxu1 %v1951_v4  ;;  %v1992_v15 = vunpack.c.l.s8.bf16 %v1024_v0  ;;  %v1021_v4 = vld [vmem:[%s7060_s17 + $0xa40] sm:$0xff] }
 0x349   : > { %3004 = vmatprep.subr.bf16.mxu0 %v1954_v5  ;;  %3824 = vmatprep.subr.bf16.mxu1 %v1956_v6  ;;  %v1023_v5 = vld [vmem:[%s7060_s17 + $0xa50] sm:$0xff]  ;;  %v1989_v6 = vunpack.c.l.s8.bf16 %v1021_v4 }
 0x34a   : > { %v1991_v7 = vunpack.c.l.s8.bf16 %v1023_v5  ;;  %v1995_v13 = vunpack.c.h.s8.bf16 %v1023_v5  ;;  %v1043_v5 = vld [vmem:[%s7060_s17 + $0xaf0] sm:$0xff] }
 0x34c   : > { %3005 = vmatpush1.bf16.msra.mxu0 %v1953_v10  ;;  %3825 = vmatpush1.bf16.msra.mxu1 %v1955_v11  ;;  %v1996_v10 = vunpack.c.h.s8.bf16 %v1024_v0  ;;  %v1026_v11 = vld [vmem:[%s7060_s17 + $0xa68] sm:$0xff]  ;;  %v1044_v0 = vld [vmem:[%s7060_s17 + $0xaf8] sm:$0xff] }
 0x34d   : > { %3006 = vmatprep.subr.bf16.mxu0 %v1958_v12  ;;  %3826 = vmatprep.subr.bf16.mxu1 %v1960_v16  ;;  %v1028_v12 = vld [vmem:[%s7060_s17 + $0xa78] sm:$0xff]  ;;  %v1993_v16 = vunpack.c.h.s8.bf16 %v1021_v4  ;;  %v1998_v14 = vunpack.c.l.s8.bf16 %v1026_v11  ;;  %v2002_v21 = vunpack.c.h.s8.bf16 %v1026_v11  ;;  %v1041_v4 = vld [vmem:[%s7060_s17 + $0xae0] sm:$0xff]  ;;  %v2036_v11 = vunpack.c.h.s8.bf16 %v1044_v0 }
 0x350   : > { %3007 = vmatpush1.bf16.msra.mxu0 %v1957_v19  ;;  %3827 = vmatpush1.bf16.msra.mxu1 %v1959_v17  ;;  %v2000_v19 = vunpack.c.l.s8.bf16 %v1028_v12  ;;  %v1025_v17 = vld [vmem:[%s7060_s17 + $0xa60] sm:$0xff] }
 0x351   : > { %3008 = vmatprep.subr.bf16.mxu0 %v1962_v18  ;;  %3828 = vmatprep.subr.bf16.mxu1 %v1964_v22  ;;  %v1027_v18 = vld [vmem:[%s7060_s17 + $0xa70] sm:$0xff]  ;;  %v1997_v22 = vunpack.c.l.s8.bf16 %v1025_v17 }
 0x352   : > { %v1999_v20 = vunpack.c.l.s8.bf16 %v1027_v18  ;;  %v2003_v26 = vunpack.c.h.s8.bf16 %v1027_v18  ;;  %v1045_v18 = vld [vmem:[%s7060_s17 + $0xb00] sm:$0xff] }
 0x354   : > { %3009 = vmatpush1.bf16.msra.mxu0 %v1961_v34  ;;  %3829 = vmatpush1.bf16.msra.mxu1 %v1963_v23  ;;  %v2004_v34 = vunpack.c.h.s8.bf16 %v1028_v12  ;;  %v1030_v23 = vld [vmem:[%s7060_s17 + $0xa88] sm:$0xff] }
 0x355   : > { %3010 = vmatprep.subr.bf16.mxu0 %v1966_v24  ;;  %3830 = vmatprep.subr.bf16.mxu1 %v1968_v25  ;;  %v1032_v24 = vld [vmem:[%s7060_s17 + $0xa98] sm:$0xff]  ;;  %v2001_v25 = vunpack.c.h.s8.bf16 %v1025_v17  ;;  %v2006_v27 = vunpack.c.l.s8.bf16 %v1030_v23  ;;  %v2010_v39 = vunpack.c.h.s8.bf16 %v1030_v23  ;;  %v1046_v12 = vld [vmem:[%s7060_s17 + $0xb08] sm:$0xff] }
 0x358   : > { %3011 = vmatpush1.bf16.msra.mxu0 %v1965_v29  ;;  %3831 = vmatpush1.bf16.msra.mxu1 %v1967_v30  ;;  %v2008_v29 = vunpack.c.l.s8.bf16 %v1032_v24  ;;  %v1029_v30 = vld [vmem:[%s7060_s17 + $0xa80] sm:$0xff] }
 0x359   : > { %3012 = vmatprep.subr.bf16.mxu0 %v1970_v31  ;;  %3832 = vmatprep.subr.bf16.mxu1 %v1972_v32  ;;  %v1031_v31 = vld [vmem:[%s7060_s17 + $0xa90] sm:$0xff]  ;;  %v2005_v32 = vunpack.c.l.s8.bf16 %v1029_v30 }
 0x35a   : > { %v2007_v33 = vunpack.c.l.s8.bf16 %v1031_v31  ;;  %v2011_v46 = vunpack.c.h.s8.bf16 %v1031_v31 }
 0x35c   : > { %3013 = vmatpush1.bf16.msra.mxu0 %v1969_v36  ;;  %3833 = vmatpush1.bf16.msra.mxu1 %v1971_v37  ;;  %v2012_v36 = vunpack.c.h.s8.bf16 %v1032_v24  ;;  %v1034_v37 = vld [vmem:[%s7060_s17 + $0xaa8] sm:$0xff]  ;;  %v2042_v24 = vunpack.c.h.s8.bf16 %v1046_v12 }
 0x35d   : > { %3023 = vmatprep.subr.bf16.mxu0 %v1974_v41  ;;  %3843 = vmatprep.subr.bf16.mxu1 %v1976_v40  ;;  %v1036_v41 = vld [vmem:[%s7060_s17 + $0xab8] sm:$0xff]  ;;  %v2009_v40 = vunpack.c.h.s8.bf16 %v1029_v30  ;;  %v2014_v56 = vunpack.c.l.s8.bf16 %v1034_v37  ;;  %v2041_v30 = vunpack.c.h.s8.bf16 %v1045_v18 }
 0x35e   : > { %v2016_v42 = vunpack.c.l.s8.bf16 %v1036_v41  ;;  %v2020_v51 = vunpack.c.h.s8.bf16 %v1036_v41 }
 0x35f   : > { %3015 = vmatmul.mubr.bf16.vlgmr.msra.gmra.mrb[0].mxu0 %v671_v43  ;;  %3835 = vmatmul.mubr.bf16.vlgmr.msra.gmra.mrb[0].mxu1 %v671_v43  ;;  %v1033_v43 = vld [vmem:[%s7060_s17 + $0xaa0] sm:$0xff] }
 0x360   : > { %3024 = vmatpush1.bf16.msra.mxu0 %v1973_v45  ;;  %3844 = vmatpush1.bf16.msra.mxu1 %v1975_v47  ;;  %v1035_v45 = vld [vmem:[%s7060_s17 + $0xab0] sm:$0xff]  ;;  %v2013_v47 = vunpack.c.l.s8.bf16 %v1033_v43 }
 0x361   : > { %3025 = vmatprep.subr.bf16.mxu0 %v1978_v48  ;;  %3845 = vmatprep.subr.bf16.mxu1 %v1980_v44  ;;  %v2015_v48 = vunpack.c.l.s8.bf16 %v1035_v45  ;;  %v2018_v44 = vunpack.c.h.s8.bf16 %v1034_v37 }
 0x362   : > { %3055 = vmatprep.mubr.bf16.mxu0 %v674_v53  ;;  %3875 = vmatprep.mubr.bf16.mxu1 %v674_v53  ;;  %v1040_v53 = vld [vmem:[%s7060_s17 + $0xad8] sm:$0xff] }
 0x364   : > { %3026 = vmatpush1.bf16.msra.mxu0 %v1977_v54  ;;  %3846 = vmatpush1.bf16.msra.mxu1 %v1979_v55  ;;  %v2017_v54 = vunpack.c.h.s8.bf16 %v1033_v43  ;;  %v2019_v55 = vunpack.c.h.s8.bf16 %v1035_v45 }
 0x365   : > { %3027 = vmatprep.subr.bf16.mxu0 %v1982_v60  ;;  %3847 = vmatprep.subr.bf16.mxu1 %v1984_v57  ;;  %v2022_v60 = vunpack.c.l.s8.bf16 %v1038_v52  ;;  %v2024_v57 = vunpack.c.l.s8.bf16 %v1040_v53 }
 0x368   : > { %3028 = vmatpush1.bf16.msra.mxu0 %v1981_v62  ;;  %3848 = vmatpush1.bf16.msra.mxu1 %v1983_v61  ;;  %v2021_v62 = vunpack.c.l.s8.bf16 %v1037_v58  ;;  %v2023_v61 = vunpack.c.l.s8.bf16 %v1039_v59 }
 0x369   : > { %3029 = vmatprep.subr.bf16.mxu0 %v1986_v1  ;;  %3849 = vmatprep.subr.bf16.mxu1 %v1988_v9  ;;  %v2026_v1 = vunpack.c.h.s8.bf16 %v1038_v52  ;;  %v2028_v9 = vunpack.c.h.s8.bf16 %v1040_v53 }
 0x36c   : > { %3030 = vmatpush1.bf16.msra.mxu0 %v1985_v50  ;;  %3850 = vmatpush1.bf16.msra.mxu1 %v1987_v2  ;;  %v2025_v50 = vunpack.c.h.s8.bf16 %v1037_v58  ;;  %v2027_v2 = vunpack.c.h.s8.bf16 %v1039_v59 }
 0x36d   : > { %3031 = vmatprep.subr.bf16.mxu0 %v1990_v3  ;;  %3851 = vmatprep.subr.bf16.mxu1 %v1992_v15  ;;  %v2030_v3 = vunpack.c.l.s8.bf16 %v1042_v63  ;;  %v2032_v15 = vunpack.c.l.s8.bf16 %v1044_v0 }
 0x370   : > { %3032 = vmatpush1.bf16.msra.mxu0 %v1989_v6  ;;  %3852 = vmatpush1.bf16.msra.mxu1 %v1991_v7  ;;  %v528_v6 = vcombine.high %v7504_v28, %v7504_v28  ;;  %v2029_v7 = vunpack.c.l.s8.bf16 %v1041_v4  ;;  %v2038_v28 = vunpack.c.l.s8.bf16 %v1046_v12 }
 0x371   : > { %3033 = vmatprep.subr.bf16.mxu0 %v1994_v8  ;;  %3853 = vmatprep.subr.bf16.mxu1 %v1996_v10  ;;  %v2031_v8 = vunpack.c.l.s8.bf16 %v1043_v5  ;;  %v2034_v10 = vunpack.c.h.s8.bf16 %v1042_v63 }
 0x374   : > { %3034 = vmatpush1.bf16.msra.mxu0 %v1993_v16  ;;  %3854 = vmatpush1.bf16.msra.mxu1 %v1995_v13  ;;  %v1048_v16 = vld [vmem:[%s7060_s17 + $0xb18] sm:$0xff]  ;;  %v7551_v13 = vrot.slane %v528_v6, %v7102_v49 }
 0x375   : > { %3035 = vmatprep.subr.bf16.mxu0 %v1998_v14  ;;  %3855 = vmatprep.subr.bf16.mxu1 %v2000_v19  ;;  %v2033_v14 = vunpack.c.h.s8.bf16 %v1041_v4  ;;  %v2035_v19 = vunpack.c.h.s8.bf16 %v1043_v5  ;;  %v2040_v17 = vunpack.c.l.s8.bf16 %v1048_v16 }
 0x378   : > { %3036 = vmatpush1.bf16.msra.mxu0 %v1997_v22  ;;  %3856 = vmatpush1.bf16.msra.mxu1 %v1999_v20  ;;  %v1047_v22 = vld [vmem:[%s7060_s17 + $0xb10] sm:$0xff]  ;;  %v544_v20 = vcombine.high %v7551_v13, %v7551_v13 }
 0x379   : > { %3037 = vmatprep.subr.bf16.mxu0 %v2002_v21  ;;  %3857 = vmatprep.subr.bf16.mxu1 %v2004_v34  ;;  %v673_v21 = vpack.c.bf16 %v7510_v35, %v7510_v35  ;;  %v2037_v34 = vunpack.c.l.s8.bf16 %v1045_v18  ;;  %v2039_v23 = vunpack.c.l.s8.bf16 %v1047_v22  ;;  %v2043_v31 = vunpack.c.h.s8.bf16 %v1047_v22 }
 0x37c   : > { %3038 = vmatpush1.bf16.msra.mxu0 %v2001_v25  ;;  %3858 = vmatpush1.bf16.msra.mxu1 %v2003_v26  ;;  %v2044_v25 = vunpack.c.h.s8.bf16 %v1048_v16  ;;  %v1050_v26 = vld [vmem:[%s7060_s17 + $0xb28] sm:$0xff] }
 0x37d   : > { %3039 = vmatprep.subr.bf16.mxu0 %v2006_v27  ;;  %3859 = vmatprep.subr.bf16.mxu1 %v2008_v29  ;;  %v1052_v27 = vld [vmem:[%s7060_s17 + $0xb38] sm:$0xff]  ;;  %v676_v29 = vpack.c.bf16 %v544_v20, %v544_v20  ;;  %v2046_v35 = vunpack.c.l.s8.bf16 %v1050_v26  ;;  %v2050_v41 = vunpack.c.h.s8.bf16 %v1050_v26  ;;  %v1065_v20 = vld [vmem:[%s7060_s17 + $0xba0] sm:$0xff]  ;;  %v1070_v26 = vld [vmem:[%s7060_s17 + $0xbc8] sm:$0xff] }
 0x380   : > { %3040 = vmatpush1.bf16.msra.mxu0 %v2005_v32  ;;  %3860 = vmatpush1.bf16.msra.mxu1 %v2007_v33  ;;  %v2048_v32 = vunpack.c.l.s8.bf16 %v1052_v27  ;;  %v1049_v33 = vld [vmem:[%s7060_s17 + $0xb20] sm:$0xff] }
 0x381   : > { %3041 = vmatprep.subr.bf16.mxu0 %v2010_v39  ;;  %3861 = vmatprep.subr.bf16.mxu1 %v2012_v36  ;;  %v1051_v39 = vld [vmem:[%s7060_s17 + $0xb30] sm:$0xff]  ;;  %v2045_v36 = vunpack.c.l.s8.bf16 %v1049_v33 }
 0x382   : > { %v2047_v37 = vunpack.c.l.s8.bf16 %v1051_v39  ;;  %v2051_v43 = vunpack.c.h.s8.bf16 %v1051_v39 }
 0x384   : > { %3042 = vmatpush1.bf16.msra.mxu0 %v2009_v40  ;;  %3862 = vmatpush1.bf16.msra.mxu1 %v2011_v46  ;;  %v2052_v40 = vunpack.c.h.s8.bf16 %v1052_v27  ;;  %v1054_v46 = vld [vmem:[%s7060_s17 + $0xb48] sm:$0xff]  ;;  %v1072_v27 = vld [vmem:[%s7060_s17 + $0xbd8] sm:$0xff] }
 0x385   : > { %3043 = vmatprep.subr.bf16.mxu0 %v2014_v56  ;;  %3863 = vmatprep.subr.bf16.mxu1 %v2016_v42  ;;  %v1056_v56 = vld [vmem:[%s7060_s17 + $0xb58] sm:$0xff]  ;;  %v2049_v42 = vunpack.c.h.s8.bf16 %v1049_v33  ;;  %v2054_v45 = vunpack.c.l.s8.bf16 %v1054_v46  ;;  %v2058_v53 = vunpack.c.h.s8.bf16 %v1054_v46  ;;  %v1071_v33 = vld [vmem:[%s7060_s17 + $0xbd0] sm:$0xff] }
 0x386   : > { %v1076_v46 = vld [vmem:[%s7060_s17 + $0xbf8] sm:$0xff] }
 0x388   : > { %3044 = vmatpush1.bf16.msra.mxu0 %v2013_v47  ;;  %3864 = vmatpush1.bf16.msra.mxu1 %v2015_v48  ;;  %v2056_v47 = vunpack.c.l.s8.bf16 %v1056_v56  ;;  %v1053_v48 = vld [vmem:[%s7060_s17 + $0xb40] sm:$0xff] }
 0x389   : > { %3045 = vmatprep.subr.bf16.mxu0 %v2018_v44  ;;  %3865 = vmatprep.subr.bf16.mxu1 %v2020_v51  ;;  %v1055_v44 = vld [vmem:[%s7060_s17 + $0xb50] sm:$0xff]  ;;  %v2053_v51 = vunpack.c.l.s8.bf16 %v1053_v48 }
 0x38a   : > { %v2055_v52 = vunpack.c.l.s8.bf16 %v1055_v44  ;;  %v2059_v58 = vunpack.c.h.s8.bf16 %v1055_v44  ;;  %v7588_v44 = vld [vmem:[%s7053_s30 + $0x30] sm:$0xff] }
 0x38c   : > { %3046 = vmatpush1.bf16.msra.mxu0 %v2017_v54  ;;  %3866 = vmatpush1.bf16.msra.mxu1 %v2019_v55  ;;  %v2060_v54 = vunpack.c.h.s8.bf16 %v1056_v56  ;;  %v1058_v55 = vld [vmem:[%s7060_s17 + $0xb68] sm:$0xff] }
 0x38d   : > { %3047 = vmatprep.subr.bf16.mxu0 %v2022_v60  ;;  %3867 = vmatprep.subr.bf16.mxu1 %v2024_v57  ;;  %v1060_v60 = vld [vmem:[%s7060_s17 + $0xb78] sm:$0xff]  ;;  %v2057_v57 = vunpack.c.h.s8.bf16 %v1053_v48  ;;  %v2062_v59 = vunpack.c.l.s8.bf16 %v1058_v55  ;;  %v2066_v0 = vunpack.c.h.s8.bf16 %v1058_v55  ;;  %v1075_v48 = vld [vmem:[%s7060_s17 + $0xbf0] sm:$0xff]  ;;  %v1078_v55 = vld [vmem:[%s7060_s17 + $0xc08] sm:$0xff] }
 0x390   : > { %3048 = vmatpush1.bf16.msra.mxu0 %v2021_v62  ;;  %3868 = vmatpush1.bf16.msra.mxu1 %v2023_v61  ;;  %v2064_v62 = vunpack.c.l.s8.bf16 %v1060_v60  ;;  %v1057_v61 = vld [vmem:[%s7060_s17 + $0xb60] sm:$0xff] }
 0x391   : > { %3049 = vmatprep.subr.bf16.mxu0 %v2026_v1  ;;  %3869 = vmatprep.subr.bf16.mxu1 %v2028_v9  ;;  %v1059_v1 = vld [vmem:[%s7060_s17 + $0xb70] sm:$0xff]  ;;  %v2061_v9 = vunpack.c.l.s8.bf16 %v1057_v61 }
 0x392   : > { %v2063_v63 = vunpack.c.l.s8.bf16 %v1059_v1  ;;  %v2067_v4 = vunpack.c.h.s8.bf16 %v1059_v1  ;;  %v1077_v1 = vld [vmem:[%s7060_s17 + $0xc00] sm:$0xff] }
 0x394   : > { %3050 = vmatpush1.bf16.msra.mxu0 %v2025_v50  ;;  %3870 = vmatpush1.bf16.msra.mxu1 %v2027_v2  ;;  %v2068_v50 = vunpack.c.h.s8.bf16 %v1060_v60  ;;  %v1062_v2 = vld [vmem:[%s7060_s17 + $0xb88] sm:$0xff]  ;;  %v1080_v60 = vld [vmem:[%s7060_s17 + $0xc18] sm:$0xff] }
 0x395   : > { %3051 = vmatprep.subr.bf16.mxu0 %v2030_v3  ;;  %3871 = vmatprep.subr.bf16.mxu1 %v2032_v15  ;;  %v1064_v3 = vld [vmem:[%s7060_s17 + $0xb98] sm:$0xff]  ;;  %v2065_v15 = vunpack.c.h.s8.bf16 %v1057_v61  ;;  %v2070_v5 = vunpack.c.l.s8.bf16 %v1062_v2  ;;  %v2074_v12 = vunpack.c.h.s8.bf16 %v1062_v2  ;;  %v2104_v61 = vunpack.c.l.s8.bf16 %v1080_v60 }
 0x396   : > { %v2072_v6 = vunpack.c.l.s8.bf16 %v1064_v3  ;;  %v2076_v16 = vunpack.c.h.s8.bf16 %v1064_v3  ;;  %v2106_v3 = vunpack.c.h.s8.bf16 %v1078_v55 }
 0x398   : > { %3052 = vmatpush1.bf16.msra.mxu0 %v2029_v7  ;;  %3872 = vmatpush1.bf16.msra.mxu1 %v2031_v8  ;;  %v1061_v7 = vld [vmem:[%s7060_s17 + $0xb80] sm:$0xff]  ;;  %v1063_v8 = vld [vmem:[%s7060_s17 + $0xb90] sm:$0xff] }
 0x399   : > { %3053 = vmatprep.subr.bf16.mxu0 %v2034_v10  ;;  %3873 = vmatprep.subr.bf16.mxu1 %v2036_v11  ;;  %v2069_v10 = vunpack.c.l.s8.bf16 %v1061_v7  ;;  %v2071_v11 = vunpack.c.l.s8.bf16 %v1063_v8 }
 0x39c   : > { %3054 = vmatpush1.bf16.msra.mxu0 %v2033_v14  ;;  %3874 = vmatpush1.bf16.msra.mxu1 %v2035_v19  ;;  %v1066_v14 = vld [vmem:[%s7060_s17 + $0xba8] sm:$0xff]  ;;  %v1068_v19 = vld [vmem:[%s7060_s17 + $0xbb8] sm:$0xff] }
 0x39d   : > { %3064 = vmatprep.subr.bf16.mxu0 %v2038_v28  ;;  %3884 = vmatprep.subr.bf16.mxu1 %v2040_v17  ;;  %v2073_v28 = vunpack.c.h.s8.bf16 %v1061_v7  ;;  %v2075_v17 = vunpack.c.h.s8.bf16 %v1063_v8  ;;  %v2078_v18 = vunpack.c.l.s8.bf16 %v1066_v14  ;;  %v2080_v22 = vunpack.c.l.s8.bf16 %v1068_v19 }
 0x39e   : > { %v2105_v7 = vunpack.c.h.s8.bf16 %v1077_v1 }
 0x39f   : > { %3056 = vmatmul.mubr.bf16.vlgmr.msra.gmra.mrb[0].mxu0 %v673_v21  ;;  %3876 = vmatmul.mubr.bf16.vlgmr.msra.gmra.mrb[0].mxu1 %v673_v21  ;;  %v1067_v21 = vld [vmem:[%s7060_s17 + $0xbb0] sm:$0xff] }
 0x3a0   : > { %3065 = vmatpush1.bf16.msra.mxu0 %v2037_v34  ;;  %3885 = vmatpush1.bf16.msra.mxu1 %v2039_v23  ;;  %v2077_v34 = vunpack.c.l.s8.bf16 %v1065_v20  ;;  %v2079_v23 = vunpack.c.l.s8.bf16 %v1067_v21 }
 0x3a1   : > { %3066 = vmatprep.subr.bf16.mxu0 %v2042_v24  ;;  %3886 = vmatprep.subr.bf16.mxu1 %v2044_v25  ;;  %v2082_v24 = vunpack.c.h.s8.bf16 %v1066_v14  ;;  %v2084_v25 = vunpack.c.h.s8.bf16 %v1068_v19 }
 0x3a2   : > { %3096 = vmatprep.mubr.bf16.mxu0 %v676_v29  ;;  %3916 = vmatprep.mubr.bf16.mxu1 %v676_v29  ;;  %v2081_v29 = vunpack.c.h.s8.bf16 %v1065_v20 }
 0x3a4   : > { %3067 = vmatpush1.bf16.msra.mxu0 %v2041_v30  ;;  %3887 = vmatpush1.bf16.msra.mxu1 %v2043_v31  ;;  %v2083_v30 = vunpack.c.h.s8.bf16 %v1067_v21  ;;  %v2086_v31 = vunpack.c.l.s8.bf16 %v1070_v26 }
 0x3a5   : > { %3068 = vmatprep.subr.bf16.mxu0 %v2046_v35  ;;  %3888 = vmatprep.subr.bf16.mxu1 %v2048_v32  ;;  %v2088_v35 = vunpack.c.l.s8.bf16 %v1072_v27  ;;  %v1069_v32 = vld [vmem:[%s7060_s17 + $0xbc0] sm:$0xff] }
 0x3a6   : > { %v2085_v39 = vunpack.c.l.s8.bf16 %v1069_v32  ;;  %v2089_v56 = vunpack.c.h.s8.bf16 %v1069_v32 }
 0x3a8   : > { %3069 = vmatpush1.bf16.msra.mxu0 %v2045_v36  ;;  %3889 = vmatpush1.bf16.msra.mxu1 %v2047_v37  ;;  %v2087_v36 = vunpack.c.l.s8.bf16 %v1071_v33  ;;  %v2090_v37 = vunpack.c.h.s8.bf16 %v1070_v26 }
 0x3a9   : > { %3070 = vmatprep.subr.bf16.mxu0 %v2050_v41  ;;  %3890 = vmatprep.subr.bf16.mxu1 %v2052_v40  ;;  %v2092_v41 = vunpack.c.h.s8.bf16 %v1072_v27  ;;  %v1074_v40 = vld [vmem:[%s7060_s17 + $0xbe8] sm:$0xff] }
 0x3ac   : > { %3071 = vmatpush1.bf16.msra.mxu0 %v2049_v42  ;;  %3891 = vmatpush1.bf16.msra.mxu1 %v2051_v43  ;;  %v2091_v42 = vunpack.c.h.s8.bf16 %v1071_v33  ;;  %v2094_v43 = vunpack.c.l.s8.bf16 %v1074_v40 }
 0x3ad   : > { %3072 = vmatprep.subr.bf16.mxu0 %v2054_v45  ;;  %3892 = vmatprep.subr.bf16.mxu1 %v2056_v47  ;;  %v2096_v45 = vunpack.c.l.s8.bf16 %v1076_v46  ;;  %v1073_v47 = vld [vmem:[%s7060_s17 + $0xbe0] sm:$0xff] }
 0x3b0   : > { %3073 = vmatpush1.bf16.msra.mxu0 %v2053_v51  ;;  %3893 = vmatpush1.bf16.msra.mxu1 %v2055_v52  ;;  %v2093_v51 = vunpack.c.l.s8.bf16 %v1073_v47  ;;  %v2095_v52 = vunpack.c.l.s8.bf16 %v1075_v48 }
 0x3b1   : > { %3074 = vmatprep.subr.bf16.mxu0 %v2058_v53  ;;  %3894 = vmatprep.subr.bf16.mxu1 %v2060_v54  ;;  %v2098_v53 = vunpack.c.h.s8.bf16 %v1074_v40  ;;  %v2100_v54 = vunpack.c.h.s8.bf16 %v1076_v46 }
 0x3b4   : > { %3075 = vmatpush1.bf16.msra.mxu0 %v2057_v57  ;;  %3895 = vmatpush1.bf16.msra.mxu1 %v2059_v58  ;;  %v7594_v57 = vrot.slane %v7588_v44, %v7102_v49  ;;  %v2097_v58 = vunpack.c.h.s8.bf16 %v1073_v47 }
 0x3b5   : > { %3076 = vmatprep.subr.bf16.mxu0 %v2062_v59  ;;  %3896 = vmatprep.subr.bf16.mxu1 %v2064_v62  ;;  %v2099_v59 = vunpack.c.h.s8.bf16 %v1075_v48  ;;  %v2102_v62 = vunpack.c.l.s8.bf16 %v1078_v55 }
 0x3b8   : > { %3077 = vmatpush1.bf16.msra.mxu0 %v2061_v9  ;;  %3897 = vmatpush1.bf16.msra.mxu1 %v2063_v63  ;;  %v1079_v9 = vld [vmem:[%s7060_s17 + $0xc10] sm:$0xff]  ;;  %v560_v63 = vcombine.high %v7594_v57, %v7594_v57 }
 0x3b9   : > { %3078 = vmatprep.subr.bf16.mxu0 %v2066_v0  ;;  %3898 = vmatprep.subr.bf16.mxu1 %v2068_v50  ;;  %v675_v0 = vpack.c.bf16 %v7551_v13, %v7551_v13  ;;  %v2101_v50 = vunpack.c.l.s8.bf16 %v1077_v1  ;;  %v2103_v2 = vunpack.c.l.s8.bf16 %v1079_v9  ;;  %v2107_v8 = vunpack.c.h.s8.bf16 %v1079_v9 }
 0x3bc   : > { %3079 = vmatpush1.bf16.msra.mxu0 %v2065_v15  ;;  %3899 = vmatpush1.bf16.msra.mxu1 %v2067_v4  ;;  %v2108_v15 = vunpack.c.h.s8.bf16 %v1080_v60  ;;  %v1082_v4 = vld [vmem:[%s7060_s17 + $0xc28] sm:$0xff] }
 0x3bd   : > { %3080 = vmatprep.subr.bf16.mxu0 %v2070_v5  ;;  %3900 = vmatprep.subr.bf16.mxu1 %v2072_v6  ;;  %v1084_v5 = vld [vmem:[%s7060_s17 + $0xc38] sm:$0xff]  ;;  %v678_v6 = vpack.c.bf16 %v560_v63, %v560_v63  ;;  %v2110_v13 = vunpack.c.l.s8.bf16 %v1082_v4  ;;  %v2114_v19 = vunpack.c.h.s8.bf16 %v1082_v4 }
 0x3c0   : > { %3081 = vmatpush1.bf16.msra.mxu0 %v2069_v10  ;;  %3901 = vmatpush1.bf16.msra.mxu1 %v2071_v11  ;;  %v2112_v10 = vunpack.c.l.s8.bf16 %v1084_v5  ;;  %v1081_v11 = vld [vmem:[%s7060_s17 + $0xc20] sm:$0xff] }
 0x3c1   : > { %3082 = vmatprep.subr.bf16.mxu0 %v2074_v12  ;;  %3902 = vmatprep.subr.bf16.mxu1 %v2076_v16  ;;  %v1083_v12 = vld [vmem:[%s7060_s17 + $0xc30] sm:$0xff]  ;;  %v2109_v16 = vunpack.c.l.s8.bf16 %v1081_v11 }
 0x3c2   : > { %v2111_v14 = vunpack.c.l.s8.bf16 %v1083_v12  ;;  %v2115_v20 = vunpack.c.h.s8.bf16 %v1083_v12  ;;  %v1103_v12 = vld [vmem:[%s7060_s17 + $0xcd0] sm:$0xff] }
 0x3c4   : > { %3083 = vmatpush1.bf16.msra.mxu0 %v2073_v28  ;;  %3903 = vmatpush1.bf16.msra.mxu1 %v2075_v17  ;;  %v2116_v28 = vunpack.c.h.s8.bf16 %v1084_v5  ;;  %v1086_v17 = vld [vmem:[%s7060_s17 + $0xc48] sm:$0xff] }
 0x3c5   : > { %3084 = vmatprep.subr.bf16.mxu0 %v2078_v18  ;;  %3904 = vmatprep.subr.bf16.mxu1 %v2080_v22  ;;  %v1088_v18 = vld [vmem:[%s7060_s17 + $0xc58] sm:$0xff]  ;;  %v2113_v22 = vunpack.c.h.s8.bf16 %v1081_v11  ;;  %v2118_v21 = vunpack.c.l.s8.bf16 %v1086_v17  ;;  %v2122_v27 = vunpack.c.h.s8.bf16 %v1086_v17  ;;  %v1102_v5 = vld [vmem:[%s7060_s17 + $0xcc8] sm:$0xff]  ;;  %v1101_v11 = vld [vmem:[%s7060_s17 + $0xcc0] sm:$0xff] }
 0x3c6   : > { %v1106_v17 = vld [vmem:[%s7060_s17 + $0xce8] sm:$0xff] }
 0x3c8   : > { %3085 = vmatpush1.bf16.msra.mxu0 %v2077_v34  ;;  %3905 = vmatpush1.bf16.msra.mxu1 %v2079_v23  ;;  %v2120_v34 = vunpack.c.l.s8.bf16 %v1088_v18  ;;  %v1085_v23 = vld [vmem:[%s7060_s17 + $0xc40] sm:$0xff] }
 0x3c9   : > { %3086 = vmatprep.subr.bf16.mxu0 %v2082_v24  ;;  %3906 = vmatprep.subr.bf16.mxu1 %v2084_v25  ;;  %v1087_v24 = vld [vmem:[%s7060_s17 + $0xc50] sm:$0xff]  ;;  %v2117_v25 = vunpack.c.l.s8.bf16 %v1085_v23 }
 0x3ca   : > { %v2119_v26 = vunpack.c.l.s8.bf16 %v1087_v24  ;;  %v2123_v32 = vunpack.c.h.s8.bf16 %v1087_v24  ;;  %v1107_v24 = vld [vmem:[%s7060_s17 + $0xcf0] sm:$0xff] }
 0x3cc   : > { %3087 = vmatpush1.bf16.msra.mxu0 %v2081_v29  ;;  %3907 = vmatpush1.bf16.msra.mxu1 %v2083_v30  ;;  %v2124_v29 = vunpack.c.h.s8.bf16 %v1088_v18  ;;  %v1090_v30 = vld [vmem:[%s7060_s17 + $0xc68] sm:$0xff]  ;;  %v1108_v18 = vld [vmem:[%s7060_s17 + $0xcf8] sm:$0xff] }
 0x3cd   : > { %3088 = vmatprep.subr.bf16.mxu0 %v2086_v31  ;;  %3908 = vmatprep.subr.bf16.mxu1 %v2088_v35  ;;  %v1092_v31 = vld [vmem:[%s7060_s17 + $0xc78] sm:$0xff]  ;;  %v2121_v35 = vunpack.c.h.s8.bf16 %v1085_v23  ;;  %v2126_v33 = vunpack.c.l.s8.bf16 %v1090_v30  ;;  %v2130_v46 = vunpack.c.h.s8.bf16 %v1090_v30  ;;  %v1105_v23 = vld [vmem:[%s7060_s17 + $0xce0] sm:$0xff]  ;;  %v2164_v30 = vunpack.c.h.s8.bf16 %v1108_v18 }
 0x3d0   : > { %3089 = vmatpush1.bf16.msra.mxu0 %v2085_v39  ;;  %3909 = vmatpush1.bf16.msra.mxu1 %v2087_v36  ;;  %v2128_v39 = vunpack.c.l.s8.bf16 %v1092_v31  ;;  %v1089_v36 = vld [vmem:[%s7060_s17 + $0xc60] sm:$0xff] }
 0x3d1   : > { %3090 = vmatprep.subr.bf16.mxu0 %v2090_v37  ;;  %3910 = vmatprep.subr.bf16.mxu1 %v2092_v41  ;;  %v1091_v37 = vld [vmem:[%s7060_s17 + $0xc70] sm:$0xff]  ;;  %v2125_v41 = vunpack.c.l.s8.bf16 %v1089_v36 }
 0x3d2   : > { %v2127_v40 = vunpack.c.l.s8.bf16 %v1091_v37  ;;  %v2131_v47 = vunpack.c.h.s8.bf16 %v1091_v37  ;;  %v1109_v37 = vld [vmem:[%s7060_s17 + $0xd00] sm:$0xff] }
 0x3d4   : > { %3091 = vmatpush1.bf16.msra.mxu0 %v2089_v56  ;;  %3911 = vmatpush1.bf16.msra.mxu1 %v2091_v42  ;;  %v2132_v56 = vunpack.c.h.s8.bf16 %v1092_v31  ;;  %v1094_v42 = vld [vmem:[%s7060_s17 + $0xc88] sm:$0xff] }
 0x3d5   : > { %3092 = vmatprep.subr.bf16.mxu0 %v2094_v43  ;;  %3912 = vmatprep.subr.bf16.mxu1 %v2096_v45  ;;  %v1096_v43 = vld [vmem:[%s7060_s17 + $0xc98] sm:$0xff]  ;;  %v2129_v45 = vunpack.c.h.s8.bf16 %v1089_v36  ;;  %v2134_v48 = vunpack.c.l.s8.bf16 %v1094_v42  ;;  %v2138_v60 = vunpack.c.h.s8.bf16 %v1094_v42  ;;  %v1110_v31 = vld [vmem:[%s7060_s17 + $0xd08] sm:$0xff] }
 0x3d8   : > { %3093 = vmatpush1.bf16.msra.mxu0 %v2093_v51  ;;  %3913 = vmatpush1.bf16.msra.mxu1 %v2095_v52  ;;  %v2136_v51 = vunpack.c.l.s8.bf16 %v1096_v43  ;;  %v1093_v52 = vld [vmem:[%s7060_s17 + $0xc80] sm:$0xff] }
 0x3d9   : > { %3094 = vmatprep.subr.bf16.mxu0 %v2098_v53  ;;  %3914 = vmatprep.subr.bf16.mxu1 %v2100_v54  ;;  %v1095_v53 = vld [vmem:[%s7060_s17 + $0xc90] sm:$0xff]  ;;  %v2133_v54 = vunpack.c.l.s8.bf16 %v1093_v52 }
 0x3da   : > { %v2135_v55 = vunpack.c.l.s8.bf16 %v1095_v53  ;;  %v2139_v1 = vunpack.c.h.s8.bf16 %v1095_v53 }
 0x3dc   : > { %3095 = vmatpush1.bf16.msra.mxu0 %v2097_v58  ;;  %3915 = vmatpush1.bf16.msra.mxu1 %v2099_v59  ;;  %v2140_v58 = vunpack.c.h.s8.bf16 %v1096_v43  ;;  %v1098_v59 = vld [vmem:[%s7060_s17 + $0xca8] sm:$0xff]  ;;  %v2170_v43 = vunpack.c.h.s8.bf16 %v1110_v31 }
 0x3dd   : > { %3105 = vmatprep.subr.bf16.mxu0 %v2102_v62  ;;  %3925 = vmatprep.subr.bf16.mxu1 %v2104_v61  ;;  %v1100_v62 = vld [vmem:[%s7060_s17 + $0xcb8] sm:$0xff]  ;;  %v2137_v61 = vunpack.c.h.s8.bf16 %v1093_v52  ;;  %v2142_v9 = vunpack.c.l.s8.bf16 %v1098_v59  ;;  %v2169_v52 = vunpack.c.h.s8.bf16 %v1109_v37 }
 0x3de   : > { %v2144_v63 = vunpack.c.l.s8.bf16 %v1100_v62  ;;  %v2148_v4 = vunpack.c.h.s8.bf16 %v1100_v62 }
 0x3df   : > { %3097 = vmatmul.mubr.bf16.vlgmr.msra.gmra.mrb[0].mxu0 %v675_v0  ;;  %3917 = vmatmul.mubr.bf16.vlgmr.msra.gmra.mrb[0].mxu1 %v675_v0  ;;  %v1097_v0 = vld [vmem:[%s7060_s17 + $0xca0] sm:$0xff] }
 0x3e0   : > { %3106 = vmatpush1.bf16.msra.mxu0 %v2101_v50  ;;  %3926 = vmatpush1.bf16.msra.mxu1 %v2103_v2  ;;  %v1099_v50 = vld [vmem:[%s7060_s17 + $0xcb0] sm:$0xff]  ;;  %v2141_v2 = vunpack.c.l.s8.bf16 %v1097_v0 }
 0x3e1   : > { %3107 = vmatprep.subr.bf16.mxu0 %v2106_v3  ;;  %3927 = vmatprep.subr.bf16.mxu1 %v2108_v15  ;;  %v2143_v3 = vunpack.c.l.s8.bf16 %v1099_v50  ;;  %v2146_v15 = vunpack.c.h.s8.bf16 %v1098_v59 }
 0x3e2   : > { %3137 = vmatprep.mubr.bf16.mxu0 %v678_v6  ;;  %3957 = vmatprep.mubr.bf16.mxu1 %v678_v6  ;;  %v1104_v6 = vld [vmem:[%s7060_s17 + $0xcd8] sm:$0xff] }
 0x3e4   : > { %3108 = vmatpush1.bf16.msra.mxu0 %v2105_v7  ;;  %3928 = vmatpush1.bf16.msra.mxu1 %v2107_v8  ;;  %v2145_v7 = vunpack.c.h.s8.bf16 %v1097_v0  ;;  %v2147_v8 = vunpack.c.h.s8.bf16 %v1099_v50 }
 0x3e5   : > { %3109 = vmatprep.subr.bf16.mxu0 %v2110_v13  ;;  %3929 = vmatprep.subr.bf16.mxu1 %v2112_v10  ;;  %v2150_v13 = vunpack.c.l.s8.bf16 %v1102_v5  ;;  %v2152_v10 = vunpack.c.l.s8.bf16 %v1104_v6 }
 0x3e8   : > { %3110 = vmatpush1.bf16.msra.mxu0 %v2109_v16  ;;  %3930 = vmatpush1.bf16.msra.mxu1 %v2111_v14  ;;  %v2149_v16 = vunpack.c.l.s8.bf16 %v1101_v11  ;;  %v2151_v14 = vunpack.c.l.s8.bf16 %v1103_v12 }
 0x3e9   : > { %3111 = vmatprep.subr.bf16.mxu0 %v2114_v19  ;;  %3931 = vmatprep.subr.bf16.mxu1 %v2116_v28  ;;  %v2154_v19 = vunpack.c.h.s8.bf16 %v1102_v5  ;;  %v2156_v28 = vunpack.c.h.s8.bf16 %v1104_v6 }
 0x3ec   : > { %3112 = vmatpush1.bf16.msra.mxu0 %v2113_v22  ;;  %3932 = vmatpush1.bf16.msra.mxu1 %v2115_v20  ;;  %v2153_v22 = vunpack.c.h.s8.bf16 %v1101_v11  ;;  %v2155_v20 = vunpack.c.h.s8.bf16 %v1103_v12 }
 0x3ed   : > { %3113 = vmatprep.subr.bf16.mxu0 %v2118_v21  ;;  %3933 = vmatprep.subr.bf16.mxu1 %v2120_v34  ;;  %v2158_v21 = vunpack.c.l.s8.bf16 %v1106_v17  ;;  %v2160_v34 = vunpack.c.l.s8.bf16 %v1108_v18 }
 0x3f0   : > { %3114 = vmatpush1.bf16.msra.mxu0 %v2117_v25  ;;  %3934 = vmatpush1.bf16.msra.mxu1 %v2119_v26  ;;  %v545_v25 = vcombine.high %v7588_v44, %v7588_v44  ;;  %v2157_v26 = vunpack.c.l.s8.bf16 %v1105_v23  ;;  %v2166_v44 = vunpack.c.l.s8.bf16 %v1110_v31 }
 0x3f1   : > { %3115 = vmatprep.subr.bf16.mxu0 %v2122_v27  ;;  %3935 = vmatprep.subr.bf16.mxu1 %v2124_v29  ;;  %v2159_v27 = vunpack.c.l.s8.bf16 %v1107_v24  ;;  %v2162_v29 = vunpack.c.h.s8.bf16 %v1106_v17 }
 0x3f4   : > { %3116 = vmatpush1.bf16.msra.mxu0 %v2121_v35  ;;  %3936 = vmatpush1.bf16.msra.mxu1 %v2123_v32  ;;  %v1112_v35 = vld [vmem:[%s7060_s17 + $0xd18] sm:$0xff]  ;;  %v7635_v32 = vrot.slane %v545_v25, %v7102_v49 }
 0x3f5   : > { %3117 = vmatprep.subr.bf16.mxu0 %v2126_v33  ;;  %3937 = vmatprep.subr.bf16.mxu1 %v2128_v39  ;;  %v2161_v33 = vunpack.c.h.s8.bf16 %v1105_v23  ;;  %v2163_v39 = vunpack.c.h.s8.bf16 %v1107_v24  ;;  %v2168_v36 = vunpack.c.l.s8.bf16 %v1112_v35 }
 0x3f8   : > { %3118 = vmatpush1.bf16.msra.mxu0 %v2125_v41  ;;  %3938 = vmatpush1.bf16.msra.mxu1 %v2127_v40  ;;  %v1111_v41 = vld [vmem:[%s7060_s17 + $0xd10] sm:$0xff]  ;;  %v561_v40 = vcombine.high %v7635_v32, %v7635_v32 }
 0x3f9   : > { %3119 = vmatprep.subr.bf16.mxu0 %v2130_v46  ;;  %3939 = vmatprep.subr.bf16.mxu1 %v2132_v56  ;;  %v677_v46 = vpack.c.bf16 %v7594_v57, %v7594_v57  ;;  %v2165_v56 = vunpack.c.l.s8.bf16 %v1109_v37  ;;  %v2167_v42 = vunpack.c.l.s8.bf16 %v1111_v41  ;;  %v2171_v53 = vunpack.c.h.s8.bf16 %v1111_v41 }
 0x3fc   : > { %3120 = vmatpush1.bf16.msra.mxu0 %v2129_v45  ;;  %3940 = vmatpush1.bf16.msra.mxu1 %v2131_v47  ;;  %v2172_v45 = vunpack.c.h.s8.bf16 %v1112_v35  ;;  %v1114_v47 = vld [vmem:[%s7060_s17 + $0xd28] sm:$0xff] }
 0x3fd   : > { %3121 = vmatprep.subr.bf16.mxu0 %v2134_v48  ;;  %3941 = vmatprep.subr.bf16.mxu1 %v2136_v51  ;;  %v1116_v48 = vld [vmem:[%s7060_s17 + $0xd38] sm:$0xff]  ;;  %v680_v51 = vpack.c.bf16 %v561_v40, %v561_v40  ;;  %v2174_v57 = vunpack.c.l.s8.bf16 %v1114_v47  ;;  %v2178_v62 = vunpack.c.h.s8.bf16 %v1114_v47  ;;  %v1129_v40 = vld [vmem:[%s7060_s17 + $0xda0] sm:$0xff]  ;;  %v1134_v47 = vld [vmem:[%s7060_s17 + $0xdc8] sm:$0xff] }
 0x400   : > { %3122 = vmatpush1.bf16.msra.mxu0 %v2133_v54  ;;  %3942 = vmatpush1.bf16.msra.mxu1 %v2135_v55  ;;  %v2176_v54 = vunpack.c.l.s8.bf16 %v1116_v48  ;;  %v1113_v55 = vld [vmem:[%s7060_s17 + $0xd20] sm:$0xff] }
 0x401   : > { %3123 = vmatprep.subr.bf16.mxu0 %v2138_v60  ;;  %3943 = vmatprep.subr.bf16.mxu1 %v2140_v58  ;;  %v1115_v60 = vld [vmem:[%s7060_s17 + $0xd30] sm:$0xff]  ;;  %v2173_v58 = vunpack.c.l.s8.bf16 %v1113_v55 }
 0x402   : > { %v2175_v59 = vunpack.c.l.s8.bf16 %v1115_v60  ;;  %v2179_v0 = vunpack.c.h.s8.bf16 %v1115_v60 }
 0x404   : > { %3124 = vmatpush1.bf16.msra.mxu0 %v2137_v61  ;;  %3944 = vmatpush1.bf16.msra.mxu1 %v2139_v1  ;;  %v2180_v61 = vunpack.c.h.s8.bf16 %v1116_v48  ;;  %v1118_v1 = vld [vmem:[%s7060_s17 + $0xd48] sm:$0xff]  ;;  %v1136_v48 = vld [vmem:[%s7060_s17 + $0xdd8] sm:$0xff] }
 0x405   : > { %3125 = vmatprep.subr.bf16.mxu0 %v2142_v9  ;;  %3945 = vmatprep.subr.bf16.mxu1 %v2144_v63  ;;  %v1120_v9 = vld [vmem:[%s7060_s17 + $0xd58] sm:$0xff]  ;;  %v2177_v63 = vunpack.c.h.s8.bf16 %v1113_v55  ;;  %v2182_v50 = vunpack.c.l.s8.bf16 %v1118_v1  ;;  %v2186_v6 = vunpack.c.h.s8.bf16 %v1118_v1  ;;  %v1135_v55 = vld [vmem:[%s7060_s17 + $0xdd0] sm:$0xff] }
 0x406   : > { %v1140_v1 = vld [vmem:[%s7060_s17 + $0xdf8] sm:$0xff] }
 0x408   : > { %3126 = vmatpush1.bf16.msra.mxu0 %v2141_v2  ;;  %3946 = vmatpush1.bf16.msra.mxu1 %v2143_v3  ;;  %v2184_v2 = vunpack.c.l.s8.bf16 %v1120_v9  ;;  %v1117_v3 = vld [vmem:[%s7060_s17 + $0xd40] sm:$0xff] }
 0x409   : > { %3127 = vmatprep.subr.bf16.mxu0 %v2146_v15  ;;  %3947 = vmatprep.subr.bf16.mxu1 %v2148_v4  ;;  %v1119_v15 = vld [vmem:[%s7060_s17 + $0xd50] sm:$0xff]  ;;  %v2181_v4 = vunpack.c.l.s8.bf16 %v1117_v3 }
 0x40a   : > { %v2183_v5 = vunpack.c.l.s8.bf16 %v1119_v15  ;;  %v2187_v11 = vunpack.c.h.s8.bf16 %v1119_v15  ;;  %v7672_v15 = vld [vmem:[%s7053_s30 + $0x38] sm:$0xff] }
 0x40c   : > { %3128 = vmatpush1.bf16.msra.mxu0 %v2145_v7  ;;  %3948 = vmatpush1.bf16.msra.mxu1 %v2147_v8  ;;  %v2188_v7 = vunpack.c.h.s8.bf16 %v1120_v9  ;;  %v1122_v8 = vld [vmem:[%s7060_s17 + $0xd68] sm:$0xff] }
 0x40d   : > { %3129 = vmatprep.subr.bf16.mxu0 %v2150_v13  ;;  %3949 = vmatprep.subr.bf16.mxu1 %v2152_v10  ;;  %v1124_v13 = vld [vmem:[%s7060_s17 + $0xd78] sm:$0xff]  ;;  %v2185_v10 = vunpack.c.h.s8.bf16 %v1117_v3  ;;  %v2190_v12 = vunpack.c.l.s8.bf16 %v1122_v8  ;;  %v2194_v18 = vunpack.c.h.s8.bf16 %v1122_v8  ;;  %v1139_v3 = vld [vmem:[%s7060_s17 + $0xdf0] sm:$0xff]  ;;  %v1142_v8 = vld [vmem:[%s7060_s17 + $0xe08] sm:$0xff] }
 0x410   : > { %3130 = vmatpush1.bf16.msra.mxu0 %v2149_v16  ;;  %3950 = vmatpush1.bf16.msra.mxu1 %v2151_v14  ;;  %v2192_v16 = vunpack.c.l.s8.bf16 %v1124_v13  ;;  %v1121_v14 = vld [vmem:[%s7060_s17 + $0xd60] sm:$0xff] }
 0x411   : > { %3131 = vmatprep.subr.bf16.mxu0 %v2154_v19  ;;  %3951 = vmatprep.subr.bf16.mxu1 %v2156_v28  ;;  %v1123_v19 = vld [vmem:[%s7060_s17 + $0xd70] sm:$0xff]  ;;  %v2189_v28 = vunpack.c.l.s8.bf16 %v1121_v14 }
 0x412   : > { %v2191_v17 = vunpack.c.l.s8.bf16 %v1123_v19  ;;  %v2195_v23 = vunpack.c.h.s8.bf16 %v1123_v19  ;;  %v1141_v19 = vld [vmem:[%s7060_s17 + $0xe00] sm:$0xff] }
 0x414   : > { %3132 = vmatpush1.bf16.msra.mxu0 %v2153_v22  ;;  %3952 = vmatpush1.bf16.msra.mxu1 %v2155_v20  ;;  %v2196_v22 = vunpack.c.h.s8.bf16 %v1124_v13  ;;  %v1126_v20 = vld [vmem:[%s7060_s17 + $0xd88] sm:$0xff]  ;;  %v1144_v13 = vld [vmem:[%s7060_s17 + $0xe18] sm:$0xff] }
 0x415   : > { %3133 = vmatprep.subr.bf16.mxu0 %v2158_v21  ;;  %3953 = vmatprep.subr.bf16.mxu1 %v2160_v34  ;;  %v1128_v21 = vld [vmem:[%s7060_s17 + $0xd98] sm:$0xff]  ;;  %v2193_v34 = vunpack.c.h.s8.bf16 %v1121_v14  ;;  %v2198_v24 = vunpack.c.l.s8.bf16 %v1126_v20  ;;  %v2202_v31 = vunpack.c.h.s8.bf16 %v1126_v20  ;;  %v2232_v14 = vunpack.c.l.s8.bf16 %v1144_v13 }
 0x416   : > { %v2200_v25 = vunpack.c.l.s8.bf16 %v1128_v21  ;;  %v2204_v35 = vunpack.c.h.s8.bf16 %v1128_v21  ;;  %v2234_v21 = vunpack.c.h.s8.bf16 %v1142_v8 }
 0x418   : > { %3134 = vmatpush1.bf16.msra.mxu0 %v2157_v26  ;;  %3954 = vmatpush1.bf16.msra.mxu1 %v2159_v27  ;;  %v1125_v26 = vld [vmem:[%s7060_s17 + $0xd80] sm:$0xff]  ;;  %v1127_v27 = vld [vmem:[%s7060_s17 + $0xd90] sm:$0xff] }
 0x419   : > { %3135 = vmatprep.subr.bf16.mxu0 %v2162_v29  ;;  %3955 = vmatprep.subr.bf16.mxu1 %v2164_v30  ;;  %v2197_v29 = vunpack.c.l.s8.bf16 %v1125_v26  ;;  %v2199_v30 = vunpack.c.l.s8.bf16 %v1127_v27 }
 0x41c   : > { %3136 = vmatpush1.bf16.msra.mxu0 %v2161_v33  ;;  %3956 = vmatpush1.bf16.msra.mxu1 %v2163_v39  ;;  %v1130_v33 = vld [vmem:[%s7060_s17 + $0xda8] sm:$0xff]  ;;  %v1132_v39 = vld [vmem:[%s7060_s17 + $0xdb8] sm:$0xff] }
 0x41d   : > { %3146 = vmatprep.subr.bf16.mxu0 %v2166_v44  ;;  %3966 = vmatprep.subr.bf16.mxu1 %v2168_v36  ;;  %v2201_v44 = vunpack.c.h.s8.bf16 %v1125_v26  ;;  %v2203_v36 = vunpack.c.h.s8.bf16 %v1127_v27  ;;  %v2206_v37 = vunpack.c.l.s8.bf16 %v1130_v33  ;;  %v2208_v41 = vunpack.c.l.s8.bf16 %v1132_v39 }
 0x41e   : > { %v2233_v26 = vunpack.c.h.s8.bf16 %v1141_v19 }
 0x41f   : > { %3138 = vmatmul.mubr.bf16.vlgmr.msra.gmra.mrb[0].mxu0 %v677_v46  ;;  %3958 = vmatmul.mubr.bf16.vlgmr.msra.gmra.mrb[0].mxu1 %v677_v46  ;;  %v1131_v46 = vld [vmem:[%s7060_s17 + $0xdb0] sm:$0xff] }
 0x420   : > { %3147 = vmatpush1.bf16.msra.mxu0 %v2165_v56  ;;  %3967 = vmatpush1.bf16.msra.mxu1 %v2167_v42  ;;  %v2205_v56 = vunpack.c.l.s8.bf16 %v1129_v40  ;;  %v2207_v42 = vunpack.c.l.s8.bf16 %v1131_v46 }
 0x421   : > { %3148 = vmatprep.subr.bf16.mxu0 %v2170_v43  ;;  %3968 = vmatprep.subr.bf16.mxu1 %v2172_v45  ;;  %v2210_v43 = vunpack.c.h.s8.bf16 %v1130_v33  ;;  %v2212_v45 = vunpack.c.h.s8.bf16 %v1132_v39 }
 0x422   : > { %3178 = vmatprep.mubr.bf16.mxu0 %v680_v51  ;;  %3998 = vmatprep.mubr.bf16.mxu1 %v680_v51  ;;  %v2209_v51 = vunpack.c.h.s8.bf16 %v1129_v40 }
 0x424   : > { %3149 = vmatpush1.bf16.msra.mxu0 %v2169_v52  ;;  %3969 = vmatpush1.bf16.msra.mxu1 %v2171_v53  ;;  %v2211_v52 = vunpack.c.h.s8.bf16 %v1131_v46  ;;  %v2214_v53 = vunpack.c.l.s8.bf16 %v1134_v47 }
 0x425   : > { %3150 = vmatprep.subr.bf16.mxu0 %v2174_v57  ;;  %3970 = vmatprep.subr.bf16.mxu1 %v2176_v54  ;;  %v2216_v57 = vunpack.c.l.s8.bf16 %v1136_v48  ;;  %v1133_v54 = vld [vmem:[%s7060_s17 + $0xdc0] sm:$0xff] }
 0x426   : > { %v2213_v60 = vunpack.c.l.s8.bf16 %v1133_v54  ;;  %v2217_v9 = vunpack.c.h.s8.bf16 %v1133_v54 }
 0x428   : > { %3151 = vmatpush1.bf16.msra.mxu0 %v2173_v58  ;;  %3971 = vmatpush1.bf16.msra.mxu1 %v2175_v59  ;;  %v2215_v58 = vunpack.c.l.s8.bf16 %v1135_v55  ;;  %v2218_v59 = vunpack.c.h.s8.bf16 %v1134_v47 }
 0x429   : > { %3152 = vmatprep.subr.bf16.mxu0 %v2178_v62  ;;  %3972 = vmatprep.subr.bf16.mxu1 %v2180_v61  ;;  %v2220_v62 = vunpack.c.h.s8.bf16 %v1136_v48  ;;  %v1138_v61 = vld [vmem:[%s7060_s17 + $0xde8] sm:$0xff] }
 0x42c   : > { %3153 = vmatpush1.bf16.msra.mxu0 %v2177_v63  ;;  %3973 = vmatpush1.bf16.msra.mxu1 %v2179_v0  ;;  %v2219_v63 = vunpack.c.h.s8.bf16 %v1135_v55  ;;  %v2222_v0 = vunpack.c.l.s8.bf16 %v1138_v61 }
 0x42d   : > { %3154 = vmatprep.subr.bf16.mxu0 %v2182_v50  ;;  %3974 = vmatprep.subr.bf16.mxu1 %v2184_v2  ;;  %v2224_v50 = vunpack.c.l.s8.bf16 %v1140_v1  ;;  %v1137_v2 = vld [vmem:[%s7060_s17 + $0xde0] sm:$0xff] }
 0x430   : > { %3155 = vmatpush1.bf16.msra.mxu0 %v2181_v4  ;;  %3975 = vmatpush1.bf16.msra.mxu1 %v2183_v5  ;;  %v2221_v4 = vunpack.c.l.s8.bf16 %v1137_v2  ;;  %v2223_v5 = vunpack.c.l.s8.bf16 %v1139_v3 }
 0x431   : > { %3156 = vmatprep.subr.bf16.mxu0 %v2186_v6  ;;  %3976 = vmatprep.subr.bf16.mxu1 %v2188_v7  ;;  %v2226_v6 = vunpack.c.h.s8.bf16 %v1138_v61  ;;  %v2228_v7 = vunpack.c.h.s8.bf16 %v1140_v1 }
 0x434   : > { %3157 = vmatpush1.bf16.msra.mxu0 %v2185_v10  ;;  %3977 = vmatpush1.bf16.msra.mxu1 %v2187_v11  ;;  %v7678_v10 = vrot.slane %v7672_v15, %v7102_v49  ;;  %v2225_v11 = vunpack.c.h.s8.bf16 %v1137_v2 }
 0x435   : > { %3158 = vmatprep.subr.bf16.mxu0 %v2190_v12  ;;  %3978 = vmatprep.subr.bf16.mxu1 %v2192_v16  ;;  %v2227_v12 = vunpack.c.h.s8.bf16 %v1139_v3  ;;  %v2230_v16 = vunpack.c.l.s8.bf16 %v1142_v8 }
 0x438   : > { %3159 = vmatpush1.bf16.msra.mxu0 %v2189_v28  ;;  %3979 = vmatpush1.bf16.msra.mxu1 %v2191_v17  ;;  %v1143_v28 = vld [vmem:[%s7060_s17 + $0xe10] sm:$0xff]  ;;  %v577_v17 = vcombine.high %v7678_v10, %v7678_v10 }
 0x439   : > { %3160 = vmatprep.subr.bf16.mxu0 %v2194_v18  ;;  %3980 = vmatprep.subr.bf16.mxu1 %v2196_v22  ;;  %v679_v18 = vpack.c.bf16 %v7635_v32, %v7635_v32  ;;  %v2229_v22 = vunpack.c.l.s8.bf16 %v1141_v19  ;;  %v2231_v20 = vunpack.c.l.s8.bf16 %v1143_v28  ;;  %v2235_v27 = vunpack.c.h.s8.bf16 %v1143_v28 }
 0x43c   : > { %3161 = vmatpush1.bf16.msra.mxu0 %v2193_v34  ;;  %3981 = vmatpush1.bf16.msra.mxu1 %v2195_v23  ;;  %v2236_v34 = vunpack.c.h.s8.bf16 %v1144_v13  ;;  %v1146_v23 = vld [vmem:[%s7060_s17 + $0xe28] sm:$0xff] }
 0x43d   : > { %3162 = vmatprep.subr.bf16.mxu0 %v2198_v24  ;;  %3982 = vmatprep.subr.bf16.mxu1 %v2200_v25  ;;  %v1148_v24 = vld [vmem:[%s7060_s17 + $0xe38] sm:$0xff]  ;;  %v682_v25 = vpack.c.bf16 %v577_v17, %v577_v17  ;;  %v2238_v32 = vunpack.c.l.s8.bf16 %v1146_v23  ;;  %v2242_v39 = vunpack.c.h.s8.bf16 %v1146_v23 }
 0x440   : > { %3163 = vmatpush1.bf16.msra.mxu0 %v2197_v29  ;;  %3983 = vmatpush1.bf16.msra.mxu1 %v2199_v30  ;;  %v2240_v29 = vunpack.c.l.s8.bf16 %v1148_v24  ;;  %v1145_v30 = vld [vmem:[%s7060_s17 + $0xe20] sm:$0xff] }
 0x441   : > { %3164 = vmatprep.subr.bf16.mxu0 %v2202_v31  ;;  %3984 = vmatprep.subr.bf16.mxu1 %v2204_v35  ;;  %v1147_v31 = vld [vmem:[%s7060_s17 + $0xe30] sm:$0xff]  ;;  %v2237_v35 = vunpack.c.l.s8.bf16 %v1145_v30 }
 0x442   : > { %v2239_v33 = vunpack.c.l.s8.bf16 %v1147_v31  ;;  %v2243_v40 = vunpack.c.h.s8.bf16 %v1147_v31  ;;  %v1167_v31 = vld [vmem:[%s7060_s17 + $0xed0] sm:$0xff] }
 0x444   : > { %3165 = vmatpush1.bf16.msra.mxu0 %v2201_v44  ;;  %3985 = vmatpush1.bf16.msra.mxu1 %v2203_v36  ;;  %v2244_v44 = vunpack.c.h.s8.bf16 %v1148_v24  ;;  %v1150_v36 = vld [vmem:[%s7060_s17 + $0xe48] sm:$0xff] }
 0x445   : > { %3166 = vmatprep.subr.bf16.mxu0 %v2206_v37  ;;  %3986 = vmatprep.subr.bf16.mxu1 %v2208_v41  ;;  %v1152_v37 = vld [vmem:[%s7060_s17 + $0xe58] sm:$0xff]  ;;  %v2241_v41 = vunpack.c.h.s8.bf16 %v1145_v30  ;;  %v2246_v46 = vunpack.c.l.s8.bf16 %v1150_v36  ;;  %v2250_v48 = vunpack.c.h.s8.bf16 %v1150_v36  ;;  %v1166_v24 = vld [vmem:[%s7060_s17 + $0xec8] sm:$0xff]  ;;  %v1165_v30 = vld [vmem:[%s7060_s17 + $0xec0] sm:$0xff] }
 0x446   : > { %v1170_v36 = vld [vmem:[%s7060_s17 + $0xee8] sm:$0xff] }
 0x448   : > { %3167 = vmatpush1.bf16.msra.mxu0 %v2205_v56  ;;  %3987 = vmatpush1.bf16.msra.mxu1 %v2207_v42  ;;  %v2248_v56 = vunpack.c.l.s8.bf16 %v1152_v37  ;;  %v1149_v42 = vld [vmem:[%s7060_s17 + $0xe40] sm:$0xff] }
 0x449   : > { %3168 = vmatprep.subr.bf16.mxu0 %v2210_v43  ;;  %3988 = vmatprep.subr.bf16.mxu1 %v2212_v45  ;;  %v1151_v43 = vld [vmem:[%s7060_s17 + $0xe50] sm:$0xff]  ;;  %v2245_v45 = vunpack.c.l.s8.bf16 %v1149_v42 }
 0x44a   : > { %v2247_v47 = vunpack.c.l.s8.bf16 %v1151_v43  ;;  %v2251_v54 = vunpack.c.h.s8.bf16 %v1151_v43  ;;  %v1171_v43 = vld [vmem:[%s7060_s17 + $0xef0] sm:$0xff] }
 0x44c   : > { %3169 = vmatpush1.bf16.msra.mxu0 %v2209_v51  ;;  %3989 = vmatpush1.bf16.msra.mxu1 %v2211_v52  ;;  %v2252_v51 = vunpack.c.h.s8.bf16 %v1152_v37  ;;  %v1154_v52 = vld [vmem:[%s7060_s17 + $0xe68] sm:$0xff]  ;;  %v1172_v37 = vld [vmem:[%s7060_s17 + $0xef8] sm:$0xff] }
 0x44d   : > { %3170 = vmatprep.subr.bf16.mxu0 %v2214_v53  ;;  %3990 = vmatprep.subr.bf16.mxu1 %v2216_v57  ;;  %v1156_v53 = vld [vmem:[%s7060_s17 + $0xe78] sm:$0xff]  ;;  %v2249_v57 = vunpack.c.h.s8.bf16 %v1149_v42  ;;  %v2254_v55 = vunpack.c.l.s8.bf16 %v1154_v52  ;;  %v2258_v1 = vunpack.c.h.s8.bf16 %v1154_v52  ;;  %v1169_v42 = vld [vmem:[%s7060_s17 + $0xee0] sm:$0xff]  ;;  %v2292_v52 = vunpack.c.h.s8.bf16 %v1172_v37 }
 0x450   : > { %3171 = vmatpush1.bf16.msra.mxu0 %v2213_v60  ;;  %3991 = vmatpush1.bf16.msra.mxu1 %v2215_v58  ;;  %v2256_v60 = vunpack.c.l.s8.bf16 %v1156_v53  ;;  %v1153_v58 = vld [vmem:[%s7060_s17 + $0xe60] sm:$0xff] }
 0x451   : > { %3172 = vmatprep.subr.bf16.mxu0 %v2218_v59  ;;  %3992 = vmatprep.subr.bf16.mxu1 %v2220_v62  ;;  %v1155_v59 = vld [vmem:[%s7060_s17 + $0xe70] sm:$0xff]  ;;  %v2253_v62 = vunpack.c.l.s8.bf16 %v1153_v58 }
 0x452   : > { %v2255_v61 = vunpack.c.l.s8.bf16 %v1155_v59  ;;  %v2259_v2 = vunpack.c.h.s8.bf16 %v1155_v59  ;;  %v1173_v59 = vld [vmem:[%s7060_s17 + $0xf00] sm:$0xff] }
 0x454   : > { %3173 = vmatpush1.bf16.msra.mxu0 %v2217_v9  ;;  %3993 = vmatpush1.bf16.msra.mxu1 %v2219_v63  ;;  %v2260_v9 = vunpack.c.h.s8.bf16 %v1156_v53  ;;  %v1158_v63 = vld [vmem:[%s7060_s17 + $0xe88] sm:$0xff] }
 0x455   : > { %3174 = vmatprep.subr.bf16.mxu0 %v2222_v0  ;;  %3994 = vmatprep.subr.bf16.mxu1 %v2224_v50  ;;  %v1160_v0 = vld [vmem:[%s7060_s17 + $0xe98] sm:$0xff]  ;;  %v2257_v50 = vunpack.c.h.s8.bf16 %v1153_v58  ;;  %v2262_v3 = vunpack.c.l.s8.bf16 %v1158_v63  ;;  %v2266_v13 = vunpack.c.h.s8.bf16 %v1158_v63  ;;  %v1174_v53 = vld [vmem:[%s7060_s17 + $0xf08] sm:$0xff] }
 0x458   : > { %3175 = vmatpush1.bf16.msra.mxu0 %v2221_v4  ;;  %3995 = vmatpush1.bf16.msra.mxu1 %v2223_v5  ;;  %v2264_v4 = vunpack.c.l.s8.bf16 %v1160_v0  ;;  %v1157_v5 = vld [vmem:[%s7060_s17 + $0xe80] sm:$0xff] }
 0x459   : > { %3176 = vmatprep.subr.bf16.mxu0 %v2226_v6  ;;  %3996 = vmatprep.subr.bf16.mxu1 %v2228_v7  ;;  %v1159_v6 = vld [vmem:[%s7060_s17 + $0xe90] sm:$0xff]  ;;  %v2261_v7 = vunpack.c.l.s8.bf16 %v1157_v5 }
 0x45a   : > { %v2263_v8 = vunpack.c.l.s8.bf16 %v1159_v6  ;;  %v2267_v19 = vunpack.c.h.s8.bf16 %v1159_v6 }
 0x45c   : > { %3177 = vmatpush1.bf16.msra.mxu0 %v2225_v11  ;;  %3997 = vmatpush1.bf16.msra.mxu1 %v2227_v12  ;;  %v2268_v11 = vunpack.c.h.s8.bf16 %v1160_v0  ;;  %v1162_v12 = vld [vmem:[%s7060_s17 + $0xea8] sm:$0xff]  ;;  %v2298_v0 = vunpack.c.h.s8.bf16 %v1174_v53 }
 0x45d   : > { %3187 = vmatprep.subr.bf16.mxu0 %v2230_v16  ;;  %4007 = vmatprep.subr.bf16.mxu1 %v2232_v14  ;;  %v1164_v16 = vld [vmem:[%s7060_s17 + $0xeb8] sm:$0xff]  ;;  %v2265_v14 = vunpack.c.h.s8.bf16 %v1157_v5  ;;  %v2270_v28 = vunpack.c.l.s8.bf16 %v1162_v12  ;;  %v2297_v5 = vunpack.c.h.s8.bf16 %v1173_v59 }
 0x45e   : > { %v2272_v17 = vunpack.c.l.s8.bf16 %v1164_v16  ;;  %v2276_v23 = vunpack.c.h.s8.bf16 %v1164_v16 }
 0x45f   : > { %3179 = vmatmul.mubr.bf16.vlgmr.msra.gmra.mrb[0].mxu0 %v679_v18  ;;  %3999 = vmatmul.mubr.bf16.vlgmr.msra.gmra.mrb[0].mxu1 %v679_v18  ;;  %v1161_v18 = vld [vmem:[%s7060_s17 + $0xea0] sm:$0xff] }
 0x460   : > { %3188 = vmatpush1.bf16.msra.mxu0 %v2229_v22  ;;  %4008 = vmatpush1.bf16.msra.mxu1 %v2231_v20  ;;  %v1163_v22 = vld [vmem:[%s7060_s17 + $0xeb0] sm:$0xff]  ;;  %v2269_v20 = vunpack.c.l.s8.bf16 %v1161_v18 }
 0x461   : > { %3189 = vmatprep.subr.bf16.mxu0 %v2234_v21  ;;  %4009 = vmatprep.subr.bf16.mxu1 %v2236_v34  ;;  %v2271_v21 = vunpack.c.l.s8.bf16 %v1163_v22  ;;  %v2274_v34 = vunpack.c.h.s8.bf16 %v1162_v12 }
 0x462   : > { %3219 = vmatprep.mubr.bf16.mxu0 %v682_v25  ;;  %4039 = vmatprep.mubr.bf16.mxu1 %v682_v25  ;;  %v1168_v25 = vld [vmem:[%s7060_s17 + $0xed8] sm:$0xff] }
 0x464   : > { %3190 = vmatpush1.bf16.msra.mxu0 %v2233_v26  ;;  %4010 = vmatpush1.bf16.msra.mxu1 %v2235_v27  ;;  %v2273_v26 = vunpack.c.h.s8.bf16 %v1161_v18  ;;  %v2275_v27 = vunpack.c.h.s8.bf16 %v1163_v22 }
 0x465   : > { %3191 = vmatprep.subr.bf16.mxu0 %v2238_v32  ;;  %4011 = vmatprep.subr.bf16.mxu1 %v2240_v29  ;;  %v2278_v32 = vunpack.c.l.s8.bf16 %v1166_v24  ;;  %v2280_v29 = vunpack.c.l.s8.bf16 %v1168_v25 }
 0x468   : > { %3192 = vmatpush1.bf16.msra.mxu0 %v2237_v35  ;;  %4012 = vmatpush1.bf16.msra.mxu1 %v2239_v33  ;;  %v2277_v35 = vunpack.c.l.s8.bf16 %v1165_v30  ;;  %v2279_v33 = vunpack.c.l.s8.bf16 %v1167_v31 }
 0x469   : > { %3193 = vmatprep.subr.bf16.mxu0 %v2242_v39  ;;  %4013 = vmatprep.subr.bf16.mxu1 %v2244_v44  ;;  %v2282_v39 = vunpack.c.h.s8.bf16 %v1166_v24  ;;  %v2284_v44 = vunpack.c.h.s8.bf16 %v1168_v25 }
 0x46c   : > { %3194 = vmatpush1.bf16.msra.mxu0 %v2241_v41  ;;  %4014 = vmatpush1.bf16.msra.mxu1 %v2243_v40  ;;  %v2281_v41 = vunpack.c.h.s8.bf16 %v1165_v30  ;;  %v2283_v40 = vunpack.c.h.s8.bf16 %v1167_v31 }
 0x46d   : > { %3195 = vmatprep.subr.bf16.mxu0 %v2246_v46  ;;  %4015 = vmatprep.subr.bf16.mxu1 %v2248_v56  ;;  %v2286_v46 = vunpack.c.l.s8.bf16 %v1170_v36  ;;  %v2288_v56 = vunpack.c.l.s8.bf16 %v1172_v37 }
 0x470   : > { %3196 = vmatpush1.bf16.msra.mxu0 %v2245_v45  ;;  %4016 = vmatpush1.bf16.msra.mxu1 %v2247_v47  ;;  %v562_v45 = vcombine.high %v7672_v15, %v7672_v15  ;;  %v2285_v47 = vunpack.c.l.s8.bf16 %v1169_v42  ;;  %v2294_v15 = vunpack.c.l.s8.bf16 %v1174_v53 }
 0x471   : > { %3197 = vmatprep.subr.bf16.mxu0 %v2250_v48  ;;  %4017 = vmatprep.subr.bf16.mxu1 %v2252_v51  ;;  %v2287_v48 = vunpack.c.l.s8.bf16 %v1171_v43  ;;  %v2290_v51 = vunpack.c.h.s8.bf16 %v1170_v36 }
 0x474   : > { %3198 = vmatpush1.bf16.msra.mxu0 %v2249_v57  ;;  %4018 = vmatpush1.bf16.msra.mxu1 %v2251_v54  ;;  %v1176_v57 = vld [vmem:[%s7060_s17 + $0xf18] sm:$0xff]  ;;  %v7719_v54 = vrot.slane %v562_v45, %v7102_v49 }
 0x475   : > { %3199 = vmatprep.subr.bf16.mxu0 %v2254_v55  ;;  %4019 = vmatprep.subr.bf16.mxu1 %v2256_v60  ;;  %v2289_v55 = vunpack.c.h.s8.bf16 %v1169_v42  ;;  %v2291_v60 = vunpack.c.h.s8.bf16 %v1171_v43  ;;  %v2296_v58 = vunpack.c.l.s8.bf16 %v1176_v57 }
 0x478   : > { %3200 = vmatpush1.bf16.msra.mxu0 %v2253_v62  ;;  %4020 = vmatpush1.bf16.msra.mxu1 %v2255_v61  ;;  %v1175_v62 = vld [vmem:[%s7060_s17 + $0xf10] sm:$0xff]  ;;  %v578_v61 = vcombine.high %v7719_v54, %v7719_v54 }
 0x479   : > { %3201 = vmatprep.subr.bf16.mxu0 %v2258_v1  ;;  %4021 = vmatprep.subr.bf16.mxu1 %v2260_v9  ;;  %v681_v1 = vpack.c.bf16 %v7678_v10, %v7678_v10  ;;  %v2293_v9 = vunpack.c.l.s8.bf16 %v1173_v59  ;;  %v2295_v63 = vunpack.c.l.s8.bf16 %v1175_v62  ;;  %v2299_v6 = vunpack.c.h.s8.bf16 %v1175_v62 }
 0x47c   : > { %3202 = vmatpush1.bf16.msra.mxu0 %v2257_v50  ;;  %4022 = vmatpush1.bf16.msra.mxu1 %v2259_v2  ;;  %v2300_v50 = vunpack.c.h.s8.bf16 %v1176_v57  ;;  %v1178_v2 = vld [vmem:[%s7060_s17 + $0xf28] sm:$0xff] }
 0x47d   : > { %3203 = vmatprep.subr.bf16.mxu0 %v2262_v3  ;;  %4023 = vmatprep.subr.bf16.mxu1 %v2264_v4  ;;  %v1180_v3 = vld [vmem:[%s7060_s17 + $0xf38] sm:$0xff]  ;;  %v684_v4 = vpack.c.bf16 %v578_v61, %v578_v61  ;;  %v2302_v10 = vunpack.c.l.s8.bf16 %v1178_v2  ;;  %v2306_v16 = vunpack.c.h.s8.bf16 %v1178_v2  ;;  %v1193_v61 = vld [vmem:[%s7060_s17 + $0xfa0] sm:$0xff]  ;;  %v1198_v2 = vld [vmem:[%s7060_s17 + $0xfc8] sm:$0xff] }
 0x480   : > { %3204 = vmatpush1.bf16.msra.mxu0 %v2261_v7  ;;  %4024 = vmatpush1.bf16.msra.mxu1 %v2263_v8  ;;  %v2304_v7 = vunpack.c.l.s8.bf16 %v1180_v3  ;;  %v1177_v8 = vld [vmem:[%s7060_s17 + $0xf20] sm:$0xff] }
 0x481   : > { %3205 = vmatprep.subr.bf16.mxu0 %v2266_v13  ;;  %4025 = vmatprep.subr.bf16.mxu1 %v2268_v11  ;;  %v1179_v13 = vld [vmem:[%s7060_s17 + $0xf30] sm:$0xff]  ;;  %v2301_v11 = vunpack.c.l.s8.bf16 %v1177_v8 }
 0x482   : > { %v2303_v12 = vunpack.c.l.s8.bf16 %v1179_v13  ;;  %v2307_v18 = vunpack.c.h.s8.bf16 %v1179_v13 }
 0x484   : > { %3206 = vmatpush1.bf16.msra.mxu0 %v2265_v14  ;;  %4026 = vmatpush1.bf16.msra.mxu1 %v2267_v19  ;;  %v2308_v14 = vunpack.c.h.s8.bf16 %v1180_v3  ;;  %v1182_v19 = vld [vmem:[%s7060_s17 + $0xf48] sm:$0xff]  ;;  %v1200_v3 = vld [vmem:[%s7060_s17 + $0xfd8] sm:$0xff] }
 0x485   : > { %3207 = vmatprep.subr.bf16.mxu0 %v2270_v28  ;;  %4027 = vmatprep.subr.bf16.mxu1 %v2272_v17  ;;  %v1184_v28 = vld [vmem:[%s7060_s17 + $0xf58] sm:$0xff]  ;;  %v2305_v17 = vunpack.c.h.s8.bf16 %v1177_v8  ;;  %v2310_v22 = vunpack.c.l.s8.bf16 %v1182_v19  ;;  %v2314_v25 = vunpack.c.h.s8.bf16 %v1182_v19  ;;  %v1199_v8 = vld [vmem:[%s7060_s17 + $0xfd0] sm:$0xff] }
 0x486   : > { %v1204_v19 = vld [vmem:[%s7060_s17 + $0xff8] sm:$0xff] }
 0x488   : > { %3208 = vmatpush1.bf16.msra.mxu0 %v2269_v20  ;;  %4028 = vmatpush1.bf16.msra.mxu1 %v2271_v21  ;;  %v2312_v20 = vunpack.c.l.s8.bf16 %v1184_v28  ;;  %v1181_v21 = vld [vmem:[%s7060_s17 + $0xf40] sm:$0xff] }
 0x489   : > { %3209 = vmatprep.subr.bf16.mxu0 %v2274_v34  ;;  %4029 = vmatprep.subr.bf16.mxu1 %v2276_v23  ;;  %v1183_v34 = vld [vmem:[%s7060_s17 + $0xf50] sm:$0xff]  ;;  %v2309_v23 = vunpack.c.l.s8.bf16 %v1181_v21 }
 0x48a   : > { %v2311_v24 = vunpack.c.l.s8.bf16 %v1183_v34  ;;  %v2315_v30 = vunpack.c.h.s8.bf16 %v1183_v34  ;;  %v7756_v34 = vld [vmem:[%s7053_s30 + $0x40] sm:$0xff] }
 0x48c   : > { %3210 = vmatpush1.bf16.msra.mxu0 %v2273_v26  ;;  %4030 = vmatpush1.bf16.msra.mxu1 %v2275_v27  ;;  %v2316_v26 = vunpack.c.h.s8.bf16 %v1184_v28  ;;  %v1186_v27 = vld [vmem:[%s7060_s17 + $0xf68] sm:$0xff] }
 0x48d   : > { %3211 = vmatprep.subr.bf16.mxu0 %v2278_v32  ;;  %4031 = vmatprep.subr.bf16.mxu1 %v2280_v29  ;;  %v1188_v32 = vld [vmem:[%s7060_s17 + $0xf78] sm:$0xff]  ;;  %v2313_v29 = vunpack.c.h.s8.bf16 %v1181_v21  ;;  %v2318_v31 = vunpack.c.l.s8.bf16 %v1186_v27  ;;  %v2322_v37 = vunpack.c.h.s8.bf16 %v1186_v27  ;;  %v1203_v21 = vld [vmem:[%s7060_s17 + $0xff0] sm:$0xff]  ;;  %v1206_v27 = vld [vmem:[%s7060_s17 + $0x1008] sm:$0xff] }
 0x490   : > { %3212 = vmatpush1.bf16.msra.mxu0 %v2277_v35  ;;  %4032 = vmatpush1.bf16.msra.mxu1 %v2279_v33  ;;  %v2320_v35 = vunpack.c.l.s8.bf16 %v1188_v32  ;;  %v1185_v33 = vld [vmem:[%s7060_s17 + $0xf60] sm:$0xff] }
 0x491   : > { %3213 = vmatprep.subr.bf16.mxu0 %v2282_v39  ;;  %4033 = vmatprep.subr.bf16.mxu1 %v2284_v44  ;;  %v1187_v39 = vld [vmem:[%s7060_s17 + $0xf70] sm:$0xff]  ;;  %v2317_v44 = vunpack.c.l.s8.bf16 %v1185_v33 }
 0x492   : > { %v2319_v36 = vunpack.c.l.s8.bf16 %v1187_v39  ;;  %v2323_v42 = vunpack.c.h.s8.bf16 %v1187_v39  ;;  %v1205_v39 = vld [vmem:[%s7060_s17 + $0x1000] sm:$0xff] }
 0x494   : > { %3214 = vmatpush1.bf16.msra.mxu0 %v2281_v41  ;;  %4034 = vmatpush1.bf16.msra.mxu1 %v2283_v40  ;;  %v2324_v41 = vunpack.c.h.s8.bf16 %v1188_v32  ;;  %v1190_v40 = vld [vmem:[%s7060_s17 + $0xf88] sm:$0xff]  ;;  %v1208_v32 = vld [vmem:[%s7060_s17 + $0x1018] sm:$0xff] }
 0x495   : > { %3215 = vmatprep.subr.bf16.mxu0 %v2286_v46  ;;  %4035 = vmatprep.subr.bf16.mxu1 %v2288_v56  ;;  %v1192_v46 = vld [vmem:[%s7060_s17 + $0xf98] sm:$0xff]  ;;  %v2321_v56 = vunpack.c.h.s8.bf16 %v1185_v33  ;;  %v2326_v43 = vunpack.c.l.s8.bf16 %v1190_v40  ;;  %v2330_v53 = vunpack.c.h.s8.bf16 %v1190_v40  ;;  %v2360_v33 = vunpack.c.l.s8.bf16 %v1208_v32 }
 0x496   : > { %v2328_v45 = vunpack.c.l.s8.bf16 %v1192_v46  ;;  %v2332_v57 = vunpack.c.h.s8.bf16 %v1192_v46  ;;  %v2362_v46 = vunpack.c.h.s8.bf16 %v1206_v27 }
 0x498   : > { %3216 = vmatpush1.bf16.msra.mxu0 %v2285_v47  ;;  %4036 = vmatpush1.bf16.msra.mxu1 %v2287_v48  ;;  %v1189_v47 = vld [vmem:[%s7060_s17 + $0xf80] sm:$0xff]  ;;  %v1191_v48 = vld [vmem:[%s7060_s17 + $0xf90] sm:$0xff] }
 0x499   : > { %3217 = vmatprep.subr.bf16.mxu0 %v2290_v51  ;;  %4037 = vmatprep.subr.bf16.mxu1 %v2292_v52  ;;  %v2325_v51 = vunpack.c.l.s8.bf16 %v1189_v47  ;;  %v2327_v52 = vunpack.c.l.s8.bf16 %v1191_v48 }
 0x49c   : > { %3218 = vmatpush1.bf16.msra.mxu0 %v2289_v55  ;;  %4038 = vmatpush1.bf16.msra.mxu1 %v2291_v60  ;;  %v1194_v55 = vld [vmem:[%s7060_s17 + $0xfa8] sm:$0xff]  ;;  %v1196_v60 = vld [vmem:[%s7060_s17 + $0xfb8] sm:$0xff] }
 0x49d   : > { %3228 = vmatprep.subr.bf16.mxu0 %v2294_v15  ;;  %4048 = vmatprep.subr.bf16.mxu1 %v2296_v58  ;;  %v2329_v15 = vunpack.c.h.s8.bf16 %v1189_v47  ;;  %v2331_v58 = vunpack.c.h.s8.bf16 %v1191_v48  ;;  %v2334_v59 = vunpack.c.l.s8.bf16 %v1194_v55  ;;  %v2336_v62 = vunpack.c.l.s8.bf16 %v1196_v60 }
 0x49e   : > { %v2361_v47 = vunpack.c.h.s8.bf16 %v1205_v39 }
 0x49f   : > { %3220 = vmatmul.mubr.bf16.vlgmr.msra.gmra.mrb[0].mxu0 %v681_v1  ;;  %4040 = vmatmul.mubr.bf16.vlgmr.msra.gmra.mrb[0].mxu1 %v681_v1  ;;  %v1195_v1 = vld [vmem:[%s7060_s17 + $0xfb0] sm:$0xff] }
 0x4a0   : > { %3229 = vmatpush1.bf16.msra.mxu0 %v2293_v9  ;;  %4049 = vmatpush1.bf16.msra.mxu1 %v2295_v63  ;;  %v2333_v9 = vunpack.c.l.s8.bf16 %v1193_v61  ;;  %v2335_v63 = vunpack.c.l.s8.bf16 %v1195_v1 }
 0x4a1   : > { %3230 = vmatprep.subr.bf16.mxu0 %v2298_v0  ;;  %4050 = vmatprep.subr.bf16.mxu1 %v2300_v50  ;;  %v2338_v0 = vunpack.c.h.s8.bf16 %v1194_v55  ;;  %v2340_v50 = vunpack.c.h.s8.bf16 %v1196_v60 }
 0x4a2   : > { %3260 = vmatprep.mubr.bf16.mxu0 %v684_v4  ;;  %4080 = vmatprep.mubr.bf16.mxu1 %v684_v4  ;;  %v2337_v4 = vunpack.c.h.s8.bf16 %v1193_v61 }
 0x4a4   : > { %3231 = vmatpush1.bf16.msra.mxu0 %v2297_v5  ;;  %4051 = vmatpush1.bf16.msra.mxu1 %v2299_v6  ;;  %v2339_v5 = vunpack.c.h.s8.bf16 %v1195_v1  ;;  %v2342_v6 = vunpack.c.l.s8.bf16 %v1198_v2 }
 0x4a5   : > { %3232 = vmatprep.subr.bf16.mxu0 %v2302_v10  ;;  %4052 = vmatprep.subr.bf16.mxu1 %v2304_v7  ;;  %v2344_v10 = vunpack.c.l.s8.bf16 %v1200_v3  ;;  %v1197_v7 = vld [vmem:[%s7060_s17 + $0xfc0] sm:$0xff] }
 0x4a6   : > { %v2341_v13 = vunpack.c.l.s8.bf16 %v1197_v7  ;;  %v2345_v28 = vunpack.c.h.s8.bf16 %v1197_v7 }
 0x4a8   : > { %3233 = vmatpush1.bf16.msra.mxu0 %v2301_v11  ;;  %4053 = vmatpush1.bf16.msra.mxu1 %v2303_v12  ;;  %v2343_v11 = vunpack.c.l.s8.bf16 %v1199_v8  ;;  %v2346_v12 = vunpack.c.h.s8.bf16 %v1198_v2 }
 0x4a9   : > { %3234 = vmatprep.subr.bf16.mxu0 %v2306_v16  ;;  %4054 = vmatprep.subr.bf16.mxu1 %v2308_v14  ;;  %v2348_v16 = vunpack.c.h.s8.bf16 %v1200_v3  ;;  %v1202_v14 = vld [vmem:[%s7060_s17 + $0xfe8] sm:$0xff] }
 0x4ac   : > { %3235 = vmatpush1.bf16.msra.mxu0 %v2305_v17  ;;  %4055 = vmatpush1.bf16.msra.mxu1 %v2307_v18  ;;  %v2347_v17 = vunpack.c.h.s8.bf16 %v1199_v8  ;;  %v2350_v18 = vunpack.c.l.s8.bf16 %v1202_v14 }
 0x4ad   : > { %3236 = vmatprep.subr.bf16.mxu0 %v2310_v22  ;;  %4056 = vmatprep.subr.bf16.mxu1 %v2312_v20  ;;  %v2352_v22 = vunpack.c.l.s8.bf16 %v1204_v19  ;;  %v1201_v20 = vld [vmem:[%s7060_s17 + $0xfe0] sm:$0xff] }
 0x4b0   : > { %3237 = vmatpush1.bf16.msra.mxu0 %v2309_v23  ;;  %4057 = vmatpush1.bf16.msra.mxu1 %v2311_v24  ;;  %v2349_v23 = vunpack.c.l.s8.bf16 %v1201_v20  ;;  %v2351_v24 = vunpack.c.l.s8.bf16 %v1203_v21 }
 0x4b1   : > { %3238 = vmatprep.subr.bf16.mxu0 %v2314_v25  ;;  %4058 = vmatprep.subr.bf16.mxu1 %v2316_v26  ;;  %v2354_v25 = vunpack.c.h.s8.bf16 %v1202_v14  ;;  %v2356_v26 = vunpack.c.h.s8.bf16 %v1204_v19 }
 0x4b4   : > { %3239 = vmatpush1.bf16.msra.mxu0 %v2313_v29  ;;  %4059 = vmatpush1.bf16.msra.mxu1 %v2315_v30  ;;  %v7762_v29 = vrot.slane %v7756_v34, %v7102_v49  ;;  %v2353_v30 = vunpack.c.h.s8.bf16 %v1201_v20 }
 0x4b5   : > { %3240 = vmatprep.subr.bf16.mxu0 %v2318_v31  ;;  %4060 = vmatprep.subr.bf16.mxu1 %v2320_v35  ;;  %v2355_v31 = vunpack.c.h.s8.bf16 %v1203_v21  ;;  %v2358_v35 = vunpack.c.l.s8.bf16 %v1206_v27 }
 0x4b8   : > { %3241 = vmatpush1.bf16.msra.mxu0 %v2317_v44  ;;  %4061 = vmatpush1.bf16.msra.mxu1 %v2319_v36  ;;  %v1207_v44 = vld [vmem:[%s7060_s17 + $0x1010] sm:$0xff]  ;;  %v594_v36 = vcombine.high %v7762_v29, %v7762_v29 }
 0x4b9   : > { %3242 = vmatprep.subr.bf16.mxu0 %v2322_v37  ;;  %4062 = vmatprep.subr.bf16.mxu1 %v2324_v41  ;;  %v683_v37 = vpack.c.bf16 %v7719_v54, %v7719_v54  ;;  %v2357_v41 = vunpack.c.l.s8.bf16 %v1205_v39  ;;  %v2359_v40 = vunpack.c.l.s8.bf16 %v1207_v44  ;;  %v2363_v48 = vunpack.c.h.s8.bf16 %v1207_v44 }
 0x4bc   : > { %3243 = vmatpush1.bf16.msra.mxu0 %v2321_v56  ;;  %4063 = vmatpush1.bf16.msra.mxu1 %v2323_v42  ;;  %v2364_v56 = vunpack.c.h.s8.bf16 %v1208_v32  ;;  %v1210_v42 = vld [vmem:[%s7060_s17 + $0x1028] sm:$0xff] }
 0x4bd   : > { %3244 = vmatprep.subr.bf16.mxu0 %v2326_v43  ;;  %4064 = vmatprep.subr.bf16.mxu1 %v2328_v45  ;;  %v1212_v43 = vld [vmem:[%s7060_s17 + $0x1038] sm:$0xff]  ;;  %v686_v45 = vpack.c.bf16 %v594_v36, %v594_v36  ;;  %v2366_v54 = vunpack.c.l.s8.bf16 %v1210_v42  ;;  %v2370_v60 = vunpack.c.h.s8.bf16 %v1210_v42 }
 0x4c0   : > { %3245 = vmatpush1.bf16.msra.mxu0 %v2325_v51  ;;  %4065 = vmatpush1.bf16.msra.mxu1 %v2327_v52  ;;  %v2368_v51 = vunpack.c.l.s8.bf16 %v1212_v43  ;;  %v1209_v52 = vld [vmem:[%s7060_s17 + $0x1020] sm:$0xff] }
 0x4c1   : > { %3246 = vmatprep.subr.bf16.mxu0 %v2330_v53  ;;  %4066 = vmatprep.subr.bf16.mxu1 %v2332_v57  ;;  %v1211_v53 = vld [vmem:[%s7060_s17 + $0x1030] sm:$0xff]  ;;  %v2365_v57 = vunpack.c.l.s8.bf16 %v1209_v52 }
 0x4c2   : > { %v2367_v55 = vunpack.c.l.s8.bf16 %v1211_v53  ;;  %v2371_v61 = vunpack.c.h.s8.bf16 %v1211_v53  ;;  %v1231_v53 = vld [vmem:[%s7060_s17 + $0x10d0] sm:$0xff] }
 0x4c4   : > { %3247 = vmatpush1.bf16.msra.mxu0 %v2329_v15  ;;  %4067 = vmatpush1.bf16.msra.mxu1 %v2331_v58  ;;  %v2372_v15 = vunpack.c.h.s8.bf16 %v1212_v43  ;;  %v1214_v58 = vld [vmem:[%s7060_s17 + $0x1048] sm:$0xff] }
 0x4c5   : > { %3248 = vmatprep.subr.bf16.mxu0 %v2334_v59  ;;  %4068 = vmatprep.subr.bf16.mxu1 %v2336_v62  ;;  %v1216_v59 = vld [vmem:[%s7060_s17 + $0x1058] sm:$0xff]  ;;  %v2369_v62 = vunpack.c.h.s8.bf16 %v1209_v52  ;;  %v2374_v1 = vunpack.c.l.s8.bf16 %v1214_v58  ;;  %v2378_v3 = vunpack.c.h.s8.bf16 %v1214_v58  ;;  %v1230_v43 = vld [vmem:[%s7060_s17 + $0x10c8] sm:$0xff]  ;;  %v1229_v52 = vld [vmem:[%s7060_s17 + $0x10c0] sm:$0xff] }
 0x4c6   : > { %v1234_v58 = vld [vmem:[%s7060_s17 + $0x10e8] sm:$0xff] }
 0x4c8   : > { %3249 = vmatpush1.bf16.msra.mxu0 %v2333_v9  ;;  %4069 = vmatpush1.bf16.msra.mxu1 %v2335_v63  ;;  %v2376_v9 = vunpack.c.l.s8.bf16 %v1216_v59  ;;  %v1213_v63 = vld [vmem:[%s7060_s17 + $0x1040] sm:$0xff] }
 0x4c9   : > { %3250 = vmatprep.subr.bf16.mxu0 %v2338_v0  ;;  %4070 = vmatprep.subr.bf16.mxu1 %v2340_v50  ;;  %v1215_v0 = vld [vmem:[%s7060_s17 + $0x1050] sm:$0xff]  ;;  %v2373_v50 = vunpack.c.l.s8.bf16 %v1213_v63 }
 0x4ca   : > { %v2375_v2 = vunpack.c.l.s8.bf16 %v1215_v0  ;;  %v2379_v7 = vunpack.c.h.s8.bf16 %v1215_v0  ;;  %v1235_v0 = vld [vmem:[%s7060_s17 + $0x10f0] sm:$0xff] }
 0x4cc   : > { %3251 = vmatpush1.bf16.msra.mxu0 %v2337_v4  ;;  %4071 = vmatpush1.bf16.msra.mxu1 %v2339_v5  ;;  %v2380_v4 = vunpack.c.h.s8.bf16 %v1216_v59  ;;  %v1218_v5 = vld [vmem:[%s7060_s17 + $0x1068] sm:$0xff]  ;;  %v1236_v59 = vld [vmem:[%s7060_s17 + $0x10f8] sm:$0xff] }
 0x4cd   : > { %3252 = vmatprep.subr.bf16.mxu0 %v2342_v6  ;;  %4072 = vmatprep.subr.bf16.mxu1 %v2344_v10  ;;  %v1220_v6 = vld [vmem:[%s7060_s17 + $0x1078] sm:$0xff]  ;;  %v2377_v10 = vunpack.c.h.s8.bf16 %v1213_v63  ;;  %v2382_v8 = vunpack.c.l.s8.bf16 %v1218_v5  ;;  %v2386_v19 = vunpack.c.h.s8.bf16 %v1218_v5  ;;  %v1233_v63 = vld [vmem:[%s7060_s17 + $0x10e0] sm:$0xff]  ;;  %v2420_v5 = vunpack.c.h.s8.bf16 %v1236_v59 }
 0x4d0   : > { %3253 = vmatpush1.bf16.msra.mxu0 %v2341_v13  ;;  %4073 = vmatpush1.bf16.msra.mxu1 %v2343_v11  ;;  %v2384_v13 = vunpack.c.l.s8.bf16 %v1220_v6  ;;  %v1217_v11 = vld [vmem:[%s7060_s17 + $0x1060] sm:$0xff] }
 0x4d1   : > { %3254 = vmatprep.subr.bf16.mxu0 %v2346_v12  ;;  %4074 = vmatprep.subr.bf16.mxu1 %v2348_v16  ;;  %v1219_v12 = vld [vmem:[%s7060_s17 + $0x1070] sm:$0xff]  ;;  %v2381_v16 = vunpack.c.l.s8.bf16 %v1217_v11 }
 0x4d2   : > { %v2383_v14 = vunpack.c.l.s8.bf16 %v1219_v12  ;;  %v2387_v20 = vunpack.c.h.s8.bf16 %v1219_v12  ;;  %v1237_v12 = vld [vmem:[%s7060_s17 + $0x1100] sm:$0xff] }
 0x4d4   : > { %3255 = vmatpush1.bf16.msra.mxu0 %v2345_v28  ;;  %4075 = vmatpush1.bf16.msra.mxu1 %v2347_v17  ;;  %v2388_v28 = vunpack.c.h.s8.bf16 %v1220_v6  ;;  %v1222_v17 = vld [vmem:[%s7060_s17 + $0x1088] sm:$0xff] }
 0x4d5   : > { %3256 = vmatprep.subr.bf16.mxu0 %v2350_v18  ;;  %4076 = vmatprep.subr.bf16.mxu1 %v2352_v22  ;;  %v1224_v18 = vld [vmem:[%s7060_s17 + $0x1098] sm:$0xff]  ;;  %v2385_v22 = vunpack.c.h.s8.bf16 %v1217_v11  ;;  %v2390_v21 = vunpack.c.l.s8.bf16 %v1222_v17  ;;  %v2394_v32 = vunpack.c.h.s8.bf16 %v1222_v17  ;;  %v1238_v6 = vld [vmem:[%s7060_s17 + $0x1108] sm:$0xff] }
 0x4d8   : > { %3257 = vmatpush1.bf16.msra.mxu0 %v2349_v23  ;;  %4077 = vmatpush1.bf16.msra.mxu1 %v2351_v24  ;;  %v2392_v23 = vunpack.c.l.s8.bf16 %v1224_v18  ;;  %v1221_v24 = vld [vmem:[%s7060_s17 + $0x1080] sm:$0xff] }
 0x4d9   : > { %3258 = vmatprep.subr.bf16.mxu0 %v2354_v25  ;;  %4078 = vmatprep.subr.bf16.mxu1 %v2356_v26  ;;  %v1223_v25 = vld [vmem:[%s7060_s17 + $0x1090] sm:$0xff]  ;;  %v2389_v26 = vunpack.c.l.s8.bf16 %v1221_v24 }
 0x4da   : > { %v2391_v27 = vunpack.c.l.s8.bf16 %v1223_v25  ;;  %v2395_v39 = vunpack.c.h.s8.bf16 %v1223_v25 }
 0x4dc   : > { %3259 = vmatpush1.bf16.msra.mxu0 %v2353_v30  ;;  %4079 = vmatpush1.bf16.msra.mxu1 %v2355_v31  ;;  %v2396_v30 = vunpack.c.h.s8.bf16 %v1224_v18  ;;  %v1226_v31 = vld [vmem:[%s7060_s17 + $0x10a8] sm:$0xff]  ;;  %v2426_v18 = vunpack.c.h.s8.bf16 %v1238_v6 }
 0x4dd   : > { %3269 = vmatprep.subr.bf16.mxu0 %v2358_v35  ;;  %4089 = vmatprep.subr.bf16.mxu1 %v2360_v33  ;;  %v1228_v35 = vld [vmem:[%s7060_s17 + $0x10b8] sm:$0xff]  ;;  %v2393_v33 = vunpack.c.h.s8.bf16 %v1221_v24  ;;  %v2398_v44 = vunpack.c.l.s8.bf16 %v1226_v31  ;;  %v2425_v24 = vunpack.c.h.s8.bf16 %v1237_v12 }
 0x4de   : > { %v2400_v36 = vunpack.c.l.s8.bf16 %v1228_v35  ;;  %v2404_v42 = vunpack.c.h.s8.bf16 %v1228_v35 }
 0x4df   : > { %3261 = vmatmul.mubr.bf16.vlgmr.msra.gmra.mrb[0].mxu0 %v683_v37  ;;  %4081 = vmatmul.mubr.bf16.vlgmr.msra.gmra.mrb[0].mxu1 %v683_v37  ;;  %v1225_v37 = vld [vmem:[%s7060_s17 + $0x10a0] sm:$0xff] }
 0x4e0   : > { %3270 = vmatpush1.bf16.msra.mxu0 %v2357_v41  ;;  %4090 = vmatpush1.bf16.msra.mxu1 %v2359_v40  ;;  %v1227_v41 = vld [vmem:[%s7060_s17 + $0x10b0] sm:$0xff]  ;;  %v2397_v40 = vunpack.c.l.s8.bf16 %v1225_v37 }
 0x4e1   : > { %3271 = vmatprep.subr.bf16.mxu0 %v2362_v46  ;;  %4091 = vmatprep.subr.bf16.mxu1 %v2364_v56  ;;  %v2399_v46 = vunpack.c.l.s8.bf16 %v1227_v41  ;;  %v2402_v56 = vunpack.c.h.s8.bf16 %v1226_v31 }
 0x4e2   : > { %3301 = vmatprep.mubr.bf16.mxu0 %v686_v45  ;;  %4121 = vmatprep.mubr.bf16.mxu1 %v686_v45  ;;  %v1232_v45 = vld [vmem:[%s7060_s17 + $0x10d8] sm:$0xff] }
 0x4e4   : > { %3272 = vmatpush1.bf16.msra.mxu0 %v2361_v47  ;;  %4092 = vmatpush1.bf16.msra.mxu1 %v2363_v48  ;;  %v2401_v47 = vunpack.c.h.s8.bf16 %v1225_v37  ;;  %v2403_v48 = vunpack.c.h.s8.bf16 %v1227_v41 }
 0x4e5   : > { %3273 = vmatprep.subr.bf16.mxu0 %v2366_v54  ;;  %4093 = vmatprep.subr.bf16.mxu1 %v2368_v51  ;;  %v2406_v54 = vunpack.c.l.s8.bf16 %v1230_v43  ;;  %v2408_v51 = vunpack.c.l.s8.bf16 %v1232_v45 }
 0x4e8   : > { %3274 = vmatpush1.bf16.msra.mxu0 %v2365_v57  ;;  %4094 = vmatpush1.bf16.msra.mxu1 %v2367_v55  ;;  %v2405_v57 = vunpack.c.l.s8.bf16 %v1229_v52  ;;  %v2407_v55 = vunpack.c.l.s8.bf16 %v1231_v53 }
 0x4e9   : > { %3275 = vmatprep.subr.bf16.mxu0 %v2370_v60  ;;  %4095 = vmatprep.subr.bf16.mxu1 %v2372_v15  ;;  %v2410_v60 = vunpack.c.h.s8.bf16 %v1230_v43  ;;  %v2412_v15 = vunpack.c.h.s8.bf16 %v1232_v45 }
 0x4ec   : > { %3276 = vmatpush1.bf16.msra.mxu0 %v2369_v62  ;;  %4096 = vmatpush1.bf16.msra.mxu1 %v2371_v61  ;;  %v2409_v62 = vunpack.c.h.s8.bf16 %v1229_v52  ;;  %v2411_v61 = vunpack.c.h.s8.bf16 %v1231_v53 }
 0x4ed   : > { %3277 = vmatprep.subr.bf16.mxu0 %v2374_v1  ;;  %4097 = vmatprep.subr.bf16.mxu1 %v2376_v9  ;;  %v2414_v1 = vunpack.c.l.s8.bf16 %v1234_v58  ;;  %v2416_v9 = vunpack.c.l.s8.bf16 %v1236_v59 }
 0x4f0   : > { %3278 = vmatpush1.bf16.msra.mxu0 %v2373_v50  ;;  %4098 = vmatpush1.bf16.msra.mxu1 %v2375_v2  ;;  %v579_v50 = vcombine.high %v7756_v34, %v7756_v34  ;;  %v2413_v2 = vunpack.c.l.s8.bf16 %v1233_v63  ;;  %v2422_v34 = vunpack.c.l.s8.bf16 %v1238_v6 }
 0x4f1   : > { %3279 = vmatprep.subr.bf16.mxu0 %v2378_v3  ;;  %4099 = vmatprep.subr.bf16.mxu1 %v2380_v4  ;;  %v2415_v3 = vunpack.c.l.s8.bf16 %v1235_v0  ;;  %v2418_v4 = vunpack.c.h.s8.bf16 %v1234_v58 }
 0x4f4   : > { %3280 = vmatpush1.bf16.msra.mxu0 %v2377_v10  ;;  %4100 = vmatpush1.bf16.msra.mxu1 %v2379_v7  ;;  %v1240_v10 = vld [vmem:[%s7060_s17 + $0x1118] sm:$0xff]  ;;  %v7803_v7 = vrot.slane %v579_v50, %v7102_v49 }
 0x4f5   : > { %3281 = vmatprep.subr.bf16.mxu0 %v2382_v8  ;;  %4101 = vmatprep.subr.bf16.mxu1 %v2384_v13  ;;  %v2417_v8 = vunpack.c.h.s8.bf16 %v1233_v63  ;;  %v2419_v13 = vunpack.c.h.s8.bf16 %v1235_v0  ;;  %v2424_v11 = vunpack.c.l.s8.bf16 %v1240_v10 }
 0x4f8   : > { %3282 = vmatpush1.bf16.msra.mxu0 %v2381_v16  ;;  %4102 = vmatpush1.bf16.msra.mxu1 %v2383_v14  ;;  %v1239_v16 = vld [vmem:[%s7060_s17 + $0x1110] sm:$0xff]  ;;  %v595_v14 = vcombine.high %v7803_v7, %v7803_v7 }
 0x4f9   : > { %3283 = vmatprep.subr.bf16.mxu0 %v2386_v19  ;;  %4103 = vmatprep.subr.bf16.mxu1 %v2388_v28  ;;  %v685_v19 = vpack.c.bf16 %v7762_v29, %v7762_v29  ;;  %v2421_v28 = vunpack.c.l.s8.bf16 %v1237_v12  ;;  %v2423_v17 = vunpack.c.l.s8.bf16 %v1239_v16  ;;  %v2427_v25 = vunpack.c.h.s8.bf16 %v1239_v16 }
 0x4fc   : > { %3284 = vmatpush1.bf16.msra.mxu0 %v2385_v22  ;;  %4104 = vmatpush1.bf16.msra.mxu1 %v2387_v20  ;;  %v2428_v22 = vunpack.c.h.s8.bf16 %v1240_v10  ;;  %v1242_v20 = vld [vmem:[%s7060_s17 + $0x1128] sm:$0xff] }
 0x4fd   : > { %3285 = vmatprep.subr.bf16.mxu0 %v2390_v21  ;;  %4105 = vmatprep.subr.bf16.mxu1 %v2392_v23  ;;  %v1244_v21 = vld [vmem:[%s7060_s17 + $0x1138] sm:$0xff]  ;;  %v688_v23 = vpack.c.bf16 %v595_v14, %v595_v14  ;;  %v2430_v29 = vunpack.c.l.s8.bf16 %v1242_v20  ;;  %v2434_v35 = vunpack.c.h.s8.bf16 %v1242_v20  ;;  %v1257_v14 = vld [vmem:[%s7060_s17 + $0x11a0] sm:$0xff]  ;;  %v1262_v20 = vld [vmem:[%s7060_s17 + $0x11c8] sm:$0xff] }
 0x500   : > { %3286 = vmatpush1.bf16.msra.mxu0 %v2389_v26  ;;  %4106 = vmatpush1.bf16.msra.mxu1 %v2391_v27  ;;  %v2432_v26 = vunpack.c.l.s8.bf16 %v1244_v21  ;;  %v1241_v27 = vld [vmem:[%s7060_s17 + $0x1120] sm:$0xff] }
 0x501   : > { %3287 = vmatprep.subr.bf16.mxu0 %v2394_v32  ;;  %4107 = vmatprep.subr.bf16.mxu1 %v2396_v30  ;;  %v1243_v32 = vld [vmem:[%s7060_s17 + $0x1130] sm:$0xff]  ;;  %v2429_v30 = vunpack.c.l.s8.bf16 %v1241_v27 }
 0x502   : > { %v2431_v31 = vunpack.c.l.s8.bf16 %v1243_v32  ;;  %v2435_v37 = vunpack.c.h.s8.bf16 %v1243_v32 }
 0x504   : > { %3288 = vmatpush1.bf16.msra.mxu0 %v2393_v33  ;;  %4108 = vmatpush1.bf16.msra.mxu1 %v2395_v39  ;;  %v2436_v33 = vunpack.c.h.s8.bf16 %v1244_v21  ;;  %v1246_v39 = vld [vmem:[%s7060_s17 + $0x1148] sm:$0xff]  ;;  %v1264_v21 = vld [vmem:[%s7060_s17 + $0x11d8] sm:$0xff] }
 0x505   : > { %3289 = vmatprep.subr.bf16.mxu0 %v2398_v44  ;;  %4109 = vmatprep.subr.bf16.mxu1 %v2400_v36  ;;  %v1248_v44 = vld [vmem:[%s7060_s17 + $0x1158] sm:$0xff]  ;;  %v2433_v36 = vunpack.c.h.s8.bf16 %v1241_v27  ;;  %v2438_v41 = vunpack.c.l.s8.bf16 %v1246_v39  ;;  %v2442_v45 = vunpack.c.h.s8.bf16 %v1246_v39  ;;  %v1263_v27 = vld [vmem:[%s7060_s17 + $0x11d0] sm:$0xff] }
 0x506   : > { %v1268_v39 = vld [vmem:[%s7060_s17 + $0x11f8] sm:$0xff] }
 0x508   : > { %3290 = vmatpush1.bf16.msra.mxu0 %v2397_v40  ;;  %4110 = vmatpush1.bf16.msra.mxu1 %v2399_v46  ;;  %v2440_v40 = vunpack.c.l.s8.bf16 %v1248_v44  ;;  %v1245_v46 = vld [vmem:[%s7060_s17 + $0x1140] sm:$0xff] }
 0x509   : > { %3291 = vmatprep.subr.bf16.mxu0 %v2402_v56  ;;  %4111 = vmatprep.subr.bf16.mxu1 %v2404_v42  ;;  %v1247_v56 = vld [vmem:[%s7060_s17 + $0x1150] sm:$0xff]  ;;  %v2437_v42 = vunpack.c.l.s8.bf16 %v1245_v46 }
 0x50a   : > { %v2439_v43 = vunpack.c.l.s8.bf16 %v1247_v56  ;;  %v2443_v52 = vunpack.c.h.s8.bf16 %v1247_v56  ;;  %v7840_v56 = vld [vmem:[%s7053_s30 + $0x48] sm:$0xff] }
 0x50c   : > { %3292 = vmatpush1.bf16.msra.mxu0 %v2401_v47  ;;  %4112 = vmatpush1.bf16.msra.mxu1 %v2403_v48  ;;  %v2444_v47 = vunpack.c.h.s8.bf16 %v1248_v44  ;;  %v1250_v48 = vld [vmem:[%s7060_s17 + $0x1168] sm:$0xff] }
 0x50d   : > { %3293 = vmatprep.subr.bf16.mxu0 %v2406_v54  ;;  %4113 = vmatprep.subr.bf16.mxu1 %v2408_v51  ;;  %v1252_v54 = vld [vmem:[%s7060_s17 + $0x1178] sm:$0xff]  ;;  %v2441_v51 = vunpack.c.h.s8.bf16 %v1245_v46  ;;  %v2446_v53 = vunpack.c.l.s8.bf16 %v1250_v48  ;;  %v2450_v59 = vunpack.c.h.s8.bf16 %v1250_v48  ;;  %v1267_v46 = vld [vmem:[%s7060_s17 + $0x11f0] sm:$0xff]  ;;  %v1270_v48 = vld [vmem:[%s7060_s17 + $0x1208] sm:$0xff] }
 0x510   : > { %3294 = vmatpush1.bf16.msra.mxu0 %v2405_v57  ;;  %4114 = vmatpush1.bf16.msra.mxu1 %v2407_v55  ;;  %v2448_v57 = vunpack.c.l.s8.bf16 %v1252_v54  ;;  %v1249_v55 = vld [vmem:[%s7060_s17 + $0x1160] sm:$0xff] }
 0x511   : > { %3295 = vmatprep.subr.bf16.mxu0 %v2410_v60  ;;  %4115 = vmatprep.subr.bf16.mxu1 %v2412_v15  ;;  %v1251_v60 = vld [vmem:[%s7060_s17 + $0x1170] sm:$0xff]  ;;  %v2445_v15 = vunpack.c.l.s8.bf16 %v1249_v55 }
 0x512   : > { %v2447_v58 = vunpack.c.l.s8.bf16 %v1251_v60  ;;  %v2451_v63 = vunpack.c.h.s8.bf16 %v1251_v60  ;;  %v1269_v60 = vld [vmem:[%s7060_s17 + $0x1200] sm:$0xff] }
 0x514   : > { %3296 = vmatpush1.bf16.msra.mxu0 %v2409_v62  ;;  %4116 = vmatpush1.bf16.msra.mxu1 %v2411_v61  ;;  %v2452_v62 = vunpack.c.h.s8.bf16 %v1252_v54  ;;  %v1254_v61 = vld [vmem:[%s7060_s17 + $0x1188] sm:$0xff]  ;;  %v1272_v54 = vld [vmem:[%s7060_s17 + $0x1218] sm:$0xff] }
 0x515   : > { %3297 = vmatprep.subr.bf16.mxu0 %v2414_v1  ;;  %4117 = vmatprep.subr.bf16.mxu1 %v2416_v9  ;;  %v1256_v1 = vld [vmem:[%s7060_s17 + $0x1198] sm:$0xff]  ;;  %v2449_v9 = vunpack.c.h.s8.bf16 %v1249_v55  ;;  %v2454_v0 = vunpack.c.l.s8.bf16 %v1254_v61  ;;  %v2458_v6 = vunpack.c.h.s8.bf16 %v1254_v61  ;;  %v2488_v55 = vunpack.c.l.s8.bf16 %v1272_v54 }
 0x516   : > { %v2456_v50 = vunpack.c.l.s8.bf16 %v1256_v1  ;;  %v2460_v10 = vunpack.c.h.s8.bf16 %v1256_v1  ;;  %v2490_v1 = vunpack.c.h.s8.bf16 %v1270_v48 }
 0x518   : > { %3298 = vmatpush1.bf16.msra.mxu0 %v2413_v2  ;;  %4118 = vmatpush1.bf16.msra.mxu1 %v2415_v3  ;;  %v1253_v2 = vld [vmem:[%s7060_s17 + $0x1180] sm:$0xff]  ;;  %v1255_v3 = vld [vmem:[%s7060_s17 + $0x1190] sm:$0xff] }
 0x519   : > { %3299 = vmatprep.subr.bf16.mxu0 %v2418_v4  ;;  %4119 = vmatprep.subr.bf16.mxu1 %v2420_v5  ;;  %v2453_v4 = vunpack.c.l.s8.bf16 %v1253_v2  ;;  %v2455_v5 = vunpack.c.l.s8.bf16 %v1255_v3 }
 0x51c   : > { %3300 = vmatpush1.bf16.msra.mxu0 %v2417_v8  ;;  %4120 = vmatpush1.bf16.msra.mxu1 %v2419_v13  ;;  %v1258_v8 = vld [vmem:[%s7060_s17 + $0x11a8] sm:$0xff]  ;;  %v1260_v13 = vld [vmem:[%s7060_s17 + $0x11b8] sm:$0xff] }
 0x51d   : > { %3310 = vmatprep.subr.bf16.mxu0 %v2422_v34  ;;  %4130 = vmatprep.subr.bf16.mxu1 %v2424_v11  ;;  %v2457_v34 = vunpack.c.h.s8.bf16 %v1253_v2  ;;  %v2459_v11 = vunpack.c.h.s8.bf16 %v1255_v3  ;;  %v2462_v12 = vunpack.c.l.s8.bf16 %v1258_v8  ;;  %v2464_v16 = vunpack.c.l.s8.bf16 %v1260_v13 }
 0x51e   : > { %v2489_v2 = vunpack.c.h.s8.bf16 %v1269_v60 }
 0x51f   : > { %3302 = vmatmul.mubr.bf16.vlgmr.msra.gmra.mrb[0].mxu0 %v685_v19  ;;  %4122 = vmatmul.mubr.bf16.vlgmr.msra.gmra.mrb[0].mxu1 %v685_v19  ;;  %v1259_v19 = vld [vmem:[%s7060_s17 + $0x11b0] sm:$0xff] }
 0x520   : > { %3311 = vmatpush1.bf16.msra.mxu0 %v2421_v28  ;;  %4131 = vmatpush1.bf16.msra.mxu1 %v2423_v17  ;;  %v2461_v28 = vunpack.c.l.s8.bf16 %v1257_v14  ;;  %v2463_v17 = vunpack.c.l.s8.bf16 %v1259_v19 }
 0x521   : > { %3312 = vmatprep.subr.bf16.mxu0 %v2426_v18  ;;  %4132 = vmatprep.subr.bf16.mxu1 %v2428_v22  ;;  %v2466_v18 = vunpack.c.h.s8.bf16 %v1258_v8  ;;  %v2468_v22 = vunpack.c.h.s8.bf16 %v1260_v13 }
 0x522   : > { %3342 = vmatprep.mubr.bf16.mxu0 %v688_v23  ;;  %4162 = vmatprep.mubr.bf16.mxu1 %v688_v23  ;;  %v2465_v23 = vunpack.c.h.s8.bf16 %v1257_v14 }
 0x524   : > { %3313 = vmatpush1.bf16.msra.mxu0 %v2425_v24  ;;  %4133 = vmatpush1.bf16.msra.mxu1 %v2427_v25  ;;  %v2467_v24 = vunpack.c.h.s8.bf16 %v1259_v19  ;;  %v2470_v25 = vunpack.c.l.s8.bf16 %v1262_v20 }
 0x525   : > { %3314 = vmatprep.subr.bf16.mxu0 %v2430_v29  ;;  %4134 = vmatprep.subr.bf16.mxu1 %v2432_v26  ;;  %v2472_v29 = vunpack.c.l.s8.bf16 %v1264_v21  ;;  %v1261_v26 = vld [vmem:[%s7060_s17 + $0x11c0] sm:$0xff] }
 0x526   : > { %v2469_v32 = vunpack.c.l.s8.bf16 %v1261_v26  ;;  %v2473_v44 = vunpack.c.h.s8.bf16 %v1261_v26 }
 0x528   : > { %3315 = vmatpush1.bf16.msra.mxu0 %v2429_v30  ;;  %4135 = vmatpush1.bf16.msra.mxu1 %v2431_v31  ;;  %v2471_v30 = vunpack.c.l.s8.bf16 %v1263_v27  ;;  %v2474_v31 = vunpack.c.h.s8.bf16 %v1262_v20 }
 0x529   : > { %3316 = vmatprep.subr.bf16.mxu0 %v2434_v35  ;;  %4136 = vmatprep.subr.bf16.mxu1 %v2436_v33  ;;  %v2476_v35 = vunpack.c.h.s8.bf16 %v1264_v21  ;;  %v1266_v33 = vld [vmem:[%s7060_s17 + $0x11e8] sm:$0xff] }
 0x52c   : > { %3317 = vmatpush1.bf16.msra.mxu0 %v2433_v36  ;;  %4137 = vmatpush1.bf16.msra.mxu1 %v2435_v37  ;;  %v2475_v36 = vunpack.c.h.s8.bf16 %v1263_v27  ;;  %v2478_v37 = vunpack.c.l.s8.bf16 %v1266_v33 }
 0x52d   : > { %3318 = vmatprep.subr.bf16.mxu0 %v2438_v41  ;;  %4138 = vmatprep.subr.bf16.mxu1 %v2440_v40  ;;  %v2480_v41 = vunpack.c.l.s8.bf16 %v1268_v39  ;;  %v1265_v40 = vld [vmem:[%s7060_s17 + $0x11e0] sm:$0xff] }
 0x530   : > { %3319 = vmatpush1.bf16.msra.mxu0 %v2437_v42  ;;  %4139 = vmatpush1.bf16.msra.mxu1 %v2439_v43  ;;  %v2477_v42 = vunpack.c.l.s8.bf16 %v1265_v40  ;;  %v2479_v43 = vunpack.c.l.s8.bf16 %v1267_v46 }
 0x531   : > { %3320 = vmatprep.subr.bf16.mxu0 %v2442_v45  ;;  %4140 = vmatprep.subr.bf16.mxu1 %v2444_v47  ;;  %v2482_v45 = vunpack.c.h.s8.bf16 %v1266_v33  ;;  %v2484_v47 = vunpack.c.h.s8.bf16 %v1268_v39 }
 0x534   : > { %3321 = vmatpush1.bf16.msra.mxu0 %v2441_v51  ;;  %4141 = vmatpush1.bf16.msra.mxu1 %v2443_v52  ;;  %v7846_v51 = vrot.slane %v7840_v56, %v7102_v49  ;;  %v2481_v52 = vunpack.c.h.s8.bf16 %v1265_v40 }
 0x535   : > { %3322 = vmatprep.subr.bf16.mxu0 %v2446_v53  ;;  %4142 = vmatprep.subr.bf16.mxu1 %v2448_v57  ;;  %v2483_v53 = vunpack.c.h.s8.bf16 %v1267_v46  ;;  %v2486_v57 = vunpack.c.l.s8.bf16 %v1270_v48 }
 0x538   : > { %3323 = vmatpush1.bf16.msra.mxu0 %v2445_v15  ;;  %4143 = vmatpush1.bf16.msra.mxu1 %v2447_v58  ;;  %v1271_v15 = vld [vmem:[%s7060_s17 + $0x1210] sm:$0xff]  ;;  %v611_v58 = vcombine.high %v7846_v51, %v7846_v51 }
 0x539   : > { %3324 = vmatprep.subr.bf16.mxu0 %v2450_v59  ;;  %4144 = vmatprep.subr.bf16.mxu1 %v2452_v62  ;;  %v687_v59 = vpack.c.bf16 %v7803_v7, %v7803_v7  ;;  %v2485_v62 = vunpack.c.l.s8.bf16 %v1269_v60  ;;  %v2487_v61 = vunpack.c.l.s8.bf16 %v1271_v15  ;;  %v2491_v3 = vunpack.c.h.s8.bf16 %v1271_v15 }
 0x53c   : > { %3325 = vmatpush1.bf16.msra.mxu0 %v2449_v9  ;;  %4145 = vmatpush1.bf16.msra.mxu1 %v2451_v63  ;;  %v2492_v9 = vunpack.c.h.s8.bf16 %v1272_v54  ;;  %v1274_v63 = vld [vmem:[%s7060_s17 + $0x1228] sm:$0xff] }
 0x53d   : > { %3326 = vmatprep.subr.bf16.mxu0 %v2454_v0  ;;  %4146 = vmatprep.subr.bf16.mxu1 %v2456_v50  ;;  %v1276_v0 = vld [vmem:[%s7060_s17 + $0x1238] sm:$0xff]  ;;  %v690_v50 = vpack.c.bf16 %v611_v58, %v611_v58  ;;  %v2494_v7 = vunpack.c.l.s8.bf16 %v1274_v63  ;;  %v2498_v13 = vunpack.c.h.s8.bf16 %v1274_v63 }
 0x540   : > { %3327 = vmatpush1.bf16.msra.mxu0 %v2453_v4  ;;  %4147 = vmatpush1.bf16.msra.mxu1 %v2455_v5  ;;  %v2496_v4 = vunpack.c.l.s8.bf16 %v1276_v0  ;;  %v1273_v5 = vld [vmem:[%s7060_s17 + $0x1220] sm:$0xff] }
 0x541   : > { %3328 = vmatprep.subr.bf16.mxu0 %v2458_v6  ;;  %4148 = vmatprep.subr.bf16.mxu1 %v2460_v10  ;;  %v1275_v6 = vld [vmem:[%s7060_s17 + $0x1230] sm:$0xff]  ;;  %v2493_v10 = vunpack.c.l.s8.bf16 %v1273_v5 }
 0x542   : > { %v2495_v8 = vunpack.c.l.s8.bf16 %v1275_v6  ;;  %v2499_v14 = vunpack.c.h.s8.bf16 %v1275_v6  ;;  %v1295_v6 = vld [vmem:[%s7060_s17 + $0x12d0] sm:$0xff] }
 0x544   : > { %3329 = vmatpush1.bf16.msra.mxu0 %v2457_v34  ;;  %4149 = vmatpush1.bf16.msra.mxu1 %v2459_v11  ;;  %v2500_v34 = vunpack.c.h.s8.bf16 %v1276_v0  ;;  %v1278_v11 = vld [vmem:[%s7060_s17 + $0x1248] sm:$0xff] }
 0x545   : > { %3330 = vmatprep.subr.bf16.mxu0 %v2462_v12  ;;  %4150 = vmatprep.subr.bf16.mxu1 %v2464_v16  ;;  %v1280_v12 = vld [vmem:[%s7060_s17 + $0x1258] sm:$0xff]  ;;  %v2497_v16 = vunpack.c.h.s8.bf16 %v1273_v5  ;;  %v2502_v19 = vunpack.c.l.s8.bf16 %v1278_v11  ;;  %v2506_v21 = vunpack.c.h.s8.bf16 %v1278_v11  ;;  %v1294_v0 = vld [vmem:[%s7060_s17 + $0x12c8] sm:$0xff]  ;;  %v1293_v5 = vld [vmem:[%s7060_s17 + $0x12c0] sm:$0xff] }
 0x546   : > { %v1298_v11 = vld [vmem:[%s7060_s17 + $0x12e8] sm:$0xff] }
 0x548   : > { %3331 = vmatpush1.bf16.msra.mxu0 %v2461_v28  ;;  %4151 = vmatpush1.bf16.msra.mxu1 %v2463_v17  ;;  %v2504_v28 = vunpack.c.l.s8.bf16 %v1280_v12  ;;  %v1277_v17 = vld [vmem:[%s7060_s17 + $0x1240] sm:$0xff] }
 0x549   : > { %3332 = vmatprep.subr.bf16.mxu0 %v2466_v18  ;;  %4152 = vmatprep.subr.bf16.mxu1 %v2468_v22  ;;  %v1279_v18 = vld [vmem:[%s7060_s17 + $0x1250] sm:$0xff]  ;;  %v2501_v22 = vunpack.c.l.s8.bf16 %v1277_v17 }
 0x54a   : > { %v2503_v20 = vunpack.c.l.s8.bf16 %v1279_v18  ;;  %v2507_v26 = vunpack.c.h.s8.bf16 %v1279_v18  ;;  %v1299_v18 = vld [vmem:[%s7060_s17 + $0x12f0] sm:$0xff] }
 0x54c   : > { %3333 = vmatpush1.bf16.msra.mxu0 %v2465_v23  ;;  %4153 = vmatpush1.bf16.msra.mxu1 %v2467_v24  ;;  %v2508_v23 = vunpack.c.h.s8.bf16 %v1280_v12  ;;  %v1282_v24 = vld [vmem:[%s7060_s17 + $0x1268] sm:$0xff]  ;;  %v1300_v12 = vld [vmem:[%s7060_s17 + $0x12f8] sm:$0xff] }
 0x54d   : > { %3334 = vmatprep.subr.bf16.mxu0 %v2470_v25  ;;  %4154 = vmatprep.subr.bf16.mxu1 %v2472_v29  ;;  %v1284_v25 = vld [vmem:[%s7060_s17 + $0x1278] sm:$0xff]  ;;  %v2505_v29 = vunpack.c.h.s8.bf16 %v1277_v17  ;;  %v2510_v27 = vunpack.c.l.s8.bf16 %v1282_v24  ;;  %v2514_v39 = vunpack.c.h.s8.bf16 %v1282_v24  ;;  %v1297_v17 = vld [vmem:[%s7060_s17 + $0x12e0] sm:$0xff]  ;;  %v2548_v24 = vunpack.c.h.s8.bf16 %v1300_v12 }
 0x550   : > { %3335 = vmatpush1.bf16.msra.mxu0 %v2469_v32  ;;  %4155 = vmatpush1.bf16.msra.mxu1 %v2471_v30  ;;  %v2512_v32 = vunpack.c.l.s8.bf16 %v1284_v25  ;;  %v1281_v30 = vld [vmem:[%s7060_s17 + $0x1260] sm:$0xff] }
 0x551   : > { %3336 = vmatprep.subr.bf16.mxu0 %v2474_v31  ;;  %4156 = vmatprep.subr.bf16.mxu1 %v2476_v35  ;;  %v1283_v31 = vld [vmem:[%s7060_s17 + $0x1270] sm:$0xff]  ;;  %v2509_v35 = vunpack.c.l.s8.bf16 %v1281_v30 }
 0x552   : > { %v2511_v33 = vunpack.c.l.s8.bf16 %v1283_v31  ;;  %v2515_v40 = vunpack.c.h.s8.bf16 %v1283_v31  ;;  %v1301_v31 = vld [vmem:[%s7060_s17 + $0x1300] sm:$0xff] }
 0x554   : > { %3337 = vmatpush1.bf16.msra.mxu0 %v2473_v44  ;;  %4157 = vmatpush1.bf16.msra.mxu1 %v2475_v36  ;;  %v2516_v44 = vunpack.c.h.s8.bf16 %v1284_v25  ;;  %v1286_v36 = vld [vmem:[%s7060_s17 + $0x1288] sm:$0xff] }
 0x555   : > { %3338 = vmatprep.subr.bf16.mxu0 %v2478_v37  ;;  %4158 = vmatprep.subr.bf16.mxu1 %v2480_v41  ;;  %v1288_v37 = vld [vmem:[%s7060_s17 + $0x1298] sm:$0xff]  ;;  %v2513_v41 = vunpack.c.h.s8.bf16 %v1281_v30  ;;  %v2518_v46 = vunpack.c.l.s8.bf16 %v1286_v36  ;;  %v2522_v54 = vunpack.c.h.s8.bf16 %v1286_v36  ;;  %v1302_v25 = vld [vmem:[%s7060_s17 + $0x1308] sm:$0xff] }
 0x558   : > { %3339 = vmatpush1.bf16.msra.mxu0 %v2477_v42  ;;  %4159 = vmatpush1.bf16.msra.mxu1 %v2479_v43  ;;  %v2520_v42 = vunpack.c.l.s8.bf16 %v1288_v37  ;;  %v1285_v43 = vld [vmem:[%s7060_s17 + $0x1280] sm:$0xff] }
 0x559   : > { %3340 = vmatprep.subr.bf16.mxu0 %v2482_v45  ;;  %4160 = vmatprep.subr.bf16.mxu1 %v2484_v47  ;;  %v1287_v45 = vld [vmem:[%s7060_s17 + $0x1290] sm:$0xff]  ;;  %v2517_v47 = vunpack.c.l.s8.bf16 %v1285_v43 }
 0x55a   : > { %v2519_v48 = vunpack.c.l.s8.bf16 %v1287_v45  ;;  %v2523_v60 = vunpack.c.h.s8.bf16 %v1287_v45 }
 0x55c   : > { %3341 = vmatpush1.bf16.msra.mxu0 %v2481_v52  ;;  %4161 = vmatpush1.bf16.msra.mxu1 %v2483_v53  ;;  %v2524_v52 = vunpack.c.h.s8.bf16 %v1288_v37  ;;  %v1290_v53 = vld [vmem:[%s7060_s17 + $0x12a8] sm:$0xff]  ;;  %v2554_v37 = vunpack.c.h.s8.bf16 %v1302_v25 }
 0x55d   : > { %3351 = vmatprep.subr.bf16.mxu0 %v2486_v57  ;;  %4171 = vmatprep.subr.bf16.mxu1 %v2488_v55  ;;  %v1292_v57 = vld [vmem:[%s7060_s17 + $0x12b8] sm:$0xff]  ;;  %v2521_v55 = vunpack.c.h.s8.bf16 %v1285_v43  ;;  %v2526_v15 = vunpack.c.l.s8.bf16 %v1290_v53  ;;  %v2553_v43 = vunpack.c.h.s8.bf16 %v1301_v31 }
 0x55e   : > { %v2528_v58 = vunpack.c.l.s8.bf16 %v1292_v57  ;;  %v2532_v63 = vunpack.c.h.s8.bf16 %v1292_v57 }
 0x55f   : > { %3343 = vmatmul.mubr.bf16.vlgmr.msra.gmra.mrb[0].mxu0 %v687_v59  ;;  %4163 = vmatmul.mubr.bf16.vlgmr.msra.gmra.mrb[0].mxu1 %v687_v59  ;;  %v1289_v59 = vld [vmem:[%s7060_s17 + $0x12a0] sm:$0xff] }
 0x560   : > { %3352 = vmatpush1.bf16.msra.mxu0 %v2485_v62  ;;  %4172 = vmatpush1.bf16.msra.mxu1 %v2487_v61  ;;  %v1291_v62 = vld [vmem:[%s7060_s17 + $0x12b0] sm:$0xff]  ;;  %v2525_v61 = vunpack.c.l.s8.bf16 %v1289_v59 }
 0x561   : > { %3353 = vmatprep.subr.bf16.mxu0 %v2490_v1  ;;  %4173 = vmatprep.subr.bf16.mxu1 %v2492_v9  ;;  %v2527_v1 = vunpack.c.l.s8.bf16 %v1291_v62  ;;  %v2530_v9 = vunpack.c.h.s8.bf16 %v1290_v53 }
 0x562   : > { %3383 = vmatprep.mubr.bf16.mxu0 %v690_v50  ;;  %4203 = vmatprep.mubr.bf16.mxu1 %v690_v50  ;;  %v1296_v50 = vld [vmem:[%s7060_s17 + $0x12d8] sm:$0xff] }
 0x564   : > { %3354 = vmatpush1.bf16.msra.mxu0 %v2489_v2  ;;  %4174 = vmatpush1.bf16.msra.mxu1 %v2491_v3  ;;  %v2529_v2 = vunpack.c.h.s8.bf16 %v1289_v59  ;;  %v2531_v3 = vunpack.c.h.s8.bf16 %v1291_v62 }
 0x565   : > { %3355 = vmatprep.subr.bf16.mxu0 %v2494_v7  ;;  %4175 = vmatprep.subr.bf16.mxu1 %v2496_v4  ;;  %v2534_v7 = vunpack.c.l.s8.bf16 %v1294_v0  ;;  %v2536_v4 = vunpack.c.l.s8.bf16 %v1296_v50 }
 0x568   : > { %3356 = vmatpush1.bf16.msra.mxu0 %v2493_v10  ;;  %4176 = vmatpush1.bf16.msra.mxu1 %v2495_v8  ;;  %v2533_v10 = vunpack.c.l.s8.bf16 %v1293_v5  ;;  %v2535_v8 = vunpack.c.l.s8.bf16 %v1295_v6 }
 0x569   : > { %3357 = vmatprep.subr.bf16.mxu0 %v2498_v13  ;;  %4177 = vmatprep.subr.bf16.mxu1 %v2500_v34  ;;  %v2538_v13 = vunpack.c.h.s8.bf16 %v1294_v0  ;;  %v2540_v34 = vunpack.c.h.s8.bf16 %v1296_v50 }
 0x56c   : > { %3358 = vmatpush1.bf16.msra.mxu0 %v2497_v16  ;;  %4178 = vmatpush1.bf16.msra.mxu1 %v2499_v14  ;;  %v2537_v16 = vunpack.c.h.s8.bf16 %v1293_v5  ;;  %v2539_v14 = vunpack.c.h.s8.bf16 %v1295_v6 }
 0x56d   : > { %3359 = vmatprep.subr.bf16.mxu0 %v2502_v19  ;;  %4179 = vmatprep.subr.bf16.mxu1 %v2504_v28  ;;  %v2542_v19 = vunpack.c.l.s8.bf16 %v1298_v11  ;;  %v2544_v28 = vunpack.c.l.s8.bf16 %v1300_v12 }
 0x570   : > { %3360 = vmatpush1.bf16.msra.mxu0 %v2501_v22  ;;  %4180 = vmatpush1.bf16.msra.mxu1 %v2503_v20  ;;  %v596_v22 = vcombine.high %v7840_v56, %v7840_v56  ;;  %v2541_v20 = vunpack.c.l.s8.bf16 %v1297_v17  ;;  %v2550_v56 = vunpack.c.l.s8.bf16 %v1302_v25 }
 0x571   : > { %3361 = vmatprep.subr.bf16.mxu0 %v2506_v21  ;;  %4181 = vmatprep.subr.bf16.mxu1 %v2508_v23  ;;  %v2543_v21 = vunpack.c.l.s8.bf16 %v1299_v18  ;;  %v2546_v23 = vunpack.c.h.s8.bf16 %v1298_v11 }
 0x574   : > { %3362 = vmatpush1.bf16.msra.mxu0 %v2505_v29  ;;  %4182 = vmatpush1.bf16.msra.mxu1 %v2507_v26  ;;  %v1304_v29 = vld [vmem:[%s7060_s17 + $0x1318] sm:$0xff]  ;;  %v7887_v26 = vrot.slane %v596_v22, %v7102_v49 }
 0x575   : > { %3363 = vmatprep.subr.bf16.mxu0 %v2510_v27  ;;  %4183 = vmatprep.subr.bf16.mxu1 %v2512_v32  ;;  %v2545_v27 = vunpack.c.h.s8.bf16 %v1297_v17  ;;  %v2547_v32 = vunpack.c.h.s8.bf16 %v1299_v18  ;;  %v2552_v30 = vunpack.c.l.s8.bf16 %v1304_v29 }
 0x578   : > { %3364 = vmatpush1.bf16.msra.mxu0 %v2509_v35  ;;  %4184 = vmatpush1.bf16.msra.mxu1 %v2511_v33  ;;  %v1303_v35 = vld [vmem:[%s7060_s17 + $0x1310] sm:$0xff]  ;;  %v612_v33 = vcombine.high %v7887_v26, %v7887_v26 }
 0x579   : > { %3365 = vmatprep.subr.bf16.mxu0 %v2514_v39  ;;  %4185 = vmatprep.subr.bf16.mxu1 %v2516_v44  ;;  %v689_v39 = vpack.c.bf16 %v7846_v51, %v7846_v51  ;;  %v2549_v44 = vunpack.c.l.s8.bf16 %v1301_v31  ;;  %v2551_v36 = vunpack.c.l.s8.bf16 %v1303_v35  ;;  %v2555_v45 = vunpack.c.h.s8.bf16 %v1303_v35 }
 0x57c   : > { %3366 = vmatpush1.bf16.msra.mxu0 %v2513_v41  ;;  %4186 = vmatpush1.bf16.msra.mxu1 %v2515_v40  ;;  %v2556_v41 = vunpack.c.h.s8.bf16 %v1304_v29  ;;  %v1306_v40 = vld [vmem:[%s7060_s17 + $0x1328] sm:$0xff] }
 0x57d   : > { %3367 = vmatprep.subr.bf16.mxu0 %v2518_v46  ;;  %4187 = vmatprep.subr.bf16.mxu1 %v2520_v42  ;;  %v1308_v46 = vld [vmem:[%s7060_s17 + $0x1338] sm:$0xff]  ;;  %v692_v42 = vpack.c.bf16 %v612_v33, %v612_v33  ;;  %v2558_v51 = vunpack.c.l.s8.bf16 %v1306_v40  ;;  %v2562_v57 = vunpack.c.h.s8.bf16 %v1306_v40  ;;  %v1321_v33 = vld [vmem:[%s7060_s17 + $0x13a0] sm:$0xff]  ;;  %v1326_v40 = vld [vmem:[%s7060_s17 + $0x13c8] sm:$0xff] }
 0x580   : > { %3368 = vmatpush1.bf16.msra.mxu0 %v2517_v47  ;;  %4188 = vmatpush1.bf16.msra.mxu1 %v2519_v48  ;;  %v2560_v47 = vunpack.c.l.s8.bf16 %v1308_v46  ;;  %v1305_v48 = vld [vmem:[%s7060_s17 + $0x1320] sm:$0xff] }
 0x581   : > { %3369 = vmatprep.subr.bf16.mxu0 %v2522_v54  ;;  %4189 = vmatprep.subr.bf16.mxu1 %v2524_v52  ;;  %v1307_v54 = vld [vmem:[%s7060_s17 + $0x1330] sm:$0xff]  ;;  %v2557_v52 = vunpack.c.l.s8.bf16 %v1305_v48 }
 0x582   : > { %v2559_v53 = vunpack.c.l.s8.bf16 %v1307_v54  ;;  %v2563_v59 = vunpack.c.h.s8.bf16 %v1307_v54 }
 0x584   : > { %3370 = vmatpush1.bf16.msra.mxu0 %v2521_v55  ;;  %4190 = vmatpush1.bf16.msra.mxu1 %v2523_v60  ;;  %v2564_v55 = vunpack.c.h.s8.bf16 %v1308_v46  ;;  %v1310_v60 = vld [vmem:[%s7060_s17 + $0x1348] sm:$0xff]  ;;  %v1328_v46 = vld [vmem:[%s7060_s17 + $0x13d8] sm:$0xff] }
 0x585   : > { %3371 = vmatprep.subr.bf16.mxu0 %v2526_v15  ;;  %4191 = vmatprep.subr.bf16.mxu1 %v2528_v58  ;;  %v1312_v15 = vld [vmem:[%s7060_s17 + $0x1358] sm:$0xff]  ;;  %v2561_v58 = vunpack.c.h.s8.bf16 %v1305_v48  ;;  %v2566_v62 = vunpack.c.l.s8.bf16 %v1310_v60  ;;  %v2570_v50 = vunpack.c.h.s8.bf16 %v1310_v60  ;;  %v1327_v48 = vld [vmem:[%s7060_s17 + $0x13d0] sm:$0xff] }
 0x586   : > { %v1332_v60 = vld [vmem:[%s7060_s17 + $0x13f8] sm:$0xff] }
 0x588   : > { %3372 = vmatpush1.bf16.msra.mxu0 %v2525_v61  ;;  %4192 = vmatpush1.bf16.msra.mxu1 %v2527_v1  ;;  %v2568_v61 = vunpack.c.l.s8.bf16 %v1312_v15  ;;  %v1309_v1 = vld [vmem:[%s7060_s17 + $0x1340] sm:$0xff] }
 0x589   : > { %3373 = vmatprep.subr.bf16.mxu0 %v2530_v9  ;;  %4193 = vmatprep.subr.bf16.mxu1 %v2532_v63  ;;  %v1311_v9 = vld [vmem:[%s7060_s17 + $0x1350] sm:$0xff]  ;;  %v2565_v63 = vunpack.c.l.s8.bf16 %v1309_v1 }
 0x58a   : > { %v2567_v0 = vunpack.c.l.s8.bf16 %v1311_v9  ;;  %v2571_v5 = vunpack.c.h.s8.bf16 %v1311_v9 }
 0x58c   : > { %3374 = vmatpush1.bf16.msra.mxu0 %v2529_v2  ;;  %4194 = vmatpush1.bf16.msra.mxu1 %v2531_v3  ;;  %v2572_v2 = vunpack.c.h.s8.bf16 %v1312_v15  ;;  %v1314_v3 = vld [vmem:[%s7060_s17 + $0x1368] sm:$0xff] }
 0x58d   : > { %3375 = vmatprep.subr.bf16.mxu0 %v2534_v7  ;;  %4195 = vmatprep.subr.bf16.mxu1 %v2536_v4  ;;  %v1316_v7 = vld [vmem:[%s7060_s17 + $0x1378] sm:$0xff]  ;;  %v2569_v4 = vunpack.c.h.s8.bf16 %v1309_v1  ;;  %v2574_v6 = vunpack.c.l.s8.bf16 %v1314_v3  ;;  %v2578_v12 = vunpack.c.h.s8.bf16 %v1314_v3  ;;  %v1331_v1 = vld [vmem:[%s7060_s17 + $0x13f0] sm:$0xff] }
 0x58e   : > { %v2611_v3 = vunpack.c.h.s8.bf16 %v1331_v1 }
 0x590   : > { %3376 = vmatpush1.bf16.msra.mxu0 %v2533_v10  ;;  %4196 = vmatpush1.bf16.msra.mxu1 %v2535_v8  ;;  %v2576_v10 = vunpack.c.l.s8.bf16 %v1316_v7  ;;  %v1313_v8 = vld [vmem:[%s7060_s17 + $0x1360] sm:$0xff] }
 0x591   : > { %3377 = vmatprep.subr.bf16.mxu0 %v2538_v13  ;;  %4197 = vmatprep.subr.bf16.mxu1 %v2540_v34  ;;  %v1315_v13 = vld [vmem:[%s7060_s17 + $0x1370] sm:$0xff]  ;;  %v2573_v34 = vunpack.c.l.s8.bf16 %v1313_v8 }
 0x592   : > { %v2575_v11 = vunpack.c.l.s8.bf16 %v1315_v13  ;;  %v2579_v17 = vunpack.c.h.s8.bf16 %v1315_v13 }
 0x594   : > { %3378 = vmatpush1.bf16.msra.mxu0 %v2537_v16  ;;  %4198 = vmatpush1.bf16.msra.mxu1 %v2539_v14  ;;  %v2580_v16 = vunpack.c.h.s8.bf16 %v1316_v7  ;;  %v1318_v14 = vld [vmem:[%s7060_s17 + $0x1388] sm:$0xff]  ;;  %v691_v7 = vpack.c.bf16 %v7887_v26, %v7887_v26 }
 0x595   : > { %3379 = vmatprep.subr.bf16.mxu0 %v2542_v19  ;;  %4199 = vmatprep.subr.bf16.mxu1 %v2544_v28  ;;  %v1320_v19 = vld [vmem:[%s7060_s17 + $0x1398] sm:$0xff]  ;;  %v2577_v28 = vunpack.c.h.s8.bf16 %v1313_v8  ;;  %v2582_v18 = vunpack.c.l.s8.bf16 %v1318_v14  ;;  %v2586_v25 = vunpack.c.h.s8.bf16 %v1318_v14 }
 0x596   : > { %v2584_v22 = vunpack.c.l.s8.bf16 %v1320_v19  ;;  %v2588_v29 = vunpack.c.h.s8.bf16 %v1320_v19 }
 0x598   : > { %3380 = vmatpush1.bf16.msra.mxu0 %v2541_v20  ;;  %4200 = vmatpush1.bf16.msra.mxu1 %v2543_v21  ;;  %v1317_v20 = vld [vmem:[%s7060_s17 + $0x1380] sm:$0xff]  ;;  %v1319_v21 = vld [vmem:[%s7060_s17 + $0x1390] sm:$0xff] }
 0x599   : > { %3381 = vmatprep.subr.bf16.mxu0 %v2546_v23  ;;  %4201 = vmatprep.subr.bf16.mxu1 %v2548_v24  ;;  %v2581_v23 = vunpack.c.l.s8.bf16 %v1317_v20  ;;  %v2583_v24 = vunpack.c.l.s8.bf16 %v1319_v21 }
 0x59c   : > { %3382 = vmatpush1.bf16.msra.mxu0 %v2545_v27  ;;  %4202 = vmatpush1.bf16.msra.mxu1 %v2547_v32  ;;  %v1322_v27 = vld [vmem:[%s7060_s17 + $0x13a8] sm:$0xff]  ;;  %v1324_v32 = vld [vmem:[%s7060_s17 + $0x13b8] sm:$0xff] }
 0x59d   : > { %3392 = vmatprep.subr.bf16.mxu0 %v2550_v56  ;;  %4212 = vmatprep.subr.bf16.mxu1 %v2552_v30  ;;  %v2585_v56 = vunpack.c.h.s8.bf16 %v1317_v20  ;;  %v2587_v30 = vunpack.c.h.s8.bf16 %v1319_v21  ;;  %v2590_v31 = vunpack.c.l.s8.bf16 %v1322_v27  ;;  %v2592_v35 = vunpack.c.l.s8.bf16 %v1324_v32  ;;  %v6261_v20 = vld [vmem:[#allocation11] ss:$16 sps:$4 sm:$0xff] (!%p5699_p1)   ;;  %v6262_v21 = vld [vmem:[#allocation11 + $0x8] ss:$16 sps:$4 sm:$0xff] (!%p5699_p1)  }
 0x59f   : > { %3384 = vmatmul.mubr.bf16.vlgmr.msra.gmra.mrb[0].mxu0 %v689_v39  ;;  %4204 = vmatmul.mubr.bf16.vlgmr.msra.gmra.mrb[0].mxu1 %v689_v39  ;;  %v1323_v39 = vld [vmem:[%s7060_s17 + $0x13b0] sm:$0xff] }
 0x5a0   : > { %3393 = vmatpush1.bf16.msra.mxu0 %v2549_v44  ;;  %4213 = vmatpush1.bf16.msra.mxu1 %v2551_v36  ;;  %v2589_v44 = vunpack.c.l.s8.bf16 %v1321_v33  ;;  %v2591_v36 = vunpack.c.l.s8.bf16 %v1323_v39 }
 0x5a1   : > { %3394 = vmatprep.subr.bf16.mxu0 %v2554_v37  ;;  %4214 = vmatprep.subr.bf16.mxu1 %v2556_v41  ;;  %v2594_v37 = vunpack.c.h.s8.bf16 %v1322_v27  ;;  %v2596_v41 = vunpack.c.h.s8.bf16 %v1324_v32  ;;  %v6269_v27 = vld [vmem:[#allocation11 + $0x44] ss:$16 sps:$4 sm:$0xff] (!%p5699_p1)   ;;  %v6271_v32 = vld [vmem:[#allocation11 + $0x4c] ss:$16 sps:$4 sm:$0xff] (!%p5699_p1)  }
 0x5a2   : > { %3424 = vmatprep.mubr.bf16.mxu0 %v692_v42  ;;  %4244 = vmatprep.mubr.bf16.mxu1 %v692_v42  ;;  %v2593_v42 = vunpack.c.h.s8.bf16 %v1321_v33  ;;  %v6279_v33 = vld [vmem:[#allocation11 + $0x60] ss:$16 sps:$4 sm:$0xff] (!%p5699_p1)  }
 0x5a4   : > { %3395 = vmatpush1.bf16.msra.mxu0 %v2553_v43  ;;  %4215 = vmatpush1.bf16.msra.mxu1 %v2555_v45  ;;  %v2595_v43 = vunpack.c.h.s8.bf16 %v1323_v39  ;;  %v2598_v45 = vunpack.c.l.s8.bf16 %v1326_v40  ;;  %v6280_v39 = vld [vmem:[#allocation11 + $0x68] ss:$16 sps:$4 sm:$0xff] (!%p5699_p1)  }
 0x5a5   : > { %3396 = vmatprep.subr.bf16.mxu0 %v2558_v51  ;;  %4216 = vmatprep.subr.bf16.mxu1 %v2560_v47  ;;  %v2600_v51 = vunpack.c.l.s8.bf16 %v1328_v46  ;;  %v1325_v47 = vld [vmem:[%s7060_s17 + $0x13c0] sm:$0xff] }
 0x5a6   : > { %v2597_v54 = vunpack.c.l.s8.bf16 %v1325_v47  ;;  %v2601_v15 = vunpack.c.h.s8.bf16 %v1325_v47  ;;  %v6297_v47 = vld [vmem:[#allocation11 + $0xc0] ss:$16 sps:$4 sm:$0xff] (!%p5699_p1)  }
 0x5a8   : > { %3397 = vmatpush1.bf16.msra.mxu0 %v2557_v52  ;;  %4217 = vmatpush1.bf16.msra.mxu1 %v2559_v53  ;;  %v2599_v52 = vunpack.c.l.s8.bf16 %v1327_v48  ;;  %v2602_v53 = vunpack.c.h.s8.bf16 %v1326_v40  ;;  %v6287_v40 = vld [vmem:[#allocation11 + $0xa4] ss:$16 sps:$4 sm:$0xff] (!%p5699_p1)  }
 0x5a9   : > { %3398 = vmatprep.subr.bf16.mxu0 %v2562_v57  ;;  %4218 = vmatprep.subr.bf16.mxu1 %v2564_v55  ;;  %v2604_v57 = vunpack.c.h.s8.bf16 %v1328_v46  ;;  %v1330_v55 = vld [vmem:[%s7060_s17 + $0x13e8] sm:$0xff]  ;;  %v6289_v46 = vld [vmem:[#allocation11 + $0xac] ss:$16 sps:$4 sm:$0xff] (!%p5699_p1)  }
 0x5ac   : > { %3399 = vmatpush1.bf16.msra.mxu0 %v2561_v58  ;;  %4219 = vmatpush1.bf16.msra.mxu1 %v2563_v59  ;;  %v2603_v58 = vunpack.c.h.s8.bf16 %v1327_v48  ;;  %v2606_v59 = vunpack.c.l.s8.bf16 %v1330_v55  ;;  %v6298_v48 = vld [vmem:[#allocation11 + $0xc8] ss:$16 sps:$4 sm:$0xff] (!%p5699_p1)  }
 0x5ad   : > { %3400 = vmatprep.subr.bf16.mxu0 %v2566_v62  ;;  %4220 = vmatprep.subr.bf16.mxu1 %v2568_v61  ;;  %v2608_v62 = vunpack.c.l.s8.bf16 %v1332_v60  ;;  %v1329_v61 = vld [vmem:[%s7060_s17 + $0x13e0] sm:$0xff] }
 0x5ae   : > { %v2605_v9 = vunpack.c.l.s8.bf16 %v1329_v61 }
 0x5b0   : > { %3401 = vmatpush1.bf16.msra.mxu0 %v2565_v63  ;;  %4221 = vmatpush1.bf16.msra.mxu1 %v2567_v0  ;;  %v2607_v63 = vunpack.c.l.s8.bf16 %v1331_v1  ;;  %v2610_v0 = vunpack.c.h.s8.bf16 %v1330_v55  ;;  %v6305_v55 = vld [vmem:[#allocation11 + $0x104] ss:$16 sps:$4 sm:$0xff] (!%p5699_p1)   ;;  %v6316_v1 = vld [vmem:[#allocation11 + $0x128] ss:$16 sps:$4 sm:$0xff] (!%p5699_p1)  }
 0x5b1   : > { %3402 = vmatprep.subr.bf16.mxu0 %v2570_v50  ;;  %4222 = vmatprep.subr.bf16.mxu1 %v2572_v2  ;;  %v2612_v50 = vunpack.c.h.s8.bf16 %v1332_v60  ;;  %v2609_v2 = vunpack.c.h.s8.bf16 %v1329_v61  ;;  %v6307_v60 = vld [vmem:[#allocation11 + $0x10c] ss:$16 sps:$4 sm:$0xff] (!%p5699_p1)   ;;  %v6315_v61 = vld [vmem:[#allocation11 + $0x120] ss:$16 sps:$4 sm:$0xff] (!%p5699_p1)  }
 0x5b4   : > { %3403 = vmatpush1.bf16.msra.mxu0 %v2569_v4  ;;  %4223 = vmatpush1.bf16.msra.mxu1 %v2571_v5 }
 0x5b5   : > { %3404 = vmatprep.subr.bf16.mxu0 %v2574_v6  ;;  %4224 = vmatprep.subr.bf16.mxu1 %v2576_v10 }
 0x5b8   : > { %3405 = vmatpush1.bf16.msra.mxu0 %v2573_v34  ;;  %4225 = vmatpush1.bf16.msra.mxu1 %v2575_v11 }
 0x5b9   : > { %3406 = vmatprep.subr.bf16.mxu0 %v2578_v12  ;;  %4226 = vmatprep.subr.bf16.mxu1 %v2580_v16 }
 0x5bc   : > { %3407 = vmatpush1.bf16.msra.mxu0 %v2577_v28  ;;  %4227 = vmatpush1.bf16.msra.mxu1 %v2579_v17  ;;  %v422_v28 = vld [vmem:[#allocation2] sm:$0xff] }
 0x5bd   : > { %3408 = vmatprep.subr.bf16.mxu0 %v2582_v18  ;;  %4228 = vmatprep.subr.bf16.mxu1 %v2584_v22  ;;  %v6257_v18 = vld [vmem:[#allocation11 + $0x4] ss:$16 sps:$4 sm:$0xff] (!%p5699_p1)   ;;  %v6259_v22 = vld [vmem:[#allocation11 + $0xc] ss:$16 sps:$4 sm:$0xff] (!%p5699_p1)  }
 0x5c0   : > { %3409 = vmatpush1.bf16.msra.mxu0 %v2581_v23  ;;  %4229 = vmatpush1.bf16.msra.mxu1 %v2583_v24  ;;  %v6263_v23 = vld [vmem:[#allocation11 + $0x24] ss:$16 sps:$4 sm:$0xff] (!%p5699_p1)   ;;  %v6265_v24 = vld [vmem:[#allocation11 + $0x2c] ss:$16 sps:$4 sm:$0xff] (!%p5699_p1)  }
 0x5c1   : > { %3410 = vmatprep.subr.bf16.mxu0 %v2586_v25  ;;  %4230 = vmatprep.subr.bf16.mxu1 %v2588_v29  ;;  %v6267_v25 = vld [vmem:[#allocation11 + $0x20] ss:$16 sps:$4 sm:$0xff] (!%p5699_p1)   ;;  %v6268_v29 = vld [vmem:[#allocation11 + $0x28] ss:$16 sps:$4 sm:$0xff] (!%p5699_p1)  }
 0x5c4   : > { %3411 = vmatpush1.bf16.msra.mxu0 %v2585_v56  ;;  %4231 = vmatpush1.bf16.msra.mxu1 %v2587_v30  ;;  %v6273_v56 = vld [vmem:[#allocation11 + $0x40] ss:$16 sps:$4 sm:$0xff] (!%p5699_p1)   ;;  %v6274_v30 = vld [vmem:[#allocation11 + $0x48] ss:$16 sps:$4 sm:$0xff] (!%p5699_p1)  }
 0x5c5   : > { %3412 = vmatprep.subr.bf16.mxu0 %v2590_v31  ;;  %4232 = vmatprep.subr.bf16.mxu1 %v2592_v35  ;;  %v6275_v31 = vld [vmem:[#allocation11 + $0x64] ss:$16 sps:$4 sm:$0xff] (!%p5699_p1)   ;;  %v6277_v35 = vld [vmem:[#allocation11 + $0x6c] ss:$16 sps:$4 sm:$0xff] (!%p5699_p1)  }
 0x5c8   : > { %3413 = vmatpush1.bf16.msra.mxu0 %v2589_v44  ;;  %4233 = vmatpush1.bf16.msra.mxu1 %v2591_v36  ;;  %v6281_v44 = vld [vmem:[#allocation11 + $0x84] ss:$16 sps:$4 sm:$0xff] (!%p5699_p1)   ;;  %v6283_v36 = vld [vmem:[#allocation11 + $0x8c] ss:$16 sps:$4 sm:$0xff] (!%p5699_p1)  }
 0x5c9   : > { %3414 = vmatprep.subr.bf16.mxu0 %v2594_v37  ;;  %4234 = vmatprep.subr.bf16.mxu1 %v2596_v41  ;;  %v6285_v37 = vld [vmem:[#allocation11 + $0x80] ss:$16 sps:$4 sm:$0xff] (!%p5699_p1)   ;;  %v6286_v41 = vld [vmem:[#allocation11 + $0x88] ss:$16 sps:$4 sm:$0xff] (!%p5699_p1)  }
 0x5cc   : > { %3415 = vmatpush1.bf16.msra.mxu0 %v2593_v42  ;;  %4235 = vmatpush1.bf16.msra.mxu1 %v2595_v43  ;;  %v6291_v42 = vld [vmem:[#allocation11 + $0xa0] ss:$16 sps:$4 sm:$0xff] (!%p5699_p1)   ;;  %v6292_v43 = vld [vmem:[#allocation11 + $0xa8] ss:$16 sps:$4 sm:$0xff] (!%p5699_p1)  }
 0x5cd   : > { %3416 = vmatprep.subr.bf16.mxu0 %v2598_v45  ;;  %4236 = vmatprep.subr.bf16.mxu1 %v2600_v51  ;;  %v6293_v45 = vld [vmem:[#allocation11 + $0xc4] ss:$16 sps:$4 sm:$0xff] (!%p5699_p1)   ;;  %v6295_v51 = vld [vmem:[#allocation11 + $0xcc] ss:$16 sps:$4 sm:$0xff] (!%p5699_p1)  }
 0x5d0   : > { %3417 = vmatpush1.bf16.msra.mxu0 %v2597_v54  ;;  %4237 = vmatpush1.bf16.msra.mxu1 %v2599_v52  ;;  %v6299_v54 = vld [vmem:[#allocation11 + $0xe4] ss:$16 sps:$4 sm:$0xff] (!%p5699_p1)   ;;  %v6301_v52 = vld [vmem:[#allocation11 + $0xec] ss:$16 sps:$4 sm:$0xff] (!%p5699_p1)  }
 0x5d1   : > { %3418 = vmatprep.subr.bf16.mxu0 %v2602_v53  ;;  %4238 = vmatprep.subr.bf16.mxu1 %v2604_v57  ;;  %v6303_v53 = vld [vmem:[#allocation11 + $0xe0] ss:$16 sps:$4 sm:$0xff] (!%p5699_p1)   ;;  %v6304_v57 = vld [vmem:[#allocation11 + $0xe8] ss:$16 sps:$4 sm:$0xff] (!%p5699_p1)  }
 0x5d4   : > { %3419 = vmatpush1.bf16.msra.mxu0 %v2601_v15  ;;  %4239 = vmatpush1.bf16.msra.mxu1 %v2603_v58  ;;  %v6309_v15 = vld [vmem:[#allocation11 + $0x100] ss:$16 sps:$4 sm:$0xff] (!%p5699_p1)   ;;  %v6310_v58 = vld [vmem:[#allocation11 + $0x108] ss:$16 sps:$4 sm:$0xff] (!%p5699_p1)  }
 0x5d5   : > { %3420 = vmatprep.subr.bf16.mxu0 %v2606_v59  ;;  %4240 = vmatprep.subr.bf16.mxu1 %v2608_v62  ;;  %v6311_v59 = vld [vmem:[#allocation11 + $0x124] ss:$16 sps:$4 sm:$0xff] (!%p5699_p1)   ;;  %v6313_v62 = vld [vmem:[#allocation11 + $0x12c] ss:$16 sps:$4 sm:$0xff] (!%p5699_p1)  }
 0x5d8   : > { %3421 = vmatpush1.bf16.msra.mxu0 %v2605_v9  ;;  %4241 = vmatpush1.bf16.msra.mxu1 %v2607_v63  ;;  %v6317_v9 = vld [vmem:[#allocation11 + $0x144] ss:$16 sps:$4 sm:$0xff] (!%p5699_p1)   ;;  %v6319_v63 = vld [vmem:[#allocation11 + $0x14c] ss:$16 sps:$4 sm:$0xff] (!%p5699_p1)  }
 0x5d9   : > { %3422 = vmatprep.subr.bf16.mxu0 %v2610_v0  ;;  %4242 = vmatprep.subr.bf16.mxu1 %v2612_v50  ;;  %v6321_v0 = vld [vmem:[#allocation11 + $0x140] ss:$16 sps:$4 sm:$0xff] (!%p5699_p1)   ;;  %v6322_v50 = vld [vmem:[#allocation11 + $0x148] ss:$16 sps:$4 sm:$0xff] (!%p5699_p1)  }
 0x5dc   : > { %3423 = vmatpush1.bf16.msra.mxu0 %v2609_v2  ;;  %4243 = vmatpush1.bf16.msra.mxu1 %v2611_v3  ;;  %v7929_v2 = vsub.s32 (!%p5699_p1), 0, %v7092_v38  ;;  %v6323_v3 = vld [vmem:[#allocation11 + $0x164] ss:$16 sps:$4 sm:$0xff] (!%p5699_p1)  }
 0x5dd   : > { %5173 = vmatprep.subr.bf16.mxu0 (!%p5699_p1), %v6257_v18  ;;  %5255 = vmatprep.subr.bf16.mxu1 (!%p5699_p1), %v6259_v22 }
 0x5df   : > { %3425 = vmatmul.mubr.bf16.vlgmr.msra.gmra.mrb[0].mxu0 %v691_v7  ;;  %4245 = vmatmul.mubr.bf16.vlgmr.msra.gmra.mrb[0].mxu1 %v691_v7  ;;  %v7932_v7 = vsub.s32 (!%p5699_p1), 1, %v7092_v38 }
 0x5e0   : > { %5174 = vmatpush1.bf16.msra.mxu0 (!%p5699_p1), %v6261_v20  ;;  %5256 = vmatpush1.bf16.msra.mxu1 (!%p5699_p1), %v6262_v21  ;;  %v6333_v20 = vld [vmem:[#allocation11 + $0x180] ss:$16 sps:$4 sm:$0xff] (!%p5699_p1)  }
 0x5e1   : > { %5175 = vmatprep.subr.bf16.mxu0 (!%p5699_p1), %v6263_v23  ;;  %5257 = vmatprep.subr.bf16.mxu1 (!%p5699_p1), %v6265_v24  ;;  %v6334_v24 = vld [vmem:[#allocation11 + $0x188] ss:$16 sps:$4 sm:$0xff] (!%p5699_p1)  }
 0x5e4   : > { %5176 = vmatpush1.bf16.msra.mxu0 (!%p5699_p1), %v6267_v25  ;;  %5258 = vmatpush1.bf16.msra.mxu1 (!%p5699_p1), %v6268_v29  ;;  %v6335_v25 = vld [vmem:[#allocation11 + $0x1a4] ss:$16 sps:$4 sm:$0xff] (!%p5699_p1)  }
 0x5e5   : > { %5177 = vmatprep.subr.bf16.mxu0 (!%p5699_p1), %v6269_v27  ;;  %5259 = vmatprep.subr.bf16.mxu1 (!%p5699_p1), %v6271_v32  ;;  %v6337_v32 = vld [vmem:[#allocation11 + $0x1ac] ss:$16 sps:$4 sm:$0xff] (!%p5699_p1)  }
 0x5e8   : > { %5178 = vmatpush1.bf16.msra.mxu0 (!%p5699_p1), %v6273_v56  ;;  %5260 = vmatpush1.bf16.msra.mxu1 (!%p5699_p1), %v6274_v30 }
 0x5e9   : > { %5179 = vmatprep.subr.bf16.mxu0 (!%p5699_p1), %v6275_v31  ;;  %5261 = vmatprep.subr.bf16.mxu1 (!%p5699_p1), %v6277_v35 }
 0x5ec   : > { %5180 = vmatpush1.bf16.msra.mxu0 (!%p5699_p1), %v6279_v33  ;;  %5262 = vmatpush1.bf16.msra.mxu1 (!%p5699_p1), %v6280_v39  ;;  %v6339_v33 = vld [vmem:[#allocation11 + $0x1a0] ss:$16 sps:$4 sm:$0xff] (!%p5699_p1)  }
 0x5ed   : > { %5181 = vmatprep.subr.bf16.mxu0 (!%p5699_p1), %v6281_v44  ;;  %5263 = vmatprep.subr.bf16.mxu1 (!%p5699_p1), %v6283_v36  ;;  %v6340_v44 = vld [vmem:[#allocation11 + $0x1a8] ss:$16 sps:$4 sm:$0xff] (!%p5699_p1)   ;;  %v6341_v36 = vld [vmem:[#allocation11 + $0x1c4] ss:$16 sps:$4 sm:$0xff] (!%p5699_p1)  }
 0x5f0   : > { %5182 = vmatpush1.bf16.msra.mxu0 (!%p5699_p1), %v6285_v37  ;;  %5264 = vmatpush1.bf16.msra.mxu1 (!%p5699_p1), %v6286_v41  ;;  %v6343_v41 = vld [vmem:[#allocation11 + $0x1cc] ss:$16 sps:$4 sm:$0xff] (!%p5699_p1)  }
 0x5f1   : > { %5183 = vmatprep.subr.bf16.mxu0 (!%p5699_p1), %v6287_v40  ;;  %5265 = vmatprep.subr.bf16.mxu1 (!%p5699_p1), %v6289_v46  ;;  %v6345_v46 = vld [vmem:[#allocation11 + $0x1c0] ss:$16 sps:$4 sm:$0xff] (!%p5699_p1)  }
 0x5f4   : > { %5184 = vmatpush1.bf16.msra.mxu0 (!%p5699_p1), %v6291_v42  ;;  %5266 = vmatpush1.bf16.msra.mxu1 (!%p5699_p1), %v6292_v43  ;;  %v6346_v43 = vld [vmem:[#allocation11 + $0x1c8] ss:$16 sps:$4 sm:$0xff] (!%p5699_p1)  }
 0x5f5   : > { %5185 = vmatprep.subr.bf16.mxu0 (!%p5699_p1), %v6293_v45  ;;  %5267 = vmatprep.subr.bf16.mxu1 (!%p5699_p1), %v6295_v51  ;;  %v6347_v45 = vld [vmem:[#allocation11 + $0x1e4] ss:$16 sps:$4 sm:$0xff] (!%p5699_p1)   ;;  %v6349_v51 = vld [vmem:[#allocation11 + $0x1ec] ss:$16 sps:$4 sm:$0xff] (!%p5699_p1)  }
 0x5f8   : > { %5186 = vmatpush1.bf16.msra.mxu0 (!%p5699_p1), %v6297_v47  ;;  %5268 = vmatpush1.bf16.msra.mxu1 (!%p5699_p1), %v6298_v48 }
 0x5f9   : > { %5187 = vmatprep.subr.bf16.mxu0 (!%p5699_p1), %v6299_v54  ;;  %5269 = vmatprep.subr.bf16.mxu1 (!%p5699_p1), %v6301_v52  ;;  %v6351_v52 = vld [vmem:[#allocation11 + $0x1e0] ss:$16 sps:$4 sm:$0xff] (!%p5699_p1)  }
 0x5fc   : > { %5188 = vmatpush1.bf16.msra.mxu0 (!%p5699_p1), %v6303_v53  ;;  %5270 = vmatpush1.bf16.msra.mxu1 (!%p5699_p1), %v6304_v57  ;;  %v6352_v53 = vld [vmem:[#allocation11 + $0x1e8] ss:$16 sps:$4 sm:$0xff] (!%p5699_p1)  }
 0x5fd   : > { %5189 = vmatprep.subr.bf16.mxu0 (!%p5699_p1), %v6305_v55  ;;  %5271 = vmatprep.subr.bf16.mxu1 (!%p5699_p1), %v6307_v60  ;;  %v6355_v55 = vld [vmem:[#allocation11 + $0x204] ss:$16 sps:$4 sm:$0xff] (!%p5699_p1)  }
 0x600   : > { %5190 = vmatpush1.bf16.msra.mxu0 (!%p5699_p1), %v6309_v15  ;;  %5272 = vmatpush1.bf16.msra.mxu1 (!%p5699_p1), %v6310_v58  ;;  %v6358_v15 = vld [vmem:[#allocation11 + $0x20c] ss:$16 sps:$4 sm:$0xff] (!%p5699_p1)  }
 0x601   : > { %5191 = vmatprep.subr.bf16.mxu0 (!%p5699_p1), %v6311_v59  ;;  %5273 = vmatprep.subr.bf16.mxu1 (!%p5699_p1), %v6313_v62  ;;  %v6353_v59 = vld [vmem:[#allocation11 + $0x200] ss:$16 sps:$4 sm:$0xff] (!%p5699_p1)  }
 0x604   : > { %5192 = vmatpush1.bf16.msra.mxu0 (!%p5699_p1), %v6315_v61  ;;  %5274 = vmatpush1.bf16.msra.mxu1 (!%p5699_p1), %v6316_v1  ;;  %v6356_v1 = vld [vmem:[#allocation11 + $0x208] ss:$16 sps:$4 sm:$0xff] (!%p5699_p1)  }
 0x605   : > { %5193 = vmatprep.subr.bf16.mxu0 (!%p5699_p1), %v6317_v9  ;;  %5275 = vmatprep.subr.bf16.mxu1 (!%p5699_p1), %v6319_v63  ;;  %v6361_v9 = vld [vmem:[#allocation11 + $0x224] ss:$16 sps:$4 sm:$0xff] (!%p5699_p1)   ;;  %v6364_v63 = vld [vmem:[#allocation11 + $0x22c] ss:$16 sps:$4 sm:$0xff] (!%p5699_p1)  }
 0x608   : > { %5194 = vmatpush1.bf16.msra.mxu0 (!%p5699_p1), %v6321_v0  ;;  %5276 = vmatpush1.bf16.msra.mxu1 (!%p5699_p1), %v6322_v50  ;;  %v6362_v50 = vld [vmem:[#allocation11 + $0x228] ss:$16 sps:$4 sm:$0xff] (!%p5699_p1)  }
 0x609   : > { %5195 = vmatprep.subr.bf16.mxu0 (!%p5699_p1), %v6323_v3  ;;  %v6367_v3 = vld [vmem:[#allocation11 + $0x244] ss:$16 sps:$4 sm:$0xff] (!%p5699_p1)  }
 0x6b2   : > { %v3426_v4 = vpop.f32.mrb[0].mxu0  ;;  %v4246_v5 = vpop.f32.mrb[0].mxu1 }
 0x6b3   : > { %v3428_v6 = vpop.f32.mrb[1].mxu0  ;;  %v4248_v10 = vpop.f32.mrb[1].mxu1 }
 0x6b4   : > { %v4257_v8 = vcombine.low %v3426_v4, %v3428_v6  ;;  %v4258_v13 = vcombine.low %v4246_v5, %v4248_v10  ;;  %v3430_v34 = vpop.f32.mrb[2].mxu0  ;;  %v4250_v11 = vpop.f32.mrb[2].mxu1  ;;  %v7935_v4 = vsub.s32 (!%p5699_p1), 2, %v7092_v38  ;;  %v6325_v5 = vld [vmem:[#allocation11 + $0x16c] ss:$16 sps:$4 sm:$0xff] (!%p5699_p1)   ;;  %v7938_v6 = vsub.s32 (!%p5699_p1), 3, %v7092_v38 }
 0x6b5   : > { %v3431_v12 = vpop.f32.mrb[3].mxu0  ;;  %v4251_v16 = vpop.f32.mrb[3].mxu1  ;;  %v6327_v10 = vld [vmem:[#allocation11 + $0x160] ss:$16 sps:$4 sm:$0xff] (!%p5699_p1)   ;;  %v6328_v34 = vld [vmem:[#allocation11 + $0x168] ss:$16 sps:$4 sm:$0xff] (!%p5699_p1)   ;;  %5277 = vmatprep.subr.bf16.mxu1 (!%p5699_p1), %v6325_v5 }
 0x6b6   : > { %v4265_v14 = vrot.slane %v4257_v8, %v7102_v49  ;;  %v4272_v19 = vrot.slane %v4258_v13, %v7102_v49  ;;  %4280 = sbr.rel (%p5699_p1) target bundleno = 2247 (0x8c7), region = 88  ;;  %v4282_v8 = vld [vmem:[#allocation8] sm:$0xf] (!%p5699_p1)  ;;  %v4319_v13 = vld [vmem:[#allocation9] sm:$0xf] (!%p5699_p1)  ;;  %5196 = vmatpush1.bf16.msra.mxu0 (!%p5699_p1), %v6327_v10  ;;  %5278 = vmatpush1.bf16.msra.mxu1 (!%p5699_p1), %v6328_v34 }
 0x6b7   : > { %v6329_v11 = vld [vmem:[#allocation11 + $0x184] ss:$16 sps:$4 sm:$0xff] (!%p5699_p1)   ;;  %v4287_v12 = vrot.slane (!%p5699_p1), %v4282_v8, %v7929_v2  ;;  %v4291_v16 = vrot.slane (!%p5699_p1), %v4282_v8, %v7932_v7  ;;  %v4324_v38 = vrot.slane (!%p5699_p1), %v4319_v13, %v7929_v2  ;;  %v4332_v18 = vrot.slane (!%p5699_p1), %v4319_v13, %v7935_v4  ;;  %v6370_v5 = vld [vmem:[#allocation11 + $0x24c] ss:$16 sps:$4 sm:$0xff] (!%p5699_p1)   ;;  %v6365_v10 = vld [vmem:[#allocation11 + $0x240] ss:$16 sps:$4 sm:$0xff] (!%p5699_p1)  }
 0x6b8   : > { %v4273_v26 = vcombine.low %v4265_v14, %v4272_v19  ;;  %v4295_v14 = vrot.slane (!%p5699_p1), %v4282_v8, %v7935_v4  ;;  %v6331_v19 = vld [vmem:[#allocation11 + $0x18c] ss:$16 sps:$4 sm:$0xff] (!%p5699_p1)   ;;  %v4336_v22 = vrot.slane (!%p5699_p1), %v4319_v13, %v7938_v6  ;;  %5197 = vmatprep.subr.bf16.mxu0 (!%p5699_p1), %v6329_v11  ;;  %v6371_v11 = vld [vmem:[#allocation11 + $0x260] ss:$16 sps:$4 sm:$0xff] (!%p5699_p1)  }
 0x6b9   : > { %5279 = vmatprep.subr.bf16.mxu1 (!%p5699_p1), %v6331_v19  ;;  %v6376_v34 = vld [vmem:[#allocation11 + $0x26c] ss:$16 sps:$4 sm:$0xff] (!%p5699_p1)   ;;  %v6377_v19 = vld [vmem:[#allocation11 + $0x280] ss:$16 sps:$4 sm:$0xff] (!%p5699_p1)  }
 0x6ba   : > { %v4275_v17 = vadd.f32 %v4273_v26, %v422_v28  ;;  %v4299_v28 = vrot.slane (!%p5699_p1), %v4282_v8, %v7938_v6  ;;  %v4328_v26 = vrot.slane (!%p5699_p1), %v4319_v13, %v7932_v7  ;;  %v4338_v27 = vcombine.low (!%p5699_p1), %v4332_v18, %v4336_v22  ;;  %5198 = vmatpush1.bf16.msra.mxu0 (!%p5699_p1), %v6333_v20  ;;  %v6368_v8 = vld [vmem:[#allocation11 + $0x248] ss:$16 sps:$4 sm:$0xff] (!%p5699_p1)   ;;  %v6373_v13 = vld [vmem:[#allocation11 + $0x264] ss:$16 sps:$4 sm:$0xff] (!%p5699_p1)   ;;  %v6394_v20 = vld [vmem:[#allocation11 + $0x2cc] ss:$16 sps:$4 sm:$0xff] (!%p5699_p1)  }
 0x6bb   : > { %5280 = vmatpush1.bf16.msra.mxu1 (!%p5699_p1), %v6334_v24  ;;  %5199 = vmatprep.subr.bf16.mxu0 (!%p5699_p1), %v6335_v25  ;;  %v6386_v18 = vld [vmem:[#allocation11 + $0x2a8] ss:$16 sps:$4 sm:$0xff] (!%p5699_p1)   ;;  %v6391_v22 = vld [vmem:[#allocation11 + $0x2c4] ss:$16 sps:$4 sm:$0xff] (!%p5699_p1)   ;;  %v6400_v25 = vld [vmem:[#allocation11 + $0x2ec] ss:$16 sps:$4 sm:$0xff] (!%p5699_p1)  }
 0x6bc   : > { %4276 = vst [vmem:[#allocation2] sm:$0xff] %v4275_v17  ;;  %v4300_v17 = vcombine.low (!%p5699_p1), %v4287_v12, %v4291_v16  ;;  %v4301_v21 = vcombine.low (!%p5699_p1), %v4295_v14, %v4299_v28  ;;  %v4337_v23 = vcombine.low (!%p5699_p1), %v4324_v38, %v4328_v26  ;;  %v4352_v35 = vrot.slane (!%p5699_p1), %v4338_v27, %v7102_v49  ;;  %v6374_v12 = vld [vmem:[#allocation11 + $0x268] ss:$16 sps:$4 sm:$0xff] (!%p5699_p1)   ;;  %v6379_v16 = vld [vmem:[#allocation11 + $0x284] ss:$16 sps:$4 sm:$0xff] (!%p5699_p1)  }
 0x6bd   : > { %5281 = vmatprep.subr.bf16.mxu1 %v6337_v32  ;;  %v6382_v14 = vld [vmem:[#allocation11 + $0x28c] ss:$16 sps:$4 sm:$0xff]   ;;  %v6380_v28 = vld [vmem:[#allocation11 + $0x288] ss:$16 sps:$4 sm:$0xff]   ;;  %v6385_v38 = vld [vmem:[#allocation11 + $0x2a4] ss:$16 sps:$4 sm:$0xff]  }
 0x6be   : > { %v4308_v29 = vrot.slane %v4300_v17, %v7102_v49  ;;  %v4315_v56 = vrot.slane %v4301_v21, %v7102_v49  ;;  %v4345_v30 = vrot.slane %v4337_v23, %v7102_v49  ;;  %5200 = vmatpush1.bf16.msra.mxu0 %v6339_v33  ;;  %v6388_v26 = vld [vmem:[#allocation11 + $0x2ac] ss:$16 sps:$4 sm:$0xff]   ;;  %v6383_v17 = vld [vmem:[#allocation11 + $0x2a0] ss:$16 sps:$4 sm:$0xff]   ;;  %v6392_v23 = vld [vmem:[#allocation11 + $0x2c8] ss:$16 sps:$4 sm:$0xff]  }
 0x6bf   : > { %5282 = vmatpush1.bf16.msra.mxu1 %v6340_v44  ;;  %5201 = vmatprep.subr.bf16.mxu0 %v6341_v36  ;;  %v6389_v21 = vld [vmem:[#allocation11 + $0x2c0] ss:$16 sps:$4 sm:$0xff]   ;;  %v6397_v24 = vld [vmem:[#allocation11 + $0x2e4] ss:$16 sps:$4 sm:$0xff]   ;;  %v6398_v27 = vld [vmem:[#allocation11 + $0x2e8] ss:$16 sps:$4 sm:$0xff]  }
 0x6c0   : > { %v4316_v39 = vcombine.low %v4308_v29, %v4315_v56  ;;  %v4353_v37 = vcombine.low %v4345_v30, %v4352_v35  ;;  %5283 = vmatprep.subr.bf16.mxu1 %v6343_v41  ;;  %v6395_v29 = vld [vmem:[#allocation11 + $0x2e0] ss:$16 sps:$4 sm:$0xff]   ;;  %v6403_v32 = vld [vmem:[#allocation11 + $0x304] ss:$16 sps:$4 sm:$0xff]   ;;  %v6406_v56 = vld [vmem:[#allocation11 + $0x30c] ss:$16 sps:$4 sm:$0xff]  }
 0x6c1   : > { %v6401_v30 = vld [vmem:[#allocation11 + $0x300] ss:$16 sps:$4 sm:$0xff]   ;;  %v6409_v35 = vld [vmem:[#allocation11 + $0x324] ss:$16 sps:$4 sm:$0xff]   ;;  %v6412_v33 = vld [vmem:[#allocation11 + $0x32c] ss:$16 sps:$4 sm:$0xff]  }
 0x6c2   : > { %5202 = vmatpush1.bf16.msra.mxu0 %v6345_v46  ;;  %v6410_v44 = vld [vmem:[#allocation11 + $0x328] ss:$16 sps:$4 sm:$0xff]   ;;  %v6415_v36 = vld [vmem:[#allocation11 + $0x344] ss:$16 sps:$4 sm:$0xff]   ;;  %v6413_v41 = vld [vmem:[#allocation11 + $0x340] ss:$16 sps:$4 sm:$0xff]  }
 0x6c3   : > { %v4281_v31 = vld [vmem:[#allocation2] sm:$0xff]  ;;  %5284 = vmatpush1.bf16.msra.mxu1 %v6346_v43  ;;  %5203 = vmatprep.subr.bf16.mxu0 %v6347_v45  ;;  %v6422_v45 = vld [vmem:[#allocation11 + $0x368] ss:$16 sps:$4 sm:$0xff]  }
 0x6c4   : > { %v4318_v40 = vmul.f32 %v4316_v39, %v4281_v31  ;;  %5285 = vmatprep.subr.bf16.mxu1 %v6349_v51  ;;  %v6404_v31 = vld [vmem:[#allocation11 + $0x308] ss:$16 sps:$4 sm:$0xff]   ;;  %v6407_v39 = vld [vmem:[#allocation11 + $0x320] ss:$16 sps:$4 sm:$0xff]   ;;  %v6421_v46 = vld [vmem:[#allocation11 + $0x364] ss:$16 sps:$4 sm:$0xff]  }
 0x6c5   : > { %v6419_v43 = vld [vmem:[#allocation11 + $0x360] ss:$16 sps:$4 sm:$0xff]   ;;  %v6427_v51 = vld [vmem:[#allocation11 + $0x384] ss:$16 sps:$4 sm:$0xff]  }
 0x6c6   : > { %v4355_v42 = vadd.f32 %v4353_v37, %v4318_v40  ;;  %5204 = vmatpush1.bf16.msra.mxu0 %v6351_v52  ;;  %v6418_v37 = vld [vmem:[#allocation11 + $0x34c] ss:$16 sps:$4 sm:$0xff]   ;;  %v6416_v40 = vld [vmem:[#allocation11 + $0x348] ss:$16 sps:$4 sm:$0xff]   ;;  %v6433_v52 = vld [vmem:[#allocation11 + $0x3a4] ss:$16 sps:$4 sm:$0xff]  }
 0x6c7   : > { %5286 = vmatpush1.bf16.msra.mxu1 %v6352_v53  ;;  %5214 = vmatprep.subr.bf16.mxu0 %v6355_v55  ;;  %v6436_v53 = vld [vmem:[#allocation11 + $0x3ac] ss:$16 sps:$4 sm:$0xff]   ;;  %v6434_v55 = vld [vmem:[#allocation11 + $0x3a8] ss:$16 sps:$4 sm:$0xff]  }
 0x6c8   : > { %v4356_v47 = vmax.f32 %v4355_v42, 0.0  ;;  %5296 = vmatprep.subr.bf16.mxu1 %v6358_v15  ;;  %v6424_v42 = vld [vmem:[#allocation11 + $0x36c] ss:$16 sps:$4 sm:$0xff]   ;;  %v6439_v15 = vld [vmem:[#allocation11 + $0x3c4] ss:$16 sps:$4 sm:$0xff]  }
 0x6ca   : > { %v4365_v48 = vrot.slane %v4356_v47, %v7102_v49  ;;  %v4358_v54 = vcombine.high %v4356_v47, %v4356_v47  ;;  %v6430_v47 = vld [vmem:[#allocation11 + $0x38c] ss:$16 sps:$4 sm:$0xff]  }
 0x6cc   : > { %v4373_v57 = vcombine.high %v4365_v48, %v4365_v48  ;;  %v7954_v60 = vrot.slane %v4358_v54, %v7102_v49  ;;  %v4379_v62 = vpack.c.bf16 %v4365_v48, %v4365_v48  ;;  %v6359_v49 = vld [vmem:[#allocation11 + $0x220] ss:$16 sps:$4 sm:$0xff]   ;;  %v6428_v54 = vld [vmem:[#allocation11 + $0x388] ss:$16 sps:$4 sm:$0xff]  }
 0x6cd   : > { %v6425_v48 = vld [vmem:[#allocation11 + $0x380] ss:$16 sps:$4 sm:$0xff]  }
 0x6ce   : > { %v4380_v58 = vpack.c.bf16 %v4373_v57, %v4373_v57  ;;  %v4374_v61 = vcombine.high %v7954_v60, %v7954_v60  ;;  %v6431_v57 = vld [vmem:[#allocation11 + $0x3a0] ss:$16 sps:$4 sm:$0xff]  }
 0x6d0   : > { %5205 = vmatprep.mubr.bf16.mxu0 %v4380_v58  ;;  %5287 = vmatprep.mubr.bf16.mxu1 %v4380_v58  ;;  %v4382_v0 = vpack.c.bf16 %v4374_v61, %v4374_v61  ;;  %v6442_v58 = vld [vmem:[#allocation11 + $0x3cc] ss:$16 sps:$4 sm:$0xff]   ;;  %v6445_v61 = vld [vmem:[#allocation11 + $0x3e4] ss:$16 sps:$4 sm:$0xff]  }
 0x6d1   : > { %5206 = vmatmul.mubr.bf16.vlgmr.msra.gmra.mrb[0].mxu0 %v4379_v62  ;;  %5288 = vmatmul.mubr.bf16.vlgmr.msra.gmra.mrb[0].mxu1 %v4379_v62  ;;  %v6440_v62 = vld [vmem:[#allocation11 + $0x3c8] ss:$16 sps:$4 sm:$0xff]  }
 0x6d2   : > { %5215 = vmatpush1.bf16.msra.mxu0 %v6353_v59  ;;  %5297 = vmatpush1.bf16.msra.mxu1 %v6356_v1  ;;  %v6437_v59 = vld [vmem:[#allocation11 + $0x3c0] ss:$16 sps:$4 sm:$0xff]   ;;  %v6448_v1 = vld [vmem:[#allocation11 + $0x3ec] ss:$16 sps:$4 sm:$0xff]  }
 0x6d3   : > { %5216 = vmatprep.subr.bf16.mxu0 %v6361_v9  ;;  %5298 = vmatprep.subr.bf16.mxu1 %v6364_v63  ;;  %v5357_v9 = vld [vmem:[%s8198_s6 + $0x80] sm:$0xff]  ;;  %v5358_v63 = vld [vmem:[%s8198_s6 + $0x88] sm:$0xff] }
 0x6d4   : > { %5246 = vmatprep.mubr.bf16.mxu0 %v4382_v0  ;;  %5328 = vmatprep.mubr.bf16.mxu1 %v4382_v0  ;;  %v5389_v0 = vld [vmem:[%s8198_s6 + $0x180] sm:$0xff] }
 0x6d6   : > { %5217 = vmatpush1.bf16.msra.mxu0 %v6359_v49  ;;  %5299 = vmatpush1.bf16.msra.mxu1 %v6362_v50  ;;  %v5390_v49 = vld [vmem:[%s8198_s6 + $0x188] sm:$0xff]  ;;  %v6443_v50 = vld [vmem:[#allocation11 + $0x3e0] ss:$16 sps:$4 sm:$0xff]  }
 0x6d7   : > { %5218 = vmatprep.subr.bf16.mxu0 %v6367_v3  ;;  %5300 = vmatprep.subr.bf16.mxu1 %v6370_v5  ;;  %v6446_v3 = vld [vmem:[#allocation11 + $0x3e8] ss:$16 sps:$4 sm:$0xff]   ;;  %v5341_v5 = vld [vmem:[%s8198_s6] sm:$0xff] }
 0x6da   : > { %5219 = vmatpush1.bf16.msra.mxu0 %v6365_v10  ;;  %5301 = vmatpush1.bf16.msra.mxu1 %v6368_v8  ;;  %v5342_v10 = vld [vmem:[%s8198_s6 + $0x8] sm:$0xff]  ;;  %v5907_v8 = vpack.c.bf16 %v5358_v63, %v5357_v9  ;;  %v5367_v63 = vld [vmem:[%s8198_s6 + $0xd0] sm:$0xff] }
 0x6db   : > { %5220 = vmatprep.subr.bf16.mxu0 %v6373_v13  ;;  %5302 = vmatprep.subr.bf16.mxu1 %v6376_v34  ;;  %v5939_v13 = vpack.c.bf16 %v5390_v49, %v5389_v0  ;;  %v5373_v34 = vld [vmem:[%s8198_s6 + $0x100] sm:$0xff]  ;;  %v5382_v9 = vld [vmem:[%s8198_s6 + $0x148] sm:$0xff]  ;;  %v5368_v0 = vld [vmem:[%s8198_s6 + $0xd8] sm:$0xff] }
 0x6dc   : > { %v5399_v49 = vld [vmem:[%s8198_s6 + $0x1d0] sm:$0xff] }
 0x6de   : > { %5221 = vmatpush1.bf16.msra.mxu0 %v6371_v11  ;;  %5303 = vmatpush1.bf16.msra.mxu1 %v6374_v12  ;;  %v5374_v11 = vld [vmem:[%s8198_s6 + $0x108] sm:$0xff]  ;;  %v5359_v12 = vld [vmem:[%s8198_s6 + $0x90] sm:$0xff] }
 0x6df   : > { %5222 = vmatprep.subr.bf16.mxu0 %v6379_v16  ;;  %5304 = vmatprep.subr.bf16.mxu1 %v6382_v14  ;;  %v5360_v16 = vld [vmem:[%s8198_s6 + $0x98] sm:$0xff]  ;;  %v5391_v14 = vld [vmem:[%s8198_s6 + $0x190] sm:$0xff] }
 0x6e2   : > { %5223 = vmatpush1.bf16.msra.mxu0 %v6377_v19  ;;  %5305 = vmatpush1.bf16.msra.mxu1 %v6380_v28  ;;  %v5392_v19 = vld [vmem:[%s8198_s6 + $0x198] sm:$0xff]  ;;  %v4381_v28 = vpack.c.bf16 %v7954_v60, %v7954_v60  ;;  %v5375_v60 = vld [vmem:[%s8198_s6 + $0x110] sm:$0xff] }
 0x6e3   : > { %5224 = vmatprep.subr.bf16.mxu0 %v6385_v38  ;;  %5306 = vmatprep.subr.bf16.mxu1 %v6388_v26  ;;  %v5909_v38 = vpack.c.bf16 %v5342_v10, %v5341_v5  ;;  %v5941_v26 = vpack.c.bf16 %v5374_v11, %v5373_v34  ;;  %v5351_v10 = vld [vmem:[%s8198_s6 + $0x50] sm:$0xff] }
 0x6e4   : > { %v5383_v11 = vld [vmem:[%s8198_s6 + $0x150] sm:$0xff] }
 0x6e6   : > { %5225 = vmatpush1.bf16.msra.mxu0 %v6383_v17  ;;  %5307 = vmatpush1.bf16.msra.mxu1 %v6386_v18  ;;  %v5343_v17 = vld [vmem:[%s8198_s6 + $0x10] sm:$0xff]  ;;  %v5344_v18 = vld [vmem:[%s8198_s6 + $0x18] sm:$0xff] }
 0x6e7   : > { %5226 = vmatprep.subr.bf16.mxu0 %v6391_v22  ;;  %5308 = vmatprep.subr.bf16.mxu1 %v6394_v20  ;;  %v5911_v22 = vpack.c.bf16 %v5360_v16, %v5359_v12  ;;  %v5943_v20 = vpack.c.bf16 %v5392_v19, %v5391_v14  ;;  %v5384_v12 = vld [vmem:[%s8198_s6 + $0x158] sm:$0xff]  ;;  %v5369_v16 = vld [vmem:[%s8198_s6 + $0xe0] sm:$0xff]  ;;  %v5370_v14 = vld [vmem:[%s8198_s6 + $0xe8] sm:$0xff] }
 0x6e8   : > { %v5401_v19 = vld [vmem:[%s8198_s6 + $0x1e0] sm:$0xff] }
 0x6ea   : > { %5227 = vmatpush1.bf16.msra.mxu0 %v6389_v21  ;;  %5309 = vmatpush1.bf16.msra.mxu1 %v6392_v23  ;;  %v5376_v21 = vld [vmem:[%s8198_s6 + $0x118] sm:$0xff]  ;;  %v5361_v23 = vld [vmem:[%s8198_s6 + $0xa0] sm:$0xff] }
 0x6eb   : > { %5228 = vmatprep.subr.bf16.mxu0 %v6397_v24  ;;  %5310 = vmatprep.subr.bf16.mxu1 %v6400_v25  ;;  %v5362_v24 = vld [vmem:[%s8198_s6 + $0xa8] sm:$0xff]  ;;  %v5393_v25 = vld [vmem:[%s8198_s6 + $0x1a0] sm:$0xff] }
 0x6ee   : > { %5229 = vmatpush1.bf16.msra.mxu0 %v6395_v29  ;;  %5311 = vmatpush1.bf16.msra.mxu1 %v6398_v27  ;;  %v5394_v29 = vld [vmem:[%s8198_s6 + $0x1a8] sm:$0xff]  ;;  %v5913_v27 = vpack.c.bf16 %v5344_v18, %v5343_v17  ;;  %v5931_v17 = vpack.c.bf16 %v5370_v14, %v5369_v16 }
 0x6ef   : > { %5230 = vmatprep.subr.bf16.mxu0 %v6403_v32  ;;  %5312 = vmatprep.subr.bf16.mxu1 %v6406_v56  ;;  %v5945_v32 = vpack.c.bf16 %v5376_v21, %v5375_v60  ;;  %v5345_v56 = vld [vmem:[%s8198_s6 + $0x20] sm:$0xff] }
 0x6f0   : > { %v5385_v60 = vld [vmem:[%s8198_s6 + $0x160] sm:$0xff] }
 0x6f2   : > { %5231 = vmatpush1.bf16.msra.mxu0 %v6401_v30  ;;  %5313 = vmatpush1.bf16.msra.mxu1 %v6404_v31  ;;  %v5346_v30 = vld [vmem:[%s8198_s6 + $0x28] sm:$0xff]  ;;  %v5915_v31 = vpack.c.bf16 %v5362_v24, %v5361_v23 }
 0x6f3   : > { %5232 = vmatprep.subr.bf16.mxu0 %v6409_v35  ;;  %5314 = vmatprep.subr.bf16.mxu1 %v6412_v33  ;;  %v5947_v35 = vpack.c.bf16 %v5394_v29, %v5393_v25  ;;  %v5377_v33 = vld [vmem:[%s8198_s6 + $0x120] sm:$0xff]  ;;  %v5386_v23 = vld [vmem:[%s8198_s6 + $0x168] sm:$0xff]  ;;  %v5371_v25 = vld [vmem:[%s8198_s6 + $0xf0] sm:$0xff] }
 0x6f4   : > { %v5965_v24 = vpack.c.bf16 %v5386_v23, %v5385_v60  ;;  %v5372_v29 = vld [vmem:[%s8198_s6 + $0xf8] sm:$0xff] }
 0x6f6   : > { %5233 = vmatpush1.bf16.msra.mxu0 %v6407_v39  ;;  %5315 = vmatpush1.bf16.msra.mxu1 %v6410_v44  ;;  %v5378_v39 = vld [vmem:[%s8198_s6 + $0x128] sm:$0xff]  ;;  %v5363_v44 = vld [vmem:[%s8198_s6 + $0xb0] sm:$0xff] }
 0x6f7   : > { %5234 = vmatprep.subr.bf16.mxu0 %v6415_v36  ;;  %5316 = vmatprep.subr.bf16.mxu1 %v6418_v37  ;;  %v5364_v36 = vld [vmem:[%s8198_s6 + $0xb8] sm:$0xff]  ;;  %v5395_v37 = vld [vmem:[%s8198_s6 + $0x1b0] sm:$0xff] }
 0x6fa   : > { %5235 = vmatpush1.bf16.msra.mxu0 %v6413_v41  ;;  %5317 = vmatpush1.bf16.msra.mxu1 %v6416_v40  ;;  %v5396_v41 = vld [vmem:[%s8198_s6 + $0x1b8] sm:$0xff]  ;;  %v5917_v40 = vpack.c.bf16 %v5346_v30, %v5345_v56  ;;  %v5355_v30 = vld [vmem:[%s8198_s6 + $0x70] sm:$0xff] }
 0x6fb   : > { %5236 = vmatprep.subr.bf16.mxu0 %v6421_v46  ;;  %5318 = vmatprep.subr.bf16.mxu1 %v6424_v42  ;;  %v5949_v46 = vpack.c.bf16 %v5378_v39, %v5377_v33  ;;  %v5347_v42 = vld [vmem:[%s8198_s6 + $0x30] sm:$0xff]  ;;  %v5404_v56 = vld [vmem:[%s8198_s6 + $0x1f8] sm:$0xff] }
 0x6fc   : > { %v5387_v39 = vld [vmem:[%s8198_s6 + $0x170] sm:$0xff] }
 0x6fe   : > { %5237 = vmatpush1.bf16.msra.mxu0 %v6419_v43  ;;  %5319 = vmatpush1.bf16.msra.mxu1 %v6422_v45  ;;  %v5348_v43 = vld [vmem:[%s8198_s6 + $0x38] sm:$0xff]  ;;  %v5919_v45 = vpack.c.bf16 %v5364_v36, %v5363_v44 }
 0x6ff   : > { %5238 = vmatprep.subr.bf16.mxu0 %v6427_v51  ;;  %5320 = vmatprep.subr.bf16.mxu1 %v6430_v47  ;;  %v5951_v51 = vpack.c.bf16 %v5396_v41, %v5395_v37  ;;  %v5379_v47 = vld [vmem:[%s8198_s6 + $0x130] sm:$0xff]  ;;  %v5388_v44 = vld [vmem:[%s8198_s6 + $0x178] sm:$0xff] }
 0x700   : > { %v5969_v36 = vpack.c.bf16 %v5388_v44, %v5387_v39  ;;  %v4511_v37 = vld [vmem:[#allocation12] sm:$0xf] }
 0x701   : > { %v4516_v41 = vrot.slane %v4511_v37, %v7929_v2 }
 0x702   : > { %5239 = vmatpush1.bf16.msra.mxu0 %v6425_v48  ;;  %5321 = vmatpush1.bf16.msra.mxu1 %v6428_v54  ;;  %v5380_v48 = vld [vmem:[%s8198_s6 + $0x138] sm:$0xff]  ;;  %v5365_v54 = vld [vmem:[%s8198_s6 + $0xc0] sm:$0xff] }
 0x703   : > { %5240 = vmatprep.subr.bf16.mxu0 %v6433_v52  ;;  %5322 = vmatprep.subr.bf16.mxu1 %v6436_v53  ;;  %v5366_v52 = vld [vmem:[%s8198_s6 + $0xc8] sm:$0xff]  ;;  %v5397_v53 = vld [vmem:[%s8198_s6 + $0x1c0] sm:$0xff] }
 0x706   : > { %5241 = vmatpush1.bf16.msra.mxu0 %v6431_v57  ;;  %5323 = vmatpush1.bf16.msra.mxu1 %v6434_v55  ;;  %v5398_v57 = vld [vmem:[%s8198_s6 + $0x1c8] sm:$0xff]  ;;  %v5921_v55 = vpack.c.bf16 %v5348_v43, %v5347_v42  ;;  %v4528_v42 = vrot.slane %v4511_v37, %v7938_v6 }
 0x707   : > { %5242 = vmatprep.subr.bf16.mxu0 %v6439_v15  ;;  %5324 = vmatprep.subr.bf16.mxu1 %v6442_v58  ;;  %v5953_v15 = vpack.c.bf16 %v5380_v48, %v5379_v47  ;;  %v5349_v58 = vld [vmem:[%s8198_s6 + $0x40] sm:$0xff] }
 0x70a   : > { %5243 = vmatpush1.bf16.msra.mxu0 %v6437_v59  ;;  %5325 = vmatpush1.bf16.msra.mxu1 %v6440_v62  ;;  %v5350_v59 = vld [vmem:[%s8198_s6 + $0x48] sm:$0xff]  ;;  %v5923_v62 = vpack.c.bf16 %v5366_v52, %v5365_v54 }
 0x70b   : > { %5244 = vmatprep.subr.bf16.mxu0 %v6445_v61  ;;  %5326 = vmatprep.subr.bf16.mxu1 %v6448_v1  ;;  %v5955_v61 = vpack.c.bf16 %v5398_v57, %v5397_v53  ;;  %v5381_v1 = vld [vmem:[%s8198_s6 + $0x140] sm:$0xff] }
 0x70c   : > { %v5957_v5 = vpack.c.bf16 %v5382_v9, %v5381_v1 }
 0x70e   : > { %5245 = vmatpush1.bf16.msra.mxu0 %v6443_v50  ;;  %5327 = vmatpush1.bf16.msra.mxu1 %v6446_v3  ;;  %v5400_v50 = vld [vmem:[%s8198_s6 + $0x1d8] sm:$0xff]  ;;  %v5925_v3 = vpack.c.bf16 %v5350_v59, %v5349_v58 }
 0x70f   : > { %5908 = vmatprep.subr.bf16.mxu0 %v5907_v8  ;;  %5940 = vmatprep.subr.bf16.mxu1 %v5939_v13  ;;  %v5352_v8 = vld [vmem:[%s8198_s6 + $0x58] sm:$0xff]  ;;  %v5927_v13 = vpack.c.bf16 %v5368_v0, %v5367_v63  ;;  %v5959_v34 = vpack.c.bf16 %v5400_v50, %v5399_v49 }
 0x711   : > { %5247 = vmatmul.mubr.bf16.vlgmr.msra.gmra.mrb[0].mxu0 %v4381_v28  ;;  %5329 = vmatmul.mubr.bf16.vlgmr.msra.gmra.mrb[0].mxu1 %v4381_v28  ;;  %v5402_v28 = vld [vmem:[%s8198_s6 + $0x1e8] sm:$0xff] }
 0x712   : > { %5910 = vmatpush3.bf16.msra.mxu0 %v5909_v38  ;;  %5942 = vmatpush3.bf16.msra.mxu1 %v5941_v26  ;;  %v5929_v38 = vpack.c.bf16 %v5352_v8, %v5351_v10  ;;  %v5961_v26 = vpack.c.bf16 %v5384_v12, %v5383_v11  ;;  %v5963_v18 = vpack.c.bf16 %v5402_v28, %v5401_v19 }
 0x713   : > { %5912 = vmatprep.subr.bf16.mxu0 %v5911_v22  ;;  %5944 = vmatprep.subr.bf16.mxu1 %v5943_v20  ;;  %v5353_v22 = vld [vmem:[%s8198_s6 + $0x60] sm:$0xff]  ;;  %v5354_v20 = vld [vmem:[%s8198_s6 + $0x68] sm:$0xff] }
 0x714   : > { %v5933_v21 = vpack.c.bf16 %v5354_v20, %v5353_v22 }
 0x716   : > { %5914 = vmatpush3.bf16.msra.mxu0 %v5913_v27  ;;  %5946 = vmatpush3.bf16.msra.mxu1 %v5945_v32  ;;  %v5403_v27 = vld [vmem:[%s8198_s6 + $0x1f0] sm:$0xff]  ;;  %v5935_v32 = vpack.c.bf16 %v5372_v29, %v5371_v25 }
 0x717   : > { %5916 = vmatprep.subr.bf16.mxu0 %v5915_v31  ;;  %5948 = vmatprep.subr.bf16.mxu1 %v5947_v35  ;;  %v5356_v31 = vld [vmem:[%s8198_s6 + $0x78] sm:$0xff]  ;;  %v5967_v35 = vpack.c.bf16 %v5404_v56, %v5403_v27 }
 0x718   : > { %v5937_v33 = vpack.c.bf16 %v5356_v31, %v5355_v30 }
 0x71a   : > { %5918 = vmatpush3.bf16.msra.mxu0 %v5917_v40  ;;  %5950 = vmatpush3.bf16.msra.mxu1 %v5949_v46  ;;  %v4524_v40 = vrot.slane %v4511_v37, %v7935_v4  ;;  %v4520_v46 = vrot.slane %v4511_v37, %v7932_v7 }
 0x71b   : > { %5920 = vmatprep.subr.bf16.mxu0 %v5919_v45  ;;  %5952 = vmatprep.subr.bf16.mxu1 %v5951_v51 }
 0x71e   : > { %5922 = vmatpush3.bf16.msra.mxu0 %v5921_v55  ;;  %5954 = vmatpush3.bf16.msra.mxu1 %v5953_v15 }
 0x71f   : > { %5924 = vmatprep.subr.bf16.mxu0 %v5923_v62  ;;  %5956 = vmatprep.subr.bf16.mxu1 %v5955_v61  ;;  %v5828_v61 = vld [vmem:[#allocation14] ss:$0 sm:$0xff] }
 0x722   : > { %5926 = vmatpush3.bf16.msra.mxu0 %v5925_v3  ;;  %5958 = vmatpush3.bf16.msra.mxu1 %v5957_v5 }
 0x723   : > { %5928 = vmatprep.subr.bf16.mxu0 %v5927_v13  ;;  %5960 = vmatprep.subr.bf16.mxu1 %v5959_v34 }
 0x726   : > { %5930 = vmatpush3.bf16.msra.mxu0 %v5929_v38  ;;  %5962 = vmatpush3.bf16.msra.mxu1 %v5961_v26 }
 0x727   : > { %5932 = vmatprep.subr.bf16.mxu0 %v5931_v17  ;;  %5964 = vmatprep.subr.bf16.mxu1 %v5963_v18 }
 0x72a   : > { %5934 = vmatpush3.bf16.msra.mxu0 %v5933_v21  ;;  %5966 = vmatpush3.bf16.msra.mxu1 %v5965_v24 }
 0x72b   : > { %5936 = vmatprep.subr.bf16.mxu0 %v5935_v32  ;;  %5968 = vmatprep.subr.bf16.mxu1 %v5967_v35 }
 0x72e   : > { %5938 = vmatpush3.bf16.msra.mxu0 %v5937_v33  ;;  %5970 = vmatpush3.bf16.msra.mxu1 %v5969_v36 }
 0x7e4   : > { %v5248_v43 = vpop.f32.mrb[0].mxu0  ;;  %v5330_v45 = vpop.f32.mrb[0].mxu1 }
 0x7e5   : > { %v6123_v51 = vadd.f32 %v5248_v43, %v4516_v41  ;;  %v6125_v47 = vadd.f32 %v5330_v45, %v4524_v40  ;;  %v5250_v48 = vpop.f32.mrb[1].mxu0  ;;  %v5332_v54 = vpop.f32.mrb[1].mxu1 }
 0x7e6   : > { %v6124_v52 = vadd.f32 %v5250_v48, %v4520_v46  ;;  %v6126_v53 = vadd.f32 %v5332_v54, %v4528_v42  ;;  %v5252_v57 = vpop.f32.mrb[2].mxu0  ;;  %v5334_v55 = vpop.f32.mrb[2].mxu1 }
 0x7e7   : > { %v5253_v15 = vpop.f32.mrb[3].mxu0  ;;  %v5335_v58 = vpop.f32.mrb[3].mxu1  ;;  %v5337_v62 = vmax.f32 %v6123_v51, 0.0  ;;  %v5339_v4 = vmax.f32 %v6125_v47, 0.0 }
 0x7e8   : > { %v5338_v59 = vmax.f32 %v6124_v52, 0.0  ;;  %v5340_v2 = vmax.f32 %v6126_v53, 0.0 }
 0x7ea   : > { %5476 = vmatprep.mubr.f32.mxu0 %v5338_v59  ;;  %5546 = vmatprep.mubr.f32.mxu1 %v5340_v2 }
 0x7eb   : > { %5477 = vmatmul.mubr.f32.vlgmr.msra.gmra.mrb[4].mxu0 %v5337_v62  ;;  %5547 = vmatmul.mubr.f32.vlgmr.msra.gmra.mrb[4].mxu1 %v5339_v4 }
 0x8be   : > { %v5869_v7 = vpop.f32.mrb[4].mxu0  ;;  %v5904_v6 = vpop.f32.mrb[4].mxu1 }
 0x8bf   : > { %v5870_v1 = vpop.f32.mrb[5].mxu0  ;;  %v5905_v9 = vpop.f32.mrb[5].mxu1 }
 0x8c0   : > { %v5871_v63 = vadd.f32 %v5870_v1, %v5869_v7  ;;  %v5906_v0 = vadd.f32 %v5905_v9, %v5904_v6 }
 0x8c2   : > { %v5479_v49 = vadd.f32 %v5871_v63, %v5828_v61 }
 0x8c4   : > { %v5549_v50 = vadd.f32 %v5906_v0, %v5479_v49 }
 0x8c6   : > { %5553 = vst.msk [vmem:[#allocation15] sm:$0x3] %vm5552_vm0, %v5549_v50 }
 0x8c7 PF: > { %p6201_p11 = scmp.eq.s32.totalorder %s6811_s11, 2  ;;  %s6744_s9 = smov [#allocation15]  }
 0x8c8   : > { %s5561_s16 = sshll.u32 %s6744_s9, 4  ;;  %s5562_s16 = int_to_ptr.vmem [resolvable:$true] %s5561_s16 }
 0x8c9   : > { %s6649_s26 = scalar_lea.vmem %s5562_s16, 32  ;;  %p6656_p7 = scmp.lt.s32.totalorder %s5562_s16, %s5562_s16 }
 0x8ca   : > { %p6650_p4 = scmp.ne.s32.totalorder %s5562_s16, %s6649_s26  ;;  %p6657_p10 = scmp.lt.s32.totalorder %s6649_s26, %s6649_s26 }
 0x8cc   : > { %p6651_p0 = pnand %p6650_p4, %p6201_p11  ;;  %p6658_p6 = por %p6657_p10, %p6656_p7 }
 0x8ce   : > { %p6652_p2 = pneg %p6651_p0 }
 0x8d0   : > { %p6659_p13 = pnand %p6658_p6, %p6652_p2 }
 0x8d2   : > { %6662 = shalt.err (!%p6659_p13)
}
 0x8d3   : > { %s6663_s23 = scalar_lea.hbm %s8200_s8, 32 }
 0x8d4   : > { %p6664_p9 = scmp.ne.s32.totalorder %s8200_s8, %s6663_s23  ;;  %p6669_p8 = scmp.lt.u32.totalorder %s6663_s23, %s8200_s8 }
 0x8d6   : > { %p6665_p3 = pnand %p6664_p9, %p6201_p11 }
 0x8d8   : > { %p6666_p12 = pneg %p6665_p3 }
 0x8da   : > { %p6671_p5 = pnand %p6669_p8, %p6666_p12 }
 0x8dc   : > { %6674 = shalt.err (!%p6671_p5)
}
 0x8dd   : > { %6164 = dma.vmem_to_hbm [thread:$0]  (%p6201_p11), %s5562_s16, 32, %s8200_s8, [#allocation5]  }
 0x8de   : > { %6712 = dma.done.wait (%p6201_p11), [#allocation5], 32  }
 0x8df   : > { %6714 = vsyncadd (%p6201_p11), [#allocation5], 4294967264 }
 0x8e0 PF: > { %p24_p1 = scmp.ge.s32.totalorder %s6950_s25, 5   ;;  %s8219_s27 = smov %s6721_s28 }
 0x8e1   : > { %s8220_s28 = smov %s6725_s29  ;;  %s8221_s29 = smov %s6961_s10 }
 0x8e2   : > { %s8222_s30 = smov %s6950_s25  ;;  %26 = sbr.rel (!%p24_p1) target bundleno = 10 (0xa), region = 130 }
 0x8e9   :  { %5574 = vsyncpa [#allocation4], 1 }
 0x8ea   :  { %5576 = vsyncpa [#allocation4 + $0x1], 1 }
 0x8eb   :  { %5577 = vsyncpa [#allocation7], 1 }
 0x8ec   :  { %5579 = vsyncpa [#allocation7 + $0x1], 1 }
 0x8ed   :  { %5580 = vsyncpa [#allocation10], 1 }
 0x8ee   :  { %5581 = vsyncpa [#allocation13], 1 }
 0x8ef   :  { %5582 = vsyncpa [#allocation5], 1 }
 0x8f0   :  { %5584 = vsyncpa [#allocation5 + $0x1], 1 }

</bundles_post_ra>
